<compile_context>
chip_gen: v6e
topology: v6e:2x2x1
jax: 0.10.0
libtpu: 0.0.40
codegen_flags: <defaults>
</compile_context>

<pallas_src>
import functools

import jax
import jax.numpy as jnp
from jax.experimental import pallas as pl
from jax.experimental.pallas import tpu as pltpu


def _window_attention_kernel(x_ref, wqkv_ref, bqkv_ref, bias_ref, wproj_ref,
                             bproj_ref, o_ref, *, num_heads):
    """One grid step == Bw windows (all heads), fully resident in VMEM."""
    bw, n, c = x_ref.shape
    hd = c // num_heads
    cdt = x_ref.dtype                                 # matmul-operand dtype (bf16 by default)

    # Fused QKV projection on the MXU for all Bw windows at once.
    # (qk scale is already folded into the Q columns of W_qkv / b_qkv.)
    x2 = x_ref[...].reshape(bw * n, c)                          # leading-dim merge, cheap
    qkv = jnp.dot(x2, wqkv_ref[...], preferred_element_type=jnp.float32)
    qkv = qkv + bqkv_ref[...]                                   # (bw*n, 3c) f32

    bias = bias_ref[...]                                        # (nwb, H, n, n) f32: rpb (+ mask)
    nwb = bias.shape[0]
    reps = bw // nwb

    y = None                                                    # f32 (bw*n, c) proj accumulator
    for h in range(num_heads):                                  # static, short unroll
        lo = h * hd
        q_h = qkv[:, lo:lo + hd].astype(cdt).reshape(bw, n, hd)
        k_h = qkv[:, c + lo:c + lo + hd].astype(cdt).reshape(bw, n, hd)
        v_h = qkv[:, 2 * c + lo:2 * c + lo + hd].astype(cdt).reshape(bw, n, hd)

        # q @ k^T, batched over the Bw windows in this step.
        attn = jnp.einsum('bqd,bkd->bqk', q_h, k_h,
                          preferred_element_type=jnp.float32)   # (bw, n, n) f32

        # Single combined bias add (relative-position bias, plus mask if present).
        b_h = bias[:, h]                                        # (nwb, n, n)
        if nwb == 1 or nwb == bw:
            attn = attn + b_h
        else:  # bw is a multiple of nwb: mask pattern repeats every nwb windows
            attn = (attn.reshape(reps, nwb, n, n) + b_h[None]).reshape(bw, n, n)

        # Numerically-stable softmax in f32; the divide goes to the EUP.
        attn = attn - jnp.max(attn, axis=-1, keepdims=True)
        attn = jnp.exp(attn)
        attn = attn * pl.reciprocal(jnp.sum(attn, axis=-1, keepdims=True), approx=True)

        ctx_h = jnp.einsum('bqk,bkd->bqd', attn.astype(cdt), v_h,
                           preferred_element_type=jnp.float32)  # (bw, n, hd) f32

        # Head-concat folded into the output projection: y += ctx_h @ W_proj[h].
        part = jnp.dot(ctx_h.reshape(bw * n, hd).astype(cdt), wproj_ref[h],
                       preferred_element_type=jnp.float32)      # (bw*n, c) f32
        y = part if y is None else y + part

    y = y + bproj_ref[...]                                      # (1, c) f32 bias broadcast
    # attn_drop / proj_drop are p=0.0 -> identity.
    o_ref[...] = y.reshape(bw, n, c).astype(o_ref.dtype)


def make_relative_position_index(window_size):
    """Matches the PyTorch buffer construction (torch.meshgrid default 'ij')."""
    Wh, Ww = window_size
    coords = jnp.stack(jnp.meshgrid(jnp.arange(Wh), jnp.arange(Ww), indexing="ij"))
    coords_flat = coords.reshape(2, -1)                                  # (2, N)
    rel = coords_flat[:, :, None] - coords_flat[:, None, :]              # (2, N, N)
    rel = rel.transpose(1, 2, 0)                                         # (N, N, 2)
    rel = rel.at[:, :, 0].add(Wh - 1)
    rel = rel.at[:, :, 1].add(Ww - 1)
    rel = rel.at[:, :, 0].multiply(2 * Ww - 1)
    return rel.sum(-1)                                                   # (N, N) int32


def _pick_windows_per_step(B_, nW, has_mask, max_bw=16):
    """Largest Bw dividing B_ (<= max_bw) that keeps >= 2 grid steps when possible
    and is compatible with the per-window mask pattern."""
    def ok(bw):
        if B_ % bw != 0:
            return False
        if has_mask and not (bw % nW == 0 or nW % bw == 0):
            return False
        return True
    cands = [bw for bw in range(1, min(B_, max_bw) + 1) if ok(bw)]
    multi_step = [bw for bw in cands if B_ // bw >= 2]
    return max(multi_step) if multi_step else max(cands)


def window_attention_pallas(x, w_qkv, b_qkv, w_proj, b_proj,
                            rpb_table, relative_position_index, num_heads,
                            mask=None, qk_scale=None,
                            compute_dtype=jnp.bfloat16, windows_per_step=None):
    """x: (B_, N, C) = (num_windows*B, Wh*Ww, dim). Returns (B_, N, C) in x.dtype."""
    B_, N, C = x.shape
    assert C % num_heads == 0
    hd = C // num_heads
    scale = float(qk_scale) if qk_scale is not None else float(hd) ** (-0.5)
    out_dtype = x.dtype
    cdt = compute_dtype if compute_dtype is not None else x.dtype

    # Fold the qk scale into the Q columns of W_qkv / b_qkv (free parameter transform).
    scale_vec = jnp.concatenate([jnp.full((C,), scale, jnp.float32),
                                 jnp.ones((2 * C,), jnp.float32)])
    w_qkv_s = w_qkv.astype(jnp.float32) * scale_vec[None, :]
    b_qkv_s = (b_qkv.astype(jnp.float32) * scale_vec).reshape(1, 3 * C)
    b_proj2 = b_proj.astype(jnp.float32).reshape(1, C)

    # Matmul operands (bf16 by default); f32 accumulation happens in the kernel.
    x_c = x.astype(cdt)
    w_qkv_c = w_qkv_s.astype(cdt)
    # Per-head row blocks of W_proj so the head-concat fuses into the projection.
    w_proj_c = w_proj.astype(cdt).reshape(num_heads, hd, C)

    # Relative-position-bias gather (parameter-only) combined with the window mask.
    rpb = rpb_table[relative_position_index.reshape(-1)]
    rpb = rpb.reshape(N, N, num_heads).transpose(2, 0, 1).astype(jnp.float32)  # (H, N, N)

    has_mask = mask is not None
    if has_mask:
        nW = mask.shape[0]
        assert B_ % nW == 0, "batch must be a multiple of the number of masked windows"
        bias = rpb[None] + mask.astype(jnp.float32)[:, None]                  # (nW, H, N, N)
    else:
        nW = 1
        bias = rpb[None]                                                      # (1, H, N, N)

    bw = windows_per_step or _pick_windows_per_step(B_, nW, has_mask)
    assert B_ % bw == 0, "windows_per_step must divide B_"
    if has_mask:
        assert bw % nW == 0 or nW % bw == 0, "windows_per_step incompatible with mask period"

    # Bias block along the window axis: full-resident when bw covers whole mask
    # periods, otherwise one (bw, H, N, N) slice per step selected by index_map.
    if not has_mask:
        nwb = 1
    elif bw % nW == 0:
        nwb = nW
    else:
        nwb = bw
    n_bias_blocks = bias.shape[0] // nwb
    bias_index_map = lambda b: (b % n_bias_blocks, 0, 0, 0)

    kernel = functools.partial(_window_attention_kernel, num_heads=num_heads)

    out = pl.pallas_call(
        kernel,
        out_shape=jax.ShapeDtypeStruct((B_, N, C), out_dtype),
        grid_spec=pltpu.PrefetchScalarGridSpec(
            num_scalar_prefetch=0,
            grid=(B_ // bw,),
            in_specs=[
                pl.BlockSpec((bw, N, C), lambda b: (b, 0, 0)),            # x (Bw windows)
                pl.BlockSpec((C, 3 * C), lambda b: (0, 0)),               # W_qkv (scale folded)
                pl.BlockSpec((1, 3 * C), lambda b: (0, 0)),               # b_qkv (scale folded)
                pl.BlockSpec((nwb, num_heads, N, N), bias_index_map),     # rpb (+ mask)
                pl.BlockSpec((num_heads, hd, C), lambda b: (0, 0, 0)),    # W_proj (per-head rows)
                pl.BlockSpec((1, C), lambda b: (0, 0)),                   # b_proj
            ],
            out_specs=pl.BlockSpec((bw, N, C), lambda b: (b, 0, 0)),
        ),
        compiler_params=pltpu.CompilerParams(
            dimension_semantics=("parallel",),
            vmem_limit_bytes=32 * 1024 * 1024,
        ),
    )(x_c, w_qkv_c, b_qkv_s, bias, w_proj_c, b_proj2)
    return out


def window_attention_reference(x, w_qkv, b_qkv, w_proj, b_proj,
                               rpb_table, relative_position_index, num_heads,
                               mask=None, qk_scale=None):
    """Pure-JAX transcription of the PyTorch forward (ground truth)."""
    B_, N, C = x.shape
    head_dim = C // num_heads
    scale = qk_scale if qk_scale is not None else head_dim ** (-0.5)
    qkv = x @ w_qkv + b_qkv
    qkv = qkv.reshape(B_, N, 3, num_heads, head_dim).transpose(2, 0, 3, 1, 4)
    q, k, v = qkv[0], qkv[1], qkv[2]
    q = q * scale
    attn = jnp.einsum("bhqd,bhkd->bhqk", q, k)
    rpb = rpb_table[relative_position_index.reshape(-1)]
    rpb = rpb.reshape(N, N, num_heads).transpose(2, 0, 1)
    attn = attn + rpb[None]
    if mask is not None:
        nW = mask.shape[0]
        attn = attn.reshape(B_ // nW, nW, num_heads, N, N) + mask[None, :, None]
        attn = attn.reshape(B_, num_heads, N, N)
    attn = jax.nn.softmax(attn, axis=-1)
    ctx = jnp.einsum("bhqk,bhkd->bhqd", attn, v).transpose(0, 2, 1, 3).reshape(B_, N, C)
    return ctx @ w_proj + b_proj


if __name__ == "__main__":
    # WindowAttention(dim=128, window_size=(8,8), num_heads=4) on 2 images x 4 windows.
    dim, num_heads = 128, 4
    window_size = (8, 8)
    N = window_size[0] * window_size[1]        # 64 tokens per window
    B, nW = 2, 4
    B_ = B * nW                                 # 8 windows total -> Bw=4, 2 grid steps

    key = jax.random.PRNGKey(0)
    kx, k1, k2, k3, k4, k5 = jax.random.split(key, 6)
    x = jax.random.normal(kx, (B_, N, dim), dtype=jnp.float32)

    # Parameters follow nn.Linear convention: out = x @ W + b.
    w_qkv = jax.random.normal(k1, (dim, 3 * dim), jnp.float32) * (1.0 / jnp.sqrt(dim))
    b_qkv = jax.random.normal(k2, (3 * dim,), jnp.float32) * 0.02
    w_proj = jax.random.normal(k3, (dim, dim), jnp.float32) * (1.0 / jnp.sqrt(dim))
    b_proj = jax.random.normal(k4, (dim,), jnp.float32) * 0.02
    n_rel = (2 * window_size[0] - 1) * (2 * window_size[1] - 1)
    rpb_table = jax.random.normal(k5, (n_rel, num_heads), jnp.float32) * 0.02

    rel_idx = make_relative_position_index(window_size)

    # Deterministic shifted-window style 0 / -100 mask: odd-indexed windows mask
    # attention between the two token halves; even-indexed windows are unmasked.
    group = jnp.arange(N) // (N // 2)
    base = jnp.where(group[:, None] == group[None, :], 0.0, -100.0).astype(jnp.float32)
    win_gate = (jnp.arange(nW) % 2).astype(jnp.float32)
    attn_mask = base[None] * win_gate[:, None, None]          # (nW, N, N)

    common = (w_qkv, b_qkv, w_proj, b_proj, rpb_table, rel_idx, num_heads)

    ref_m = window_attention_reference(x, *common, mask=attn_mask)
    ref_u = window_attention_reference(x, *common, mask=None)

    # 1) Default (bf16 matmul operands, f32 accumulation/softmax), masked path.
    out_bf = window_attention_pallas(x, *common, mask=attn_mask)
    jax.block_until_ready(out_bf)
    assert out_bf.shape == (B_, N, dim)
    assert jnp.allclose(out_bf, ref_m, atol=1e-1, rtol=1e-1), "bf16 masked path mismatch"

    # 2) f32 matmul operands, masked path (tight tolerance; approx-reciprocal softmax).
    out_m = window_attention_pallas(x, *common, mask=attn_mask, compute_dtype=jnp.float32)
    jax.block_until_ready(out_m)
    assert jnp.allclose(out_m, ref_m, atol=1e-2, rtol=1e-2), "f32 masked path mismatch"

    # 3) f32 matmul operands, no-mask path (exercises the mask-free specialization).
    out_u = window_attention_pallas(x, *common, mask=None, compute_dtype=jnp.float32)
    jax.block_until_ready(out_u)
    assert jnp.allclose(out_u, ref_u, atol=1e-2, rtol=1e-2), "f32 unmasked path mismatch"

    print("KERNEL_OK")
</pallas_src>

<mosaic_0001>
module attributes {stable_mosaic.version = 11 : i64} {
  func.func @_window_attention_kernel(%arg0: i32, %arg1: memref<4x64x128xbf16, #tpu.memory_space<vmem>>, %arg2: memref<128x384xbf16, #tpu.memory_space<vmem>>, %arg3: memref<1x384xf32, #tpu.memory_space<vmem>>, %arg4: memref<4x4x64x64xf32, #tpu.memory_space<vmem>>, %arg5: memref<4x32x128xbf16, #tpu.memory_space<vmem>>, %arg6: memref<1x128xf32, #tpu.memory_space<vmem>>, %arg7: memref<4x64x128xf32, #tpu.memory_space<vmem>>) attributes {dimension_semantics = [#tpu.dimension_semantics<parallel>], iteration_bounds = array<i64: 2>, scalar_prefetch = 0 : i64, scratch_operands = 0 : i64, tpu.core_type = #tpu.core_type<tc>, window_params = [{transform_indices = @transform_0, window_bounds = array<i64: 4, 64, 128>}, {pipeline_mode = #tpu.pipeline_mode<synchronous>, transform_indices = @transform_1, window_bounds = array<i64: 128, 384>}, {pipeline_mode = #tpu.pipeline_mode<synchronous>, transform_indices = @transform_2, window_bounds = array<i64: 1, 384>}, {transform_indices = @transform_3, window_bounds = array<i64: 4, 4, 64, 64>}, {pipeline_mode = #tpu.pipeline_mode<synchronous>, transform_indices = @transform_4, window_bounds = array<i64: 4, 32, 128>}, {pipeline_mode = #tpu.pipeline_mode<synchronous>, transform_indices = @transform_5, window_bounds = array<i64: 1, 128>}, {transform_indices = @transform_6, window_bounds = array<i64: 4, 64, 128>}]} {
    %c0 = arith.constant 0 : index
    %c0_0 = arith.constant 0 : index
    %c0_1 = arith.constant 0 : index
    %0 = vector.load %arg1[%c0, %c0_0, %c0_1] : memref<4x64x128xbf16, #tpu.memory_space<vmem>>, vector<4x64x128xbf16>
    %1 = vector.shape_cast %0 : vector<4x64x128xbf16> to vector<256x128xbf16>
    %c0_2 = arith.constant 0 : index
    %c0_3 = arith.constant 0 : index
    %2 = vector.load %arg2[%c0_2, %c0_3] : memref<128x384xbf16, #tpu.memory_space<vmem>>, vector<128x384xbf16>
    %cst = arith.constant dense<0.000000e+00> : vector<256x384xf32>
    %3 = tpu.matmul %1, %2, %cst {dimension_numbers = #tpu.dot_dimension_numbers<[1], [0], [0], [1], [0, 0, 1, 1], [], []>} : vector<256x128xbf16>, vector<128x384xbf16>, vector<256x384xf32> -> vector<256x384xf32>
    %c0_4 = arith.constant 0 : index
    %c0_5 = arith.constant 0 : index
    %4 = vector.load %arg3[%c0_4, %c0_5] : memref<1x384xf32, #tpu.memory_space<vmem>>, vector<1x384xf32>
    %5 = vector.broadcast %4 : vector<1x384xf32> to vector<256x384xf32>
    %6 = arith.addf %3, %5 : vector<256x384xf32>
    %c0_6 = arith.constant 0 : index
    %c0_7 = arith.constant 0 : index
    %c0_8 = arith.constant 0 : index
    %c0_9 = arith.constant 0 : index
    %7 = vector.load %arg4[%c0_6, %c0_7, %c0_8, %c0_9] : memref<4x4x64x64xf32, #tpu.memory_space<vmem>>, vector<4x4x64x64xf32>
    %8 = vector.extract_strided_slice %6 {offsets = [0, 0], sizes = [256, 32], strides = [1, 1]} : vector<256x384xf32> to vector<256x32xf32>
    %9 = arith.truncf %8 : vector<256x32xf32> to vector<256x32xbf16>
    %10 = vector.shape_cast %9 : vector<256x32xbf16> to vector<4x64x32xbf16>
    %11 = vector.extract_strided_slice %6 {offsets = [0, 128], sizes = [256, 32], strides = [1, 1]} : vector<256x384xf32> to vector<256x32xf32>
    %12 = arith.truncf %11 : vector<256x32xf32> to vector<256x32xbf16>
    %13 = vector.shape_cast %12 : vector<256x32xbf16> to vector<4x64x32xbf16>
    %14 = vector.extract_strided_slice %6 {offsets = [0, 256], sizes = [256, 32], strides = [1, 1]} : vector<256x384xf32> to vector<256x32xf32>
    %15 = arith.truncf %14 : vector<256x32xf32> to vector<256x32xbf16>
    %16 = vector.shape_cast %15 : vector<256x32xbf16> to vector<4x64x32xbf16>
    "tpu.trace_start"() <{level = 10 : i32, message = "bqd,bkd->bqk"}> : () -> ()
    %cst_10 = arith.constant dense<0.000000e+00> : vector<4x64x64xf32>
    %17 = tpu.matmul %10, %13, %cst_10 {dimension_numbers = #tpu.dot_dimension_numbers<[2], [2], [1], [1], [0, 0, 0, 1, 1, 1], [0], [0]>} : vector<4x64x32xbf16>, vector<4x64x32xbf16>, vector<4x64x64xf32> -> vector<4x64x64xf32>
    "tpu.trace_stop"() : () -> ()
    %18 = vector.extract_strided_slice %7 {offsets = [0, 0, 0, 0], sizes = [4, 1, 64, 64], strides = [1, 1, 1, 1]} : vector<4x4x64x64xf32> to vector<4x1x64x64xf32>
    %19 = vector.shape_cast %18 : vector<4x1x64x64xf32> to vector<4x64x64xf32>
    %20 = arith.addf %17, %19 : vector<4x64x64xf32>
    %cst_11 = arith.constant dense<0xFF800000> : vector<4x64xf32>
    %21 = vector.multi_reduction <maximumf>, %20, %cst_11 [2] : vector<4x64x64xf32> to vector<4x64xf32>
    %22 = vector.shape_cast %21 : vector<4x64xf32> to vector<4x64x1xf32>
    %23 = vector.broadcast %22 : vector<4x64x1xf32> to vector<4x64x64xf32>
    %24 = arith.subf %20, %23 : vector<4x64x64xf32>
    %25 = math.exp %24 : vector<4x64x64xf32>
    %cst_12 = arith.constant dense<0.000000e+00> : vector<4x64xf32>
    %26 = vector.multi_reduction <add>, %25, %cst_12 [2] : vector<4x64x64xf32> to vector<4x64xf32>
    %27 = vector.shape_cast %26 : vector<4x64xf32> to vector<4x64x1xf32>
    %28 = tpu.reciprocal %27 {approx = true} : vector<4x64x1xf32> -> vector<4x64x1xf32>
    %29 = vector.broadcast %28 : vector<4x64x1xf32> to vector<4x64x64xf32>
    %30 = arith.mulf %25, %29 : vector<4x64x64xf32>
    %31 = arith.truncf %30 : vector<4x64x64xf32> to vector<4x64x64xbf16>
    "tpu.trace_start"() <{level = 10 : i32, message = "bqk,bkd->bqd"}> : () -> ()
    %cst_13 = arith.constant dense<0.000000e+00> : vector<4x64x32xf32>
    %32 = tpu.matmul %31, %16, %cst_13 {dimension_numbers = #tpu.dot_dimension_numbers<[2], [1], [1], [2], [0, 0, 0, 1, 1, 2], [0], [0]>} : vector<4x64x64xbf16>, vector<4x64x32xbf16>, vector<4x64x32xf32> -> vector<4x64x32xf32>
    "tpu.trace_stop"() : () -> ()
    %33 = vector.shape_cast %32 : vector<4x64x32xf32> to vector<256x32xf32>
    %34 = arith.truncf %33 : vector<256x32xf32> to vector<256x32xbf16>
    %c0_14 = arith.constant 0 : index
    %c0_15 = arith.constant 0 : index
    %c0_16 = arith.constant 0 : index
    %35 = vector.load %arg5[%c0_14, %c0_15, %c0_16] : memref<4x32x128xbf16, #tpu.memory_space<vmem>>, vector<1x32x128xbf16>
    %36 = vector.shape_cast %35 : vector<1x32x128xbf16> to vector<32x128xbf16>
    %cst_17 = arith.constant dense<0.000000e+00> : vector<256x128xf32>
    %37 = tpu.matmul %34, %36, %cst_17 {dimension_numbers = #tpu.dot_dimension_numbers<[1], [0], [0], [1], [0, 0, 1, 1], [], []>} : vector<256x32xbf16>, vector<32x128xbf16>, vector<256x128xf32> -> vector<256x128xf32>
    %38 = vector.extract_strided_slice %6 {offsets = [0, 32], sizes = [256, 32], strides = [1, 1]} : vector<256x384xf32> to vector<256x32xf32>
    %39 = arith.truncf %38 : vector<256x32xf32> to vector<256x32xbf16>
    %40 = vector.shape_cast %39 : vector<256x32xbf16> to vector<4x64x32xbf16>
    %41 = vector.extract_strided_slice %6 {offsets = [0, 160], sizes = [256, 32], strides = [1, 1]} : vector<256x384xf32> to vector<256x32xf32>
    %42 = arith.truncf %41 : vector<256x32xf32> to vector<256x32xbf16>
    %43 = vector.shape_cast %42 : vector<256x32xbf16> to vector<4x64x32xbf16>
    %44 = vector.extract_strided_slice %6 {offsets = [0, 288], sizes = [256, 32], strides = [1, 1]} : vector<256x384xf32> to vector<256x32xf32>
    %45 = arith.truncf %44 : vector<256x32xf32> to vector<256x32xbf16>
    %46 = vector.shape_cast %45 : vector<256x32xbf16> to vector<4x64x32xbf16>
    "tpu.trace_start"() <{level = 10 : i32, message = "bqd,bkd->bqk"}> : () -> ()
    %cst_18 = arith.constant dense<0.000000e+00> : vector<4x64x64xf32>
    %47 = tpu.matmul %40, %43, %cst_18 {dimension_numbers = #tpu.dot_dimension_numbers<[2], [2], [1], [1], [0, 0, 0, 1, 1, 1], [0], [0]>} : vector<4x64x32xbf16>, vector<4x64x32xbf16>, vector<4x64x64xf32> -> vector<4x64x64xf32>
    "tpu.trace_stop"() : () -> ()
    %48 = vector.extract_strided_slice %7 {offsets = [0, 1, 0, 0], sizes = [4, 1, 64, 64], strides = [1, 1, 1, 1]} : vector<4x4x64x64xf32> to vector<4x1x64x64xf32>
    %49 = vector.shape_cast %48 : vector<4x1x64x64xf32> to vector<4x64x64xf32>
    %50 = arith.addf %47, %49 : vector<4x64x64xf32>
    %cst_19 = arith.constant dense<0xFF800000> : vector<4x64xf32>
    %51 = vector.multi_reduction <maximumf>, %50, %cst_19 [2] : vector<4x64x64xf32> to vector<4x64xf32>
    %52 = vector.shape_cast %51 : vector<4x64xf32> to vector<4x64x1xf32>
    %53 = vector.broadcast %52 : vector<4x64x1xf32> to vector<4x64x64xf32>
    %54 = arith.subf %50, %53 : vector<4x64x64xf32>
    %55 = math.exp %54 : vector<4x64x64xf32>
    %cst_20 = arith.constant dense<0.000000e+00> : vector<4x64xf32>
    %56 = vector.multi_reduction <add>, %55, %cst_20 [2] : vector<4x64x64xf32> to vector<4x64xf32>
    %57 = vector.shape_cast %56 : vector<4x64xf32> to vector<4x64x1xf32>
    %58 = tpu.reciprocal %57 {approx = true} : vector<4x64x1xf32> -> vector<4x64x1xf32>
    %59 = vector.broadcast %58 : vector<4x64x1xf32> to vector<4x64x64xf32>
    %60 = arith.mulf %55, %59 : vector<4x64x64xf32>
    %61 = arith.truncf %60 : vector<4x64x64xf32> to vector<4x64x64xbf16>
    "tpu.trace_start"() <{level = 10 : i32, message = "bqk,bkd->bqd"}> : () -> ()
    %cst_21 = arith.constant dense<0.000000e+00> : vector<4x64x32xf32>
    %62 = tpu.matmul %61, %46, %cst_21 {dimension_numbers = #tpu.dot_dimension_numbers<[2], [1], [1], [2], [0, 0, 0, 1, 1, 2], [0], [0]>} : vector<4x64x64xbf16>, vector<4x64x32xbf16>, vector<4x64x32xf32> -> vector<4x64x32xf32>
    "tpu.trace_stop"() : () -> ()
    %63 = vector.shape_cast %62 : vector<4x64x32xf32> to vector<256x32xf32>
    %64 = arith.truncf %63 : vector<256x32xf32> to vector<256x32xbf16>
    %c1 = arith.constant 1 : index
    %c0_22 = arith.constant 0 : index
    %c0_23 = arith.constant 0 : index
    %65 = vector.load %arg5[%c1, %c0_22, %c0_23] : memref<4x32x128xbf16, #tpu.memory_space<vmem>>, vector<1x32x128xbf16>
    %66 = vector.shape_cast %65 : vector<1x32x128xbf16> to vector<32x128xbf16>
    %cst_24 = arith.constant dense<0.000000e+00> : vector<256x128xf32>
    %67 = tpu.matmul %64, %66, %cst_24 {dimension_numbers = #tpu.dot_dimension_numbers<[1], [0], [0], [1], [0, 0, 1, 1], [], []>} : vector<256x32xbf16>, vector<32x128xbf16>, vector<256x128xf32> -> vector<256x128xf32>
    %68 = arith.addf %37, %67 : vector<256x128xf32>
    %69 = vector.extract_strided_slice %6 {offsets = [0, 64], sizes = [256, 32], strides = [1, 1]} : vector<256x384xf32> to vector<256x32xf32>
    %70 = arith.truncf %69 : vector<256x32xf32> to vector<256x32xbf16>
    %71 = vector.shape_cast %70 : vector<256x32xbf16> to vector<4x64x32xbf16>
    %72 = vector.extract_strided_slice %6 {offsets = [0, 192], sizes = [256, 32], strides = [1, 1]} : vector<256x384xf32> to vector<256x32xf32>
    %73 = arith.truncf %72 : vector<256x32xf32> to vector<256x32xbf16>
    %74 = vector.shape_cast %73 : vector<256x32xbf16> to vector<4x64x32xbf16>
    %75 = vector.extract_strided_slice %6 {offsets = [0, 320], sizes = [256, 32], strides = [1, 1]} : vector<256x384xf32> to vector<256x32xf32>
    %76 = arith.truncf %75 : vector<256x32xf32> to vector<256x32xbf16>
    %77 = vector.shape_cast %76 : vector<256x32xbf16> to vector<4x64x32xbf16>
    "tpu.trace_start"() <{level = 10 : i32, message = "bqd,bkd->bqk"}> : () -> ()
    %cst_25 = arith.constant dense<0.000000e+00> : vector<4x64x64xf32>
    %78 = tpu.matmul %71, %74, %cst_25 {dimension_numbers = #tpu.dot_dimension_numbers<[2], [2], [1], [1], [0, 0, 0, 1, 1, 1], [0], [0]>} : vector<4x64x32xbf16>, vector<4x64x32xbf16>, vector<4x64x64xf32> -> vector<4x64x64xf32>
    "tpu.trace_stop"() : () -> ()
    %79 = vector.extract_strided_slice %7 {offsets = [0, 2, 0, 0], sizes = [4, 1, 64, 64], strides = [1, 1, 1, 1]} : vector<4x4x64x64xf32> to vector<4x1x64x64xf32>
    %80 = vector.shape_cast %79 : vector<4x1x64x64xf32> to vector<4x64x64xf32>
    %81 = arith.addf %78, %80 : vector<4x64x64xf32>
    %cst_26 = arith.constant dense<0xFF800000> : vector<4x64xf32>
    %82 = vector.multi_reduction <maximumf>, %81, %cst_26 [2] : vector<4x64x64xf32> to vector<4x64xf32>
    %83 = vector.shape_cast %82 : vector<4x64xf32> to vector<4x64x1xf32>
    %84 = vector.broadcast %83 : vector<4x64x1xf32> to vector<4x64x64xf32>
    %85 = arith.subf %81, %84 : vector<4x64x64xf32>
    %86 = math.exp %85 : vector<4x64x64xf32>
    %cst_27 = arith.constant dense<0.000000e+00> : vector<4x64xf32>
    %87 = vector.multi_reduction <add>, %86, %cst_27 [2] : vector<4x64x64xf32> to vector<4x64xf32>
    %88 = vector.shape_cast %87 : vector<4x64xf32> to vector<4x64x1xf32>
    %89 = tpu.reciprocal %88 {approx = true} : vector<4x64x1xf32> -> vector<4x64x1xf32>
    %90 = vector.broadcast %89 : vector<4x64x1xf32> to vector<4x64x64xf32>
    %91 = arith.mulf %86, %90 : vector<4x64x64xf32>
    %92 = arith.truncf %91 : vector<4x64x64xf32> to vector<4x64x64xbf16>
    "tpu.trace_start"() <{level = 10 : i32, message = "bqk,bkd->bqd"}> : () -> ()
    %cst_28 = arith.constant dense<0.000000e+00> : vector<4x64x32xf32>
    %93 = tpu.matmul %92, %77, %cst_28 {dimension_numbers = #tpu.dot_dimension_numbers<[2], [1], [1], [2], [0, 0, 0, 1, 1, 2], [0], [0]>} : vector<4x64x64xbf16>, vector<4x64x32xbf16>, vector<4x64x32xf32> -> vector<4x64x32xf32>
    "tpu.trace_stop"() : () -> ()
    %94 = vector.shape_cast %93 : vector<4x64x32xf32> to vector<256x32xf32>
    %95 = arith.truncf %94 : vector<256x32xf32> to vector<256x32xbf16>
    %c2 = arith.constant 2 : index
    %c0_29 = arith.constant 0 : index
    %c0_30 = arith.constant 0 : index
    %96 = vector.load %arg5[%c2, %c0_29, %c0_30] : memref<4x32x128xbf16, #tpu.memory_space<vmem>>, vector<1x32x128xbf16>
    %97 = vector.shape_cast %96 : vector<1x32x128xbf16> to vector<32x128xbf16>
    %cst_31 = arith.constant dense<0.000000e+00> : vector<256x128xf32>
    %98 = tpu.matmul %95, %97, %cst_31 {dimension_numbers = #tpu.dot_dimension_numbers<[1], [0], [0], [1], [0, 0, 1, 1], [], []>} : vector<256x32xbf16>, vector<32x128xbf16>, vector<256x128xf32> -> vector<256x128xf32>
    %99 = arith.addf %68, %98 : vector<256x128xf32>
    %100 = vector.extract_strided_slice %6 {offsets = [0, 96], sizes = [256, 32], strides = [1, 1]} : vector<256x384xf32> to vector<256x32xf32>
    %101 = arith.truncf %100 : vector<256x32xf32> to vector<256x32xbf16>
    %102 = vector.shape_cast %101 : vector<256x32xbf16> to vector<4x64x32xbf16>
    %103 = vector.extract_strided_slice %6 {offsets = [0, 224], sizes = [256, 32], strides = [1, 1]} : vector<256x384xf32> to vector<256x32xf32>
    %104 = arith.truncf %103 : vector<256x32xf32> to vector<256x32xbf16>
    %105 = vector.shape_cast %104 : vector<256x32xbf16> to vector<4x64x32xbf16>
    %106 = vector.extract_strided_slice %6 {offsets = [0, 352], sizes = [256, 32], strides = [1, 1]} : vector<256x384xf32> to vector<256x32xf32>
    %107 = arith.truncf %106 : vector<256x32xf32> to vector<256x32xbf16>
    %108 = vector.shape_cast %107 : vector<256x32xbf16> to vector<4x64x32xbf16>
    "tpu.trace_start"() <{level = 10 : i32, message = "bqd,bkd->bqk"}> : () -> ()
    %cst_32 = arith.constant dense<0.000000e+00> : vector<4x64x64xf32>
    %109 = tpu.matmul %102, %105, %cst_32 {dimension_numbers = #tpu.dot_dimension_numbers<[2], [2], [1], [1], [0, 0, 0, 1, 1, 1], [0], [0]>} : vector<4x64x32xbf16>, vector<4x64x32xbf16>, vector<4x64x64xf32> -> vector<4x64x64xf32>
    "tpu.trace_stop"() : () -> ()
    %110 = vector.extract_strided_slice %7 {offsets = [0, 3, 0, 0], sizes = [4, 1, 64, 64], strides = [1, 1, 1, 1]} : vector<4x4x64x64xf32> to vector<4x1x64x64xf32>
    %111 = vector.shape_cast %110 : vector<4x1x64x64xf32> to vector<4x64x64xf32>
    %112 = arith.addf %109, %111 : vector<4x64x64xf32>
    %cst_33 = arith.constant dense<0xFF800000> : vector<4x64xf32>
    %113 = vector.multi_reduction <maximumf>, %112, %cst_33 [2] : vector<4x64x64xf32> to vector<4x64xf32>
    %114 = vector.shape_cast %113 : vector<4x64xf32> to vector<4x64x1xf32>
    %115 = vector.broadcast %114 : vector<4x64x1xf32> to vector<4x64x64xf32>
    %116 = arith.subf %112, %115 : vector<4x64x64xf32>
    %117 = math.exp %116 : vector<4x64x64xf32>
    %cst_34 = arith.constant dense<0.000000e+00> : vector<4x64xf32>
    %118 = vector.multi_reduction <add>, %117, %cst_34 [2] : vector<4x64x64xf32> to vector<4x64xf32>
    %119 = vector.shape_cast %118 : vector<4x64xf32> to vector<4x64x1xf32>
    %120 = tpu.reciprocal %119 {approx = true} : vector<4x64x1xf32> -> vector<4x64x1xf32>
    %121 = vector.broadcast %120 : vector<4x64x1xf32> to vector<4x64x64xf32>
    %122 = arith.mulf %117, %121 : vector<4x64x64xf32>
    %123 = arith.truncf %122 : vector<4x64x64xf32> to vector<4x64x64xbf16>
    "tpu.trace_start"() <{level = 10 : i32, message = "bqk,bkd->bqd"}> : () -> ()
    %cst_35 = arith.constant dense<0.000000e+00> : vector<4x64x32xf32>
    %124 = tpu.matmul %123, %108, %cst_35 {dimension_numbers = #tpu.dot_dimension_numbers<[2], [1], [1], [2], [0, 0, 0, 1, 1, 2], [0], [0]>} : vector<4x64x64xbf16>, vector<4x64x32xbf16>, vector<4x64x32xf32> -> vector<4x64x32xf32>
    "tpu.trace_stop"() : () -> ()
    %125 = vector.shape_cast %124 : vector<4x64x32xf32> to vector<256x32xf32>
    %126 = arith.truncf %125 : vector<256x32xf32> to vector<256x32xbf16>
    %c3 = arith.constant 3 : index
    %c0_36 = arith.constant 0 : index
    %c0_37 = arith.constant 0 : index
    %127 = vector.load %arg5[%c3, %c0_36, %c0_37] : memref<4x32x128xbf16, #tpu.memory_space<vmem>>, vector<1x32x128xbf16>
    %128 = vector.shape_cast %127 : vector<1x32x128xbf16> to vector<32x128xbf16>
    %cst_38 = arith.constant dense<0.000000e+00> : vector<256x128xf32>
    %129 = tpu.matmul %126, %128, %cst_38 {dimension_numbers = #tpu.dot_dimension_numbers<[1], [0], [0], [1], [0, 0, 1, 1], [], []>} : vector<256x32xbf16>, vector<32x128xbf16>, vector<256x128xf32> -> vector<256x128xf32>
    %130 = arith.addf %99, %129 : vector<256x128xf32>
    %c0_39 = arith.constant 0 : index
    %c0_40 = arith.constant 0 : index
    %131 = vector.load %arg6[%c0_39, %c0_40] : memref<1x128xf32, #tpu.memory_space<vmem>>, vector<1x128xf32>
    %132 = vector.broadcast %131 : vector<1x128xf32> to vector<256x128xf32>
    %133 = arith.addf %130, %132 : vector<256x128xf32>
    %134 = vector.shape_cast %133 : vector<256x128xf32> to vector<4x64x128xf32>
    %c0_41 = arith.constant 0 : index
    %c0_42 = arith.constant 0 : index
    %c0_43 = arith.constant 0 : index
    %135 = vector.load %arg7[%c0_41, %c0_42, %c0_43] : memref<4x64x128xf32, #tpu.memory_space<vmem>>, vector<4x64x128xf32>
    tpu.vector_store %arg7[%c0_41, %c0_42, %c0_43], %134 {strides = array<i32>} : memref<4x64x128xf32, #tpu.memory_space<vmem>>, vector<4x64x128xf32>,
    return
  }
  func.func @transform_0(%arg0: i32) -> (i32, i32, i32) {
    %c0_i32 = arith.constant 0 : i32
    %c0_i32_0 = arith.constant 0 : i32
    %c0_i32_1 = arith.constant 0 : i32
    return %arg0, %c0_i32, %c0_i32_0 : i32, i32, i32
  }
  func.func @transform_1(%arg0: i32) -> (i32, i32) {
    %c0_i32 = arith.constant 0 : i32
    %c0_i32_0 = arith.constant 0 : i32
    %c0_i32_1 = arith.constant 0 : i32
    return %c0_i32, %c0_i32_0 : i32, i32
  }
  func.func @transform_2(%arg0: i32) -> (i32, i32) {
    %c0_i32 = arith.constant 0 : i32
    %c0_i32_0 = arith.constant 0 : i32
    %c0_i32_1 = arith.constant 0 : i32
    return %c0_i32, %c0_i32_0 : i32, i32
  }
  func.func @transform_3(%arg0: i32) -> (i32, i32, i32, i32) {
    %c1_i32 = arith.constant 1 : i32
    %c0_i32 = arith.constant 0 : i32
    %0 = arith.cmpi eq, %c1_i32, %c0_i32 : i32
    %c1_i32_0 = arith.constant 1 : i32
    %1 = arith.select %0, %c1_i32_0, %c1_i32 : i32
    %2 = arith.remsi %arg0, %1 : i32
    %c0_i32_1 = arith.constant 0 : i32
    %3 = arith.cmpi ne, %2, %c0_i32_1 : i32
    %c0_i32_2 = arith.constant 0 : i32
    %4 = arith.cmpi slt, %2, %c0_i32_2 : i32
    %c0_i32_3 = arith.constant 0 : i32
    %5 = arith.cmpi slt, %1, %c0_i32_3 : i32
    %6 = arith.xori %4, %5 : i1
    %7 = arith.andi %6, %3 : i1
    %8 = arith.addi %2, %1 : i32
    %9 = arith.select %7, %8, %2 : i32
    %c0_i32_4 = arith.constant 0 : i32
    %c0_i32_5 = arith.constant 0 : i32
    %c0_i32_6 = arith.constant 0 : i32
    %c0_i32_7 = arith.constant 0 : i32
    return %9, %c0_i32_4, %c0_i32_5, %c0_i32_6 : i32, i32, i32, i32
  }
  func.func @transform_4(%arg0: i32) -> (i32, i32, i32) {
    %c0_i32 = arith.constant 0 : i32
    %c0_i32_0 = arith.constant 0 : i32
    %c0_i32_1 = arith.constant 0 : i32
    %c0_i32_2 = arith.constant 0 : i32
    return %c0_i32, %c0_i32_0, %c0_i32_1 : i32, i32, i32
  }
  func.func @transform_5(%arg0: i32) -> (i32, i32) {
    %c0_i32 = arith.constant 0 : i32
    %c0_i32_0 = arith.constant 0 : i32
    %c0_i32_1 = arith.constant 0 : i32
    return %c0_i32, %c0_i32_0 : i32, i32
  }
  func.func @transform_6(%arg0: i32) -> (i32, i32, i32) {
    %c0_i32 = arith.constant 0 : i32
    %c0_i32_0 = arith.constant 0 : i32
    %c0_i32_1 = arith.constant 0 : i32
    return %arg0, %c0_i32, %c0_i32_0 : i32, i32, i32
  }
}

</mosaic_0001>

<bundles_post_ra>
// kernel: tpu_custom_call.1
= control target key start
LH: loop header
LB: loop body
LE: loop exit
PB: predicated region body
PF: predicated region fallthrough
CT: control target
= control target key end

     0   :  { %11 = vsyncpa [#allocation3], 0  ;;  %s12493_s0 = inlined_call_operand.hbm [shape: bf16[8,64,128], index: 0, kind: input, shape index: {}]   ;;  %s12494_s1 = inlined_call_operand.hbm [shape: bf16[128,384], index: 1, kind: input, shape index: {}]   ;;  %s12495_s2 = inlined_call_operand.vmem [shape: f32[1,384], index: 2, kind: input, shape index: {}]   ;;  %s12496_s3 = inlined_call_operand.hbm [shape: f32[4,4,64,64], index: 3, kind: input, shape index: {}]   ;;  %s12497_s4 = inlined_call_operand.hbm [shape: bf16[4,32,128], index: 4, kind: input, shape index: {}]   ;;  %s12498_s5 = inlined_call_operand.vmem [shape: f32[1,128], index: 5, kind: input, shape index: {}]   ;;  %s12499_s6 = inlined_call_operand.hbm [shape: f32[8,64,128], index: 6, kind: output, shape index: {}]  }
   0x1   :  { %13 = vsyncpa [#allocation3 + $0x1], 0 }
   0x2   :  { %14 = vsyncpa [#allocation6], 0 }
   0x3   :  { %15 = vsyncpa [#allocation9], 0 }
   0x4   :  { %16 = vsyncpa [#allocation4], 0 }
   0x5   :  { %18 = vsyncpa [#allocation4 + $0x1], 0  ;;  %s9166_s21 = smov 0   ;;  %s9168_s22 = smov 0  }
   0x6   :  { %s9170_s23 = smov 0   ;;  %s9172_s24 = smov 0  }
   0x7 LB: > { %s9187_s25 = sadd.s32 4294967295, %s9112_s24   ;;  %s6886_s26 = sadd.s32 4294967294, %s9112_s24   ;;  %s9112_s24 = sphi %s9172_s24, %s13046_s24   ;;  %s9108_s23 = sphi %s9170_s23, %s13045_s23   ;;  %s9104_s22 = sphi %s9168_s22, %s13044_s22   ;;  %s9100_s21 = sphi %s9166_s21, %s13043_s21  }
   0x8   : > { %p44_p0 = scmp.ne.s32.totalorder %s9104_s22, %s9100_s21  ;;  %p12500_p1 = scmp.eq.s32.totalorder %s9187_s25, 0 }
   0x9   : > { %p179_p3 = scmp.eq.s32.totalorder %s6886_s26, 1  ;;  %p6887_p5 = scmp.ge.s32.totalorder %s9112_s24, 1 }
   0xa   : > { %p9196_p4 = por %p12500_p1, %p44_p0  ;;  %p186_p7 = scmp.lt.s32.totalorder %s9112_s24, 3 }
   0xb   : > { %p9201_p6 = por %p179_p3, %p44_p0  ;;  %s9114_s30 = smov [#allocation5]  }
   0xc   : > { %s12626_s27 = scalar_select %p9196_p4, 1, 0 }
   0xd   : > { %s12627_s28 = scalar_select %p9201_p6, 1, 0 }
   0xe   : > { %p9206_p8 = pnand %p6887_p5, %p186_p7  ;;  %s198_s7 = sshll.u32 %s9114_s30, 4  ;;  %s199_s7 = int_to_ptr.vmem [resolvable:$true] %s198_s7 }
   0xf   : > { %s9115_s9 = smov [#allocation7]   ;;  %s8945_s11 = scalar_lea.vmem %s199_s7, 3072 }
  0x10   : > { %s12628_s29 = scalar_select %p9206_p8, 1, 0 }
  0x11   : > { %p8293_p9 = pneg %p9206_p8  ;;  %s214_s10 = sshll.u32 %s9115_s9, 4  ;;  %s215_s10 = int_to_ptr.vmem [resolvable:$true] %s214_s10 }
  0x12   : > { %p8946_p13 = scmp.ne.s32.totalorder %s199_s7, %s8945_s11  ;;  %p8953_p5 = scmp.lt.s32.totalorder %s199_s7, %s199_s7 }
  0x13   : > { %p9215_p11 = pnand %p8293_p9, %p12500_p1  ;;  %p8954_p7 = scmp.lt.s32.totalorder %s8945_s11, %s8945_s11 }
  0x15   : > { %p8936_p12 = pneg %p9215_p11  ;;  %p8955_p10 = por %p8954_p7, %p8953_p5 }
  0x17   : > { %p8948_p0 = pnand %p8946_p13, %p8936_p12 }
  0x19   : > { %p8949_p3 = pneg %p8948_p0 }
  0x1b   : > { %p8956_p9 = pnand %p8955_p10, %p8949_p3 }
  0x1d   : > { %8959 = shalt.err (!%p8956_p9)
}
  0x1e   : > { %s9116_s12 = smov 192   ;;  %s9117_s13 = smov 12  }
  0x1f   : > { %8296 = dma.hbm_to_vmem [thread:$0]  (!%p9215_p11), %s12494_s1, 3072, %s199_s7, [#allocation6], %s9116_s12, %s9116_s12, %s9117_s13  }
  0x20   : > { %s8971_s16 = scalar_lea.vmem %s215_s10, 16384  ;;  %p8979_p2 = scmp.lt.s32.totalorder %s215_s10, %s215_s10 }
  0x21   : > { %p8972_p1 = scmp.ne.s32.totalorder %s215_s10, %s8971_s16  ;;  %p8980_p6 = scmp.lt.s32.totalorder %s8971_s16, %s8971_s16 }
  0x23   : > { %p8974_p13 = pnand %p8972_p1, %p8936_p12  ;;  %p8981_p5 = por %p8980_p6, %p8979_p2 }
  0x25   : > { %p8975_p0 = pneg %p8974_p13 }
  0x27   : > { %p8982_p10 = pnand %p8981_p5, %p8975_p0 }
  0x29   : > { %8985 = shalt.err (!%p8982_p10)
}
  0x2a   : > { %s9118_s17 = smov 128   ;;  %s9119_s18 = smov 8  }
  0x2b   : > { %8299 = dma.hbm_to_vmem [thread:$0]  (!%p9215_p11), %s12496_s3, 16384, %s215_s10, [#allocation6], %s9118_s17, %s9118_s17, %s9119_s18  }
  0x2c   : > { %s9120_s26 = smov [#allocation8]  }
  0x2d   : > { %s227_s30 = sshll.u32 %s9120_s26, 4  ;;  %s228_s30 = int_to_ptr.vmem [resolvable:$true] %s227_s30 }
  0x2e   : > { %s8997_s7 = scalar_lea.vmem %s228_s30, 1024  ;;  %p9005_p6 = scmp.lt.s32.totalorder %s228_s30, %s228_s30 }
  0x2f   : > { %p8998_p1 = scmp.ne.s32.totalorder %s228_s30, %s8997_s7  ;;  %p9006_p7 = scmp.lt.s32.totalorder %s8997_s7, %s8997_s7 }
  0x31   : > { %p9000_p3 = pnand %p8998_p1, %p8936_p12  ;;  %p9007_p9 = por %p9006_p7, %p9005_p6 }
  0x33   : > { %p9001_p2 = pneg %p9000_p3 }
  0x35   : > { %p9008_p13 = pnand %p9007_p9, %p9001_p2 }
  0x37   : > { %9011 = shalt.err (!%p9008_p13)
}
  0x38   : > { %s12501_s9 = smov 64   ;;  %s12502_s10 = smov 4  }
  0x39   : > { %8302 = dma.hbm_to_vmem [thread:$0]  (!%p9215_p11), %s12497_s4, 1024, %s228_s30, [#allocation9], %s12501_s9, %s12501_s9, %s12502_s10  }
  0x3a   : > { %s9249_s13 = sadd.s32 1, %s9112_s24   ;;  %s31_s15 = sadd.s32 1, %s9108_s23 }
  0x3b   : > { %s28_s14 = ssub.s32 %s9112_s24, %s9249_s13  ;;  %p38_p0 = scmp.ne.s32.totalorder %s9108_s23, %s9104_s22 }
  0x3c   : > { %p29_p12 = scmp.eq.s32.totalorder %s28_s14, 0  ;;  %p39_p5 = scmp.eq.s32.totalorder %s9112_s24, 0 }
  0x3d   : > { %p8314_p10 = scmp.lt.s32.totalorder %s9112_s24, 2  ;;  %p12630_p3 = scmp.eq.s32.totalorder %s9187_s25, 1 }
  0x3e   : > { %s9259_s16 = scalar_select %p29_p12, %s9108_s23, %s31_s15  }
  0x3f   : > { %p40_p1 = por %p39_p5, %p38_p0  ;;  %p9263_p2 = por %p12630_p3, %p38_p0 }
  0x40   : > { %s244_s17 = sand.u32 1, %s9108_s23   ;;  %s7150_s18 = sshll.u32 %s9112_s24, 11 }
  0x41   : > { %s12631_s8 = scalar_select %p9263_p2, 1, 0 }
  0x42   : > { %s6892_s19 = sshll.u32 %s244_s17, 7  ;;  %s9272_s30 = scalar_lea.hbm %s12493_s0, %s7150_s18 }
  0x43   : > { %s248_s7 = scalar_lea.vmem [#allocation2], %s6892_s19  ;;  %p9274_p11 = pnand %p8314_p10, %p40_p1 }
  0x44   : > { %s256_s11 = sshll.u32 %s248_s7, 4  ;;  %s9280_s14 = scalar_lea.sflag [#allocation3], %s244_s17  ;;  %s9278_s11 = int_to_ptr.vmem [resolvable:$true] %s256_s11 }
  0x45   : > { %s9012_s15 = scalar_lea.hbm %s9272_s30, 2048  ;;  %p9014_p7 = pneg %p9274_p11 }
  0x46   : > { %p9013_p6 = scmp.ne.s32.totalorder %s9272_s30, %s9012_s15  ;;  %s9017_s19 = scalar_lea.hbm %s12493_s0, 4096 }
  0x47   : > { %p9018_p12 = scmp.lt.s32.totalorder %s9272_s30, %s12493_s0  ;;  %p9019_p0 = scmp.lt.s32.totalorder %s9017_s19, %s9012_s15 }
  0x48   : > { %p9015_p9 = pnand %p9014_p7, %p9013_p6 }
  0x49   : > { %p9020_p5 = por %p9019_p0, %p9018_p12 }
  0x4a   : > { %p9016_p13 = pneg %p9015_p9 }
  0x4c   : > { %p9021_p10 = pnand %p9020_p5, %p9016_p13 }
  0x4e   : > { %9024 = shalt.err (!%p9021_p10)
}
  0x4f   : > { %s9025_s17 = scalar_lea.vmem %s9278_s11, 2048  ;;  %s9123_s9 = smov [#allocation2]  }
  0x50   : > { %p9026_p1 = scmp.ne.s32.totalorder %s9278_s11, %s9025_s17  ;;  %s9030_s10 = sshll.u32 %s9123_s9, 4  ;;  %s9031_s10 = int_to_ptr.vmem [resolvable:$false] %s9030_s10 }
  0x51   : > { %s9032_s18 = scalar_lea.vmem %s9031_s10, 4096  ;;  %p9033_p9 = scmp.lt.s32.totalorder %s9278_s11, %s9031_s10 }
  0x52   : > { %p9028_p3 = pnand %p9026_p1, %p9014_p7  ;;  %p9034_p2 = scmp.lt.s32.totalorder %s9032_s18, %s9025_s17 }
  0x54   : > { %p9029_p6 = pneg %p9028_p3  ;;  %p9035_p4 = por %p9034_p2, %p9033_p9 }
  0x56   : > { %p9036_p8 = pnand %p9035_p4, %p9029_p6 }
  0x58   : > { %9039 = shalt.err (!%p9036_p8)
}
  0x59   : > { %s12633_s15 = smov 4   ;;  %s12634_s20 = smov 64  }
  0x5a   : > { %8306 = dma.hbm_to_vmem [thread:$0]  (!%p9274_p11), %s9272_s30, 2048, %s9278_s11, %s9280_s14, %s12634_s20, %s12634_s20, %s12633_s15  }
  0x5b   : > { %p12635_p7 = scmp.ne.s32.totalorder %s12628_s29, 0 }
  0x5d   : > { %268 = sbr.rel (%p12635_p7) target bundleno = 3719 (0xe87), region = 44 }
  0x62   : > { %s9307_s9 = sand.u32 1, %s9104_s22   ;;  %p12636_p4 = scmp.ne.s32.totalorder %s12626_s27, 0 }
  0x63   : > { %s6897_s10 = sshll.u32 %s9307_s9, 7  ;;  %s271_s19 = scalar_lea.sflag [#allocation3], %s9307_s9 }
  0x64   : > { %s9311_s26 = scalar_lea.vmem [#allocation2], %s6897_s10 }
  0x65   : > { %9083 = dma.done.wait (%p12636_p4), %s271_s19, 2048  }
  0x66   : > { %9085 = vsyncadd (%p12636_p4), %s271_s19, 4294965248  ;;  %p12637_p8 = scmp.eq.s32.totalorder %s9187_s25, 0 }
  0x68   : > { %9087 = dma.done.wait (%p12637_p8), [#allocation6], 19456   ;;  %p12638_p2 = pmov %p12637_p8 }
  0x6a   : > { %9089 = vsyncadd (%p12638_p2), [#allocation6], 4294947840  ;;  %p12639_p11 = pmov %p12638_p2 }
  0x6b   : > { %p12640_p13 = pmov %p12638_p2 }
  0x6c   : > { %9091 = dma.done.wait (%p12639_p11), [#allocation9], 1024  }
  0x6d   : > { %9093 = vsyncadd (%p12640_p13), [#allocation9], 4294966272  ;;  %v9124_v0 = vmov 0   ;;  %v8366_v1 = vld [vmem:[#allocation5 + $0xac] ss:$12 sps:$4 sm:$0xff]   ;;  %v8390_v9 = vld [vmem:[%s9311_s26] sm:$0xff]   ;;  %v384_v41 = vlaneseq }
  0x6e   : > { %655 = vmatprep.mubr.bf16.mxu0 %v9124_v0  ;;  %v8368_v2 = vld [vmem:[#allocation5 + $0xa8] ss:$12 sps:$4 sm:$0xff]   ;;  %623 = vmatprep.subr.bf16.mxu0 %v8366_v1  ;;  %v8371_v4 = vld [vmem:[#allocation5 + $0x90] ss:$12 sps:$4 sm:$0xff]   ;;  %v8374_v6 = vld [vmem:[#allocation5 + $0x78] ss:$12 sps:$4 sm:$0xff]  }
  0x6f   : > { %v8369_v3 = vld [vmem:[#allocation5 + $0x94] ss:$12 sps:$4 sm:$0xff]   ;;  %624 = vmatpush1.bf16.msra.mxu0 %v8368_v2  ;;  %v8372_v5 = vld [vmem:[#allocation5 + $0x7c] ss:$12 sps:$4 sm:$0xff]   ;;  %v8375_v7 = vld [vmem:[#allocation5 + $0x64] ss:$12 sps:$4 sm:$0xff]   ;;  %7521 = vmatprep.mubr.bf16.mxu1 %v8390_v9 }
  0x70   : > { %625 = vmatprep.subr.bf16.mxu0 %v8369_v3  ;;  %v8377_v8 = vld [vmem:[#allocation5 + $0x60] ss:$12 sps:$4 sm:$0xff]   ;;  %v8380_v11 = vld [vmem:[#allocation5 + $0x48] ss:$12 sps:$4 sm:$0xff]   ;;  %v8383_v13 = vld [vmem:[#allocation5 + $0x30] ss:$12 sps:$4 sm:$0xff]  }
  0x71   : > { %v8378_v10 = vld [vmem:[#allocation5 + $0x4c] ss:$12 sps:$4 sm:$0xff]   ;;  %v8381_v12 = vld [vmem:[#allocation5 + $0x34] ss:$12 sps:$4 sm:$0xff]   ;;  %v8384_v14 = vld [vmem:[#allocation5 + $0x1c] ss:$12 sps:$4 sm:$0xff]  }
  0x72   : > { %v8386_v15 = vld [vmem:[#allocation5 + $0x18] ss:$12 sps:$4 sm:$0xff]   ;;  %v8389_v17 = vld [vmem:[#allocation5] ss:$12 sps:$4 sm:$0xff]   ;;  %v8405_v18 = vld [vmem:[#allocation5 + $0xb0] ss:$12 sps:$4 sm:$0xff]  }
  0x73   : > { %626 = vmatpush1.bf16.msra.mxu0 %v8371_v4  ;;  %v8387_v16 = vld [vmem:[#allocation5 + $0x4] ss:$12 sps:$4 sm:$0xff]   ;;  %7505 = vmatprep.subr.bf16.mxu1 %v8405_v18  ;;  %v8408_v20 = vld [vmem:[#allocation5 + $0x80] ss:$12 sps:$4 sm:$0xff]   ;;  %v8409_v21 = vld [vmem:[#allocation5 + $0x68] ss:$12 sps:$4 sm:$0xff]  }
  0x74   : > { %627 = vmatprep.subr.bf16.mxu0 %v8372_v5  ;;  %v8406_v19 = vld [vmem:[#allocation5 + $0x98] ss:$12 sps:$4 sm:$0xff]   ;;  %7506 = vmatpush3.bf16.msra.mxu1 %v8405_v18  ;;  %v8391_v22 = vld [vmem:[%s9311_s26 + $0x8] sm:$0xff]   ;;  %v8410_v23 = vld [vmem:[#allocation5 + $0x50] ss:$12 sps:$4 sm:$0xff]   ;;  %v9357_v42 = vshrl.u32 %v384_v41, 7 }
  0x75   : > { %7507 = vmatprep.subr.bf16.mxu1 %v8406_v19  ;;  %v8411_v24 = vld [vmem:[#allocation5 + $0x38] ss:$12 sps:$4 sm:$0xff]   ;;  %v8392_v25 = vld [vmem:[%s9311_s26 + $0x10] sm:$0xff]   ;;  %v8412_v26 = vld [vmem:[#allocation5 + $0x20] ss:$12 sps:$4 sm:$0xff]   ;;  %vm1153_vm0 = vcmask 261120  }
  0x76   : > { %v8413_v27 = vld [vmem:[#allocation5 + $0x8] ss:$12 sps:$4 sm:$0xff]   ;;  %v8393_v28 = vld [vmem:[%s9311_s26 + $0x18] sm:$0xff]   ;;  %v8394_v29 = vld [vmem:[%s9311_s26 + $0x20] sm:$0xff]   ;;  %v386_v43 = vsub.s32 0, %v9357_v42  ;;  %v390_v45 = vsub.s32 1, %v9357_v42 }
  0x77   : > { %628 = vmatpush1.bf16.msra.mxu0 %v8374_v6  ;;  %v8395_v30 = vld [vmem:[%s9311_s26 + $0x28] sm:$0xff]   ;;  %v8396_v31 = vld [vmem:[%s9311_s26 + $0x30] sm:$0xff]   ;;  %v8397_v32 = vld [vmem:[%s9311_s26 + $0x38] sm:$0xff]   ;;  %s9125_s30 = smov 96   ;;  %vm1510_vm1 = vcmask 523264   ;;  %s9126_s11 = smov 64  }
  0x78   : > { %629 = vmatprep.subr.bf16.mxu0 %v8375_v7  ;;  %7508 = vmatpush3.bf16.msra.mxu1 %v8406_v19  ;;  %v8398_v33 = vld [vmem:[%s9311_s26 + $0x40] sm:$0xff]   ;;  %v8399_v34 = vld [vmem:[%s9311_s26 + $0x48] sm:$0xff]   ;;  %v8400_v35 = vld [vmem:[%s9311_s26 + $0x50] sm:$0xff]   ;;  %s9127_s12 = smov 32   ;;  %s6901_s14 = sshll.u32 %s9307_s9, 8 }
  0x79   : > { %7509 = vmatprep.subr.bf16.mxu1 %v8408_v20  ;;  %v8401_v36 = vld [vmem:[%s9311_s26 + $0x58] sm:$0xff]   ;;  %v8402_v37 = vld [vmem:[%s9311_s26 + $0x60] sm:$0xff]   ;;  %v8403_v38 = vld [vmem:[%s9311_s26 + $0x68] sm:$0xff]   ;;  %s12336_s18 = scalar_lea.vmem [#allocation10], %s6901_s14  ;;  %s7152_s15 = sshll.u32 %s9187_s25, 12 }
  0x7a   : > { %v8404_v39 = vld [vmem:[%s9311_s26 + $0x70] sm:$0xff]   ;;  %v8407_v40 = vld [vmem:[%s9311_s26 + $0x78] sm:$0xff]   ;;  %v9363_v44 = vld [vmem:[%s12495_s2] sm:$0x7]  ;;  %s6784_s20 = sshll.u32 %s12336_s18, 4  ;;  %s12445_s26 = scalar_lea.hbm %s12499_s6, %s7152_s15  ;;  %s12447_s20 = int_to_ptr.vmem [resolvable:$true] %s6784_s20 }
  0x7b   : > { %630 = vmatpush1.bf16.msra.mxu0 %v8377_v8  ;;  %v9367_v47 = vrot.slane %v9363_v44, %v386_v43  ;;  %v9370_v49 = vrot.slane %v9363_v44, %v390_v45  ;;  %s6770_s25 = scalar_lea.sflag [#allocation4], %s9307_s9  ;;  %s9040_s27 = scalar_lea.vmem %s12447_s20, 4096 }
  0x7c   : > { %631 = vmatprep.subr.bf16.mxu0 %v8378_v10  ;;  %7510 = vmatpush3.bf16.msra.mxu1 %v8408_v20  ;;  %p9041_p12 = scmp.ne.s32.totalorder %s12447_s20, %s9040_s27  ;;  %p13040_p0 = scmp.ne.s32.totalorder %s12631_s8, 0 }
  0x7d   : > { %7511 = vmatprep.subr.bf16.mxu1 %v8409_v21  ;;  %s9128_s29 = smov [#allocation10]  }
  0x7e   : > { %p9042_p5 = pnand %p9041_p12, %p13040_p0 }
  0x7f   : > { %632 = vmatpush1.bf16.msra.mxu0 %v8380_v11 }
  0x80   : > { %633 = vmatprep.subr.bf16.mxu0 %v8381_v12  ;;  %7512 = vmatpush3.bf16.msra.mxu1 %v8409_v21  ;;  %p9043_p10 = pneg %p9042_p5 }
  0x81   : > { %7513 = vmatprep.subr.bf16.mxu1 %v8410_v23 }
  0x83   : > { %634 = vmatpush1.bf16.msra.mxu0 %v8383_v13 }
  0x84   : > { %635 = vmatprep.subr.bf16.mxu0 %v8384_v14  ;;  %7514 = vmatpush3.bf16.msra.mxu1 %v8410_v23 }
  0x85   : > { %7515 = vmatprep.subr.bf16.mxu1 %v8411_v24 }
  0x87   : > { %636 = vmatpush1.bf16.msra.mxu0 %v8386_v15 }
  0x88   : > { %637 = vmatprep.subr.bf16.mxu0 %v8387_v16  ;;  %7516 = vmatpush3.bf16.msra.mxu1 %v8411_v24 }
  0x89   : > { %7517 = vmatprep.subr.bf16.mxu1 %v8412_v26 }
  0x8b   : > { %638 = vmatpush1.bf16.msra.mxu0 %v8389_v17 }
  0x8c   : > { %7518 = vmatpush3.bf16.msra.mxu1 %v8412_v26 }
  0x8d   : > { %7519 = vmatprep.subr.bf16.mxu1 %v8413_v27 }
  0x8e   : > { %656 = vmatmul.mubr.bf16.vlgmr.msra.gmra.mxu0 %v8390_v9 }
  0x8f   : > { %665 = vmatprep.mubr.bf16.mxu0 %v9124_v0 }
  0x90   : > { %7520 = vmatpush3.bf16.msra.mxu1 %v8413_v27 }
  0x93   : > { %7522 = vmatmul.mubr.bf16.vlgmr.msra.gmra.mxu1 %v8391_v22 }
  0x94   : > { %7525 = vmatprep.mubr.bf16.mxu1 %v8392_v25 }
  0x96   : > { %666 = vmatmul.mubr.bf16.gmra.mxu0 %v8391_v22 }
  0x97   : > { %675 = vmatprep.mubr.bf16.mxu0 %v9124_v0 }
  0x9b   : > { %7526 = vmatmul.mubr.bf16.gmra.mxu1 %v8393_v28 }
  0x9c   : > { %7529 = vmatprep.mubr.bf16.mxu1 %v8394_v29 }
  0x9e   : > { %676 = vmatmul.mubr.bf16.gmra.mxu0 %v8392_v25 }
  0x9f   : > { %685 = vmatprep.mubr.bf16.mxu0 %v9124_v0 }
  0xa3   : > { %7530 = vmatmul.mubr.bf16.gmra.mxu1 %v8395_v30 }
  0xa4   : > { %7533 = vmatprep.mubr.bf16.mxu1 %v8396_v31 }
  0xa6   : > { %686 = vmatmul.mubr.bf16.gmra.mxu0 %v8393_v28 }
  0xa7   : > { %695 = vmatprep.mubr.bf16.mxu0 %v9124_v0 }
  0xab   : > { %7534 = vmatmul.mubr.bf16.gmra.mxu1 %v8397_v32 }
  0xac   : > { %7537 = vmatprep.mubr.bf16.mxu1 %v8398_v33 }
  0xae   : > { %696 = vmatmul.mubr.bf16.gmra.mxu0 %v8394_v29 }
  0xaf   : > { %705 = vmatprep.mubr.bf16.mxu0 %v9124_v0 }
  0xb3   : > { %7538 = vmatmul.mubr.bf16.gmra.mxu1 %v8399_v34 }
  0xb4   : > { %7541 = vmatprep.mubr.bf16.mxu1 %v8400_v35 }
  0xb6   : > { %706 = vmatmul.mubr.bf16.gmra.mxu0 %v8395_v30 }
  0xb7   : > { %715 = vmatprep.mubr.bf16.mxu0 %v9124_v0 }
  0xbb   : > { %7542 = vmatmul.mubr.bf16.gmra.mxu1 %v8401_v36 }
  0xbc   : > { %7545 = vmatprep.mubr.bf16.mxu1 %v8402_v37 }
  0xbe   : > { %716 = vmatmul.mubr.bf16.gmra.mxu0 %v8396_v31 }
  0xbf   : > { %725 = vmatprep.mubr.bf16.mxu0 %v9124_v0 }
  0xc3   : > { %7546 = vmatmul.mubr.bf16.gmra.mxu1 %v8403_v38 }
  0xc4   : > { %7549 = vmatprep.mubr.bf16.mxu1 %v8404_v39 }
  0xc6   : > { %726 = vmatmul.mubr.bf16.gmra.mxu0 %v8397_v32 }
  0xc7   : > { %735 = vmatprep.mubr.bf16.mxu0 %v9124_v0 }
  0xcb   : > { %7550 = vmatmul.mubr.bf16.gmra.mxu1 %v8407_v40 }
  0xce   : > { %736 = vmatmul.mubr.bf16.gmra.mxu0 %v8398_v33 }
  0xcf   : > { %745 = vmatprep.mubr.bf16.mxu0 %v9124_v0 }
  0xd6   : > { %746 = vmatmul.mubr.bf16.gmra.mxu0 %v8399_v34 }
  0xd7   : > { %755 = vmatprep.mubr.bf16.mxu0 %v9124_v0 }
  0xde   : > { %756 = vmatmul.mubr.bf16.gmra.mxu0 %v8400_v35 }
  0xdf   : > { %765 = vmatprep.mubr.bf16.mxu0 %v9124_v0 }
  0xe6   : > { %766 = vmatmul.mubr.bf16.gmra.mxu0 %v8401_v36 }
  0xe7   : > { %775 = vmatprep.mubr.bf16.mxu0 %v9124_v0 }
  0xee   : > { %776 = vmatmul.mubr.bf16.gmra.mxu0 %v8402_v37 }
  0xef   : > { %785 = vmatprep.mubr.bf16.mxu0 %v9124_v0 }
  0xf6   : > { %786 = vmatmul.mubr.bf16.gmra.mxu0 %v8403_v38 }
  0xf7   : > { %795 = vmatprep.mubr.bf16.mxu0 %v9124_v0 }
  0xfe   : > { %796 = vmatmul.mubr.bf16.gmra.mxu0 %v8404_v39 }
  0xff   : > { %805 = vmatprep.mubr.bf16.mxu0 %v9124_v0 }
 0x106   : > { %806 = vmatmul.mubr.bf16.gmra.mxu0 %v8407_v40 }
 0x14e   : > { %v657_v46 = vpop.f32.mrf.mxu0 }
 0x14f   : > { %v658_v51 = vadd.f32 %v657_v46, %v9367_v47 }
 0x150   : > { %v659_v48 = vpop.f32.mrf.mxu0 }
 0x151   : > { %v660_v54 = vadd.f32 %v659_v48, %v9370_v49 }
 0x152   : > { %v661_v50 = vpop.f32.mrf.mxu0 }
 0x153   : > { %v662_v52 = vadd.f32 %v661_v50, %v9367_v47  ;;  %v9448_v35 = vpop.f32.mrf.mxu1 }
 0x154   : > { %v663_v53 = vpop.f32.mrf.mxu0 }
 0x155   : > { %v9375_v55 = vpack.c.bf16 %v662_v52, %v658_v51  ;;  %v664_v56 = vadd.f32 %v663_v53, %v9370_v49  ;;  %v9452_v39 = vpop.f32.mrf.mxu1 }
 0x156   : > { %v667_v57 = vpop.f32.mrf.mxu0 }
 0x157   : > { %12641 = vst [vmem:[#allocation15_spill] sm:$0xff] %v9375_v55  ;;  %v9378_v58 = vpack.c.bf16 %v664_v56, %v660_v54  ;;  %2211 = vrot.lane.b32.xlu0 %v9375_v55, %s9125_s30  ;;  %7561 = vmatprep.mubr.msk.bf16.mxu1 %vm1153_vm0, %v9375_v55  ;;  %v668_v61 = vadd.f32 %v667_v57, %v9367_v47  ;;  %v9458_v43 = vpop.f32.mrf.mxu1 }
 0x158   : > { %v669_v59 = vpop.f32.mrf.mxu0 }
 0x159   : > { %12642 = vst [vmem:[#allocation16_spill] sm:$0xff] %v9378_v58  ;;  %2223 = vrot.lane.b32.xlu1 %v9378_v58, %s9125_s30  ;;  %v670_v0 = vadd.f32 %v669_v59, %v9370_v49  ;;  %v1167_v46 = vsel %vm1153_vm0, %v9378_v58, 0  ;;  %v9464_v48 = vpop.f32.mrf.mxu1 }
 0x15a   : > { %v671_v60 = vpop.f32.mrf.mxu0 }
 0x15b   : > { %v672_v62 = vadd.f32 %v671_v60, %v9367_v47  ;;  %v9468_v51 = vpop.f32.mrf.mxu1 }
 0x15c   : > { %v673_v63 = vpop.f32.mrf.mxu0 }
 0x15d   : > { %v9389_v1 = vpack.c.bf16 %v672_v62, %v668_v61  ;;  %v674_v2 = vadd.f32 %v673_v63, %v9370_v49  ;;  %v9477_v61 = vpop.f32.mrf.mxu1 }
 0x15e   : > { %v9392_v3 = vpop.f32.mrf.mxu0 }
 0x15f   : > { %12643 = vst [vmem:[#allocation17_spill] sm:$0xff] %v9389_v1  ;;  %v9394_v4 = vpack.c.bf16 %v674_v2, %v670_v0  ;;  %2213 = vrot.lane.b32.xlu1 %v9389_v1, %s9125_s30  ;;  %v678_v57 = vadd.f32 %v9392_v3, %v9367_v47 }
 0x160   : > { %v679_v5 = vpop.f32.mrf.mxu0 }
 0x161   : > { %12644 = vst [vmem:[#allocation18_spill] sm:$0xff] %v9394_v4  ;;  %2225 = vrot.lane.b32.xlu0 %v9394_v4, %s9125_s30  ;;  %v680_v8 = vadd.f32 %v679_v5, %v9370_v49  ;;  %v1170_v33 = vsel %vm1153_vm0, %v9394_v4, 0 }
 0x162   : > { %v681_v6 = vpop.f32.mrf.mxu0 }
 0x163   : > { %v682_v52 = vadd.f32 %v681_v6, %v9367_v47 }
 0x164   : > { %v683_v7 = vpop.f32.mrf.mxu0 }
 0x165   : > { %v684_v9 = vadd.f32 %v683_v7, %v9370_v49  ;;  %v9479_v62 = vpack.c.bf16 %v682_v52, %v678_v57  ;;  %v9496_v7 = vpop.f32.mrf.mxu1 }
 0x166   : > { %v9402_v10 = vpop.f32.mrf.mxu0 }
 0x167   : > { %v9404_v11 = vpack.c.bf16 %v684_v9, %v680_v8  ;;  %12650 = vst [vmem:[#allocation24_spill] sm:$0xff] %v9479_v62 }
 0x168   : > { %v689_v12 = vpop.f32.mrf.mxu0 }
 0x169   : > { %12645 = vst [vmem:[#allocation19_spill] sm:$0xff] %v9404_v11  ;;  %2227 = vrot.lane.b32.xlu1 %v9404_v11, %s9125_s30  ;;  %v690_v15 = vadd.f32 %v689_v12, %v9370_v49  ;;  %v1173_v25 = vsel %vm1153_vm0, %v9404_v11, 0  ;;  %v688_v12 = vadd.f32 %v9402_v10, %v9367_v47 }
 0x16a   : > { %v691_v13 = vpop.f32.mrf.mxu0 }
 0x16b   : > { %v692_v3 = vadd.f32 %v691_v13, %v9367_v47 }
 0x16c   : > { %v693_v14 = vpop.f32.mrf.mxu0 }
 0x16d   : > { %v694_v16 = vadd.f32 %v693_v14, %v9370_v49 }
 0x16e   : > { %v9410_v17 = vpop.f32.mrf.mxu0 }
 0x16f   : > { %v9412_v18 = vpack.c.bf16 %v694_v16, %v690_v15  ;;  %v698_v13 = vadd.f32 %v9410_v17, %v9367_v47  ;;  %v9511_v16 = vpack.c.bf16 %v692_v3, %v688_v12 }
 0x170   : > { %v9414_v19 = vpop.f32.mrf.mxu0 }
 0x171   : > { %12646 = vst [vmem:[#allocation20_spill] sm:$0xff] %v9412_v18  ;;  %8213 = vmatprep.subr.msk.bf16.mxu1 %vm1153_vm0, %v9412_v18  ;;  %2229 = vrot.lane.b32.xlu0 %v9412_v18, %s9125_s30  ;;  %v1176_v20 = vsel %vm1153_vm0, %v9412_v18, 0  ;;  %12652 = vst [vmem:[#allocation26_spill] sm:$0xff] %v9511_v16 }
 0x172   : > { %v701_v21 = vpop.f32.mrf.mxu0  ;;  %7554 = vmatpush3.bf16.xpose.msra.mxu1 %v1176_v20  ;;  %v9515_v20 = vpop.f32.mrf.mxu1 }
 0x173   : > { %8214 = vmatprep.subr.msk.bf16.mxu1 %vm1153_vm0, %v9404_v11  ;;  %v702_v8 = vadd.f32 %v701_v21, %v9367_v47 }
 0x174   : > { %v9424_v22 = vpop.f32.mrf.mxu0 }
 0x175   : > { %v9517_v21 = vpack.c.bf16 %v702_v8, %v698_v13 }
 0x176   : > { %v9426_v23 = vpop.f32.mrf.mxu0 }
 0x177   : > { %12653 = vst [vmem:[#allocation27_spill] sm:$0xff] %v9517_v21 }
 0x178   : > { %v709_v24 = vpop.f32.mrf.mxu0 }
 0x179   : > { %v710_v28 = vadd.f32 %v709_v24, %v9370_v49 }
 0x17a   : > { %v9430_v26 = vpop.f32.mrf.mxu0  ;;  %7556 = vmatpush3.bf16.xpose.msra.mxu1 %v1173_v25  ;;  %v9529_v25 = vpop.f32.mrf.mxu1 }
 0x17b   : > { %8215 = vmatprep.subr.msk.bf16.mxu1 %vm1153_vm0, %v9394_v4 }
 0x17c   : > { %v713_v27 = vpop.f32.mrf.mxu0 }
 0x17d   : > { %v714_v29 = vadd.f32 %v713_v27, %v9370_v49 }
 0x17e   : > { %v9436_v30 = vpop.f32.mrf.mxu0 }
 0x17f   : > { %v9438_v31 = vpack.c.bf16 %v714_v29, %v710_v28  ;;  %v704_v28 = vadd.f32 %v9424_v22, %v9370_v49 }
 0x180   : > { %v719_v32 = vpop.f32.mrf.mxu0 }
 0x181   : > { %12647 = vst [vmem:[#allocation21_spill] sm:$0xff] %v9438_v31  ;;  %2338 = vrot.lane.b32.xlu0 %v9438_v31, %s9125_s30  ;;  %v720_v37 = vadd.f32 %v719_v32, %v9370_v49  ;;  %v9537_v32 = vpop.f32.mrf.mxu1 }
 0x182   : > { %v9444_v34 = vpop.f32.mrf.mxu0  ;;  %7558 = vmatpush3.bf16.xpose.msra.mxu1 %v1170_v33  ;;  %v700_v33 = vadd.f32 %v9414_v19, %v9370_v49 }
 0x183   : > { %8216 = vmatprep.subr.msk.bf16.mxu1 %vm1153_vm0, %v9378_v58 }
 0x184   : > { %v723_v36 = vpop.f32.mrf.mxu0 }
 0x185   : > { %v724_v38 = vadd.f32 %v723_v36, %v9370_v49 }
 0x186   : > { %v9454_v40 = vpop.f32.mrf.mxu0 }
 0x187   : > { %v9456_v41 = vpack.c.bf16 %v724_v38, %v720_v37  ;;  %v9541_v37 = vpack.c.bf16 %v704_v28, %v700_v33  ;;  %v708_v28 = vadd.f32 %v9426_v23, %v9367_v47 }
 0x188   : > { %v729_v45 = vpop.f32.mrf.mxu0 }
 0x189   : > { %12648 = vst [vmem:[#allocation22_spill] sm:$0xff] %v9456_v41  ;;  %2340 = vrot.lane.b32.xlu1 %v9456_v41, %s9125_s30  ;;  %v730_v54 = vadd.f32 %v729_v45, %v9370_v49  ;;  %v1262_v17 = vsel %vm1153_vm0, %v9456_v41, 0  ;;  %12654 = vst [vmem:[#allocation28_spill] sm:$0xff] %v9541_v37  ;;  %v1259_v45 = vsel %vm1153_vm0, %v9438_v31, 0 }
 0x18a   : > { %v9466_v50 = vpop.f32.mrf.mxu0  ;;  %7560 = vmatpush3.bf16.xpose.msra.mxu1 %v1167_v46  ;;  %v9547_v46 = vpop.f32.mrf.mxu1 }
 0x18c   : > { %v733_v53 = vpop.f32.mrf.mxu0  ;;  %v9551_v52 = vpop.f32.mrf.mxu1 }
 0x18d   : > { %v734_v56 = vadd.f32 %v733_v53, %v9370_v49 }
 0x18e   : > { %v737_v59 = vpop.f32.mrf.mxu0  ;;  %v9555_v19 = vpop.f32.mrf.mxu1 }
 0x18f   : > { %v9475_v60 = vpack.c.bf16 %v734_v56, %v730_v54  ;;  %v738_v5 = vadd.f32 %v737_v59, %v9367_v47  ;;  %v1256_v59 = vsel %vm1153_vm0, %v9541_v37, 0 }
 0x190   : > { %v9481_v63 = vpop.f32.mrf.mxu0  ;;  %v9557_v56 = vpop.f32.mrf.mxu1 }
 0x191   : > { %12649 = vst [vmem:[#allocation23_spill] sm:$0xff] %v9475_v60  ;;  %2342 = vrot.lane.b32.xlu1 %v9475_v60, %s9125_s30  ;;  %7562 = vmatmul.mubr.msk.bf16.vlgmr.msra.gmra.mxu1 %vm1153_vm0, %v9389_v1  ;;  %v1265_v0 = vsel %vm1153_vm0, %v9475_v60, 0 }
 0x192   : > { %8217 = vmatprep.subr.msk.bf16.mxu1 %vm1153_vm0, %v9475_v60  ;;  %v741_v2 = vpop.f32.mrf.mxu0  ;;  %7565 = vmatprep.mubr.msk.bf16.mxu1 %vm1153_vm0, %v9479_v62 }
 0x193   : > { %v742_v6 = vadd.f32 %v741_v2, %v9367_v47  ;;  %7570 = vmatpush3.bf16.xpose.msra.mxu1 %v1265_v0  ;;  %v9563_v0 = vpop.f32.mrf.mxu1  ;;  %v712_v2 = vadd.f32 %v9430_v26, %v9367_v47  ;;  %v718_v26 = vadd.f32 %v9436_v30, %v9367_v47 }
 0x194   : > { %8218 = vmatprep.subr.msk.bf16.mxu1 %vm1153_vm0, %v9456_v41  ;;  %v9501_v9 = vpop.f32.mrf.mxu0 }
 0x195   : > { %v9505_v14 = vpack.c.bf16 %v742_v6, %v738_v5  ;;  %v394_v5 = vsub.s32 2, %v9357_v42  ;;  %v722_v6 = vadd.f32 %v9444_v34, %v9367_v47 }
 0x196   : > { %v9509_v15 = vpop.f32.mrf.mxu0 }
 0x197   : > { %12651 = vst [vmem:[#allocation25_spill] sm:$0xff] %v9505_v14  ;;  %7593 = vmatprep.mubr.msk.bf16.mxu0 %vm1153_vm0, %v9505_v14 }
 0x198   : > { %v9519_v24 = vpop.f32.mrf.mxu0 }
 0x199   : > { %7566 = vmatmul.mubr.msk.bf16.gmra.mxu1 %vm1153_vm0, %v9511_v16 }
 0x19a   : > { %v9523_v10 = vpop.f32.mrf.mxu0  ;;  %7577 = vmatprep.mubr.msk.bf16.mxu1 %vm1153_vm0, %v9517_v21 }
 0x19b   : > { %7572 = vmatpush3.bf16.xpose.msra.mxu1 %v1262_v17  ;;  %v9573_v17 = vpop.f32.mrf.mxu1 }
 0x19c   : > { %8219 = vmatprep.subr.msk.bf16.mxu1 %vm1153_vm0, %v9438_v31  ;;  %v753_v27 = vpop.f32.mrf.mxu0 }
 0x19d   : > { %v7539_v34 = vpop.f32.mrf.mxu1 }
 0x19e   : > { %v9535_v29 = vpop.f32.mrf.mxu0 }
 0x19f   : > { %v9599_v30 = vpop.f32.mrf.mxu1 }
 0x1a0   : > { %v759_v36 = vpop.f32.mrf.mxu0 }
 0x1a1   : > { %v760_v42 = vadd.f32 %v759_v36, %v9370_v49 }
 0x1a2   : > { %v9543_v38 = vpop.f32.mrf.mxu0 }
 0x1a3   : > { %7574 = vmatpush3.bf16.xpose.msra.mxu1 %v1259_v45 }
 0x1a4   : > { %8220 = vmatprep.subr.msk.bf16.mxu1 %vm1153_vm0, %v9541_v37  ;;  %v763_v22 = vpop.f32.mrf.mxu0 }
 0x1a5   : > { %v764_v8 = vadd.f32 %v763_v22, %v9370_v49 }
 0x1a6   : > { %v9553_v53 = vpop.f32.mrf.mxu0 }
 0x1a7   : > { %v9591_v31 = vpack.c.bf16 %v764_v8, %v760_v42 }
 0x1a8   : > { %v769_v54 = vpop.f32.mrf.mxu0 }
 0x1a9   : > { %v770_v12 = vadd.f32 %v769_v54, %v9370_v49  ;;  %v9587_v54 = vrot.slane %v9363_v44, %v394_v5  ;;  %v732_v5 = vadd.f32 %v9466_v50, %v9367_v47  ;;  %v750_v50 = vadd.f32 %v9519_v24, %v9370_v49 }
 0x1aa   : > { %v9559_v57 = vpop.f32.mrf.mxu0 }
 0x1ab   : > { %7576 = vmatpush3.bf16.xpose.msra.mxu1 %v1256_v59  ;;  %v9582_v59 = vpack.c.bf16 %v712_v2, %v708_v28  ;;  %v923_v36 = vadd.f32 %v7539_v34, %v9587_v54  ;;  %v7540_v2 = vpop.f32.mrf.mxu1 }
 0x1ac   : > { %v773_v3 = vpop.f32.mrf.mxu0  ;;  %v926_v8 = vadd.f32 %v7540_v2, %v9587_v54 }
 0x1ad   : > { %v774_v13 = vadd.f32 %v773_v3, %v9370_v49  ;;  %12656 = vst [vmem:[#allocation30_spill] sm:$0xff] %v9582_v59  ;;  %v9589_v3 = vpack.c.bf16 %v722_v6, %v718_v26  ;;  %v9615_v28 = vpop.f32.mrf.mxu1  ;;  %v728_v26 = vadd.f32 %v9454_v40, %v9367_v47  ;;  %v1351_v40 = vsel %vm1153_vm0, %v9591_v31, 0 }
 0x1ae   : > { %v777_v33 = vpop.f32.mrf.mxu0  ;;  %v9621_v34 = vpack.c.bf16 %v926_v8, %v923_v36  ;;  %v744_v8 = vadd.f32 %v9501_v9, %v9370_v49 }
 0x1af   : > { %v9580_v45 = vpack.c.bf16 %v774_v13, %v770_v12  ;;  %12657 = vst [vmem:[#allocation31_spill] sm:$0xff] %v9589_v3  ;;  %v754_v12 = vadd.f32 %v753_v27, %v9370_v49  ;;  %v9626_v55 = vpop.f32.mrf.mxu1  ;;  %v9628_v2 = vpack.c.bf16 %v732_v5, %v728_v26  ;;  %v740_v26 = vadd.f32 %v9481_v63, %v9370_v49 }
 0x1b0   : > { %v9584_v22 = vpop.f32.mrf.mxu0  ;;  %12658 = vst [vmem:[#allocation32_spill] sm:$0xff] %v9621_v34  ;;  %v875_v63 = vadd.f32 %v9468_v51, %v9587_v54  ;;  %v752_v51 = vadd.f32 %v9523_v10, %v9367_v47 }
 0x1b1   : > { %12655 = vst [vmem:[#allocation29_spill] sm:$0xff] %v9580_v45  ;;  %8221 = vmatprep.subr.msk.bf16.mxu0 %vm1153_vm0, %v9580_v45  ;;  %2455 = vrot.lane.b32.xlu1 %v9580_v45, %s9125_s30  ;;  %v1354_v23 = vsel %vm1153_vm0, %v9580_v45, 0  ;;  %12659 = vst [vmem:[#allocation33_spill] sm:$0xff] %v9628_v2  ;;  %v9638_v36 = vpop.f32.mrf.mxu1 }
 0x1b2   : > { %7578 = vmatmul.mubr.msk.bf16.vlgmr.msra.gmra.mxu1 %vm1153_vm0, %v9582_v59  ;;  %v781_v44 = vpop.f32.mrf.mxu0  ;;  %7586 = vmatpush3.bf16.xpose.msra.mxu0 %v1354_v23  ;;  %v778_v23 = vadd.f32 %v777_v33, %v9367_v47 }
 0x1b3   : > { %7581 = vmatprep.mubr.msk.bf16.mxu1 %vm1153_vm0, %v9589_v3  ;;  %8222 = vmatprep.subr.msk.bf16.mxu0 %vm1153_vm0, %v9591_v31  ;;  %v782_v13 = vadd.f32 %v781_v44, %v9367_v47  ;;  %v9632_v44 = vpack.c.bf16 %v754_v12, %v750_v50  ;;  %v9648_v33 = vpop.f32.mrf.mxu1 }
 0x1b4   : > { %v9610_v6 = vpop.f32.mrf.mxu0 }
 0x1b5   : > { %12660 = vst [vmem:[#allocation34_spill] sm:$0xff] %v9632_v44  ;;  %v9634_v58 = vpack.c.bf16 %v782_v13, %v778_v23  ;;  %v9652_v12 = vpop.f32.mrf.mxu1  ;;  %v1348_v4 = vsel %vm1153_vm0, %v9632_v44, 0 }
 0x1b6   : > { %v9619_v42 = vpop.f32.mrf.mxu0 }
 0x1b7   : > { %12661 = vst [vmem:[#allocation35_spill] sm:$0xff] %v9634_v58  ;;  %v7547_v50 = vpop.f32.mrf.mxu1 }
 0x1b8   : > { %v9630_v27 = vpop.f32.mrf.mxu0  ;;  %v955_v9 = vadd.f32 %v7547_v50, %v9587_v54 }
 0x1b9   : > { %v9662_v18 = vpop.f32.mrf.mxu1 }
 0x1ba   : > { %7582 = vmatmul.mubr.msk.bf16.gmra.mxu1 %vm1153_vm0, %v9628_v2  ;;  %v9642_v24 = vpop.f32.mrf.mxu0  ;;  %7588 = vmatpush3.bf16.xpose.msra.mxu0 %v1351_v40  ;;  %v9658_v40 = vpack.c.bf16 %v744_v8, %v740_v26  ;;  %12663 = vst [vmem:[#allocation37_spill] sm:$0xff] %v9662_v18  ;;  %v878_v8 = vadd.f32 %v9496_v7, %v9587_v54 }
 0x1bb   : > { %8223 = vmatprep.subr.msk.bf16.mxu0 %vm1153_vm0, %v9632_v44  ;;  %7609 = vmatprep.mubr.msk.bf16.mxu1 %vm1153_vm0, %v9634_v58  ;;  %v7548_v26 = vpop.f32.mrf.mxu1  ;;  %v762_v7 = vadd.f32 %v9543_v38, %v9367_v47 }
 0x1bc   : > { %v793_v5 = vpop.f32.mrf.mxu0  ;;  %12662 = vst [vmem:[#allocation36_spill] sm:$0xff] %v9658_v40  ;;  %v958_v41 = vadd.f32 %v7548_v26, %v9587_v54  ;;  %v1345_v58 = vsel %vm1153_vm0, %v9658_v40, 0 }
 0x1be   : > { %v9654_v13 = vpop.f32.mrf.mxu0  ;;  %v9676_v11 = vpack.c.bf16 %v958_v41, %v955_v9  ;;  %v867_v41 = vadd.f32 %v9477_v61, %v9587_v54  ;;  %v870_v9 = vadd.f32 %v9515_v20, %v9587_v54 }
 0x1c0   : > { %v799_v23 = vpop.f32.mrf.mxu0  ;;  %12664 = vst [vmem:[#allocation38_spill] sm:$0xff] %v9676_v11  ;;  %v758_v11 = vadd.f32 %v9535_v29, %v9367_v47  ;;  %v9711_v20 = vpack.c.bf16 %v870_v9, %v867_v41  ;;  %v854_v29 = vadd.f32 %v9464_v48, %v9587_v54  ;;  %v942_v48 = vadd.f32 %v9648_v33, %v9587_v54 }
 0x1c1   : > { %v800_v14 = vadd.f32 %v799_v23, %v9370_v49  ;;  %v768_v23 = vadd.f32 %v9553_v53, %v9367_v47  ;;  %v784_v33 = vadd.f32 %v9610_v6, %v9370_v49  ;;  %v910_v6 = vadd.f32 %v9563_v0, %v9587_v54 }
 0x1c2   : > { %v9664_v45 = vpop.f32.mrf.mxu0  ;;  %7590 = vmatpush3.bf16.xpose.msra.mxu0 %v1348_v4  ;;  %v9678_v4 = vpack.c.bf16 %v878_v8, %v875_v63  ;;  %v748_v63 = vadd.f32 %v9509_v15, %v9367_v47  ;;  %v859_v15 = vadd.f32 %v9448_v35, %v9587_v54  ;;  %12669 = vst [vmem:[#allocation43_spill] sm:$0xff] %v9711_v20 }
 0x1c3   : > { %8224 = vmatprep.subr.msk.bf16.mxu0 %vm1153_vm0, %v9658_v40  ;;  %v9705_v40 = vpack.c.bf16 %v762_v7, %v758_v11  ;;  %v772_v35 = vadd.f32 %v9559_v57, %v9367_v47  ;;  %v794_v57 = vadd.f32 %v793_v5, %v9370_v49  ;;  %v790_v7 = vadd.f32 %v9630_v27, %v9370_v49 }
 0x1c4   : > { %v803_v1 = vpop.f32.mrf.mxu0  ;;  %12665 = vst [vmem:[#allocation39_spill] sm:$0xff] %v9678_v4  ;;  %v9700_v38 = vpack.c.bf16 %v752_v51, %v748_v63  ;;  %v780_v5 = vadd.f32 %v9584_v22, %v9370_v49  ;;  %v907_v63 = vadd.f32 %v9555_v19, %v9587_v54  ;;  %v902_v19 = vadd.f32 %v9573_v17, %v9587_v54 }
 0x1c5   : > { %12668 = vst [vmem:[#allocation42_spill] sm:$0xff] %v9705_v40  ;;  %v9738_v51 = vpack.c.bf16 %v772_v35, %v768_v23  ;;  %v9750_v53 = vpack.c.bf16 %v794_v57, %v790_v7  ;;  %v802_v0 = vadd.f32 %v9664_v45, %v9367_v47  ;;  %v894_v17 = vadd.f32 %v9547_v46, %v9587_v54 }
 0x1c6   : > { %v9674_v60 = vpop.f32.mrf.mxu0  ;;  %12666 = vst [vmem:[#allocation40_spill] sm:$0xff] %v9700_v38  ;;  %v9768_v41 = vpack.c.bf16 %v784_v33, %v780_v5  ;;  %v883_v46 = vadd.f32 %v9537_v32, %v9587_v54  ;;  %v980_v5 = vld [vmem:[#allocation7 + $0x18] sm:$0xff] }
 0x1c7   : > { %12672 = vst [vmem:[#allocation46_spill] sm:$0xff] %v9738_v51  ;;  %12674 = vst [vmem:[#allocation48_spill] sm:$0xff] %v9750_v53  ;;  %v1437_v9 = vsel %vm1153_vm0, %v9750_v53, 0 }
 0x1c8   : > { %v809_v50 = vpop.f32.mrf.mxu0  ;;  %12676 = vst [vmem:[#allocation50_spill] sm:$0xff] %v9768_v41  ;;  %v1434_v22 = vsel %vm1153_vm0, %v9768_v41, 0 }
 0x1c9   : > { %v810_v8 = vadd.f32 %v809_v50, %v9370_v49 }
 0x1ca   : > { %v9682_v18 = vpop.f32.mrf.mxu0  ;;  %7592 = vmatpush3.bf16.xpose.msra.mxu0 %v1345_v58  ;;  %v804_v58 = vadd.f32 %v803_v1, %v9370_v49  ;;  %v862_v1 = vadd.f32 %v9458_v43, %v9587_v54  ;;  %v851_v43 = vadd.f32 %v9452_v39, %v9587_v54 }
 0x1cb   : > { %7617 = vmatprep.subr.bf16.mxu0 %v9678_v4 }
 0x1cc   : > { %v813_v26 = vpop.f32.mrf.mxu0  ;;  %v9713_v50 = vpack.c.bf16 %v804_v58, %v800_v14  ;;  %v9730_v14 = vpack.c.bf16 %v862_v1, %v859_v15  ;;  %v9743_v39 = vpack.c.bf16 %v854_v29, %v851_v43  ;;  %v9782_v58 = vpop.f32.mrf.mxu1  ;;  %v788_v15 = vadd.f32 %v9619_v42, %v9367_v47 }
 0x1cd   : > { %v814_v10 = vadd.f32 %v813_v26, %v9370_v49  ;;  %v939_v26 = vadd.f32 %v9626_v55, %v9587_v54  ;;  %v9778_v49 = vpack.c.bf16 %v910_v6, %v907_v63  ;;  %12678 = vst [vmem:[#allocation52_spill] sm:$0xff] %v9782_v58  ;;  %v798_v1 = vadd.f32 %v9654_v13, %v9367_v47 }
 0x1ce   : > { %12670 = vst [vmem:[#allocation44_spill] sm:$0xff] %v9713_v50  ;;  %12671 = vst [vmem:[#allocation45_spill] sm:$0xff] %v9730_v14  ;;  %v1440_v27 = vsel %vm1153_vm0, %v9713_v50, 0  ;;  %v886_v13 = vadd.f32 %v9551_v52, %v9587_v54  ;;  %v808_v29 = vadd.f32 %v9674_v60, %v9367_v47  ;;  %v979_v60 = vld [vmem:[#allocation7 + $0x10] sm:$0xff] }
 0x1cf   : > { %v9703_v61 = vpack.c.bf16 %v814_v10, %v810_v8  ;;  %12673 = vst [vmem:[#allocation47_spill] sm:$0xff] %v9743_v39  ;;  %v9759_v55 = vpack.c.bf16 %v942_v48, %v939_v26  ;;  %12677 = vst [vmem:[#allocation51_spill] sm:$0xff] %v9778_v49  ;;  %v792_v8 = vadd.f32 %v9642_v24, %v9367_v47  ;;  %v977_v48 = vld [vmem:[#allocation7] sm:$0xff] }
 0x1d0   : > { %v899_v10 = vadd.f32 %v9557_v56, %v9587_v54  ;;  %v891_v56 = vadd.f32 %v9529_v25, %v9587_v54  ;;  %v9805_v43 = vpack.c.bf16 %v802_v0, %v798_v1  ;;  %v812_v25 = vadd.f32 %v9682_v18, %v9367_v47  ;;  %v983_v0 = vld [vmem:[#allocation7 + $0x30] sm:$0xff] }
 0x1d1   : > { %12667 = vst [vmem:[#allocation41_spill] sm:$0xff] %v9703_v61  ;;  %7594 = vmatmul.mubr.msk.bf16.vlgmr.msra.gmra.mxu0 %vm1153_vm0, %v9700_v38  ;;  %8225 = vmatprep.subr.msk.bf16.mxu1 %vm1153_vm0, %v9703_v61  ;;  %v1443_v11 = vsel %vm1153_vm0, %v9703_v61, 0  ;;  %12675 = vst [vmem:[#allocation49_spill] sm:$0xff] %v9759_v55  ;;  %v9797_v35 = vpack.c.bf16 %v792_v8, %v788_v15  ;;  %v9828_v7 = vpack.c.bf16 %v886_v13, %v883_v46  ;;  %v981_v46 = vld [vmem:[#allocation7 + $0x20] sm:$0xff]  ;;  %v984_v13 = vld [vmem:[#allocation7 + $0x38] sm:$0xff] }
 0x1d2   : > { %7597 = vmatprep.mubr.msk.bf16.mxu0 %vm1153_vm0, %v9705_v40  ;;  %7602 = vmatpush3.bf16.xpose.msra.mxu1 %v1443_v11  ;;  %v7551_v11 = vpop.f32.mrf.mxu1  ;;  %v9803_v24 = vpack.c.bf16 %v902_v19, %v899_v10  ;;  %12681 = vst [vmem:[#allocation55_spill] sm:$0xff] %v9805_v43  ;;  %v9818_v42 = vpack.c.bf16 %v894_v17, %v891_v56  ;;  %v1078_v40 = vld [vmem:[#allocation7 + $0x328] sm:$0xff] }
 0x1d3   : > { %8226 = vmatprep.subr.msk.bf16.mxu1 %vm1153_vm0, %v9713_v50  ;;  %7618 = vmatpush3.bf16.msra.mxu0 %v9678_v4  ;;  %12679 = vst [vmem:[#allocation53_spill] sm:$0xff] %v9797_v35  ;;  %v9826_v57 = vpack.c.bf16 %v812_v25, %v808_v29  ;;  %12685 = vst [vmem:[#allocation59_spill] sm:$0xff] %v9828_v7  ;;  %v971_v18 = vadd.f32 %v7551_v11, %v9587_v54  ;;  %v1046_v4 = vld [vmem:[#allocation7 + $0x228] sm:$0xff] }
 0x1d4   : > { %7619 = vmatprep.subr.bf16.mxu0 %v9711_v20  ;;  %12680 = vst [vmem:[#allocation54_spill] sm:$0xff] %v9803_v24  ;;  %v9811_v45 = vpop.f32.mrf.mxu1  ;;  %12683 = vst [vmem:[#allocation57_spill] sm:$0xff] %v9818_v42 }
 0x1d5   : > { %12682 = vst [vmem:[#allocation56_spill] sm:$0xff] %v9811_v45  ;;  %12684 = vst [vmem:[#allocation58_spill] sm:$0xff] %v9826_v57 }
 0x1d6   : > { %v7552_v23 = vpop.f32.mrf.mxu1 }
 0x1d7   : > { %7620 = vmatpush3.bf16.msra.mxu0 %v9711_v20  ;;  %v974_v32 = vadd.f32 %v7552_v23, %v9587_v54  ;;  %v982_v23 = vld [vmem:[#allocation7 + $0x28] sm:$0xff] }
 0x1d8   : > { %7621 = vmatprep.subr.bf16.mxu0 %v9730_v14  ;;  %v9841_v47 = vpop.f32.mrf.mxu1 }
 0x1d9   : > { %7598 = vmatmul.mubr.msk.bf16.gmra.mxu0 %vm1153_vm0, %v9738_v51  ;;  %v9836_v52 = vpack.c.bf16 %v974_v32, %v971_v18  ;;  %12687 = vst [vmem:[#allocation61_spill] sm:$0xff] %v9841_v47  ;;  %v1079_v51 = vld [vmem:[#allocation7 + $0x330] sm:$0xff] }
 0x1da   : > { %7604 = vmatpush3.bf16.xpose.msra.mxu1 %v1440_v27 }
 0x1db   : > { %8227 = vmatprep.subr.msk.bf16.mxu1 %vm1153_vm0, %v9750_v53  ;;  %7622 = vmatpush3.bf16.msra.mxu0 %v9730_v14  ;;  %12686 = vst [vmem:[#allocation60_spill] sm:$0xff] %v9836_v52  ;;  %v1080_v53 = vld [vmem:[#allocation7 + $0x338] sm:$0xff] }
 0x1dc   : > { %7623 = vmatprep.subr.bf16.mxu0 %v9743_v39 }
 0x1df   : > { %7624 = vmatpush3.bf16.msra.mxu0 %v9743_v39 }
 0x1e0   : > { %7649 = vmatprep.subr.bf16.mxu0 %v9759_v55 }
 0x1e2   : > { %7606 = vmatpush3.bf16.xpose.msra.mxu1 %v1437_v9 }
 0x1e3   : > { %8228 = vmatprep.subr.msk.bf16.mxu1 %vm1153_vm0, %v9768_v41 }
 0x1ea   : > { %7608 = vmatpush3.bf16.xpose.msra.mxu1 %v1434_v22  ;;  %v978_v22 = vld [vmem:[#allocation7 + $0x8] sm:$0xff] }
 0x1eb   : > { %7633 = vmatprep.subr.bf16.mxu1 %v9778_v49 }
 0x1f1   : > { %7610 = vmatmul.mubr.msk.bf16.vlgmr.msra.gmra.mxu1 %vm1153_vm0, %v9797_v35 }
 0x1f2   : > { %7613 = vmatprep.mubr.msk.bf16.mxu1 %vm1153_vm0, %v9805_v43  ;;  %7634 = vmatpush3.bf16.msra.mxu1 %v9778_v49  ;;  %v1048_v49 = vld [vmem:[#allocation7 + $0x238] sm:$0xff] }
 0x1f3   : > { %7635 = vmatprep.subr.bf16.mxu1 %v9803_v24 }
 0x1f6   : > { %7636 = vmatpush3.bf16.msra.mxu1 %v9803_v24  ;;  %v1047_v24 = vld [vmem:[#allocation7 + $0x230] sm:$0xff] }
 0x1f7   : > { %7637 = vmatprep.subr.bf16.mxu1 %v9818_v42 }
 0x1f9   : > { %7614 = vmatmul.mubr.msk.bf16.gmra.mxu1 %vm1153_vm0, %v9826_v57 }
 0x1fa   : > { %7638 = vmatpush3.bf16.msra.mxu1 %v9818_v42 }
 0x1fb   : > { %7639 = vmatprep.subr.bf16.mxu1 %v9828_v7 }
 0x1fe   : > { %7640 = vmatpush3.bf16.msra.mxu1 %v9828_v7 }
 0x1ff   : > { %7665 = vmatprep.subr.bf16.mxu1 %v9836_v52 }
 0x251   : > { %v7563_v26 = vpop.f32.mrf.mxu1 }
 0x252   : > { %v9843_v27 = vadd.f32 %v7563_v26, %v979_v60 }
 0x253   : > { %v1212_v33 = vpop.f32.mrf.mxu1 }
 0x254   : > { %v9845_v9 = vadd.f32 %v1212_v33, %v977_v48  ;;  %v1517_v63 = vsel %vm1510_vm1, %v9843_v27, -inf }
 0x255   : > { %1518 = vmax.xlane.f32.xlu1 %v1517_v63  ;;  %v7564_v6 = vpop.f32.mrf.mxu1 }
 0x256   : > { %v9849_v8 = vadd.f32 %v7564_v6, %v980_v5  ;;  %v1511_v10 = vsel %vm1510_vm1, %v9845_v9, -inf  ;;  %v1011_v6 = vld [vmem:[#allocation7 + $0x110] sm:$0xff] }
 0x257   : > { %v1215_v19 = vpop.f32.mrf.mxu1  ;;  %1512 = vmax.xlane.f32.xlu0 %v1511_v10  ;;  %v1009_v10 = vld [vmem:[#allocation7 + $0x100] sm:$0xff] }
 0x258   : > { %v9853_v15 = vadd.f32 %v1215_v19, %v978_v22  ;;  %v1520_v1 = vsel %vm1510_vm1, %v9849_v8, -inf }
 0x259   : > { %1521 = vmax.xlane.f32.xlu1 %v1520_v1  ;;  %v7567_v11 = vpop.f32.mrf.mxu1  ;;  %v1012_v1 = vld [vmem:[#allocation7 + $0x118] sm:$0xff] }
 0x25a   : > { %v9857_v56 = vadd.f32 %v7567_v11, %v983_v0  ;;  %v1514_v17 = vsel %vm1510_vm1, %v9853_v15, -inf }
 0x25b   : > { %v1228_v25 = vpop.f32.mrf.mxu1  ;;  %1515 = vmax.xlane.f32.xlu0 %v1514_v17 }
 0x25c   : > { %v9861_v18 = vadd.f32 %v1228_v25, %v981_v46  ;;  %v1529_v60 = vsel %vm1510_vm1, %v9857_v56, -inf  ;;  %v1010_v46 = vld [vmem:[#allocation7 + $0x108] sm:$0xff] }
 0x25d   : > { %v7568_v29 = vpop.f32.mrf.mxu1 }
 0x25e   : > { %v9863_v32 = vadd.f32 %v7568_v29, %v984_v13  ;;  %v1523_v5 = vsel %vm1510_vm1, %v9861_v18, -inf }
 0x25f   : > { %v1231_v26 = vpop.f32.mrf.mxu1  ;;  %1530 = vmax.xlane.f32.xlu0 %v1529_v60 }
 0x260   : > { %v9867_v48 = vadd.f32 %v1231_v26, %v982_v23  ;;  %v1532_v33 = vsel %vm1510_vm1, %v9863_v32, -inf  ;;  %v1015_v23 = vld [vmem:[#allocation7 + $0x130] sm:$0xff] }
 0x261   : > { %1533 = vmax.xlane.f32.xlu1 %v1532_v33 }
 0x262   : > { %v1526_v63 = vsel %vm1510_vm1, %v9867_v48, -inf }
 0x263   : > { %1524 = vmax.xlane.f32.xlu0 %v1523_v5 }
 0x265   : > { %1527 = vmax.xlane.f32.xlu1 %v1526_v63  ;;  %v1013_v63 = vld [vmem:[#allocation7 + $0x120] sm:$0xff] }
 0x272   : > { %v7579_v22 = vpop.f32.mrf.mxu1 }
 0x273   : > { %v9875_v19 = vadd.f32 %v7579_v22, %v1011_v6 }
 0x274   : > { %v1301_v0 = vpop.f32.mrf.mxu1 }
 0x275   : > { %v9877_v11 = vadd.f32 %v1301_v0, %v1009_v10  ;;  %v1541_v17 = vsel %vm1510_vm1, %v9875_v19, -inf  ;;  %v1016_v10 = vld [vmem:[#allocation7 + $0x138] sm:$0xff] }
 0x276   : > { %v7580_v25 = vpop.f32.mrf.mxu1  ;;  %1542 = vmax.xlane.f32.xlu0 %v1541_v17 }
 0x277   : > { %v9881_v13 = vadd.f32 %v7580_v25, %v1012_v1  ;;  %v1535_v33 = vsel %vm1510_vm1, %v9877_v11, -inf }
 0x278   : > { %v1304_v29 = vpop.f32.mrf.mxu1 }
 0x279   : > { %v9883_v60 = vadd.f32 %v1304_v29, %v1010_v46  ;;  %v1544_v26 = vsel %vm1510_vm1, %v9881_v13, -inf  ;;  %v1014_v46 = vld [vmem:[#allocation7 + $0x128] sm:$0xff] }
 0x27a   : > { %v7583_v5 = vpop.f32.mrf.mxu1  ;;  %1545 = vmax.xlane.f32.xlu1 %v1544_v26  ;;  %1536 = vmax.xlane.f32.xlu0 %v1535_v33 }
 0x27b   : > { %v9889_v6 = vadd.f32 %v7583_v5, %v1015_v23  ;;  %v1538_v1 = vsel %vm1510_vm1, %v9883_v60, -inf }
 0x27c   : > { %v1317_v22 = vpop.f32.mrf.mxu1 }
 0x27d   : > { %v9891_v0 = vadd.f32 %v1317_v22, %v1013_v63  ;;  %v1553_v17 = vsel %vm1510_vm1, %v9889_v6, -inf  ;;  %v1043_v22 = vld [vmem:[#allocation7 + $0x210] sm:$0xff] }
 0x27e   : > { %v7584_v25 = vpop.f32.mrf.mxu1  ;;  %1539 = vmax.xlane.f32.xlu1 %v1538_v1  ;;  %1554 = vmax.xlane.f32.xlu0 %v1553_v17  ;;  %v1041_v17 = vld [vmem:[#allocation7 + $0x200] sm:$0xff] }
 0x27f   : > { %v9897_v29 = vadd.f32 %v7584_v25, %v1016_v10  ;;  %v1547_v5 = vsel %vm1510_vm1, %v9891_v0, -inf }
 0x280   : > { %v1320_v26 = vpop.f32.mrf.mxu1 }
 0x281   : > { %v9899_v33 = vadd.f32 %v1320_v26, %v1014_v46  ;;  %v1556_v23 = vsel %vm1510_vm1, %v9897_v29, -inf  ;;  %v1044_v46 = vld [vmem:[#allocation7 + $0x218] sm:$0xff] }
 0x282   : > { %1557 = vmax.xlane.f32.xlu1 %v1556_v23  ;;  %1548 = vmax.xlane.f32.xlu0 %v1547_v5  ;;  %v1042_v23 = vld [vmem:[#allocation7 + $0x208] sm:$0xff] }
 0x283   : > { %v1550_v63 = vsel %vm1510_vm1, %v9899_v33, -inf }
 0x286   : > { %1551 = vmax.xlane.f32.xlu1 %v1550_v63 }
 0x291   : > { %v7595_v1 = vpop.f32.mrf.mxu0 }
 0x292   : > { %v9907_v10 = vadd.f32 %v7595_v1, %v1043_v22 }
 0x293   : > { %v1390_v25 = vpop.f32.mrf.mxu0 }
 0x294   : > { %v9909_v26 = vadd.f32 %v1390_v25, %v1041_v17  ;;  %v1565_v42 = vsel %vm1510_vm1, %v9907_v10, -inf  ;;  %v1045_v25 = vld [vmem:[#allocation7 + $0x220] sm:$0xff] }
 0x295   : > { %v7596_v7 = vpop.f32.mrf.mxu0  ;;  %1566 = vmax.xlane.f32.xlu0 %v1565_v42 }
 0x296   : > { %v9913_v5 = vadd.f32 %v7596_v7, %v1044_v46  ;;  %v1559_v1 = vsel %vm1510_vm1, %v9909_v26, -inf }
 0x297   : > { %v1393_v39 = vpop.f32.mrf.mxu0 }
 0x298   : > { %v9915_v63 = vadd.f32 %v1393_v39, %v1042_v23  ;;  %v1568_v22 = vsel %vm1510_vm1, %v9913_v5, -inf }
 0x299   : > { %v7599_v17 = vpop.f32.mrf.mxu0  ;;  %1569 = vmax.xlane.f32.xlu1 %v1568_v22  ;;  %1560 = vmax.xlane.f32.xlu0 %v1559_v1 }
 0x29a   : > { %v9921_v14 = vadd.f32 %v7599_v17, %v1047_v24  ;;  %v1562_v39 = vsel %vm1510_vm1, %v9915_v63, -inf }
 0x29b   : > { %v1406_v42 = vpop.f32.mrf.mxu0 }
 0x29c   : > { %v9923_v7 = vadd.f32 %v1406_v42, %v1045_v25  ;;  %v1577_v46 = vsel %vm1510_vm1, %v9921_v14, -inf  ;;  %v1075_v42 = vld [vmem:[#allocation7 + $0x310] sm:$0xff] }
 0x29d   : > { %v7600_v23 = vpop.f32.mrf.mxu0  ;;  %1563 = vmax.xlane.f32.xlu1 %v1562_v39  ;;  %1578 = vmax.xlane.f32.xlu0 %v1577_v46  ;;  %v1073_v46 = vld [vmem:[#allocation7 + $0x300] sm:$0xff] }
 0x29e   : > { %v9929_v20 = vadd.f32 %v7600_v23, %v1048_v49  ;;  %v1571_v17 = vsel %vm1510_vm1, %v9923_v7, -inf }
 0x29f   : > { %v1409_v22 = vpop.f32.mrf.mxu0 }
 0x2a0   : > { %v9931_v1 = vadd.f32 %v1409_v22, %v1046_v4  ;;  %v1580_v24 = vsel %vm1510_vm1, %v9929_v20, -inf  ;;  %v1076_v4 = vld [vmem:[#allocation7 + $0x318] sm:$0xff] }
 0x2a1   : > { %1581 = vmax.xlane.f32.xlu1 %v1580_v24  ;;  %1572 = vmax.xlane.f32.xlu0 %v1571_v17  ;;  %v1074_v24 = vld [vmem:[#allocation7 + $0x308] sm:$0xff] }
 0x2a2   : > { %v1574_v25 = vsel %vm1510_vm1, %v9931_v1, -inf }
 0x2a5   : > { %1575 = vmax.xlane.f32.xlu1 %v1574_v25 }
 0x2b1   : > { %v7611_v39 = vpop.f32.mrf.mxu1 }
 0x2b2   : > { %v9939_v49 = vadd.f32 %v7611_v39, %v1075_v42 }
 0x2b3   : > { %v1479_v23 = vpop.f32.mrf.mxu1 }
 0x2b4   : > { %v9941_v22 = vadd.f32 %v1479_v23, %v1073_v46  ;;  %v1589_v43 = vsel %vm1510_vm1, %v9939_v49, -inf  ;;  %v1077_v23 = vld [vmem:[#allocation7 + $0x320] sm:$0xff] }
 0x2b5   : > { %v7612_v57 = vpop.f32.mrf.mxu1  ;;  %1590 = vmax.xlane.f32.xlu0 %v1589_v43 }
 0x2b6   : > { %v9945_v17 = vadd.f32 %v7612_v57, %v1076_v4  ;;  %v1583_v39 = vsel %vm1510_vm1, %v9941_v22, -inf }
 0x2b7   : > { %v1482_v35 = vpop.f32.mrf.mxu1 }
 0x2b8   : > { %v9947_v25 = vadd.f32 %v1482_v35, %v1074_v24  ;;  %v1592_v42 = vsel %vm1510_vm1, %v9945_v17, -inf }
 0x2b9   : > { %v7615_v46 = vpop.f32.mrf.mxu1  ;;  %1593 = vmax.xlane.f32.xlu1 %v1592_v42  ;;  %1584 = vmax.xlane.f32.xlu0 %v1583_v39 }
 0x2ba   : > { %v9953_v41 = vadd.f32 %v7615_v46, %v1079_v51  ;;  %v1586_v35 = vsel %vm1510_vm1, %v9947_v25, -inf }
 0x2bb   : > { %v1495_v43 = vpop.f32.mrf.mxu1 }
 0x2bc   : > { %v9955_v57 = vadd.f32 %v1495_v43, %v1077_v23  ;;  %v1601_v4 = vsel %vm1510_vm1, %v9953_v41, -inf  ;;  %v9971_v43 = vpop.permute.xlu1 %2223 }
 0x2bd   : > { %v7616_v24 = vpop.f32.mrf.mxu1  ;;  %1587 = vmax.xlane.f32.xlu1 %v1586_v35  ;;  %1602 = vmax.xlane.f32.xlu0 %v1601_v4  ;;  %12688 = vst [vmem:[#allocation62_spill] sm:$0xff] %v9971_v43 }
 0x2be   : > { %v9961_v58 = vadd.f32 %v7616_v24, %v1080_v53  ;;  %v1595_v46 = vsel %vm1510_vm1, %v9955_v57, -inf }
 0x2bf   : > { %v1498_v42 = vpop.f32.mrf.mxu1 }
 0x2c0   : > { %v9963_v39 = vadd.f32 %v1498_v42, %v1078_v40  ;;  %v1604_v51 = vsel %vm1510_vm1, %v9961_v58, -inf  ;;  %v9973_v35 = vpop.permute.xlu1 %2213  ;;  %v9977_v40 = vpop.permute.xlu0 %2211 }
 0x2c1   : > { %1605 = vmax.xlane.f32.xlu1 %v1604_v51  ;;  %1596 = vmax.xlane.f32.xlu0 %v1595_v46  ;;  %12689 = vst [vmem:[#allocation63_spill] sm:$0xff] %v9973_v35  ;;  %12691 = vst [vmem:[#allocation65_spill] sm:$0xff] %v9977_v40 }
 0x2c2   : > { %v1598_v23 = vsel %vm1510_vm1, %v9963_v39, -inf }
 0x2c4   : > { %v9975_v53 = vpop.permute.xlu1 %2227  ;;  %v9981_v24 = vpop.permute.xlu0 %2225 }
 0x2c5   : > { %1599 = vmax.xlane.f32.xlu1 %v1598_v23  ;;  %12690 = vst [vmem:[#allocation64_spill] sm:$0xff] %v9975_v53  ;;  %12693 = vst [vmem:[#allocation67_spill] sm:$0xff] %v9981_v24 }
 0x2c8   : > { %v9979_v4 = vpop.permute.xlu1 %2340  ;;  %v9985_v51 = vpop.permute.xlu0 %2229 }
 0x2c9   : > { %12692 = vst [vmem:[#allocation66_spill] sm:$0xff] %v9979_v4 }
 0x2cc   : > { %v9983_v42 = vpop.permute.xlu1 %2342  ;;  %v9989_v52 = vpop.permute.xlu0 %2338 }
 0x2cd   : > { %12694 = vst [vmem:[#allocation68_spill] sm:$0xff] %v9983_v42  ;;  %12696 = vst [vmem:[#allocation70_spill] sm:$0xff] %v9989_v52 }
 0x2d0   : > { %v9987_v46 = vpop.permute.xlu1 %2455 }
 0x2d1   : > { %12695 = vst [vmem:[#allocation69_spill] sm:$0xff] %v9987_v46 }
 0x2de   : > { %v1519_v23 = vpop.xlane.xlu1 %1518 }
 0x2df   : > { %v1609_v43 = vsub.f32 %v9843_v27, %v1519_v23 }
 0x2e0   : > { %v1513_v35 = vpop.xlane.xlu0 %1512 }
 0x2e1   : > { %v1643_v38 = vmul.f32 1.442695, %v1609_v43  ;;  %v1607_v53 = vsub.f32 %v9845_v9, %v1513_v35 }
 0x2e2   : > { %v1522_v40 = vpop.xlane.xlu1 %1521 }
 0x2e3   : > { %8422 = vpow2.f32 %v1643_v38  ;;  %v1639_v4 = vmul.f32 1.442695, %v1607_v53  ;;  %v1610_v24 = vsub.f32 %v9849_v8, %v1522_v40 }
 0x2e4   : > { %v1516_v50 = vpop.xlane.xlu0 %1515 }
 0x2e5   : > { %8424 = vpow2.f32 %v1639_v4  ;;  %v1645_v42 = vmul.f32 1.442695, %v1610_v24  ;;  %v1608_v47 = vsub.f32 %v9853_v15, %v1516_v50 }
 0x2e7   : > { %8426 = vpow2.f32 %v1645_v42  ;;  %v1641_v46 = vmul.f32 1.442695, %v1608_v47 }
 0x2e8   : > { %v1531_v52 = vpop.xlane.xlu0 %1530 }
 0x2e9   : > { %8428 = vpow2.f32 %v1641_v46  ;;  %v1613_v27 = vsub.f32 %v9857_v56, %v1531_v52 }
 0x2ea   : > { %v1534_v23 = vpop.xlane.xlu1 %1533 }
 0x2eb   : > { %v1651_v43 = vmul.f32 1.442695, %v1613_v27  ;;  %v1614_v9 = vsub.f32 %v9863_v32, %v1534_v23 }
 0x2ec   : > { %v1525_v35 = vpop.xlane.xlu0 %1524 }
 0x2ed   : > { %8430 = vpow2.f32 %v1651_v43  ;;  %v1653_v38 = vmul.f32 1.442695, %v1614_v9  ;;  %v1611_v8 = vsub.f32 %v9861_v18, %v1525_v35 }
 0x2ee   : > { %v1528_v53 = vpop.xlane.xlu1 %1527 }
 0x2ef   : > { %8432 = vpow2.f32 %v1653_v38  ;;  %v1647_v40 = vmul.f32 1.442695, %v1611_v8  ;;  %v1612_v50 = vsub.f32 %v9867_v48, %v1528_v53 }
 0x2f0   : > { %v9999_v15 = vpop.eup %8422 }
 0x2f1   : > { %8434 = vpow2.f32 %v1647_v40  ;;  %v1649_v47 = vmul.f32 1.442695, %v1612_v50  ;;  %v1709_v52 = vsel %vm1510_vm1, %v9999_v15, 0.0 }
 0x2f2   : > { %v10003_v56 = vpop.eup %8424  ;;  %1710 = vadd.xlane.f32.xlu0 %v1709_v52 }
 0x2f3   : > { %8436 = vpow2.f32 %v1649_v47  ;;  %v1703_v4 = vsel %vm1510_vm1, %v10003_v56, 0.0 }
 0x2f4   : > { %v10005_v32 = vpop.eup %8426 }
 0x2f5   : > { %v1712_v18 = vsel %vm1510_vm1, %v10005_v32, 0.0 }
 0x2f6   : > { %v10011_v48 = vpop.eup %8428  ;;  %1713 = vadd.xlane.f32.xlu1 %v1712_v18  ;;  %1704 = vadd.xlane.f32.xlu0 %v1703_v4 }
 0x2f7   : > { %v1706_v24 = vsel %vm1510_vm1, %v10011_v48, 0.0 }
 0x2fa   : > { %v10015_v42 = vpop.eup %8430  ;;  %1707 = vadd.xlane.f32.xlu1 %v1706_v24 }
 0x2fb   : > { %v1721_v46 = vsel %vm1510_vm1, %v10015_v42, 0.0 }
 0x2fc   : > { %v10019_v27 = vpop.eup %8432  ;;  %1722 = vadd.xlane.f32.xlu0 %v1721_v46 }
 0x2fd   : > { %v1724_v23 = vsel %vm1510_vm1, %v10019_v27, 0.0 }
 0x2fe   : > { %v10023_v43 = vpop.eup %8434  ;;  %1725 = vadd.xlane.f32.xlu1 %v1724_v23 }
 0x2ff   : > { %v1543_v9 = vpop.xlane.xlu0 %1542  ;;  %v1715_v35 = vsel %vm1510_vm1, %v10023_v43, 0.0 }
 0x300   : > { %v10027_v38 = vpop.eup %8436  ;;  %v1617_v8 = vsub.f32 %v9875_v19, %v1543_v9  ;;  %1716 = vadd.xlane.f32.xlu0 %v1715_v35 }
 0x301   : > { %v1718_v53 = vsel %vm1510_vm1, %v10027_v38, 0.0 }
 0x302   : > { %v1659_v40 = vmul.f32 1.442695, %v1617_v8  ;;  %1719 = vadd.xlane.f32.xlu1 %v1718_v53 }
 0x303   : > { %v1546_v50 = vpop.xlane.xlu1 %1545  ;;  %v1537_v47 = vpop.xlane.xlu0 %1536 }
 0x304   : > { %8438 = vpow2.f32 %v1659_v40  ;;  %v1618_v52 = vsub.f32 %v9881_v13, %v1546_v50  ;;  %v1615_v18 = vsub.f32 %v9877_v11, %v1537_v47 }
 0x306   : > { %v1661_v4 = vmul.f32 1.442695, %v1618_v52  ;;  %v1655_v24 = vmul.f32 1.442695, %v1615_v18 }
 0x307   : > { %v1540_v46 = vpop.xlane.xlu1 %1539  ;;  %v1555_v23 = vpop.xlane.xlu0 %1554 }
 0x308   : > { %8440 = vpow2.f32 %v1661_v4  ;;  %v1616_v19 = vsub.f32 %v9883_v60, %v1540_v46  ;;  %v1621_v9 = vsub.f32 %v9889_v6, %v1555_v23 }
 0x309   : > { %8442 = vpow2.f32 %v1655_v24 }
 0x30a   : > { %v1657_v35 = vmul.f32 1.442695, %v1616_v19  ;;  %v1667_v8 = vmul.f32 1.442695, %v1621_v9 }
 0x30b   : > { %v1558_v53 = vpop.xlane.xlu1 %1557  ;;  %v1549_v45 = vpop.xlane.xlu0 %1548 }
 0x30c   : > { %8444 = vpow2.f32 %v1657_v35  ;;  %v1622_v40 = vsub.f32 %v9897_v29, %v1558_v53  ;;  %v1619_v13 = vsub.f32 %v9891_v0, %v1549_v45 }
 0x30d   : > { %8446 = vpow2.f32 %v1667_v8 }
 0x30e   : > { %v1669_v11 = vmul.f32 1.442695, %v1622_v40  ;;  %v1663_v50 = vmul.f32 1.442695, %v1619_v13 }
 0x30f   : > { %v1552_v47 = vpop.xlane.xlu1 %1551 }
 0x310   : > { %8448 = vpow2.f32 %v1669_v11  ;;  %v1620_v52 = vsub.f32 %v9899_v33, %v1552_v47 }
 0x311   : > { %v10039_v60 = vpop.eup %8438  ;;  %8450 = vpow2.f32 %v1663_v50 }
 0x312   : > { %v1665_v6 = vmul.f32 1.442695, %v1620_v52  ;;  %v1733_v18 = vsel %vm1510_vm1, %v10039_v60, 0.0 }
 0x313   : > { %1734 = vadd.xlane.f32.xlu0 %v1733_v18 }
 0x314   : > { %8452 = vpow2.f32 %v1665_v6 }
 0x315   : > { %v10043_v4 = vpop.eup %8440 }
 0x316   : > { %v10045_v29 = vpop.eup %8442  ;;  %v1736_v45 = vsel %vm1510_vm1, %v10043_v4, 0.0 }
 0x317   : > { %1737 = vadd.xlane.f32.xlu1 %v1736_v45  ;;  %v1727_v0 = vsel %vm1510_vm1, %v10045_v29, 0.0 }
 0x318   : > { %1728 = vadd.xlane.f32.xlu0 %v1727_v0 }
 0x319   : > { %v10051_v33 = vpop.eup %8444 }
 0x31a   : > { %v10053_v24 = vpop.eup %8446  ;;  %v1730_v46 = vsel %vm1510_vm1, %v10051_v33, 0.0 }
 0x31b   : > { %12697 = vst [vmem:[#allocation71_spill] sm:$0xff] %v10053_v24  ;;  %1731 = vadd.xlane.f32.xlu1 %v1730_v46  ;;  %v1745_v23 = vsel %vm1510_vm1, %v10053_v24, 0.0 }
 0x31c   : > { %1746 = vadd.xlane.f32.xlu0 %v1745_v23 }
 0x31d   : > { %v10059_v19 = vpop.eup %8448 }
 0x31e   : > { %v10061_v9 = vpop.eup %8450  ;;  %v1748_v35 = vsel %vm1510_vm1, %v10059_v19, 0.0  ;;  %v1567_v8 = vpop.xlane.xlu0 %1566 }
 0x31f   : > { %1749 = vadd.xlane.f32.xlu1 %v1748_v35  ;;  %v1739_v53 = vsel %vm1510_vm1, %v10061_v9, 0.0  ;;  %v1625_v40 = vsub.f32 %v9907_v10, %v1567_v8 }
 0x320   : > { %1740 = vadd.xlane.f32.xlu0 %v1739_v53 }
 0x321   : > { %v10068_v13 = vpop.eup %8452  ;;  %v1675_v11 = vmul.f32 1.442695, %v1625_v40 }
 0x322   : > { %v1570_v50 = vpop.xlane.xlu1 %1569  ;;  %v1742_v47 = vsel %vm1510_vm1, %v10068_v13, 0.0  ;;  %v1561_v52 = vpop.xlane.xlu0 %1560 }
 0x323   : > { %8454 = vpow2.f32 %v1675_v11  ;;  %v1626_v6 = vsub.f32 %v9913_v5, %v1570_v50  ;;  %1743 = vadd.xlane.f32.xlu1 %v1742_v47  ;;  %v1623_v18 = vsub.f32 %v9909_v26, %v1561_v52 }
 0x325   : > { %v1677_v45 = vmul.f32 1.442695, %v1626_v6  ;;  %v1671_v0 = vmul.f32 1.442695, %v1623_v18 }
 0x326   : > { %v1564_v46 = vpop.xlane.xlu1 %1563  ;;  %v1579_v23 = vpop.xlane.xlu0 %1578 }
 0x327   : > { %8456 = vpow2.f32 %v1677_v45  ;;  %v1624_v10 = vsub.f32 %v9915_v63, %v1564_v46  ;;  %v1629_v35 = vsub.f32 %v9921_v14, %v1579_v23 }
 0x328   : > { %8458 = vpow2.f32 %v1671_v0 }
 0x329   : > { %v1673_v8 = vmul.f32 1.442695, %v1624_v10  ;;  %v1683_v53 = vmul.f32 1.442695, %v1629_v35 }
 0x32a   : > { %v1582_v40 = vpop.xlane.xlu1 %1581  ;;  %v1573_v24 = vpop.xlane.xlu0 %1572 }
 0x32b   : > { %8460 = vpow2.f32 %v1673_v8  ;;  %v1630_v5 = vsub.f32 %v9929_v20, %v1582_v40  ;;  %v1627_v11 = vsub.f32 %v9923_v7, %v1573_v24 }
 0x32c   : > { %8462 = vpow2.f32 %v1683_v53 }
 0x32d   : > { %v1685_v26 = vmul.f32 1.442695, %v1630_v5  ;;  %v1679_v50 = vmul.f32 1.442695, %v1627_v11 }
 0x32e   : > { %v1576_v47 = vpop.xlane.xlu1 %1575 }
 0x32f   : > { %8464 = vpow2.f32 %v1685_v26  ;;  %v1628_v52 = vsub.f32 %v9931_v1, %v1576_v47 }
 0x330   : > { %v10079_v63 = vpop.eup %8454  ;;  %8466 = vpow2.f32 %v1679_v50 }
 0x331   : > { %v1681_v14 = vmul.f32 1.442695, %v1628_v52  ;;  %v1757_v6 = vsel %vm1510_vm1, %v10079_v63, 0.0 }
 0x332   : > { %1758 = vadd.xlane.f32.xlu0 %v1757_v6 }
 0x333   : > { %8468 = vpow2.f32 %v1681_v14 }
 0x334   : > { %v10083_v18 = vpop.eup %8456 }
 0x335   : > { %v10085_v20 = vpop.eup %8458  ;;  %v1760_v7 = vsel %vm1510_vm1, %v10083_v18, 0.0 }
 0x336   : > { %1761 = vadd.xlane.f32.xlu1 %v1760_v7  ;;  %v1751_v1 = vsel %vm1510_vm1, %v10085_v20, 0.0 }
 0x337   : > { %1752 = vadd.xlane.f32.xlu0 %v1751_v1 }
 0x338   : > { %v10091_v24 = vpop.eup %8460 }
 0x339   : > { %v10093_v45 = vpop.eup %8462  ;;  %v1754_v0 = vsel %vm1510_vm1, %v10091_v24, 0.0 }
 0x33a   : > { %1755 = vadd.xlane.f32.xlu1 %v1754_v0  ;;  %v1769_v46 = vsel %vm1510_vm1, %v10093_v45, 0.0 }
 0x33b   : > { %1770 = vadd.xlane.f32.xlu0 %v1769_v46 }
 0x33c   : > { %v10099_v23 = vpop.eup %8464 }
 0x33d   : > { %v10101_v10 = vpop.eup %8466  ;;  %v1772_v35 = vsel %vm1510_vm1, %v10099_v23, 0.0 }
 0x33e   : > { %1773 = vadd.xlane.f32.xlu1 %v1772_v35  ;;  %v1763_v8 = vsel %vm1510_vm1, %v10101_v10, 0.0  ;;  %v1591_v53 = vpop.xlane.xlu0 %1590 }
 0x33f   : > { %1764 = vadd.xlane.f32.xlu0 %v1763_v8  ;;  %v1633_v40 = vsub.f32 %v9939_v49, %v1591_v53 }
 0x340   : > { %v10108_v5 = vpop.eup %8468 }
 0x341   : > { %v1691_v11 = vmul.f32 1.442695, %v1633_v40  ;;  %v1766_v26 = vsel %vm1510_vm1, %v10108_v5, 0.0 }
 0x342   : > { %v1594_v50 = vpop.xlane.xlu1 %1593  ;;  %1767 = vadd.xlane.f32.xlu1 %v1766_v26  ;;  %v1585_v47 = vpop.xlane.xlu0 %1584 }
 0x343   : > { %8470 = vpow2.f32 %v1691_v11  ;;  %v1634_v52 = vsub.f32 %v9945_v17, %v1594_v50  ;;  %v1631_v14 = vsub.f32 %v9941_v22, %v1585_v47 }
 0x345   : > { %v1693_v6 = vmul.f32 1.442695, %v1634_v52  ;;  %v1687_v7 = vmul.f32 1.442695, %v1631_v14 }
 0x346   : > { %v1588_v1 = vpop.xlane.xlu1 %1587  ;;  %v1603_v11 = vpop.xlane.xlu0 %1602 }
 0x347   : > { %8472 = vpow2.f32 %v1693_v6  ;;  %v1632_v49 = vsub.f32 %v9947_v25, %v1588_v1  ;;  %v1637_v50 = vsub.f32 %v9953_v41, %v1603_v11 }
 0x348   : > { %8474 = vpow2.f32 %v1687_v7 }
 0x349   : > { %v1689_v0 = vmul.f32 1.442695, %v1632_v49  ;;  %v1699_v6 = vmul.f32 1.442695, %v1637_v50 }
 0x34a   : > { %v1606_v26 = vpop.xlane.xlu1 %1605  ;;  %v1597_v47 = vpop.xlane.xlu0 %1596 }
 0x34b   : > { %8476 = vpow2.f32 %v1689_v0  ;;  %v1635_v14 = vsub.f32 %v9955_v57, %v1597_v47  ;;  %v1638_v1 = vsub.f32 %v9961_v58, %v1606_v26 }
 0x34c   : > { %8478 = vpow2.f32 %v1699_v6 }
 0x34d   : > { %v1695_v49 = vmul.f32 1.442695, %v1635_v14 }
 0x34e   : > { %v1600_v52 = vpop.xlane.xlu1 %1599 }
 0x34f   : > { %v1636_v7 = vsub.f32 %v9963_v39, %v1600_v52  ;;  %8480 = vpow2.f32 %v1695_v49 }
 0x350   : > { %v10115_v46 = vpop.eup %8470 }
 0x351   : > { %v1781_v35 = vsel %vm1510_vm1, %v10115_v46, 0.0  ;;  %v1697_v0 = vmul.f32 1.442695, %v1636_v7 }
 0x352   : > { %1782 = vadd.xlane.f32.xlu0 %v1781_v35 }
 0x353   : > { %8482 = vpow2.f32 %v1697_v0 }
 0x354   : > { %v10119_v8 = vpop.eup %8472 }
 0x355   : > { %v10121_v17 = vpop.eup %8474  ;;  %v1784_v22 = vsel %vm1510_vm1, %v10119_v8, 0.0 }
 0x356   : > { %1785 = vadd.xlane.f32.xlu1 %v1784_v22  ;;  %v1775_v25 = vsel %vm1510_vm1, %v10121_v17, 0.0  ;;  %v1701_v22 = vmul.f32 1.442695, %v1638_v1 }
 0x357   : > { %1776 = vadd.xlane.f32.xlu0 %v1775_v25 }
 0x358   : > { %v10127_v53 = vpop.eup %8476  ;;  %8484 = vpow2.f32 %v1701_v22 }
 0x359   : > { %v1778_v40 = vsel %vm1510_vm1, %v10127_v53, 0.0  ;;  %v10139_v39 = vpop.eup %8478 }
 0x35a   : > { %1779 = vadd.xlane.f32.xlu1 %v1778_v40  ;;  %v1793_v47 = vsel %vm1510_vm1, %v10139_v39, 0.0 }
 0x35c   : > { %v10141_v26 = vpop.eup %8480 }
 0x35d   : > { %v1787_v7 = vsel %vm1510_vm1, %v10141_v26, 0.0 }
 0x360   : > { %v10145_v52 = vpop.eup %8482 }
 0x361   : > { %v1790_v49 = vsel %vm1510_vm1, %v10145_v52, 0.0 }
 0x365   : > { %v10147_v14 = vpop.eup %8484 }
 0x36b   : > { %2217 = vrot.lane.b32.xlu1 %v9511_v16, %s9125_s30 }
 0x36d   : > { %2215 = vrot.lane.b32.xlu0 %v9479_v62, %s9125_s30 }
 0x37b   : > { %v1711_v35 = vpop.xlane.xlu0 %1710 }
 0x37f   : > { %v1714_v25 = vpop.xlane.xlu1 %1713  ;;  %v1705_v40 = vpop.xlane.xlu0 %1704 }
 0x380   : > { %8486 = vrcp.f32 %v1714_v25  ;;  %v1796_v25 = vsel %vm1510_vm1, %v10147_v14, 0.0 }
 0x381   : > { %8488 = vrcp.f32 %v1705_v40 }
 0x382   : > { %8490 = vrcp.f32 %v1711_v35 }
 0x383   : > { %v1708_v41 = vpop.xlane.xlu1 %1707 }
 0x384   : > { %8492 = vrcp.f32 %v1708_v41 }
 0x385   : > { %v1723_v57 = vpop.xlane.xlu0 %1722 }
 0x387   : > { %v1726_v11 = vpop.xlane.xlu1 %1725 }
 0x388   : > { %8494 = vrcp.f32 %v1726_v11  ;;  %v934_v11 = vadd.f32 %v9652_v12, %v9587_v54 }
 0x389   : > { %v1717_v58 = vpop.xlane.xlu0 %1716 }
 0x38a   : > { %8496 = vrcp.f32 %v1717_v58 }
 0x38b   : > { %8498 = vrcp.f32 %v1723_v57  ;;  %v1720_v50 = vpop.xlane.xlu1 %1719  ;;  %v931_v57 = vadd.f32 %v9638_v36, %v9587_v54 }
 0x38c   : > { %8500 = vrcp.f32 %v1720_v50  ;;  %1794 = vadd.xlane.f32.xlu0 %v1793_v47 }
 0x38d   : > { %v8487_v6 = vpop.eup %8486 }
 0x38e   : > { %v8489_v1 = vpop.eup %8488  ;;  %v1834_v22 = vmul.f32 %v8487_v6, %v10005_v32  ;;  %v10164_v6 = vpack.c.bf16 %v934_v11, %v931_v57 }
 0x38f   : > { %1788 = vadd.xlane.f32.xlu1 %v1787_v7  ;;  %v8491_v0 = vpop.eup %8490  ;;  %v1831_v40 = vmul.f32 %v8489_v1, %v10003_v56  ;;  %v915_v1 = vadd.f32 %v9599_v30, %v9587_v54 }
 0x390   : > { %1791 = vadd.xlane.f32.xlu0 %v1790_v49  ;;  %v1833_v58 = vmul.f32 %v8491_v0, %v9999_v15  ;;  %12698 = vst [vmem:[#allocation72_spill] sm:$0xff] %v10164_v6  ;;  %v918_v49 = vadd.f32 %v9615_v28, %v9587_v54 }
 0x391   : > { %v8493_v35 = vpop.eup %8492 }
 0x392   : > { %v1832_v41 = vmul.f32 %v8493_v35, %v10011_v48  ;;  %v1864_v47 = vpack.c.bf16 %v1834_v22, %v1833_v58 }
 0x393   : > { %1797 = vadd.xlane.f32.xlu1 %v1796_v25 }
 0x394   : > { %v1863_v50 = vpack.c.bf16 %v1832_v41, %v1831_v40 }
 0x395   : > { %v8495_v7 = vpop.eup %8494 }
 0x396   : > { %7625 = vmatprep.mubr.msk.bf16.mxu0 %vm1510_vm1, %v1863_v50  ;;  %v1838_v12 = vmul.f32 %v8495_v7, %v10019_v27  ;;  %v10180_v27 = vpack.c.bf16 %v918_v49, %v915_v1  ;;  %v12702_v1 = vld [vmem:[#allocation44_spill] sm:$0xff] }
 0x397   : > { %v8497_v32 = vpop.eup %8496  ;;  %7626 = vmatmul.mubr.msk.bf16.vlgmr.msra.gmra.mxu0 %vm1510_vm1, %v1864_v47 }
 0x398   : > { %v8499_v56 = vpop.eup %8498  ;;  %7650 = vmatpush3.bf16.msra.mxu0 %v9759_v55  ;;  %v1835_v15 = vmul.f32 %v8497_v32, %v10023_v43  ;;  %12699 = vst [vmem:[#allocation73_spill] sm:$0xff] %v10180_v27 }
 0x399   : > { %v8501_v36 = vpop.eup %8500  ;;  %7651 = vmatprep.subr.bf16.mxu0 %v10164_v6  ;;  %v1837_v0 = vmul.f32 %v8499_v56, %v10015_v42  ;;  %v12700_v56 = vld [vmem:[#allocation56_spill] sm:$0xff] }
 0x39a   : > { %v1836_v48 = vmul.f32 %v8501_v36, %v10027_v38  ;;  %v963_v36 = vadd.f32 %v12700_v56, %v9587_v54 }
 0x39b   : > { %v1866_v25 = vpack.c.bf16 %v1838_v12, %v1837_v0  ;;  %v12701_v12 = vld [vmem:[#allocation61_spill] sm:$0xff] }
 0x39c   : > { %7652 = vmatpush3.bf16.msra.mxu0 %v10164_v6  ;;  %v1735_v35 = vpop.xlane.xlu0 %1734  ;;  %v1865_v22 = vpack.c.bf16 %v1836_v48, %v1835_v15  ;;  %v966_v15 = vadd.f32 %v12701_v12, %v9587_v54  ;;  %v12713_v12 = vld [vmem:[#allocation50_spill] sm:$0xff] }
 0x39d   : > { %7653 = vmatprep.subr.bf16.mxu0 %v9621_v34 }
 0x39e   : > { %7629 = vmatprep.mubr.msk.bf16.mxu0 %vm1510_vm1, %v1865_v22  ;;  %v12704_v22 = vld [vmem:[#allocation40_spill] sm:$0xff] }
 0x39f   : > { %7630 = vmatmul.mubr.msk.bf16.gmra.mxu0 %vm1510_vm1, %v1866_v25  ;;  %v12705_v25 = vld [vmem:[#allocation60_spill] sm:$0xff] }
 0x3a0   : > { %v1738_v43 = vpop.xlane.xlu1 %1737  ;;  %7654 = vmatpush3.bf16.msra.mxu0 %v9621_v34 }
 0x3a1   : > { %v1729_v30 = vpop.xlane.xlu0 %1728  ;;  %7655 = vmatprep.subr.bf16.mxu0 %v10180_v27  ;;  %8502 = vrcp.f32 %v1738_v43 }
 0x3a2   : > { %8504 = vrcp.f32 %v1729_v30  ;;  %v12706_v30 = vld [vmem:[#allocation25_spill] sm:$0xff] }
 0x3a3   : > { %8506 = vrcp.f32 %v1735_v35 }
 0x3a4   : > { %v1732_v28 = vpop.xlane.xlu1 %1731  ;;  %7656 = vmatpush3.bf16.msra.mxu0 %v10180_v27  ;;  %2453 = vrot.lane.b32.xlu1 %v9591_v31, %s9125_s30 }
 0x3a5   : > { %8508 = vrcp.f32 %v1732_v28  ;;  %v1747_v42 = vpop.xlane.xlu0 %1746  ;;  %8229 = vmatprep.subr.msk.bf16.mxu0 %vm1153_vm0, %v9985_v51 }
 0x3a6   : > { %2336 = vrot.lane.b32.xlu0 %v9541_v37, %s9125_s30  ;;  %v1088_v37 = vld [vmem:[#allocation7 + $0x378] sm:$0xff] }
 0x3a8   : > { %v1750_v38 = vpop.xlane.xlu1 %1749  ;;  %2326 = vrot.lane.b32.xlu1 %v9582_v59, %s9125_s30 }
 0x3a9   : > { %v1741_v40 = vpop.xlane.xlu0 %1740  ;;  %8510 = vrcp.f32 %v1750_v38 }
 0x3aa   : > { %2324 = vrot.lane.b32.xlu0 %v9517_v21, %s9125_s30  ;;  %8512 = vrcp.f32 %v1741_v40 }
 0x3ab   : > { %8514 = vrcp.f32 %v1747_v42 }
 0x3ac   : > { %v1744_v41 = vpop.xlane.xlu1 %1743  ;;  %2568 = vrot.lane.b32.xlu1 %v9703_v61, %s9125_s30 }
 0x3ad   : > { %8516 = vrcp.f32 %v1744_v41  ;;  %v12707_v41 = vld [vmem:[#allocation37_spill] sm:$0xff] }
 0x3ae   : > { %2451 = vrot.lane.b32.xlu0 %v9632_v44, %s9125_s30  ;;  %v8503_v57 = vpop.eup %8502  ;;  %v1085_v44 = vld [vmem:[#allocation7 + $0x360] sm:$0xff] }
 0x3af   : > { %v8505_v11 = vpop.eup %8504  ;;  %v1842_v47 = vmul.f32 %v8503_v57, %v10043_v4  ;;  %v12703_v4 = vld [vmem:[#allocation36_spill] sm:$0xff]  ;;  %v947_v57 = vadd.f32 %v12707_v41, %v9587_v54 }
 0x3b0   : > { %2330 = vrot.lane.b32.xlu1 %v9628_v2, %s9125_s30  ;;  %v8507_v58 = vpop.eup %8506  ;;  %v1839_v7 = vmul.f32 %v8505_v11, %v10045_v29  ;;  %v12708_v11 = vld [vmem:[#allocation52_spill] sm:$0xff] }
 0x3b1   : > { %v1841_v48 = vmul.f32 %v8507_v58, %v10039_v60  ;;  %v950_v58 = vadd.f32 %v12708_v11, %v9587_v54 }
 0x3b2   : > { %v8509_v50 = vpop.eup %8508  ;;  %2328 = vrot.lane.b32.xlu0 %v9589_v3, %s9125_s30 }
 0x3b3   : > { %v1840_v32 = vmul.f32 %v8509_v50, %v10051_v33  ;;  %v1868_v0 = vpack.c.bf16 %v1842_v47, %v1841_v48  ;;  %v10217_v33 = vpack.c.bf16 %v966_v15, %v963_v36  ;;  %v12709_v50 = vld [vmem:[#allocation42_spill] sm:$0xff]  ;;  %v12710_v47 = vld [vmem:[#allocation71_spill] sm:$0xff]  ;;  %v10241_v36 = vpack.c.bf16 %v950_v58, %v947_v57 }
 0x3b4   : > { %2566 = vrot.lane.b32.xlu1 %v12702_v1, %s9125_s30  ;;  %v12714_v15 = vld [vmem:[#allocation46_spill] sm:$0xff]  ;;  %v12721_v57 = vld [vmem:[#allocation39_spill] sm:$0xff] }
 0x3b5   : > { %v1867_v49 = vpack.c.bf16 %v1840_v32, %v1839_v7 }
 0x3b6   : > { %2449 = vrot.lane.b32.xlu0 %v12703_v4, %s9125_s30  ;;  %v8511_v35 = vpop.eup %8510  ;;  %v1084_v4 = vld [vmem:[#allocation7 + $0x358] sm:$0xff] }
 0x3b7   : > { %7641 = vmatprep.mubr.msk.bf16.mxu1 %vm1510_vm1, %v1867_v49  ;;  %v8513_v29 = vpop.eup %8512  ;;  %v1846_v28 = vmul.f32 %v8511_v35, %v10059_v19  ;;  %v12711_v19 = vld [vmem:[#allocation38_spill] sm:$0xff]  ;;  %v12716_v35 = vld [vmem:[#allocation68_spill] sm:$0xff] }
 0x3b8   : > { %7642 = vmatmul.mubr.msk.bf16.vlgmr.msra.gmra.mxu1 %vm1510_vm1, %v1868_v0  ;;  %2439 = vrot.lane.b32.xlu1 %v12704_v22, %s9125_s30  ;;  %v8515_v60 = vpop.eup %8514  ;;  %v1843_v38 = vmul.f32 %v8513_v29, %v10061_v9  ;;  %v12712_v9 = vld [vmem:[#allocation48_spill] sm:$0xff]  ;;  %v12715_v0 = vld [vmem:[#allocation53_spill] sm:$0xff]  ;;  %v12717_v29 = vld [vmem:[#allocation35_spill] sm:$0xff] }
 0x3b9   : > { %7666 = vmatpush3.bf16.msra.mxu1 %v12705_v25  ;;  %v1845_v7 = vmul.f32 %v8515_v60, %v12710_v47  ;;  %v12722_v47 = vld [vmem:[#allocation51_spill] sm:$0xff] }
 0x3ba   : > { %v8517_v43 = vpop.eup %8516  ;;  %7667 = vmatprep.subr.bf16.mxu1 %v10217_v33  ;;  %2437 = vrot.lane.b32.xlu0 %v12706_v30, %s9125_s30 }
 0x3bb   : > { %v1759_v42 = vpop.xlane.xlu0 %1758  ;;  %v1844_v40 = vmul.f32 %v8517_v43, %v10068_v13  ;;  %v1870_v13 = vpack.c.bf16 %v1846_v28, %v1845_v7  ;;  %v12718_v28 = vld [vmem:[#allocation58_spill] sm:$0xff] }
 0x3bc   : > { %2441 = vrot.lane.b32.xlu1 %v12709_v50, %s9125_s30 }
 0x3bd   : > { %7668 = vmatpush3.bf16.msra.mxu1 %v10217_v33  ;;  %v1869_v32 = vpack.c.bf16 %v1844_v40, %v1843_v38  ;;  %v12720_v40 = vld [vmem:[#allocation43_spill] sm:$0xff] }
 0x3be   : > { %7669 = vmatprep.subr.bf16.mxu1 %v12711_v19  ;;  %2564 = vrot.lane.b32.xlu0 %v12712_v9, %s9125_s30 }
 0x3bf   : > { %7645 = vmatprep.mubr.msk.bf16.mxu1 %vm1510_vm1, %v1869_v32  ;;  %v1762_v56 = vpop.xlane.xlu1 %1761 }
 0x3c0   : > { %7646 = vmatmul.mubr.msk.bf16.gmra.mxu1 %vm1510_vm1, %v1870_v13  ;;  %v1753_v54 = vpop.xlane.xlu0 %1752  ;;  %2562 = vrot.lane.b32.xlu1 %v12713_v12, %s9125_s30  ;;  %8518 = vrcp.f32 %v1762_v56  ;;  %v12723_v13 = vld [vmem:[#allocation45_spill] sm:$0xff] }
 0x3c1   : > { %7670 = vmatpush3.bf16.msra.mxu1 %v12711_v19  ;;  %8520 = vrcp.f32 %v1753_v54 }
 0x3c2   : > { %7671 = vmatprep.subr.bf16.mxu1 %v10241_v36  ;;  %2443 = vrot.lane.b32.xlu0 %v12714_v15, %s9125_s30  ;;  %8522 = vrcp.f32 %v1759_v42  ;;  %v12719_v42 = vld [vmem:[#allocation55_spill] sm:$0xff] }
 0x3c3   : > { %v1756_v48 = vpop.xlane.xlu1 %1755 }
 0x3c4   : > { %8524 = vrcp.f32 %v1756_v48  ;;  %v1771_v49 = vpop.xlane.xlu0 %1770  ;;  %2552 = vrot.lane.b32.xlu1 %v12715_v0, %s9125_s30 }
 0x3c5   : > { %7672 = vmatpush3.bf16.msra.mxu1 %v10241_v36 }
 0x3c6   : > { %8233 = vmatprep.subr.msk.bf16.mxu1 %vm1153_vm0, %v12716_v35  ;;  %2550 = vrot.lane.b32.xlu0 %v12717_v29, %s9125_s30 }
 0x3c7   : > { %v1774_v60 = vpop.xlane.xlu1 %1773 }
 0x3c8   : > { %v1765_v43 = vpop.xlane.xlu0 %1764  ;;  %2556 = vrot.lane.b32.xlu1 %v12718_v28, %s9125_s30  ;;  %8526 = vrcp.f32 %v1774_v60 }
 0x3c9   : > { %8528 = vrcp.f32 %v1765_v43 }
 0x3ca   : > { %2554 = vrot.lane.b32.xlu0 %v12719_v42, %s9125_s30  ;;  %8530 = vrcp.f32 %v1771_v49  ;;  %v12724_v49 = vld [vmem:[#allocation54_spill] sm:$0xff] }
 0x3cb   : > { %v1768_v38 = vpop.xlane.xlu1 %1767 }
 0x3cc   : > { %8532 = vrcp.f32 %v1768_v38  ;;  %3035 = vrot.lane.b32.xlu1 %v12720_v40, %s9125_s30 }
 0x3cd   : > { %v8519_v41 = vpop.eup %8518 }
 0x3ce   : > { %3037 = vrot.lane.b32.xlu0 %v12721_v57, %s9125_s30  ;;  %v8521_v11 = vpop.eup %8520  ;;  %v1850_v32 = vmul.f32 %v8519_v41, %v10083_v18  ;;  %v12725_v57 = vld [vmem:[#allocation47_spill] sm:$0xff] }
 0x3cf   : > { %v8523_v58 = vpop.eup %8522  ;;  %v1847_v56 = vmul.f32 %v8521_v11, %v10085_v20  ;;  %v2253_v20 = vsel %vm1153_vm0, %v9985_v51, 0  ;;  %v12727_v11 = vld [vmem:[#allocation64_spill] sm:$0xff] }
 0x3d0   : > { %3130 = vrot.lane.b32.xlu1 %v12722_v47, %s9125_s30  ;;  %v1849_v48 = vmul.f32 %v8523_v58, %v10079_v63  ;;  %v12726_v63 = vld [vmem:[#allocation59_spill] sm:$0xff] }
 0x3d1   : > { %v8525_v7 = vpop.eup %8524 }
 0x3d2   : > { %3033 = vrot.lane.b32.xlu0 %v12723_v13, %s9125_s30  ;;  %v1848_v54 = vmul.f32 %v8525_v7, %v10091_v24  ;;  %v1872_v43 = vpack.c.bf16 %v1850_v32, %v1849_v48  ;;  %v12728_v7 = vld [vmem:[#allocation57_spill] sm:$0xff] }
 0x3d4   : > { %3128 = vrot.lane.b32.xlu1 %v12724_v49, %s9125_s30  ;;  %v1871_v60 = vpack.c.bf16 %v1848_v54, %v1847_v56 }
 0x3d5   : > { %v8527_v38 = vpop.eup %8526 }
 0x3d6   : > { %3031 = vrot.lane.b32.xlu0 %v12725_v57, %s9125_s30  ;;  %7657 = vmatprep.mubr.msk.bf16.mxu0 %vm1510_vm1, %v1871_v60  ;;  %v8529_v18 = vpop.eup %8528  ;;  %v1854_v58 = vmul.f32 %v8527_v38, %v10099_v23 }
 0x3d7   : > { %7658 = vmatmul.mubr.msk.bf16.vlgmr.msra.gmra.mxu0 %vm1510_vm1, %v1872_v43  ;;  %v8531_v24 = vpop.eup %8530  ;;  %v1851_v32 = vmul.f32 %v8529_v18, %v10101_v10  ;;  %v2250_v10 = vsel %vm1153_vm0, %v12727_v11, 0  ;;  %v12729_v43 = vld [vmem:[#allocation65_spill] sm:$0xff] }
 0x3d8   : > { %7682 = vmatpush3.bf16.xpose.msra.mxu0 %v2253_v20  ;;  %3124 = vrot.lane.b32.xlu1 %v12726_v63, %s9125_s30  ;;  %v1853_v51 = vmul.f32 %v8531_v24, %v10093_v45  ;;  %v12730_v45 = vld [vmem:[#allocation67_spill] sm:$0xff]  ;;  %v12731_v20 = vld [vmem:[#allocation62_spill] sm:$0xff] }
 0x3d9   : > { %v8533_v41 = vpop.eup %8532  ;;  %8230 = vmatprep.subr.msk.bf16.mxu0 %vm1153_vm0, %v12727_v11  ;;  %v2247_v18 = vsel %vm1153_vm0, %v12730_v45, 0  ;;  %v2244_v11 = vsel %vm1153_vm0, %v12731_v20, 0 }
 0x3da   : > { %3126 = vrot.lane.b32.xlu0 %v12728_v7, %s9125_s30  ;;  %v1852_v56 = vmul.f32 %v8533_v41, %v10108_v5  ;;  %v1874_v60 = vpack.c.bf16 %v1854_v58, %v1853_v51 }
 0x3db   : > { %v1783_v54 = vpop.xlane.xlu0 %1782 }
 0x3dc   : > { %3221 = vrot.lane.b32.xlu1 %v10164_v6, %s9125_s30  ;;  %v1873_v48 = vpack.c.bf16 %v1852_v56, %v1851_v32 }
 0x3de   : > { %3223 = vrot.lane.b32.xlu0 %v9759_v55, %s9125_s30  ;;  %7661 = vmatprep.mubr.msk.bf16.mxu0 %vm1510_vm1, %v1873_v48 }
 0x3df   : > { %v1786_v23 = vpop.xlane.xlu1 %1785  ;;  %7662 = vmatmul.mubr.msk.bf16.gmra.mxu0 %vm1510_vm1, %v1874_v60 }
 0x3e0   : > { %7684 = vmatpush3.bf16.xpose.msra.mxu0 %v2250_v10  ;;  %v1777_v5 = vpop.xlane.xlu0 %1776  ;;  %7689 = vmatprep.mubr.msk.bf16.mxu0 %vm1153_vm0, %v12729_v43  ;;  %8534 = vrcp.f32 %v1786_v23  ;;  %v12733_v43 = vld [vmem:[#allocation63_spill] sm:$0xff] }
 0x3e1   : > { %8231 = vmatprep.subr.msk.bf16.mxu0 %vm1153_vm0, %v12730_v45  ;;  %8536 = vrcp.f32 %v1777_v5 }
 0x3e2   : > { %8538 = vrcp.f32 %v1783_v54  ;;  %v12732_v54 = vld [vmem:[#allocation69_spill] sm:$0xff] }
 0x3e3   : > { %v1780_v38 = vpop.xlane.xlu1 %1779 }
 0x3e4   : > { %8540 = vrcp.f32 %v1780_v38  ;;  %v2216_v5 = vpop.permute.xlu0 %2215  ;;  %v12735_v38 = vld [vmem:[#allocation70_spill] sm:$0xff] }
 0x3e8   : > { %7686 = vmatpush3.bf16.xpose.msra.mxu0 %v2247_v18 }
 0x3e9   : > { %8232 = vmatprep.subr.msk.bf16.mxu0 %vm1153_vm0, %v12731_v20 }
 0x3ed   : > { %v8535_v24 = vpop.eup %8534 }
 0x3ee   : > { %v8537_v41 = vpop.eup %8536  ;;  %v1858_v56 = vmul.f32 %v8535_v24, %v10119_v8  ;;  %v2366_v8 = vsel %vm1153_vm0, %v12716_v35, 0  ;;  %v2360_v35 = vsel %vm1153_vm0, %v12735_v38, 0 }
 0x3ef   : > { %v8539_v58 = vpop.eup %8538  ;;  %v1855_v51 = vmul.f32 %v8537_v41, %v10121_v17  ;;  %v2479_v17 = vsel %vm1153_vm0, %v12732_v54, 0 }
 0x3f0   : > { %7688 = vmatpush3.bf16.xpose.msra.mxu0 %v2244_v11  ;;  %v1857_v60 = vmul.f32 %v8539_v58, %v10115_v46  ;;  %v12734_v46 = vld [vmem:[#allocation66_spill] sm:$0xff] }
 0x3f1   : > { %v8541_v32 = vpop.eup %8540  ;;  %8237 = vmatprep.subr.msk.bf16.mxu0 %vm1153_vm0, %v12732_v54  ;;  %v2363_v45 = vsel %vm1153_vm0, %v12734_v46, 0 }
 0x3f2   : > { %v1856_v48 = vmul.f32 %v8541_v32, %v10127_v53  ;;  %v1876_v10 = vpack.c.bf16 %v1858_v56, %v1857_v60  ;;  %v2218_v53 = vpop.permute.xlu1 %2217 }
 0x3f4   : > { %v1875_v23 = vpack.c.bf16 %v1856_v48, %v1855_v51 }
 0x3f6   : > { %7673 = vmatprep.mubr.msk.bf16.mxu1 %vm1510_vm1, %v1875_v23 }
 0x3f7   : > { %7690 = vmatmul.mubr.msk.bf16.vlgmr.msra.gmra.mxu0 %vm1153_vm0, %v12733_v43  ;;  %7674 = vmatmul.mubr.msk.bf16.vlgmr.msra.gmra.mxu1 %vm1510_vm1, %v1876_v10 }
 0x3f8   : > { %7693 = vmatprep.mubr.msk.bf16.mxu0 %vm1153_vm0, %v2216_v5  ;;  %7698 = vmatpush3.bf16.xpose.msra.mxu1 %v2366_v8 }
 0x3f9   : > { %7714 = vmatpush3.bf16.xpose.msra.mxu0 %v2479_v17  ;;  %8234 = vmatprep.subr.msk.bf16.mxu1 %vm1153_vm0, %v12734_v46 }
 0x3ff   : > { %7694 = vmatmul.mubr.msk.bf16.gmra.mxu0 %vm1153_vm0, %v2218_v53 }
 0x400   : > { %7700 = vmatpush3.bf16.xpose.msra.mxu1 %v2363_v45 }
 0x401   : > { %8235 = vmatprep.subr.msk.bf16.mxu1 %vm1153_vm0, %v12735_v38 }
 0x408   : > { %7702 = vmatpush3.bf16.xpose.msra.mxu1 %v2360_v35 }
 0x415   : > { %v1795_v18 = vpop.xlane.xlu0 %1794 }
 0x418   : > { %v1789_v20 = vpop.xlane.xlu1 %1788 }
 0x419   : > { %8542 = vrcp.f32 %v1789_v20  ;;  %v1792_v24 = vpop.xlane.xlu0 %1791 }
 0x41a   : > { %8544 = vrcp.f32 %v1792_v24 }
 0x41b   : > { %8546 = vrcp.f32 %v1795_v18 }
 0x41c   : > { %v1798_v41 = vpop.xlane.xlu1 %1797 }
 0x41d   : > { %8548 = vrcp.f32 %v1798_v41  ;;  %v2337_v11 = vpop.permute.xlu0 %2336 }
 0x41e   : > { %8236 = vmatprep.subr.msk.bf16.mxu1 %vm1153_vm0, %v2337_v11  ;;  %v2357_v58 = vsel %vm1153_vm0, %v2337_v11, 0 }
 0x41f   : > { %7704 = vmatpush3.bf16.xpose.msra.mxu1 %v2357_v58 }
 0x420   : > { %v2454_v32 = vpop.permute.xlu1 %2453 }
 0x421   : > { %v2325_v56 = vpop.permute.xlu0 %2324  ;;  %8238 = vmatprep.subr.msk.bf16.mxu0 %vm1153_vm0, %v2454_v32  ;;  %v2476_v54 = vsel %vm1153_vm0, %v2454_v32, 0 }
 0x422   : > { %7716 = vmatpush3.bf16.xpose.msra.mxu0 %v2476_v54 }
 0x424   : > { %v2327_v51 = vpop.permute.xlu1 %2326 }
 0x425   : > { %v2452_v48 = vpop.permute.xlu0 %2451 }
 0x426   : > { %v8543_v60 = vpop.eup %8542  ;;  %8239 = vmatprep.subr.msk.bf16.mxu0 %vm1153_vm0, %v2452_v48  ;;  %v2473_v46 = vsel %vm1153_vm0, %v2452_v48, 0 }
 0x427   : > { %v8545_v23 = vpop.eup %8544  ;;  %v1859_v10 = vmul.f32 %v8543_v60, %v10141_v26 }
 0x428   : > { %v8547_v5 = vpop.eup %8546  ;;  %v2569_v43 = vpop.permute.xlu1 %2568  ;;  %v1860_v8 = vmul.f32 %v8545_v23, %v10145_v52 }
 0x429   : > { %v2329_v17 = vpop.permute.xlu0 %2328  ;;  %8241 = vmatprep.subr.msk.bf16.mxu1 %vm1153_vm0, %v2569_v43  ;;  %v1861_v38 = vmul.f32 %v8547_v5, %v10139_v39  ;;  %v2592_v11 = vsel %vm1153_vm0, %v2569_v43, 0 }
 0x42a   : > { %v8549_v53 = vpop.eup %8548  ;;  %7718 = vmatpush3.bf16.xpose.msra.mxu0 %v2473_v46  ;;  %v1877_v45 = vpack.c.bf16 %v1860_v8, %v1859_v10 }
 0x42b   : > { %v1862_v35 = vmul.f32 %v8549_v53, %v10147_v14 }
 0x42c   : > { %7677 = vmatprep.mubr.msk.bf16.mxu1 %vm1510_vm1, %v1877_v45  ;;  %v2331_v18 = vpop.permute.xlu1 %2330 }
 0x42d   : > { %v2450_v26 = vpop.permute.xlu0 %2449  ;;  %v1878_v20 = vpack.c.bf16 %v1862_v35, %v1861_v38 }
 0x42e   : > { %8240 = vmatprep.subr.msk.bf16.mxu0 %vm1153_vm0, %v2450_v26  ;;  %v2470_v41 = vsel %vm1153_vm0, %v2450_v26, 0 }
 0x42f   : > { %7678 = vmatmul.mubr.msk.bf16.gmra.mxu1 %vm1510_vm1, %v1878_v20 }
 0x430   : > { %v2567_v52 = vpop.permute.xlu1 %2566  ;;  %7705 = vmatprep.mubr.msk.bf16.mxu1 %vm1153_vm0, %v2325_v56 }
 0x431   : > { %v2438_v24 = vpop.permute.xlu0 %2437  ;;  %v2589_v48 = vsel %vm1153_vm0, %v2567_v52, 0 }
 0x432   : > { %7721 = vmatprep.mubr.msk.bf16.mxu0 %vm1153_vm0, %v2438_v24  ;;  %7720 = vmatpush3.bf16.xpose.msra.mxu0 %v2470_v41 }
 0x434   : > { %v2440_v39 = vpop.permute.xlu1 %2439 }
 0x435   : > { %v2565_v14 = vpop.permute.xlu0 %2564 }
 0x436   : > { %v2586_v5 = vsel %vm1153_vm0, %v2565_v14, 0 }
 0x437   : > { %7706 = vmatmul.mubr.msk.bf16.vlgmr.msra.gmra.mxu1 %vm1153_vm0, %v2327_v51 }
 0x438   : > { %7730 = vmatpush3.bf16.xpose.msra.mxu1 %v2592_v11  ;;  %v2442_v58 = vpop.permute.xlu1 %2441  ;;  %7709 = vmatprep.mubr.msk.bf16.mxu1 %vm1153_vm0, %v2329_v17 }
 0x439   : > { %8242 = vmatprep.subr.msk.bf16.mxu1 %vm1153_vm0, %v2567_v52  ;;  %v2444_v32 = vpop.permute.xlu0 %2443  ;;  %7722 = vmatmul.mubr.msk.bf16.vlgmr.msra.gmra.mxu0 %vm1153_vm0, %v2440_v39 }
 0x43a   : > { %7725 = vmatprep.mubr.msk.bf16.mxu0 %vm1153_vm0, %v2442_v58 }
 0x43c   : > { %v2563_v56 = vpop.permute.xlu1 %2562 }
 0x43d   : > { %v2551_v54 = vpop.permute.xlu0 %2550  ;;  %v2583_v46 = vsel %vm1153_vm0, %v2563_v56, 0 }
 0x43f   : > { %7710 = vmatmul.mubr.msk.bf16.gmra.mxu1 %vm1153_vm0, %v2331_v18 }
 0x440   : > { %7732 = vmatpush3.bf16.xpose.msra.mxu1 %v2589_v48  ;;  %v2553_v51 = vpop.permute.xlu1 %2552  ;;  %7737 = vmatprep.mubr.msk.bf16.mxu1 %vm1153_vm0, %v2551_v54 }
 0x441   : > { %8243 = vmatprep.subr.msk.bf16.mxu1 %vm1153_vm0, %v2565_v14  ;;  %v2555_v60 = vpop.permute.xlu0 %2554  ;;  %7726 = vmatmul.mubr.msk.bf16.gmra.mxu0 %vm1153_vm0, %v2444_v32 }
 0x444   : > { %v2557_v23 = vpop.permute.xlu1 %2556 }
 0x445   : > { %v3038_v10 = vpop.permute.xlu0 %3037 }
 0x446   : > { %7745 = vmatprep.subr.bf16.mxu0 %v3038_v10 }
 0x447   : > { %7746 = vmatpush3.bf16.msra.mxu0 %v3038_v10 }
 0x448   : > { %7734 = vmatpush3.bf16.xpose.msra.mxu1 %v2586_v5  ;;  %v3036_v43 = vpop.permute.xlu1 %3035  ;;  %v988_v5 = vld [vmem:[#allocation7 + $0x58] sm:$0xff] }
 0x449   : > { %8244 = vmatprep.subr.msk.bf16.mxu1 %vm1153_vm0, %v2563_v56  ;;  %v3034_v8 = vpop.permute.xlu0 %3033  ;;  %7747 = vmatprep.subr.bf16.mxu0 %v3036_v43 }
 0x44b   : > { %7748 = vmatpush3.bf16.msra.mxu0 %v3036_v43 }
 0x44c   : > { %7749 = vmatprep.subr.bf16.mxu0 %v3034_v8  ;;  %v3131_v53 = vpop.permute.xlu1 %3130 }
 0x44d   : > { %v3032_v17 = vpop.permute.xlu0 %3031 }
 0x44f   : > { %7750 = vmatpush3.bf16.msra.mxu0 %v3034_v8 }
 0x450   : > { %7736 = vmatpush3.bf16.xpose.msra.mxu1 %v2583_v46  ;;  %7751 = vmatprep.subr.bf16.mxu0 %v3032_v17  ;;  %v3129_v18 = vpop.permute.xlu1 %3128 }
 0x451   : > { %7761 = vmatprep.subr.bf16.mxu1 %v3131_v53  ;;  %v3127_v45 = vpop.permute.xlu0 %3126 }
 0x453   : > { %7752 = vmatpush3.bf16.msra.mxu0 %v3032_v17 }
 0x454   : > { %v3125_v39 = vpop.permute.xlu1 %3124 }
 0x455   : > { %v10364_v38 = vpop.permute.xlu0 %3223 }
 0x456   : > { %7777 = vmatprep.subr.bf16.mxu0 %v10364_v38 }
 0x457   : > { %7738 = vmatmul.mubr.msk.bf16.vlgmr.msra.gmra.mxu1 %vm1153_vm0, %v2553_v51  ;;  %v10368_v35 = vpop.f32.mrf.mxu0 }
 0x458   : > { %12736 = vst [vmem:[#allocation56_spill] sm:$0xff] %v10368_v35  ;;  %7741 = vmatprep.mubr.msk.bf16.mxu1 %vm1153_vm0, %v2555_v60  ;;  %7762 = vmatpush3.bf16.msra.mxu1 %v3131_v53  ;;  %v985_v53 = vld [vmem:[#allocation7 + $0x40] sm:$0xff]  ;;  %v1020_v35 = vld [vmem:[#allocation7 + $0x158] sm:$0xff] }
 0x459   : > { %7763 = vmatprep.subr.bf16.mxu1 %v3129_v18  ;;  %v10371_v26 = vpop.f32.mrf.mxu0 }
 0x45a   : > { %12737 = vst [vmem:[#allocation61_spill] sm:$0xff] %v10371_v26  ;;  %v1018_v26 = vld [vmem:[#allocation7 + $0x148] sm:$0xff] }
 0x45b   : > { %v10373_v20 = vpop.f32.mrf.mxu0 }
 0x45c   : > { %12738 = vst [vmem:[#allocation60_spill] sm:$0xff] %v10373_v20  ;;  %7764 = vmatpush3.bf16.msra.mxu1 %v3129_v18  ;;  %v1017_v20 = vld [vmem:[#allocation7 + $0x140] sm:$0xff] }
 0x45d   : > { %7765 = vmatprep.subr.bf16.mxu1 %v3127_v45  ;;  %v10377_v24 = vpop.f32.mrf.mxu0 }
 0x45e   : > { %12739 = vst [vmem:[#allocation37_spill] sm:$0xff] %v10377_v24 }
 0x45f   : > { %7742 = vmatmul.mubr.msk.bf16.gmra.mxu1 %vm1153_vm0, %v2557_v23  ;;  %v10380_v41 = vpop.f32.mrf.mxu0 }
 0x460   : > { %12740 = vst [vmem:[#allocation52_spill] sm:$0xff] %v10380_v41  ;;  %7766 = vmatpush3.bf16.msra.mxu1 %v3127_v45  ;;  %v992_v41 = vld [vmem:[#allocation7 + $0x78] sm:$0xff] }
 0x461   : > { %7767 = vmatprep.subr.bf16.mxu1 %v3125_v39  ;;  %v10382_v14 = vpop.f32.mrf.mxu0 }
 0x462   : > { %12741 = vst [vmem:[#allocation71_spill] sm:$0xff] %v10382_v14 }
 0x463   : > { %v10384_v11 = vpop.f32.mrf.mxu0 }
 0x464   : > { %12742 = vst [vmem:[#allocation38_spill] sm:$0xff] %v10384_v11  ;;  %7768 = vmatpush3.bf16.msra.mxu1 %v3125_v39 }
 0x465   : > { %v10406_v43 = vpop.f32.mrf.mxu0 }
 0x466   : > { %12750 = vst [vmem:[#allocation66_spill] sm:$0xff] %v10406_v43 }
 0x478   : > { %v10388_v32 = vpop.f32.mrf.mxu1 }
 0x479   : > { %12743 = vst [vmem:[#allocation68_spill] sm:$0xff] %v10388_v32 }
 0x47a   : > { %v10390_v56 = vpop.f32.mrf.mxu1 }
 0x47b   : > { %12744 = vst [vmem:[#allocation64_spill] sm:$0xff] %v10390_v56 }
 0x47c   : > { %v10392_v54 = vpop.f32.mrf.mxu1 }
 0x47d   : > { %12745 = vst [vmem:[#allocation65_spill] sm:$0xff] %v10392_v54 }
 0x47e   : > { %v10396_v51 = vpop.f32.mrf.mxu1 }
 0x47f   : > { %12746 = vst [vmem:[#allocation67_spill] sm:$0xff] %v10396_v51  ;;  %v1051_v51 = vld [vmem:[#allocation7 + $0x250] sm:$0xff] }
 0x480   : > { %v10398_v60 = vpop.f32.mrf.mxu1 }
 0x481   : > { %12747 = vst [vmem:[#allocation62_spill] sm:$0xff] %v10398_v60  ;;  %v987_v60 = vld [vmem:[#allocation7 + $0x50] sm:$0xff] }
 0x482   : > { %v10400_v23 = vpop.f32.mrf.mxu1 }
 0x483   : > { %12748 = vst [vmem:[#allocation69_spill] sm:$0xff] %v10400_v23 }
 0x484   : > { %v10402_v10 = vpop.f32.mrf.mxu1 }
 0x485   : > { %12749 = vst [vmem:[#allocation63_spill] sm:$0xff] %v10402_v10 }
 0x486   : > { %v10426_v58 = vpop.f32.mrf.mxu1 }
 0x487   : > { %12758 = vst [vmem:[#allocation80_spill] sm:$0xff] %v10426_v58 }
 0x497   : > { %v10408_v8 = vpop.f32.mrf.mxu0 }
 0x498   : > { %12751 = vst [vmem:[#allocation70_spill] sm:$0xff] %v10408_v8 }
 0x499   : > { %v10410_v17 = vpop.f32.mrf.mxu0 }
 0x49a   : > { %12752 = vst [vmem:[#allocation74_spill] sm:$0xff] %v10410_v17 }
 0x49b   : > { %v10412_v46 = vpop.f32.mrf.mxu0 }
 0x49c   : > { %12753 = vst [vmem:[#allocation75_spill] sm:$0xff] %v10412_v46 }
 0x49d   : > { %v10416_v45 = vpop.f32.mrf.mxu0 }
 0x49e   : > { %12754 = vst [vmem:[#allocation76_spill] sm:$0xff] %v10416_v45 }
 0x49f   : > { %v10418_v18 = vpop.f32.mrf.mxu0 }
 0x4a0   : > { %12755 = vst [vmem:[#allocation77_spill] sm:$0xff] %v10418_v18 }
 0x4a1   : > { %v10420_v39 = vpop.f32.mrf.mxu0 }
 0x4a2   : > { %12756 = vst [vmem:[#allocation78_spill] sm:$0xff] %v10420_v39 }
 0x4a3   : > { %v10422_v48 = vpop.f32.mrf.mxu0 }
 0x4a4   : > { %12757 = vst [vmem:[#allocation79_spill] sm:$0xff] %v10422_v48 }
 0x4a5   : > { %v10428_v52 = vpop.f32.mrf.mxu0 }
 0x4a6   : > { %12759 = vst [vmem:[#allocation81_spill] sm:$0xff] %v10428_v52  ;;  %v986_v52 = vld [vmem:[#allocation7 + $0x48] sm:$0xff] }
 0x4b7   : > { %v7691_v10 = vpop.f32.mrf.mxu0  ;;  %v10430_v17 = vpop.f32.mrf.mxu1 }
 0x4b8   : > { %12760 = vst [vmem:[#allocation82_spill] sm:$0xff] %v10430_v17  ;;  %v10432_v8 = vadd.f32 %v7691_v10, %v987_v60 }
 0x4b9   : > { %v2289_v46 = vpop.f32.mrf.mxu0  ;;  %v10434_v45 = vpop.f32.mrf.mxu1 }
 0x4ba   : > { %12761 = vst [vmem:[#allocation83_spill] sm:$0xff] %v10434_v45  ;;  %v10436_v39 = vadd.f32 %v2289_v46, %v985_v53  ;;  %v2665_v32 = vsel %vm1510_vm1, %v10432_v8, -inf  ;;  %v991_v53 = vld [vmem:[#allocation7 + $0x70] sm:$0xff] }
 0x4bb   : > { %2666 = vmax.xlane.f32.xlu0 %v2665_v32  ;;  %v7692_v18 = vpop.f32.mrf.mxu0  ;;  %v10440_v48 = vpop.f32.mrf.mxu1 }
 0x4bc   : > { %12762 = vst [vmem:[#allocation84_spill] sm:$0xff] %v10440_v48  ;;  %v10444_v60 = vadd.f32 %v7692_v18, %v988_v5  ;;  %v2659_v46 = vsel %vm1510_vm1, %v10436_v39, -inf  ;;  %v989_v18 = vld [vmem:[#allocation7 + $0x60] sm:$0xff] }
 0x4bd   : > { %v2292_v58 = vpop.f32.mrf.mxu0 }
 0x4be   : > { %v10446_v10 = vadd.f32 %v2292_v58, %v986_v52  ;;  %v2668_v5 = vsel %vm1510_vm1, %v10444_v60, -inf  ;;  %v990_v58 = vld [vmem:[#allocation7 + $0x68] sm:$0xff] }
 0x4bf   : > { %2660 = vmax.xlane.f32.xlu0 %v2659_v46  ;;  %v7695_v45 = vpop.f32.mrf.mxu0 }
 0x4c0   : > { %v2662_v32 = vsel %vm1510_vm1, %v10446_v10, -inf  ;;  %v10452_v11 = vadd.f32 %v7695_v45, %v991_v53 }
 0x4c1   : > { %2663 = vmax.xlane.f32.xlu1 %v2662_v32  ;;  %v2305_v23 = vpop.f32.mrf.mxu0 }
 0x4c2   : > { %v10458_v17 = vadd.f32 %v2305_v23, %v989_v18  ;;  %v2677_v32 = vsel %vm1510_vm1, %v10452_v11, -inf  ;;  %v10470_v23 = vpop.f32.mrf.mxu1 }
 0x4c3   : > { %2669 = vmax.xlane.f32.xlu0 %v2668_v5  ;;  %v7696_v52 = vpop.f32.mrf.mxu0  ;;  %12763 = vst [vmem:[#allocation85_spill] sm:$0xff] %v10470_v23 }
 0x4c4   : > { %v10456_v54 = vadd.f32 %v7696_v52, %v992_v41  ;;  %v2671_v41 = vsel %vm1510_vm1, %v10458_v17, -inf }
 0x4c5   : > { %v2308_v46 = vpop.f32.mrf.mxu0 }
 0x4c6   : > { %v10460_v48 = vadd.f32 %v2308_v46, %v990_v58  ;;  %v2680_v45 = vsel %vm1510_vm1, %v10456_v54, -inf  ;;  %v1052_v58 = vld [vmem:[#allocation7 + $0x258] sm:$0xff] }
 0x4c7   : > { %2678 = vmax.xlane.f32.xlu0 %v2677_v32  ;;  %2681 = vmax.xlane.f32.xlu1 %v2680_v45  ;;  %v1019_v32 = vld [vmem:[#allocation7 + $0x150] sm:$0xff] }
 0x4c8   : > { %v2674_v53 = vsel %vm1510_vm1, %v10460_v48, -inf }
 0x4cb   : > { %2675 = vmax.xlane.f32.xlu1 %v2674_v53  ;;  %2672 = vmax.xlane.f32.xlu0 %v2671_v41 }
 0x4ef   : > { %v10472_v5 = vpop.f32.mrf.mxu1 }
 0x4f0   : > { %12764 = vst [vmem:[#allocation86_spill] sm:$0xff] %v10472_v5 }
 0x4f1   : > { %v10474_v18 = vpop.f32.mrf.mxu1 }
 0x4f2   : > { %12765 = vst [vmem:[#allocation87_spill] sm:$0xff] %v10474_v18 }
 0x4f3   : > { %v10476_v52 = vpop.f32.mrf.mxu1 }
 0x4f4   : > { %12766 = vst [vmem:[#allocation88_spill] sm:$0xff] %v10476_v52 }
 0x4f5   : > { %v10480_v46 = vpop.f32.mrf.mxu1 }
 0x4f6   : > { %12767 = vst [vmem:[#allocation89_spill] sm:$0xff] %v10480_v46 }
 0x4f7   : > { %v7707_v45 = vpop.f32.mrf.mxu1 }
 0x4f8   : > { %v10482_v56 = vadd.f32 %v7707_v45, %v1019_v32 }
 0x4f9   : > { %v2402_v53 = vpop.f32.mrf.mxu1  ;;  %v7723_v41 = vpop.f32.mrf.mxu0 }
 0x4fa   : > { %v10484_v23 = vadd.f32 %v7723_v41, %v1051_v51  ;;  %v2689_v18 = vsel %vm1510_vm1, %v10482_v56, -inf  ;;  %v10490_v24 = vadd.f32 %v2402_v53, %v1017_v20  ;;  %v1049_v41 = vld [vmem:[#allocation7 + $0x240] sm:$0xff]  ;;  %v1050_v53 = vld [vmem:[#allocation7 + $0x248] sm:$0xff] }
 0x4fb   : > { %2690 = vmax.xlane.f32.xlu0 %v2689_v18  ;;  %v7708_v43 = vpop.f32.mrf.mxu1  ;;  %v2515_v14 = vpop.f32.mrf.mxu0 }
 0x4fc   : > { %v10488_v5 = vadd.f32 %v7708_v43, %v1020_v35  ;;  %v2713_v45 = vsel %vm1510_vm1, %v10484_v23, -inf  ;;  %v10498_v35 = vadd.f32 %v2515_v14, %v1049_v41  ;;  %v2683_v20 = vsel %vm1510_vm1, %v10490_v24, -inf  ;;  %v1024_v41 = vld [vmem:[#allocation7 + $0x178] sm:$0xff] }
 0x4fd   : > { %v2405_v52 = vpop.f32.mrf.mxu1  ;;  %v7724_v46 = vpop.f32.mrf.mxu0 }
 0x4fe   : > { %v10492_v32 = vadd.f32 %v7724_v46, %v1052_v58  ;;  %v2692_v51 = vsel %vm1510_vm1, %v10488_v5, -inf  ;;  %v10500_v43 = vadd.f32 %v2405_v52, %v1018_v26  ;;  %v1023_v46 = vld [vmem:[#allocation7 + $0x170] sm:$0xff]  ;;  %v2707_v14 = vsel %vm1510_vm1, %v10498_v35, -inf }
 0x4ff   : > { %2693 = vmax.xlane.f32.xlu1 %v2692_v51  ;;  %v7711_v18 = vpop.f32.mrf.mxu1  ;;  %2714 = vmax.xlane.f32.xlu0 %v2713_v45  ;;  %v2518_v55 = vpop.f32.mrf.mxu0  ;;  %v1055_v52 = vld [vmem:[#allocation7 + $0x270] sm:$0xff] }
 0x500   : > { %v2716_v58 = vsel %vm1510_vm1, %v10492_v32, -inf  ;;  %v10506_v51 = vadd.f32 %v7711_v18, %v1023_v46  ;;  %v10508_v45 = vadd.f32 %v2518_v55, %v1050_v53  ;;  %v2686_v26 = vsel %vm1510_vm1, %v10500_v43, -inf  ;;  %v1056_v46 = vld [vmem:[#allocation7 + $0x278] sm:$0xff] }
 0x501   : > { %v2418_v7 = vpop.f32.mrf.mxu1  ;;  %v7727_v57 = vpop.f32.mrf.mxu0 }
 0x502   : > { %v10514_v29 = vadd.f32 %v7727_v57, %v1055_v52  ;;  %v2710_v55 = vsel %vm1510_vm1, %v10508_v45, -inf  ;;  %v2701_v18 = vsel %vm1510_vm1, %v10506_v51, -inf  ;;  %v1022_v52 = vld [vmem:[#allocation7 + $0x168] sm:$0xff] }
 0x503   : > { %2684 = vmax.xlane.f32.xlu0 %v2683_v20  ;;  %2717 = vmax.xlane.f32.xlu1 %v2716_v58  ;;  %v7712_v13 = vpop.f32.mrf.mxu1  ;;  %v2531_v42 = vpop.f32.mrf.mxu0  ;;  %v1021_v58 = vld [vmem:[#allocation7 + $0x160] sm:$0xff] }
 0x504   : > { %v10516_v20 = vadd.f32 %v7712_v13, %v1024_v41  ;;  %v10522_v15 = vadd.f32 %v2418_v7, %v1021_v58  ;;  %v2725_v13 = vsel %vm1510_vm1, %v10514_v29, -inf  ;;  %v1054_v58 = vld [vmem:[#allocation7 + $0x268] sm:$0xff] }
 0x505   : > { %v7728_v53 = vpop.f32.mrf.mxu0 }
 0x506   : > { %v10524_v9 = vadd.f32 %v7728_v53, %v1056_v46  ;;  %v2704_v57 = vsel %vm1510_vm1, %v10516_v20, -inf  ;;  %v2695_v7 = vsel %vm1510_vm1, %v10522_v15, -inf  ;;  %v1083_v46 = vld [vmem:[#allocation7 + $0x350] sm:$0xff] }
 0x507   : > { %2687 = vmax.xlane.f32.xlu1 %v2686_v26  ;;  %2708 = vmax.xlane.f32.xlu0 %v2707_v14  ;;  %v1053_v26 = vld [vmem:[#allocation7 + $0x260] sm:$0xff]  ;;  %v2421_v14 = vpop.f32.mrf.mxu1 }
 0x508   : > { %v10530_v41 = vadd.f32 %v2531_v42, %v1053_v26  ;;  %v10532_v30 = vadd.f32 %v2421_v14, %v1022_v52  ;;  %v1081_v26 = vld [vmem:[#allocation7 + $0x340] sm:$0xff] }
 0x50a   : > { %v2719_v42 = vsel %vm1510_vm1, %v10530_v41, -inf }
 0x50b   : > { %2711 = vmax.xlane.f32.xlu1 %v2710_v55  ;;  %2702 = vmax.xlane.f32.xlu0 %v2701_v18  ;;  %v2728_v55 = vsel %vm1510_vm1, %v10524_v9, -inf  ;;  %v2534_v18 = vpop.f32.mrf.mxu0 }
 0x50c   : > { %v10538_v53 = vadd.f32 %v2534_v18, %v1054_v58  ;;  %v1082_v58 = vld [vmem:[#allocation7 + $0x348] sm:$0xff] }
 0x50f   : > { %2705 = vmax.xlane.f32.xlu1 %v2704_v57  ;;  %2726 = vmax.xlane.f32.xlu0 %v2725_v13  ;;  %v2698_v57 = vsel %vm1510_vm1, %v10532_v30, -inf }
 0x513   : > { %2696 = vmax.xlane.f32.xlu0 %v2695_v7  ;;  %2729 = vmax.xlane.f32.xlu1 %v2728_v55  ;;  %v2722_v7 = vsel %vm1510_vm1, %v10538_v53, -inf }
 0x517   : > { %v7739_v13 = vpop.f32.mrf.mxu1  ;;  %2699 = vmax.xlane.f32.xlu1 %v2698_v57  ;;  %2720 = vmax.xlane.f32.xlu0 %v2719_v42  ;;  %v1087_v42 = vld [vmem:[#allocation7 + $0x370] sm:$0xff] }
 0x518   : > { %v10544_v14 = vadd.f32 %v7739_v13, %v1083_v46 }
 0x519   : > { %v2628_v52 = vpop.f32.mrf.mxu1 }
 0x51a   : > { %v10546_v3 = vadd.f32 %v2628_v52, %v1081_v26  ;;  %v2737_v55 = vsel %vm1510_vm1, %v10544_v14, -inf }
 0x51b   : > { %v7740_v18 = vpop.f32.mrf.mxu1  ;;  %2723 = vmax.xlane.f32.xlu1 %v2722_v7  ;;  %2738 = vmax.xlane.f32.xlu0 %v2737_v55 }
 0x51c   : > { %v10552_v6 = vadd.f32 %v7740_v18, %v1084_v4  ;;  %v2731_v26 = vsel %vm1510_vm1, %v10546_v3, -inf }
 0x51d   : > { %v2631_v57 = vpop.f32.mrf.mxu1 }
 0x51e   : > { %v10554_v46 = vadd.f32 %v2631_v57, %v1082_v58  ;;  %v2740_v13 = vsel %vm1510_vm1, %v10552_v6, -inf }
 0x51f   : > { %v7743_v52 = vpop.f32.mrf.mxu1  ;;  %2741 = vmax.xlane.f32.xlu1 %v2740_v13  ;;  %2732 = vmax.xlane.f32.xlu0 %v2731_v26 }
 0x520   : > { %v10560_v63 = vadd.f32 %v7743_v52, %v1087_v42  ;;  %v2734_v4 = vsel %vm1510_vm1, %v10554_v46, -inf  ;;  %v10575_v42 = vpop.permute.xlu1 %3221 }
 0x521   : > { %v2644_v7 = vpop.f32.mrf.mxu1 }
 0x522   : > { %v10562_v55 = vadd.f32 %v2644_v7, %v1085_v44  ;;  %v2749_v18 = vsel %vm1510_vm1, %v10560_v63, -inf }
 0x523   : > { %2735 = vmax.xlane.f32.xlu1 %v2734_v4  ;;  %2750 = vmax.xlane.f32.xlu0 %v2749_v18  ;;  %v7744_v21 = vpop.f32.mrf.mxu1 }
 0x524   : > { %v2743_v58 = vsel %vm1510_vm1, %v10562_v55, -inf }
 0x527   : > { %2744 = vmax.xlane.f32.xlu0 %v2743_v58 }
 0x534   : > { %3217 = vrot.lane.b32.xlu1 %v10180_v27, %s9125_s30 }
 0x53d   : > { %3219 = vrot.lane.b32.xlu0 %v9621_v34, %s9125_s30 }
 0x544   : > { %v2667_v44 = vpop.xlane.xlu0 %2666 }
 0x545   : > { %v2757_v57 = vsub.f32 %v10432_v8, %v2667_v44 }
 0x547   : > { %v2791_v13 = vmul.f32 1.442695, %v2757_v57 }
 0x548   : > { %v2661_v26 = vpop.xlane.xlu0 %2660 }
 0x549   : > { %v2755_v52 = vsub.f32 %v10436_v39, %v2661_v26  ;;  %8550 = vpow2.f32 %v2791_v13  ;;  %v10582_v26 = vadd.f32 %v7744_v21, %v1088_v37  ;;  %v2647_v13 = vpop.f32.mrf.mxu1 }
 0x54a   : > { %v2664_v7 = vpop.xlane.xlu1 %2663 }
 0x54b   : > { %v2787_v4 = vmul.f32 1.442695, %v2755_v52  ;;  %v2756_v18 = vsub.f32 %v10446_v10, %v2664_v7  ;;  %v1086_v52 = vld [vmem:[#allocation7 + $0x368] sm:$0xff]  ;;  %v2752_v21 = vsel %vm1510_vm1, %v10582_v26, -inf }
 0x54c   : > { %v2670_v58 = vpop.xlane.xlu0 %2669 }
 0x54d   : > { %v2758_v27 = vsub.f32 %v10444_v60, %v2670_v58  ;;  %8552 = vpow2.f32 %v2787_v4  ;;  %v2789_v34 = vmul.f32 1.442695, %v2756_v18  ;;  %v10586_v18 = vadd.f32 %v2647_v13, %v1086_v52 }
 0x54f   : > { %v2793_v49 = vmul.f32 1.442695, %v2758_v27 }
 0x550   : > { %v2682_v8 = vpop.xlane.xlu1 %2681  ;;  %v2679_v44 = vpop.xlane.xlu0 %2678 }
 0x551   : > { %8554 = vpow2.f32 %v2793_v49  ;;  %v2762_v57 = vsub.f32 %v10456_v54, %v2682_v8  ;;  %v2761_v39 = vsub.f32 %v10452_v11, %v2679_v44 }
 0x552   : > { %8556 = vpow2.f32 %v2789_v34  ;;  %v2746_v34 = vsel %vm1510_vm1, %v10586_v18, -inf }
 0x553   : > { %v2801_v10 = vmul.f32 1.442695, %v2762_v57  ;;  %v2799_v7 = vmul.f32 1.442695, %v2761_v39 }
 0x554   : > { %v2676_v60 = vpop.xlane.xlu1 %2675  ;;  %v2673_v58 = vpop.xlane.xlu0 %2672 }
 0x555   : > { %v2760_v4 = vsub.f32 %v10460_v48, %v2676_v60  ;;  %v2759_v27 = vsub.f32 %v10458_v17, %v2673_v58  ;;  %8558 = vpow2.f32 %v2799_v7 }
 0x556   : > { %8560 = vpow2.f32 %v2801_v10  ;;  %v10590_v37 = vpop.eup %8550 }
 0x557   : > { %v2797_v49 = vmul.f32 1.442695, %v2760_v4  ;;  %v2795_v54 = vmul.f32 1.442695, %v2759_v27  ;;  %v2857_v11 = vsel %vm1510_vm1, %v10590_v37, 0.0 }
 0x558   : > { %2753 = vmax.xlane.f32.xlu1 %v2752_v21 }
 0x559   : > { %8562 = vpow2.f32 %v2795_v54 }
 0x55a   : > { %8564 = vpow2.f32 %v2797_v49  ;;  %v10596_v48 = vpop.eup %8552 }
 0x55b   : > { %v2851_v8 = vsel %vm1510_vm1, %v10596_v48, 0.0 }
 0x55c   : > { %2747 = vmax.xlane.f32.xlu1 %v2746_v34  ;;  %2858 = vadd.xlane.f32.xlu0 %v2857_v11 }
 0x55e   : > { %v10598_v17 = vpop.eup %8554 }
 0x55f   : > { %v2860_v44 = vsel %vm1510_vm1, %v10598_v17, 0.0  ;;  %v10604_v57 = vpop.eup %8556 }
 0x560   : > { %2852 = vadd.xlane.f32.xlu0 %v2851_v8  ;;  %2861 = vadd.xlane.f32.xlu1 %v2860_v44  ;;  %v2854_v13 = vsel %vm1510_vm1, %v10604_v57, 0.0 }
 0x562   : > { %v10606_v39 = vpop.eup %8558 }
 0x563   : > { %v10610_v52 = vpop.eup %8560  ;;  %v2869_v10 = vsel %vm1510_vm1, %v10606_v39, 0.0 }
 0x564   : > { %2855 = vadd.xlane.f32.xlu1 %v2854_v13  ;;  %2870 = vadd.xlane.f32.xlu0 %v2869_v10  ;;  %v2872_v60 = vsel %vm1510_vm1, %v10610_v52, 0.0 }
 0x566   : > { %v10614_v7 = vpop.eup %8562 }
 0x567   : > { %v10618_v58 = vpop.eup %8564  ;;  %v2863_v4 = vsel %vm1510_vm1, %v10614_v7, 0.0 }
 0x568   : > { %2873 = vadd.xlane.f32.xlu1 %v2872_v60  ;;  %2864 = vadd.xlane.f32.xlu0 %v2863_v4  ;;  %v2866_v27 = vsel %vm1510_vm1, %v10618_v58, 0.0 }
 0x56c   : > { %2867 = vadd.xlane.f32.xlu1 %v2866_v27 }
 0x584   : > { %v2691_v49 = vpop.xlane.xlu0 %2690 }
 0x585   : > { %v2765_v54 = vsub.f32 %v10482_v56, %v2691_v49 }
 0x587   : > { %v2807_v21 = vmul.f32 1.442695, %v2765_v54 }
 0x588   : > { %v2694_v34 = vpop.xlane.xlu1 %2693  ;;  %v2715_v11 = vpop.xlane.xlu0 %2714 }
 0x589   : > { %8566 = vpow2.f32 %v2807_v21  ;;  %v2773_v8 = vsub.f32 %v10484_v23, %v2715_v11  ;;  %v2766_v27 = vsub.f32 %v10488_v5, %v2694_v34 }
 0x58b   : > { %v2823_v44 = vmul.f32 1.442695, %v2773_v8  ;;  %v2809_v23 = vmul.f32 1.442695, %v2766_v27 }
 0x58c   : > { %v2718_v13 = vpop.xlane.xlu1 %2717  ;;  %v2685_v10 = vpop.xlane.xlu0 %2684 }
 0x58d   : > { %v2774_v60 = vsub.f32 %v10492_v32, %v2718_v13  ;;  %v2763_v4 = vsub.f32 %v10490_v24, %v2685_v10  ;;  %8568 = vpow2.f32 %v2823_v44 }
 0x58f   : > { %v2825_v47 = vmul.f32 1.442695, %v2774_v60  ;;  %v2803_v62 = vmul.f32 1.442695, %v2763_v4 }
 0x590   : > { %v2688_v40 = vpop.xlane.xlu1 %2687  ;;  %v2709_v56 = vpop.xlane.xlu0 %2708 }
 0x591   : > { %8570 = vpow2.f32 %v2825_v47  ;;  %v2771_v49 = vsub.f32 %v10498_v35, %v2709_v56  ;;  %v2764_v21 = vsub.f32 %v10500_v43, %v2688_v40 }
 0x592   : > { %8572 = vpow2.f32 %v2803_v62 }
 0x593   : > { %v2819_v54 = vmul.f32 1.442695, %v2771_v49  ;;  %v2805_v62 = vmul.f32 1.442695, %v2764_v21 }
 0x594   : > { %v2712_v11 = vpop.xlane.xlu1 %2711  ;;  %v2703_v8 = vpop.xlane.xlu0 %2702 }
 0x595   : > { %v2772_v32 = vsub.f32 %v10508_v45, %v2712_v11  ;;  %v2769_v24 = vsub.f32 %v10506_v51, %v2703_v8  ;;  %8574 = vpow2.f32 %v2819_v54 }
 0x596   : > { %v10633_v44 = vpop.eup %8566  ;;  %8576 = vpow2.f32 %v2809_v23 }
 0x597   : > { %v2821_v5 = vmul.f32 1.442695, %v2772_v32  ;;  %v2815_v34 = vmul.f32 1.442695, %v2769_v24  ;;  %v2881_v47 = vsel %vm1510_vm1, %v10633_v44, 0.0 }
 0x598   : > { %v2706_v35 = vpop.xlane.xlu1 %2705  ;;  %2882 = vadd.xlane.f32.xlu1 %v2881_v47  ;;  %v2727_v13 = vpop.xlane.xlu0 %2726 }
 0x599   : > { %8578 = vpow2.f32 %v2821_v5  ;;  %v2777_v40 = vsub.f32 %v10514_v29, %v2727_v13  ;;  %v2770_v51 = vsub.f32 %v10516_v20, %v2706_v35 }
 0x59a   : > { %v10638_v43 = vpop.eup %8568  ;;  %8580 = vpow2.f32 %v2815_v34 }
 0x59b   : > { %8582 = vpow2.f32 %v2805_v62  ;;  %v2831_v45 = vmul.f32 1.442695, %v2777_v40  ;;  %v2905_v60 = vsel %vm1510_vm1, %v10638_v43, 0.0  ;;  %v2817_v20 = vmul.f32 1.442695, %v2770_v51 }
 0x59c   : > { %v2730_v10 = vpop.xlane.xlu1 %2729  ;;  %v2697_v4 = vpop.xlane.xlu0 %2696  ;;  %2906 = vadd.xlane.f32.xlu0 %v2905_v60 }
 0x59d   : > { %v2767_v27 = vsub.f32 %v10522_v15, %v2697_v4  ;;  %v2778_v29 = vsub.f32 %v10524_v9, %v2730_v10  ;;  %8584 = vpow2.f32 %v2831_v45 }
 0x59e   : > { %v10644_v56 = vpop.eup %8570 }
 0x59f   : > { %v10646_v49 = vpop.eup %8572  ;;  %v2811_v54 = vmul.f32 1.442695, %v2767_v27  ;;  %v2908_v23 = vsel %vm1510_vm1, %v10644_v56, 0.0  ;;  %v2833_v9 = vmul.f32 1.442695, %v2778_v29 }
 0x5a0   : > { %v2700_v21 = vpop.xlane.xlu1 %2699  ;;  %v2875_v11 = vsel %vm1510_vm1, %v10646_v49, 0.0  ;;  %v2721_v8 = vpop.xlane.xlu0 %2720  ;;  %2909 = vadd.xlane.f32.xlu0 %v2908_v23 }
 0x5a1   : > { %v2768_v32 = vsub.f32 %v10532_v30, %v2700_v21  ;;  %2876 = vadd.xlane.f32.xlu1 %v2875_v11  ;;  %v2775_v15 = vsub.f32 %v10530_v41, %v2721_v8  ;;  %8586 = vpow2.f32 %v2811_v54 }
 0x5a2   : > { %v10655_v24 = vpop.eup %8574  ;;  %8588 = vpow2.f32 %v2817_v20 }
 0x5a3   : > { %v2827_v5 = vmul.f32 1.442695, %v2775_v15  ;;  %v2813_v34 = vmul.f32 1.442695, %v2768_v32  ;;  %v2899_v62 = vsel %vm1510_vm1, %v10655_v24, 0.0  ;;  %v10659_v13 = vpop.eup %8576 }
 0x5a4   : > { %v2724_v47 = vpop.xlane.xlu1 %2723  ;;  %v2739_v35 = vpop.xlane.xlu0 %2738 }
 0x5a5   : > { %v2776_v30 = vsub.f32 %v10538_v53, %v2724_v47  ;;  %2900 = vadd.xlane.f32.xlu1 %v2899_v62  ;;  %v2781_v40 = vsub.f32 %v10544_v14, %v2739_v35  ;;  %8590 = vpow2.f32 %v2827_v5  ;;  %v2884_v53 = vsel %vm1510_vm1, %v10659_v13, 0.0 }
 0x5a6   : > { %v10663_v41 = vpop.eup %8578  ;;  %8592 = vpow2.f32 %v2833_v9 }
 0x5a7   : > { %v2829_v51 = vmul.f32 1.442695, %v2776_v30  ;;  %v2902_v45 = vsel %vm1510_vm1, %v10663_v41, 0.0  ;;  %v10667_v10 = vpop.eup %8580  ;;  %8594 = vpow2.f32 %v2813_v34  ;;  %v2839_v60 = vmul.f32 1.442695, %v2781_v40 }
 0x5a8   : > { %v2742_v4 = vpop.xlane.xlu1 %2741  ;;  %2903 = vadd.xlane.f32.xlu0 %v2902_v45  ;;  %v2733_v27 = vpop.xlane.xlu0 %2732  ;;  %v2893_v20 = vsel %vm1510_vm1, %v10667_v10, 0.0 }
 0x5a9   : > { %v10671_v29 = vpop.eup %8582  ;;  %v2782_v14 = vsub.f32 %v10552_v6, %v2742_v4  ;;  %2885 = vadd.xlane.f32.xlu1 %v2884_v53  ;;  %v2779_v54 = vsub.f32 %v10546_v3, %v2733_v27  ;;  %8596 = vpow2.f32 %v2829_v51 }
 0x5aa   : > { %8598 = vpow2.f32 %v2839_v60  ;;  %v2878_v8 = vsel %vm1510_vm1, %v10671_v29, 0.0  ;;  %v10679_v15 = vpop.eup %8584 }
 0x5ab   : > { %v2841_v23 = vmul.f32 1.442695, %v2782_v14  ;;  %v2835_v21 = vmul.f32 1.442695, %v2779_v54  ;;  %v2917_v47 = vsel %vm1510_vm1, %v10679_v15, 0.0 }
 0x5ac   : > { %v2736_v11 = vpop.xlane.xlu1 %2735  ;;  %2894 = vadd.xlane.f32.xlu0 %v2893_v20  ;;  %v2751_v32 = vpop.xlane.xlu0 %2750 }
 0x5ad   : > { %v2780_v6 = vsub.f32 %v10554_v46, %v2736_v11  ;;  %2879 = vadd.xlane.f32.xlu1 %v2878_v8  ;;  %v2785_v3 = vsub.f32 %v10560_v63, %v2751_v32  ;;  %8600 = vpow2.f32 %v2841_v23 }
 0x5ae   : > { %v10683_v9 = vpop.eup %8586  ;;  %8602 = vpow2.f32 %v2835_v21 }
 0x5af   : > { %v2837_v5 = vmul.f32 1.442695, %v2780_v6  ;;  %v2847_v34 = vmul.f32 1.442695, %v2785_v3  ;;  %v2887_v62 = vsel %vm1510_vm1, %v10683_v9, 0.0  ;;  %v10689_v30 = vpop.eup %8588 }
 0x5b0   : > { %v2745_v35 = vpop.xlane.xlu0 %2744  ;;  %2888 = vadd.xlane.f32.xlu0 %v2887_v62  ;;  %v2896_v45 = vsel %vm1510_vm1, %v10689_v30, 0.0  ;;  %v10736_v62 = vpop.permute.xlu1 %3217 }
 0x5b1   : > { %2918 = vadd.xlane.f32.xlu1 %v2917_v47  ;;  %v2783_v46 = vsub.f32 %v10562_v55, %v2745_v35  ;;  %8604 = vpow2.f32 %v2837_v5 }
 0x5b2   : > { %v10692_v63 = vpop.eup %8590  ;;  %8606 = vpow2.f32 %v2847_v34 }
 0x5b3   : > { %v10694_v40 = vpop.eup %8592  ;;  %v2843_v51 = vmul.f32 1.442695, %v2783_v46  ;;  %v2911_v60 = vsel %vm1510_vm1, %v10692_v63, 0.0 }
 0x5b4   : > { %v10700_v4 = vpop.eup %8594  ;;  %2897 = vadd.xlane.f32.xlu0 %v2896_v45  ;;  %v2920_v55 = vsel %vm1510_vm1, %v10694_v40, 0.0  ;;  %v10740_v35 = vpop.permute.xlu0 %3219 }
 0x5b5   : > { %2912 = vadd.xlane.f32.xlu1 %v2911_v60  ;;  %8608 = vpow2.f32 %v2843_v51  ;;  %v2890_v27 = vsel %vm1510_vm1, %v10700_v4, 0.0 }
 0x5b6   : > { %v10702_v53 = vpop.eup %8596 }
 0x5b7   : > { %v10708_v14 = vpop.eup %8598  ;;  %v2914_v23 = vsel %vm1510_vm1, %v10702_v53, 0.0 }
 0x5b8   : > { %2921 = vadd.xlane.f32.xlu0 %v2920_v55  ;;  %v2929_v20 = vsel %vm1510_vm1, %v10708_v14, 0.0 }
 0x5b9   : > { %2891 = vadd.xlane.f32.xlu1 %v2890_v27 }
 0x5ba   : > { %v10710_v54 = vpop.eup %8600 }
 0x5bb   : > { %v10716_v21 = vpop.eup %8602  ;;  %v2932_v8 = vsel %vm1510_vm1, %v10710_v54, 0.0 }
 0x5bc   : > { %2915 = vadd.xlane.f32.xlu0 %v2914_v23  ;;  %v2923_v32 = vsel %vm1510_vm1, %v10716_v21, 0.0  ;;  %v12768_v23 = vld [vmem:[#allocation19_spill] sm:$0xff] }
 0x5bd   : > { %2930 = vadd.xlane.f32.xlu1 %v2929_v20 }
 0x5be   : > { %v10718_v11 = vpop.eup %8604 }
 0x5bf   : > { %v10724_v6 = vpop.eup %8606  ;;  %v2926_v3 = vsel %vm1510_vm1, %v10718_v11, 0.0 }
 0x5c0   : > { %2933 = vadd.xlane.f32.xlu0 %v2932_v8  ;;  %v2941_v5 = vsel %vm1510_vm1, %v10724_v6, 0.0 }
 0x5c1   : > { %2924 = vadd.xlane.f32.xlu1 %v2923_v32 }
 0x5c2   : > { %v10730_v34 = vpop.eup %8608 }
 0x5c3   : > { %v2935_v47 = vsel %vm1510_vm1, %v10730_v34, 0.0 }
 0x5c4   : > { %2927 = vadd.xlane.f32.xlu0 %v2926_v3  ;;  %v12769_v3 = vld [vmem:[#allocation23_spill] sm:$0xff] }
 0x5c5   : > { %2942 = vadd.xlane.f32.xlu1 %v2941_v5  ;;  %v12770_v5 = vld [vmem:[#allocation22_spill] sm:$0xff] }
 0x5c9   : > { %2936 = vadd.xlane.f32.xlu1 %v2935_v47 }
 0x5da   : > { %3314 = vrot.lane.b32.xlu1 %v10217_v33, %s9125_s30 }
 0x5de   : > { %3312 = vrot.lane.b32.xlu1 %v12711_v19, %s9125_s30 }
 0x5e1   : > { %v2754_v46 = vpop.xlane.xlu1 %2753 }
 0x5e2   : > { %v2786_v51 = vsub.f32 %v10582_v26, %v2754_v46  ;;  %3310 = vrot.lane.b32.xlu1 %v10241_v36, %s9125_s30  ;;  %v12771_v46 = vld [vmem:[#allocation17_spill] sm:$0xff] }
 0x5e4   : > { %v2849_v45 = vmul.f32 1.442695, %v2786_v51 }
 0x5e5   : > { %v2748_v60 = vpop.xlane.xlu1 %2747  ;;  %v2859_v55 = vpop.xlane.xlu0 %2858 }
 0x5e6   : > { %8610 = vpow2.f32 %v2849_v45  ;;  %v2784_v27 = vsub.f32 %v10586_v18, %v2748_v60  ;;  %3874 = vrot.lane.b32.xlu1 %v12768_v23, %s9126_s11 }
 0x5e8   : > { %v2845_v20 = vmul.f32 1.442695, %v2784_v27  ;;  %v12772_v27 = vld [vmem:[#allocation29_spill] sm:$0xff] }
 0x5e9   : > { %v2862_v8 = vpop.xlane.xlu1 %2861  ;;  %v2853_v32 = vpop.xlane.xlu0 %2852 }
 0x5ea   : > { %8612 = vpow2.f32 %v2845_v20  ;;  %3981 = vrot.lane.b32.xlu1 %v12769_v3, %s9126_s11 }
 0x5eb   : > { %8614 = vrcp.f32 %v2862_v8 }
 0x5ec   : > { %8616 = vrcp.f32 %v2853_v32 }
 0x5ed   : > { %8618 = vrcp.f32 %v2859_v55  ;;  %v2856_v26 = vpop.xlane.xlu1 %2855  ;;  %v2871_v18 = vpop.xlane.xlu0 %2870 }
 0x5ee   : > { %8620 = vrcp.f32 %v2856_v26  ;;  %3979 = vrot.lane.b32.xlu1 %v12770_v5, %s9126_s11 }
 0x5f1   : > { %v2874_v47 = vpop.xlane.xlu1 %2873  ;;  %v2865_v51 = vpop.xlane.xlu0 %2864 }
 0x5f2   : > { %3864 = vrot.lane.b32.xlu1 %v12771_v46, %s9126_s11  ;;  %8622 = vrcp.f32 %v2874_v47 }
 0x5f3   : > { %v10754_v45 = vpop.eup %8610  ;;  %8624 = vrcp.f32 %v2865_v51 }
 0x5f4   : > { %v2944_v60 = vsel %vm1510_vm1, %v10754_v45, 0.0  ;;  %8626 = vrcp.f32 %v2871_v18 }
 0x5f5   : > { %v2868_v55 = vpop.xlane.xlu1 %2867  ;;  %2945 = vadd.xlane.f32.xlu0 %v2944_v60 }
 0x5f6   : > { %8628 = vrcp.f32 %v2868_v55  ;;  %4086 = vrot.lane.b32.xlu1 %v12772_v27, %s9126_s11 }
 0x5f7   : > { %v10760_v20 = vpop.eup %8612 }
 0x5f8   : > { %v8615_v8 = vpop.eup %8614  ;;  %v2938_v32 = vsel %vm1510_vm1, %v10760_v20, 0.0 }
 0x5f9   : > { %v8617_v26 = vpop.eup %8616  ;;  %2939 = vadd.xlane.f32.xlu0 %v2938_v32  ;;  %v2982_v18 = vmul.f32 %v8615_v8, %v10598_v17 }
 0x5fa   : > { %v8619_v47 = vpop.eup %8618  ;;  %3868 = vrot.lane.b32.xlu1 %v9511_v16, %s9126_s11  ;;  %v2979_v60 = vmul.f32 %v8617_v26, %v10596_v48  ;;  %v12780_v26 = vld [vmem:[#allocation51_spill] sm:$0xff] }
 0x5fb   : > { %v8621_v51 = vpop.eup %8620  ;;  %v2981_v27 = vmul.f32 %v8619_v47, %v10590_v37  ;;  %v12781_v47 = vld [vmem:[#allocation28_spill] sm:$0xff] }
 0x5fc   : > { %v2980_v55 = vmul.f32 %v8621_v51, %v10604_v57 }
 0x5fd   : > { %v3012_v3 = vpack.c.bf16 %v2982_v18, %v2981_v27  ;;  %v12779_v27 = vld [vmem:[#allocation24_spill] sm:$0xff] }
 0x5fe   : > { %4084 = vrot.lane.b32.xlu1 %v9591_v31, %s9126_s11  ;;  %v3011_v5 = vpack.c.bf16 %v2980_v55, %v2979_v60  ;;  %v12782_v60 = vld [vmem:[#allocation54_spill] sm:$0xff]  ;;  %v12783_v55 = vld [vmem:[#allocation27_spill] sm:$0xff] }
 0x5ff   : > { %v8623_v23 = vpop.eup %8622 }
 0x600   : > { %7753 = vmatprep.mubr.msk.bf16.mxu0 %vm1510_vm1, %v3011_v5  ;;  %v8625_v32 = vpop.eup %8624  ;;  %v2986_v37 = vmul.f32 %v8623_v23, %v10610_v52  ;;  %v12775_v52 = vld [vmem:[#allocation16_spill] sm:$0xff] }
 0x601   : > { %7754 = vmatmul.mubr.msk.bf16.vlgmr.msra.gmra.mxu0 %vm1510_vm1, %v3012_v3  ;;  %v8627_v16 = vpop.eup %8626  ;;  %v2983_v17 = vmul.f32 %v8625_v32, %v10614_v7  ;;  %v12776_v7 = vld [vmem:[#allocation15_spill] sm:$0xff] }
 0x602   : > { %3969 = vrot.lane.b32.xlu1 %v9582_v59, %s9126_s11  ;;  %7778 = vmatpush3.bf16.msra.mxu0 %v10364_v38  ;;  %v2985_v5 = vmul.f32 %v8627_v16, %v10606_v39  ;;  %v10792_v16 = vld [vmem:[#allocation8 + $0x18] sm:$0xff]  }
 0x603   : > { %v8629_v48 = vpop.eup %8628  ;;  %7779 = vmatprep.subr.bf16.mxu0 %v10575_v42  ;;  %v12774_v39 = vld [vmem:[#allocation18_spill] sm:$0xff] }
 0x604   : > { %v2984_v57 = vmul.f32 %v8629_v48, %v10618_v58  ;;  %v3014_v38 = vpack.c.bf16 %v2986_v37, %v2985_v5  ;;  %v12777_v58 = vld [vmem:[#allocation21_spill] sm:$0xff]  ;;  %v12784_v37 = vld [vmem:[#allocation59_spill] sm:$0xff] }
 0x606   : > { %4191 = vrot.lane.b32.xlu1 %v9703_v61, %s9126_s11  ;;  %7780 = vmatpush3.bf16.msra.mxu0 %v10575_v42  ;;  %v3013_v3 = vpack.c.bf16 %v2984_v57, %v2983_v17  ;;  %v12773_v42 = vld [vmem:[#allocation20_spill] sm:$0xff]  ;;  %v12785_v17 = vld [vmem:[#allocation34_spill] sm:$0xff] }
 0x607   : > { %7781 = vmatprep.subr.bf16.mxu0 %v10740_v35 }
 0x608   : > { %7757 = vmatprep.mubr.msk.bf16.mxu0 %vm1510_vm1, %v3013_v3  ;;  %v12786_v3 = vld [vmem:[#allocation72_spill] sm:$0xff] }
 0x609   : > { %7758 = vmatmul.mubr.msk.bf16.gmra.mxu0 %vm1510_vm1, %v3014_v38  ;;  %v12787_v38 = vld [vmem:[#allocation31_spill] sm:$0xff] }
 0x60a   : > { %3973 = vrot.lane.b32.xlu1 %v9628_v2, %s9126_s11  ;;  %7782 = vmatpush3.bf16.msra.mxu0 %v10740_v35  ;;  %v12778_v35 = vld [vmem:[#allocation43_spill] sm:$0xff] }
 0x60b   : > { %7783 = vmatprep.subr.bf16.mxu0 %v10736_v62 }
 0x60e   : > { %4189 = vrot.lane.b32.xlu1 %v12702_v1, %s9126_s11  ;;  %7784 = vmatpush3.bf16.msra.mxu0 %v10736_v62 }
 0x60f   : > { %3316 = vrot.lane.b32.xlu0 %v12705_v25, %s9125_s30  ;;  %7809 = vmatprep.subr.bf16.mxu0 %v10792_v16  ;;  %s9044_s30 = sshll.u32 %s9128_s29, 4  ;;  %s9045_s30 = int_to_ptr.vmem [resolvable:$false] %s9044_s30 }
 0x610   : > { %p9047_p1 = scmp.lt.s32.totalorder %s12447_s20, %s9045_s30 }
 0x612   : > { %4074 = vrot.lane.b32.xlu1 %v12704_v22, %s9126_s11 }
 0x613   : > { %3876 = vrot.lane.b32.xlu0 %v12773_v42, %s9126_s11 }
 0x616   : > { %4076 = vrot.lane.b32.xlu1 %v12709_v50, %s9126_s11 }
 0x617   : > { %3872 = vrot.lane.b32.xlu0 %v12774_v39, %s9126_s11 }
 0x61a   : > { %4185 = vrot.lane.b32.xlu1 %v12713_v12, %s9126_s11 }
 0x61b   : > { %3870 = vrot.lane.b32.xlu0 %v12775_v52, %s9126_s11 }
 0x61e   : > { %4179 = vrot.lane.b32.xlu1 %v12715_v0, %s9126_s11 }
 0x61f   : > { %3862 = vrot.lane.b32.xlu0 %v12776_v7, %s9126_s11 }
 0x621   : > { %v2883_v62 = vpop.xlane.xlu1 %2882 }
 0x622   : > { %4183 = vrot.lane.b32.xlu1 %v12718_v28, %s9126_s11 }
 0x623   : > { %3977 = vrot.lane.b32.xlu0 %v12777_v58, %s9126_s11 }
 0x625   : > { %v2907_v23 = vpop.xlane.xlu0 %2906 }
 0x626   : > { %4654 = vrot.lane.b32.xlu1 %v12778_v35, %s9126_s11  ;;  %v12789_v35 = vld [vmem:[#allocation25_spill] sm:$0xff] }
 0x627   : > { %3866 = vrot.lane.b32.xlu0 %v12779_v27, %s9126_s11 }
 0x629   : > { %v2910_v51 = vpop.xlane.xlu0 %2909 }
 0x62a   : > { %v2877_v8 = vpop.xlane.xlu1 %2876  ;;  %4745 = vrot.lane.b32.xlu1 %v12780_v26, %s9126_s11  ;;  %8630 = vrcp.f32 %v2910_v51 }
 0x62b   : > { %3975 = vrot.lane.b32.xlu0 %v12781_v47, %s9126_s11 }
 0x62e   : > { %v2901_v18 = vpop.xlane.xlu1 %2900  ;;  %4743 = vrot.lane.b32.xlu1 %v12782_v60, %s9126_s11 }
 0x62f   : > { %3967 = vrot.lane.b32.xlu0 %v12783_v55, %s9126_s11  ;;  %8632 = vrcp.f32 %v2901_v18  ;;  %v12788_v18 = vld [vmem:[#allocation36_spill] sm:$0xff] }
 0x630   : > { %8634 = vrcp.f32 %v2907_v23 }
 0x631   : > { %v2904_v32 = vpop.xlane.xlu0 %2903 }
 0x632   : > { %v2886_v48 = vpop.xlane.xlu1 %2885  ;;  %4739 = vrot.lane.b32.xlu1 %v12784_v37, %s9126_s11  ;;  %8636 = vrcp.f32 %v2904_v32 }
 0x633   : > { %4082 = vrot.lane.b32.xlu0 %v12785_v17, %s9126_s11  ;;  %8638 = vrcp.f32 %v2886_v48 }
 0x634   : > { %8640 = vrcp.f32 %v2877_v8 }
 0x635   : > { %v2895_v57 = vpop.xlane.xlu0 %2894  ;;  %8642 = vrcp.f32 %v2883_v62 }
 0x636   : > { %v2880_v5 = vpop.xlane.xlu1 %2879  ;;  %4832 = vrot.lane.b32.xlu1 %v12786_v3, %s9126_s11 }
 0x637   : > { %8644 = vrcp.f32 %v2880_v5  ;;  %3971 = vrot.lane.b32.xlu0 %v12787_v38, %s9126_s11  ;;  %v8631_v32 = vpop.eup %8630 }
 0x638   : > { %v2998_v62 = vmul.f32 %v8631_v32, %v10644_v56  ;;  %v12790_v56 = vld [vmem:[#allocation48_spill] sm:$0xff]  ;;  %v8415_v32 = vld [vmem:[#allocation8 + $0x10] sm:$0xff]  }
 0x639   : > { %v2889_v51 = vpop.xlane.xlu0 %2888 }
 0x63a   : > { %v2919_v23 = vpop.xlane.xlu1 %2918 }
 0x63b   : > { %4080 = vrot.lane.b32.xlu0 %v12788_v18, %s9126_s11 }
 0x63c   : > { %v8633_v37 = vpop.eup %8632 }
 0x63d   : > { %v8635_v60 = vpop.eup %8634  ;;  %v2898_v8 = vpop.xlane.xlu0 %2897  ;;  %v2995_v5 = vmul.f32 %v8633_v37, %v10655_v24 }
 0x63e   : > { %v2913_v48 = vpop.xlane.xlu1 %2912  ;;  %8646 = vrcp.f32 %v2898_v8  ;;  %v2997_v0 = vmul.f32 %v8635_v60, %v10638_v43  ;;  %v12791_v60 = vld [vmem:[#allocation46_spill] sm:$0xff] }
 0x63f   : > { %v8637_v26 = vpop.eup %8636  ;;  %4072 = vrot.lane.b32.xlu0 %v12789_v35, %s9126_s11  ;;  %8648 = vrcp.f32 %v2889_v51 }
 0x640   : > { %v2996_v3 = vmul.f32 %v8637_v26, %v10663_v41  ;;  %v8639_v28 = vpop.eup %8638  ;;  %8650 = vrcp.f32 %v2895_v57  ;;  %v3020_v61 = vpack.c.bf16 %v2998_v62, %v2997_v0  ;;  %v12794_v62 = vld [vmem:[#allocation39_spill] sm:$0xff] }
 0x641   : > { %v8641_v12 = vpop.eup %8640  ;;  %v2922_v22 = vpop.xlane.xlu0 %2921  ;;  %v2990_v24 = vmul.f32 %v8639_v28, %v10659_v13 }
 0x642   : > { %v2892_v50 = vpop.xlane.xlu1 %2891  ;;  %v3019_v1 = vpack.c.bf16 %v2996_v3, %v2995_v5  ;;  %v8643_v2 = vpop.eup %8642  ;;  %v2987_v43 = vmul.f32 %v8641_v12, %v10646_v49 }
 0x643   : > { %8652 = vrcp.f32 %v2892_v50  ;;  %4187 = vrot.lane.b32.xlu0 %v12790_v56, %s9126_s11  ;;  %v2989_v26 = vmul.f32 %v8643_v2, %v10633_v44 }
 0x644   : > { %v8645_v8 = vpop.eup %8644  ;;  %7785 = vmatprep.mubr.msk.bf16.mxu0 %vm1510_vm1, %v3019_v1  ;;  %8654 = vrcp.f32 %v2922_v22  ;;  %v12792_v22 = vld [vmem:[#allocation35_spill] sm:$0xff] }
 0x645   : > { %7786 = vmatmul.mubr.msk.bf16.vlgmr.msra.gmra.mxu0 %vm1510_vm1, %v3020_v61  ;;  %v2988_v41 = vmul.f32 %v8645_v8, %v10671_v29  ;;  %8656 = vrcp.f32 %v2913_v48  ;;  %v2916_v0 = vpop.xlane.xlu0 %2915  ;;  %v3016_v1 = vpack.c.bf16 %v2990_v24, %v2989_v26  ;;  %v12793_v29 = vld [vmem:[#allocation55_spill] sm:$0xff] }
 0x646   : > { %v2931_v50 = vpop.xlane.xlu1 %2930  ;;  %7810 = vmatpush3.bf16.msra.mxu0 %v10792_v16  ;;  %8658 = vrcp.f32 %v2919_v23 }
 0x647   : > { %4078 = vrot.lane.b32.xlu0 %v12791_v60, %s9126_s11  ;;  %v3015_v28 = vpack.c.bf16 %v2988_v41, %v2987_v43  ;;  %7811 = vmatprep.subr.bf16.mxu0 %v8415_v32  ;;  %8660 = vrcp.f32 %v2916_v0 }
 0x649   : > { %7769 = vmatprep.mubr.msk.bf16.mxu1 %vm1510_vm1, %v3015_v28  ;;  %v2934_v61 = vpop.xlane.xlu0 %2933 }
 0x64a   : > { %7770 = vmatmul.mubr.msk.bf16.vlgmr.msra.gmra.mxu1 %vm1510_vm1, %v3016_v1  ;;  %7812 = vmatpush3.bf16.msra.mxu0 %v8415_v32  ;;  %v2925_v2 = vpop.xlane.xlu1 %2924  ;;  %v12797_v1 = vld [vmem:[#allocation57_spill] sm:$0xff] }
 0x64b   : > { %4177 = vrot.lane.b32.xlu0 %v12792_v22, %s9126_s11  ;;  %v8647_v12 = vpop.eup %8646  ;;  %8662 = vrcp.f32 %v2925_v2 }
 0x64c   : > { %v8649_v44 = vpop.eup %8648  ;;  %v2994_v37 = vmul.f32 %v8647_v12, %v10689_v30 }
 0x64d   : > { %v2928_v49 = vpop.xlane.xlu0 %2927  ;;  %v8651_v13 = vpop.eup %8650  ;;  %v2991_v57 = vmul.f32 %v8649_v44, %v10683_v9 }
 0x64e   : > { %8664 = vrcp.f32 %v2928_v49  ;;  %v2993_v51 = vmul.f32 %v8651_v13, %v10667_v10  ;;  %v12795_v10 = vld [vmem:[#allocation45_spill] sm:$0xff]  ;;  %v2943_v12 = vpop.xlane.xlu1 %2942 }
 0x64f   : > { %4181 = vrot.lane.b32.xlu0 %v12793_v29, %s9126_s11  ;;  %8666 = vrcp.f32 %v2934_v61 }
 0x650   : > { %v8653_v16 = vpop.eup %8652  ;;  %v3018_v8 = vpack.c.bf16 %v2994_v37, %v2993_v51  ;;  %8668 = vrcp.f32 %v2931_v50 }
 0x651   : > { %v2992_v3 = vmul.f32 %v8653_v16, %v10700_v4  ;;  %v8655_v23 = vpop.eup %8654 }
 0x652   : > { %v8657_v48 = vpop.eup %8656  ;;  %v3002_v43 = vmul.f32 %v8655_v23, %v10694_v40  ;;  %v12796_v40 = vld [vmem:[#allocation47_spill] sm:$0xff]  ;;  %v2937_v44 = vpop.xlane.xlu1 %2936 }
 0x653   : > { %4656 = vrot.lane.b32.xlu0 %v12794_v62, %s9126_s11  ;;  %v3017_v5 = vpack.c.bf16 %v2992_v3, %v2991_v57  ;;  %v8659_v32 = vpop.eup %8658  ;;  %v2999_v9 = vmul.f32 %v8657_v48, %v10692_v63 }
 0x654   : > { %v8661_v24 = vpop.eup %8660  ;;  %v3001_v4 = vmul.f32 %v8659_v32, %v10679_v15  ;;  %v12798_v15 = vld [vmem:[#allocation49_spill] sm:$0xff] }
 0x655   : > { %7773 = vmatprep.mubr.msk.bf16.mxu1 %vm1510_vm1, %v3017_v5  ;;  %v3000_v30 = vmul.f32 %v8661_v24, %v10702_v53  ;;  %v8416_v5 = vld [vmem:[#allocation8 + $0x8] sm:$0xff]  }
 0x656   : > { %7774 = vmatmul.mubr.msk.bf16.gmra.mxu1 %vm1510_vm1, %v3018_v8  ;;  %v3022_v26 = vpack.c.bf16 %v3002_v43, %v3001_v4  ;;  %v3315_v49 = vpop.permute.xlu1 %3314 }
 0x657   : > { %4652 = vrot.lane.b32.xlu0 %v12795_v10, %s9126_s11  ;;  %v3021_v41 = vpack.c.bf16 %v3000_v30, %v2999_v9  ;;  %v8417_v9 = vld [vmem:[#allocation8] sm:$0xff]  }
 0x658   : > { %v8663_v0 = vpop.eup %8662 }
 0x659   : > { %7789 = vmatprep.mubr.msk.bf16.mxu0 %vm1510_vm1, %v3021_v41  ;;  %v3003_v63 = vmul.f32 %v8663_v0, %v10716_v21 }
 0x65a   : > { %7790 = vmatmul.mubr.msk.bf16.gmra.mxu0 %vm1510_vm1, %v3022_v26  ;;  %v3313_v21 = vpop.permute.xlu1 %3312 }
 0x65b   : > { %4650 = vrot.lane.b32.xlu0 %v12796_v40, %s9126_s11  ;;  %v8665_v28 = vpop.eup %8664 }
 0x65c   : > { %v3004_v53 = vmul.f32 %v8665_v28, %v10718_v11  ;;  %v8667_v61 = vpop.eup %8666  ;;  %v12799_v28 = vld [vmem:[#allocation61_spill] sm:$0xff] }
 0x65d   : > { %v8669_v50 = vpop.eup %8668  ;;  %v3006_v48 = vmul.f32 %v8667_v61, %v10710_v54 }
 0x65e   : > { %v3023_v2 = vpack.c.bf16 %v3004_v53, %v3003_v63  ;;  %v3311_v37 = vpop.permute.xlu1 %3310  ;;  %v3005_v8 = vmul.f32 %v8669_v50, %v10708_v14  ;;  %v12800_v63 = vld [vmem:[#allocation37_spill] sm:$0xff]  ;;  %v12806_v50 = vld [vmem:[#allocation64_spill] sm:$0xff] }
 0x65f   : > { %4741 = vrot.lane.b32.xlu0 %v12797_v1, %s9126_s11  ;;  %v2187_v53 = vpack.c.bf16 %v12800_v63, %v12799_v28  ;;  %v12816_v63 = vld [vmem:[#allocation74_spill] sm:$0xff] }
 0x660   : > { %7801 = vmatprep.mubr.msk.bf16.mxu1 %vm1510_vm1, %v3023_v2  ;;  %v3024_v43 = vpack.c.bf16 %v3006_v48, %v3005_v8 }
 0x662   : > { %v10894_v23 = vpop.permute.xlu1 %3874 }
 0x663   : > { %4834 = vrot.lane.b32.xlu0 %v12798_v15, %s9126_s11 }
 0x666   : > { %v3982_v4 = vpop.permute.xlu1 %3981 }
 0x67e   : > { %v2946_v13 = vpop.xlane.xlu0 %2945 }
 0x682   : > { %v2940_v16 = vpop.xlane.xlu0 %2939 }
 0x683   : > { %8670 = vrcp.f32 %v2940_v16  ;;  %v12804_v16 = vld [vmem:[#allocation56_spill] sm:$0xff] }
 0x684   : > { %8672 = vrcp.f32 %v2937_v44  ;;  %v12802_v44 = vld [vmem:[#allocation66_spill] sm:$0xff] }
 0x685   : > { %8674 = vrcp.f32 %v2946_v13  ;;  %v12803_v13 = vld [vmem:[#allocation60_spill] sm:$0xff] }
 0x686   : > { %v3317_v11 = vpop.permute.xlu0 %3316  ;;  %8676 = vrcp.f32 %v2943_v12 }
 0x687   : > { %7793 = vmatprep.subr.bf16.mxu1 %v3317_v11 }
 0x688   : > { %7794 = vmatpush3.bf16.msra.mxu1 %v3317_v11  ;;  %v4005_v11 = vsel %vm1153_vm0, %v3982_v4, 0 }
 0x689   : > { %7795 = vmatprep.subr.bf16.mxu1 %v3315_v49 }
 0x68a   : > { %v10890_v57 = vpop.permute.xlu0 %3876 }
 0x68b   : > { %8245 = vmatprep.subr.msk.bf16.mxu0 %vm1153_vm0, %v10890_v57 }
 0x68c   : > { %7796 = vmatpush3.bf16.msra.mxu1 %v3315_v49 }
 0x68d   : > { %7797 = vmatprep.subr.bf16.mxu1 %v3313_v21 }
 0x690   : > { %v8671_v3 = vpop.eup %8670  ;;  %7798 = vmatpush3.bf16.msra.mxu1 %v3313_v21  ;;  %v12805_v21 = vpack.c.bf16 %v12803_v13, %v12804_v16 }
 0x691   : > { %v8673_v51 = vpop.eup %8672  ;;  %7799 = vmatprep.subr.bf16.mxu1 %v3311_v37  ;;  %v3008_v32 = vmul.f32 %v8671_v3, %v10760_v20  ;;  %v10903_v20 = vpop.permute.xlu0 %3872  ;;  %v12807_v3 = vld [vmem:[#allocation67_spill] sm:$0xff] }
 0x692   : > { %v3007_v24 = vmul.f32 %v8673_v51, %v10730_v34  ;;  %v8675_v30 = vpop.eup %8674  ;;  %v3980_v34 = vpop.permute.xlu1 %3979  ;;  %v2191_v51 = vpack.c.bf16 %v12807_v3, %v12806_v50 }
 0x693   : > { %v8677_v26 = vpop.eup %8676  ;;  %v3010_v54 = vmul.f32 %v8675_v30, %v10754_v45  ;;  %v12801_v45 = vld [vmem:[#allocation71_spill] sm:$0xff]  ;;  %v12811_v30 = vld [vmem:[#allocation69_spill] sm:$0xff] }
 0x694   : > { %7800 = vmatpush3.bf16.msra.mxu1 %v3311_v37  ;;  %v3025_v41 = vpack.c.bf16 %v3008_v32, %v3007_v24  ;;  %v3009_v14 = vmul.f32 %v8677_v26, %v10724_v6  ;;  %v2189_v49 = vpack.c.bf16 %v12802_v44, %v12801_v45  ;;  %v12809_v32 = vld [vmem:[#allocation52_spill] sm:$0xff]  ;;  %v4002_v24 = vsel %vm1153_vm0, %v3980_v34, 0  ;;  %v12813_v26 = vld [vmem:[#allocation65_spill] sm:$0xff]  ;;  %v12818_v44 = vld [vmem:[#allocation63_spill] sm:$0xff] }
 0x695   : > { %7845 = vmatprep.subr.bf16.mxu1 %v8416_v5  ;;  %v10910_v2 = vpop.permute.xlu0 %3870 }
 0x696   : > { %v3026_v0 = vpack.c.bf16 %v3010_v54, %v3009_v14  ;;  %v10913_v12 = vpop.permute.xlu1 %3864  ;;  %v12814_v54 = vld [vmem:[#allocation68_spill] sm:$0xff] }
 0x697   : > { %7802 = vmatmul.mubr.msk.bf16.vlgmr.msra.gmra.mxu1 %vm1510_vm1, %v3024_v43  ;;  %v12815_v14 = vpack.c.bf16 %v12813_v26, %v12814_v54 }
 0x698   : > { %7805 = vmatprep.mubr.msk.bf16.mxu1 %vm1510_vm1, %v3025_v41  ;;  %7846 = vmatpush3.bf16.msra.mxu1 %v8416_v5  ;;  %v12808_v5 = vld [vmem:[#allocation38_spill] sm:$0xff] }
 0x699   : > { %7847 = vmatprep.subr.bf16.mxu1 %v8417_v9  ;;  %v10917_v6 = vpop.permute.xlu0 %3862  ;;  %v12810_v8 = vpack.c.bf16 %v12808_v5, %v12809_v32  ;;  %v12822_v5 = vld [vmem:[#allocation81_spill] sm:$0xff] }
 0x69a   : > { %v10924_v37 = vpop.permute.xlu1 %4086 }
 0x69c   : > { %7848 = vmatpush3.bf16.msra.mxu1 %v8417_v9 }
 0x69d   : > { %8249 = vmatprep.subr.msk.bf16.mxu1 %vm1153_vm0, %v3982_v4  ;;  %v3978_v61 = vpop.permute.xlu0 %3977  ;;  %v12812_v4 = vld [vmem:[#allocation80_spill] sm:$0xff] }
 0x69e   : > { %v10930_v48 = vpop.permute.xlu1 %3868  ;;  %v2193_v41 = vpack.c.bf16 %v12812_v4, %v12811_v30  ;;  %v12824_v30 = vld [vmem:[#allocation70_spill] sm:$0xff] }
 0x69f   : > { %7806 = vmatmul.mubr.msk.bf16.gmra.mxu1 %vm1510_vm1, %v3026_v0  ;;  %v3999_v0 = vsel %vm1153_vm0, %v3978_v61, 0 }
 0x6a0   : > { %7849 = vmatprep.mubr.msk.bf16.mxu1 %vm1153_vm0, %v2187_v53  ;;  %v12817_v53 = vld [vmem:[#allocation76_spill] sm:$0xff] }
 0x6a1   : > { %v10939_v43 = vpop.permute.xlu0 %3866  ;;  %v2195_v45 = vpack.c.bf16 %v12817_v53, %v12816_v63  ;;  %v12826_v53 = vld [vmem:[#allocation83_spill] sm:$0xff] }
 0x6a2   : > { %v10941_v9 = vpop.permute.xlu1 %4084 }
 0x6a6   : > { %v3970_v28 = vpop.permute.xlu1 %3969 }
 0x6a7   : > { %7850 = vmatmul.mubr.msk.bf16.vlgmr.msra.gmra.mxu1 %vm1153_vm0, %v12805_v21 }
 0x6a8   : > { %7898 = vmatpush3.bf16.xpose.msra.mxu1 %v4005_v11  ;;  %7853 = vmatprep.mubr.msk.bf16.mxu1 %vm1153_vm0, %v2189_v49  ;;  %v12819_v49 = vld [vmem:[#allocation62_spill] sm:$0xff] }
 0x6a9   : > { %8250 = vmatprep.subr.msk.bf16.mxu1 %vm1153_vm0, %v3980_v34  ;;  %v3976_v34 = vpop.permute.xlu0 %3975  ;;  %v12820_v13 = vpack.c.bf16 %v12818_v44, %v12819_v49 }
 0x6aa   : > { %v3996_v16 = vsel %vm1153_vm0, %v3976_v34, 0  ;;  %v4192_v21 = vpop.permute.xlu1 %4191 }
 0x6ad   : > { %v3968_v50 = vpop.permute.xlu0 %3967 }
 0x6af   : > { %7854 = vmatmul.mubr.msk.bf16.gmra.mxu1 %vm1153_vm0, %v12810_v8 }
 0x6b0   : > { %7900 = vmatpush3.bf16.xpose.msra.mxu1 %v4002_v24  ;;  %7857 = vmatprep.mubr.msk.bf16.mxu1 %vm1153_vm0, %v2191_v51  ;;  %v12821_v51 = vld [vmem:[#allocation78_spill] sm:$0xff]  ;;  %v12823_v24 = vld [vmem:[#allocation75_spill] sm:$0xff] }
 0x6b1   : > { %8251 = vmatprep.subr.msk.bf16.mxu1 %vm1153_vm0, %v3978_v61  ;;  %v2197_v32 = vpack.c.bf16 %v12822_v5, %v12821_v51  ;;  %v12825_v4 = vpack.c.bf16 %v12823_v24, %v12824_v30  ;;  %v3897_v5 = vsel %vm1153_vm0, %v10894_v23, 0 }
 0x6b7   : > { %7858 = vmatmul.mubr.msk.bf16.gmra.mxu1 %vm1153_vm0, %v12815_v14  ;;  %v10968_v14 = vpop.permute.xlu0 %4082 }
 0x6b8   : > { %7902 = vmatpush3.bf16.xpose.msra.mxu1 %v3999_v0  ;;  %7861 = vmatprep.mubr.msk.bf16.mxu1 %vm1153_vm0, %v2193_v41 }
 0x6b9   : > { %8252 = vmatprep.subr.msk.bf16.mxu1 %vm1153_vm0, %v3976_v34  ;;  %v3900_v34 = vsel %vm1153_vm0, %v10890_v57, 0 }
 0x6bf   : > { %7862 = vmatmul.mubr.msk.bf16.gmra.mxu1 %vm1153_vm0, %v12820_v13  ;;  %v12828_v13 = vld [vmem:[#allocation79_spill] sm:$0xff] }
 0x6c0   : > { %7904 = vmatpush3.bf16.xpose.msra.mxu1 %v3996_v16  ;;  %7865 = vmatprep.mubr.msk.bf16.mxu1 %vm1153_vm0, %v2195_v45  ;;  %v12827_v45 = vld [vmem:[#allocation85_spill] sm:$0xff] }
 0x6c1   : > { %8257 = vmatprep.subr.msk.bf16.mxu1 %vm1153_vm0, %v4192_v21  ;;  %v7755_v11 = vpop.f32.mrf.mxu0  ;;  %v2199_v44 = vpack.c.bf16 %v12827_v45, %v12826_v53  ;;  %v12829_v16 = vld [vmem:[#allocation77_spill] sm:$0xff]  ;;  %v12837_v53 = vld [vmem:[#allocation86_spill] sm:$0xff] }
 0x6c3   : > { %v3089_v61 = vpop.f32.mrf.mxu0 }
 0x6c5   : > { %v7756_v3 = vpop.f32.mrf.mxu0 }
 0x6c6   : > { %v3400_v26 = vpack.c.bf16 %v7756_v3, %v7755_v11  ;;  %v12830_v11 = vpack.c.bf16 %v12828_v13, %v12829_v16  ;;  %v3972_v3 = vpop.permute.xlu0 %3971  ;;  %v4215_v13 = vsel %vm1153_vm0, %v4192_v21, 0 }
 0x6c7   : > { %v3092_v8 = vpop.f32.mrf.mxu0  ;;  %7866 = vmatmul.mubr.msk.bf16.gmra.mxu1 %vm1153_vm0, %v12825_v4 }
 0x6c8   : > { %v3399_v41 = vpack.c.bf16 %v3092_v8, %v3089_v61  ;;  %7869 = vmatprep.mubr.msk.bf16.mxu1 %vm1153_vm0, %v2197_v32  ;;  %v3974_v61 = vpop.permute.xlu1 %3973  ;;  %v12831_v32 = vld [vmem:[#allocation87_spill] sm:$0xff]  ;;  %v12832_v8 = vld [vmem:[#allocation89_spill] sm:$0xff] }
 0x6c9   : > { %v7759_v54 = vpop.f32.mrf.mxu0  ;;  %v2201_v24 = vpack.c.bf16 %v12832_v8, %v12831_v32 }
 0x6ca   : > { %7813 = vmatprep.mubr.msk.bf16.mxu0 %vm1153_vm0, %v3399_v41  ;;  %v10991_v4 = vpop.permute.xlu0 %4080  ;;  %v12833_v41 = vld [vmem:[#allocation84_spill] sm:$0xff] }
 0x6cb   : > { %v3105_v0 = vpop.f32.mrf.mxu0  ;;  %7814 = vmatmul.mubr.msk.bf16.vlgmr.msra.gmra.mxu0 %vm1153_vm0, %v3400_v26  ;;  %v12834_v26 = vld [vmem:[#allocation82_spill] sm:$0xff] }
 0x6cc   : > { %7882 = vmatpush3.bf16.xpose.msra.mxu0 %v3900_v34  ;;  %v4190_v30 = vpop.permute.xlu1 %4189 }
 0x6cd   : > { %8246 = vmatprep.subr.msk.bf16.mxu0 %vm1153_vm0, %v10894_v23  ;;  %v7760_v63 = vpop.f32.mrf.mxu0  ;;  %v3894_v23 = vsel %vm1153_vm0, %v10903_v20, 0 }
 0x6ce   : > { %v3402_v57 = vpack.c.bf16 %v7760_v63, %v7759_v54  ;;  %v12835_v54 = vpack.c.bf16 %v12833_v41, %v12834_v26  ;;  %v11002_v34 = vpop.permute.xlu0 %4072  ;;  %v12836_v63 = vld [vmem:[#allocation88_spill] sm:$0xff] }
 0x6cf   : > { %v3108_v49 = vpop.f32.mrf.mxu0  ;;  %7870 = vmatmul.mubr.msk.bf16.gmra.mxu1 %vm1153_vm0, %v12830_v11  ;;  %v12838_v45 = vpack.c.bf16 %v12836_v63, %v12837_v53 }
 0x6d0   : > { %v3401_v51 = vpack.c.bf16 %v3108_v49, %v3105_v0  ;;  %7873 = vmatprep.mubr.msk.bf16.mxu1 %vm1153_vm0, %v2199_v44  ;;  %v11000_v0 = vpop.permute.xlu1 %4074 }
 0x6d2   : > { %7817 = vmatprep.mubr.msk.bf16.mxu0 %vm1153_vm0, %v3401_v51  ;;  %v4188_v49 = vpop.permute.xlu0 %4187 }
 0x6d3   : > { %7818 = vmatmul.mubr.msk.bf16.gmra.mxu0 %vm1153_vm0, %v3402_v57  ;;  %v4209_v57 = vsel %vm1153_vm0, %v4188_v49, 0 }
 0x6d4   : > { %7884 = vmatpush3.bf16.xpose.msra.mxu0 %v3897_v5  ;;  %v11011_v44 = vpop.permute.xlu1 %4076 }
 0x6d5   : > { %8247 = vmatprep.subr.msk.bf16.mxu0 %vm1153_vm0, %v10903_v20  ;;  %v3891_v20 = vsel %vm1153_vm0, %v10910_v2, 0 }
 0x6d6   : > { %v11019_v11 = vpop.permute.xlu0 %4078 }
 0x6d7   : > { %7874 = vmatmul.mubr.msk.bf16.gmra.mxu1 %vm1153_vm0, %v12835_v54 }
 0x6d8   : > { %7877 = vmatprep.mubr.msk.bf16.mxu1 %vm1153_vm0, %v2201_v24  ;;  %v4186_v16 = vpop.permute.xlu1 %4185 }
 0x6da   : > { %v4178_v51 = vpop.permute.xlu0 %4177 }
 0x6dc   : > { %7886 = vmatpush3.bf16.xpose.msra.mxu0 %v3894_v23 }
 0x6dd   : > { %8248 = vmatprep.subr.msk.bf16.mxu0 %vm1153_vm0, %v10910_v2  ;;  %v4212_v2 = vsel %vm1153_vm0, %v4190_v30, 0 }
 0x6de   : > { %v4182_v21 = vpop.permute.xlu0 %4181 }
 0x6df   : > { %7878 = vmatmul.mubr.msk.bf16.gmra.mxu1 %vm1153_vm0, %v12838_v45 }
 0x6e0   : > { %7905 = vmatprep.mubr.msk.bf16.mxu1 %vm1153_vm0, %v3968_v50  ;;  %v4180_v50 = vpop.permute.xlu1 %4179 }
 0x6e2   : > { %v11031_v5 = vpop.permute.xlu0 %4656 }
 0x6e4   : > { %7888 = vmatpush3.bf16.xpose.msra.mxu0 %v3891_v20 }
 0x6e5   : > { %8253 = vmatprep.subr.msk.bf16.mxu0 %vm1153_vm0, %v10924_v37 }
 0x6e6   : > { %v11034_v8 = vpop.permute.xlu0 %4652 }
 0x6e7   : > { %7906 = vmatmul.mubr.msk.bf16.vlgmr.msra.gmra.mxu1 %vm1153_vm0, %v3970_v28  ;;  %v4184_v28 = vpop.permute.xlu1 %4183 }
 0x6e8   : > { %7930 = vmatpush3.bf16.xpose.msra.mxu1 %v4215_v13  ;;  %7909 = vmatprep.mubr.msk.bf16.mxu1 %vm1153_vm0, %v3972_v3 }
 0x6e9   : > { %8258 = vmatprep.subr.msk.bf16.mxu1 %vm1153_vm0, %v4190_v30 }
 0x6ea   : > { %v11036_v24 = vpop.permute.xlu0 %4650 }
 0x6eb   : > { %v11029_v3 = vpop.permute.xlu1 %4654 }
 0x6ee   : > { %v4742_v26 = vpop.permute.xlu0 %4741 }
 0x6ef   : > { %7910 = vmatmul.mubr.msk.bf16.gmra.mxu1 %vm1153_vm0, %v3974_v61  ;;  %v4206_v61 = vsel %vm1153_vm0, %v4186_v16, 0  ;;  %v4746_v32 = vpop.permute.xlu1 %4745 }
 0x6f0   : > { %7932 = vmatpush3.bf16.xpose.msra.mxu1 %v4212_v2  ;;  %7937 = vmatprep.mubr.msk.bf16.mxu1 %vm1153_vm0, %v4178_v51 }
 0x6f1   : > { %8259 = vmatprep.subr.msk.bf16.mxu1 %vm1153_vm0, %v4188_v49 }
 0x6f3   : > { %v4744_v30 = vpop.permute.xlu1 %4743 }
 0x6f7   : > { %v4740_v53 = vpop.permute.xlu1 %4739 }
 0x6f8   : > { %7934 = vmatpush3.bf16.xpose.msra.mxu1 %v4209_v57 }
 0x6f9   : > { %8260 = vmatprep.subr.msk.bf16.mxu1 %vm1153_vm0, %v4186_v16 }
 0x700   : > { %7936 = vmatpush3.bf16.xpose.msra.mxu1 %v4206_v61 }
 0x701   : > { %7961 = vmatprep.subr.bf16.mxu1 %v4746_v32 }
 0x705   : > { %v7787_v23 = vpop.f32.mrf.mxu0 }
 0x707   : > { %7938 = vmatmul.mubr.msk.bf16.vlgmr.msra.gmra.mxu1 %vm1153_vm0, %v4180_v50  ;;  %v3275_v49 = vpop.f32.mrf.mxu0 }
 0x708   : > { %7941 = vmatprep.mubr.msk.bf16.mxu1 %vm1153_vm0, %v4182_v21  ;;  %7962 = vmatpush3.bf16.msra.mxu1 %v4746_v32 }
 0x709   : > { %7963 = vmatprep.subr.bf16.mxu1 %v4744_v30  ;;  %v7788_v16 = vpop.f32.mrf.mxu0 }
 0x70a   : > { %v7771_v41 = vpop.f32.mrf.mxu1 }
 0x70b   : > { %v3278_v2 = vpop.f32.mrf.mxu0 }
 0x70c   : > { %v3182_v54 = vpop.f32.mrf.mxu1  ;;  %7964 = vmatpush3.bf16.msra.mxu1 %v4744_v30 }
 0x70d   : > { %7965 = vmatprep.subr.bf16.mxu1 %v4742_v26 }
 0x70e   : > { %v7772_v63 = vpop.f32.mrf.mxu1 }
 0x70f   : > { %7942 = vmatmul.mubr.msk.bf16.gmra.mxu1 %vm1153_vm0, %v4184_v28  ;;  %v3404_v13 = vpack.c.bf16 %v7772_v63, %v7771_v41  ;;  %v3408_v63 = vpack.c.bf16 %v7788_v16, %v7787_v23 }
 0x710   : > { %v3185_v45 = vpop.f32.mrf.mxu1  ;;  %7966 = vmatpush3.bf16.msra.mxu1 %v4742_v26  ;;  %v3407_v26 = vpack.c.bf16 %v3278_v2, %v3275_v49 }
 0x711   : > { %v3403_v20 = vpack.c.bf16 %v3185_v45, %v3182_v54  ;;  %7967 = vmatprep.subr.bf16.mxu1 %v4740_v53 }
 0x713   : > { %7821 = vmatprep.mubr.msk.bf16.mxu0 %vm1153_vm0, %v3403_v20 }
 0x714   : > { %7822 = vmatmul.mubr.msk.bf16.gmra.mxu0 %vm1153_vm0, %v3404_v13  ;;  %7968 = vmatpush3.bf16.msra.mxu1 %v4740_v53 }
 0x716   : > { %v7775_v50 = vpop.f32.mrf.mxu1 }
 0x718   : > { %v3198_v51 = vpop.f32.mrf.mxu1 }
 0x71a   : > { %v7776_v21 = vpop.f32.mrf.mxu1  ;;  %v7791_v57 = vpop.f32.mrf.mxu0 }
 0x71b   : > { %v3406_v30 = vpack.c.bf16 %v7776_v21, %v7775_v50 }
 0x71c   : > { %v3201_v61 = vpop.f32.mrf.mxu1  ;;  %v3291_v32 = vpop.f32.mrf.mxu0 }
 0x71d   : > { %v3405_v28 = vpack.c.bf16 %v3201_v61, %v3198_v51 }
 0x71e   : > { %v7792_v54 = vpop.f32.mrf.mxu0 }
 0x71f   : > { %7825 = vmatprep.mubr.msk.bf16.mxu0 %vm1153_vm0, %v3405_v28  ;;  %v3410_v45 = vpack.c.bf16 %v7792_v54, %v7791_v57 }
 0x720   : > { %7826 = vmatmul.mubr.msk.bf16.gmra.mxu0 %vm1153_vm0, %v3406_v30  ;;  %v3294_v41 = vpop.f32.mrf.mxu0 }
 0x721   : > { %7829 = vmatprep.mubr.msk.bf16.mxu0 %vm1153_vm0, %v3407_v26  ;;  %v3409_v53 = vpack.c.bf16 %v3294_v41, %v3291_v32 }
 0x728   : > { %7830 = vmatmul.mubr.msk.bf16.gmra.mxu0 %vm1153_vm0, %v3408_v63 }
 0x729   : > { %7833 = vmatprep.mubr.msk.bf16.mxu0 %vm1153_vm0, %v3409_v53  ;;  %v4110_v53 = vsel %vm1153_vm0, %v10924_v37, 0 }
 0x730   : > { %7834 = vmatmul.mubr.msk.bf16.gmra.mxu0 %vm1153_vm0, %v3410_v45 }
 0x757   : > { %v7803_v20 = vpop.f32.mrf.mxu1 }
 0x759   : > { %v3368_v13 = vpop.f32.mrf.mxu1 }
 0x75b   : > { %v7804_v49 = vpop.f32.mrf.mxu1 }
 0x75c   : > { %v3412_v2 = vpack.c.bf16 %v7804_v49, %v7803_v20 }
 0x75d   : > { %v3371_v50 = vpop.f32.mrf.mxu1 }
 0x75e   : > { %v3411_v51 = vpack.c.bf16 %v3371_v50, %v3368_v13 }
 0x75f   : > { %v7807_v21 = vpop.f32.mrf.mxu1 }
 0x760   : > { %7837 = vmatprep.mubr.msk.bf16.mxu0 %vm1153_vm0, %v3411_v51 }
 0x761   : > { %v3384_v61 = vpop.f32.mrf.mxu1  ;;  %7838 = vmatmul.mubr.msk.bf16.gmra.mxu0 %vm1153_vm0, %v3412_v2 }
 0x763   : > { %v7808_v23 = vpop.f32.mrf.mxu1 }
 0x764   : > { %v3414_v32 = vpack.c.bf16 %v7808_v23, %v7807_v21  ;;  %v4101_v21 = vsel %vm1153_vm0, %v10991_v4, 0 }
 0x765   : > { %v3387_v16 = vpop.f32.mrf.mxu1 }
 0x766   : > { %v3413_v28 = vpack.c.bf16 %v3387_v16, %v3384_v61 }
 0x767   : > { %v7851_v30 = vpop.f32.mrf.mxu1 }
 0x768   : > { %7841 = vmatprep.mubr.msk.bf16.mxu0 %vm1153_vm0, %v3413_v28 }
 0x769   : > { %7842 = vmatmul.mubr.msk.bf16.gmra.mxu0 %vm1153_vm0, %v3414_v32  ;;  %v3735_v57 = vpop.f32.mrf.mxu1 }
 0x76a   : > { %7889 = vmatprep.mubr.msk.bf16.mxu0 %vm1153_vm0, %v10917_v6 }
 0x76b   : > { %v7852_v26 = vpop.f32.mrf.mxu1 }
 0x76d   : > { %v11055_v54 = vpop.f32.mrf.mxu1 }
 0x76e   : > { %12839 = vst [vmem:[#allocation17_spill] sm:$0xff] %v11055_v54  ;;  %v1028_v54 = vld [vmem:[#allocation7 + $0x198] sm:$0xff] }
 0x76f   : > { %v7855_v41 = vpop.f32.mrf.mxu1 }
 0x771   : > { %v3751_v63 = vpop.f32.mrf.mxu1  ;;  %7890 = vmatmul.mubr.msk.bf16.vlgmr.msra.gmra.mxu0 %vm1153_vm0, %v10913_v12  ;;  %v4107_v12 = vsel %vm1153_vm0, %v10941_v9, 0 }
 0x772   : > { %7914 = vmatpush3.bf16.xpose.msra.mxu0 %v4110_v53  ;;  %7893 = vmatprep.mubr.msk.bf16.mxu0 %vm1153_vm0, %v10939_v43 }
 0x773   : > { %8254 = vmatprep.subr.msk.bf16.mxu0 %vm1153_vm0, %v10941_v9  ;;  %v7856_v45 = vpop.f32.mrf.mxu1 }
 0x775   : > { %v11065_v6 = vpop.f32.mrf.mxu1 }
 0x776   : > { %12840 = vst [vmem:[#allocation20_spill] sm:$0xff] %v11065_v6  ;;  %v11276_v6 = vpop.permute.xlu1 %4832 }
 0x777   : > { %v11067_v20 = vpop.f32.mrf.mxu1  ;;  %12898 = vst [vmem:[#allocation102_spill] sm:$0xff] %v11276_v6 }
 0x778   : > { %12841 = vst [vmem:[#allocation18_spill] sm:$0xff] %v11067_v20 }
 0x779   : > { %v11069_v13 = vpop.f32.mrf.mxu1  ;;  %7894 = vmatmul.mubr.msk.bf16.gmra.mxu0 %vm1153_vm0, %v10930_v48  ;;  %v4104_v48 = vsel %vm1153_vm0, %v10968_v14, 0 }
 0x77a   : > { %12842 = vst [vmem:[#allocation16_spill] sm:$0xff] %v11069_v13  ;;  %7916 = vmatpush3.bf16.xpose.msra.mxu0 %v4107_v12  ;;  %7921 = vmatprep.mubr.msk.bf16.mxu0 %vm1153_vm0, %v11002_v34 }
 0x77b   : > { %8255 = vmatprep.subr.msk.bf16.mxu0 %vm1153_vm0, %v10968_v14  ;;  %v11079_v37 = vpop.f32.mrf.mxu1 }
 0x77c   : > { %12843 = vst [vmem:[#allocation15_spill] sm:$0xff] %v11079_v37 }
 0x77d   : > { %v11081_v43 = vpop.f32.mrf.mxu1 }
 0x77e   : > { %12844 = vst [vmem:[#allocation21_spill] sm:$0xff] %v11081_v43 }
 0x77f   : > { %v11083_v49 = vpop.f32.mrf.mxu1 }
 0x780   : > { %12845 = vst [vmem:[#allocation24_spill] sm:$0xff] %v11083_v49  ;;  %v1094_v49 = vld [vmem:[#allocation7 + $0x3a8] sm:$0xff] }
 0x781   : > { %v11085_v50 = vpop.f32.mrf.mxu1 }
 0x782   : > { %12846 = vst [vmem:[#allocation28_spill] sm:$0xff] %v11085_v50  ;;  %7918 = vmatpush3.bf16.xpose.msra.mxu0 %v4104_v48  ;;  %v1096_v50 = vld [vmem:[#allocation7 + $0x3b8] sm:$0xff] }
 0x783   : > { %8256 = vmatprep.subr.msk.bf16.mxu0 %vm1153_vm0, %v10991_v4  ;;  %v11091_v9 = vpop.f32.mrf.mxu1 }
 0x784   : > { %12847 = vst [vmem:[#allocation27_spill] sm:$0xff] %v11091_v9 }
 0x785   : > { %v11093_v34 = vpop.f32.mrf.mxu1 }
 0x786   : > { %12848 = vst [vmem:[#allocation34_spill] sm:$0xff] %v11093_v34 }
 0x787   : > { %v11095_v51 = vpop.f32.mrf.mxu1 }
 0x788   : > { %12849 = vst [vmem:[#allocation31_spill] sm:$0xff] %v11095_v51  ;;  %v1095_v51 = vld [vmem:[#allocation7 + $0x3b0] sm:$0xff] }
 0x789   : > { %v11097_v2 = vpop.f32.mrf.mxu1 }
 0x78a   : > { %12850 = vst [vmem:[#allocation36_spill] sm:$0xff] %v11097_v2  ;;  %7920 = vmatpush3.bf16.xpose.msra.mxu0 %v4101_v21 }
 0x78b   : > { %7945 = vmatprep.subr.bf16.mxu0 %v11031_v5  ;;  %v7815_v61 = vpop.f32.mrf.mxu0  ;;  %v11102_v14 = vpop.f32.mrf.mxu1 }
 0x78c   : > { %12851 = vst [vmem:[#allocation25_spill] sm:$0xff] %v11102_v14  ;;  %v11104_v23 = vadd.f32 %v7851_v30, %v7815_v61 }
 0x78d   : > { %v3514_v16 = vpop.f32.mrf.mxu0  ;;  %v11106_v28 = vpop.f32.mrf.mxu1 }
 0x78e   : > { %12852 = vst [vmem:[#allocation48_spill] sm:$0xff] %v11104_v23  ;;  %12853 = vst [vmem:[#allocation46_spill] sm:$0xff] %v11106_v28  ;;  %v11108_v32 = vadd.f32 %v3735_v57, %v3514_v16  ;;  %v997_v23 = vld [vmem:[#allocation7 + $0xa0] sm:$0xff] }
 0x78f   : > { %v7816_v53 = vpop.f32.mrf.mxu0  ;;  %v11110_v12 = vpop.f32.mrf.mxu1 }
 0x790   : > { %12854 = vst [vmem:[#allocation61_spill] sm:$0xff] %v11108_v32  ;;  %12855 = vst [vmem:[#allocation37_spill] sm:$0xff] %v11110_v12  ;;  %v11112_v48 = vadd.f32 %v7852_v26, %v7816_v53 }
 0x791   : > { %7922 = vmatmul.mubr.msk.bf16.vlgmr.msra.gmra.mxu0 %vm1153_vm0, %v11000_v0  ;;  %v11116_v4 = vpop.f32.mrf.mxu0  ;;  %v11118_v21 = vpop.f32.mrf.mxu1 }
 0x792   : > { %12856 = vst [vmem:[#allocation71_spill] sm:$0xff] %v11112_v48  ;;  %12857 = vst [vmem:[#allocation66_spill] sm:$0xff] %v11116_v4  ;;  %7925 = vmatprep.mubr.msk.bf16.mxu0 %vm1153_vm0, %v11011_v44  ;;  %7946 = vmatpush3.bf16.msra.mxu0 %v11031_v5 }
 0x793   : > { %12858 = vst [vmem:[#allocation60_spill] sm:$0xff] %v11118_v21  ;;  %7947 = vmatprep.subr.bf16.mxu0 %v11029_v3  ;;  %v7819_v30 = vpop.f32.mrf.mxu0  ;;  %v11124_v57 = vpop.f32.mrf.mxu1 }
 0x794   : > { %12859 = vst [vmem:[#allocation56_spill] sm:$0xff] %v11124_v57  ;;  %v11126_v61 = vadd.f32 %v7855_v41, %v7819_v30  ;;  %v1030_v57 = vld [vmem:[#allocation7 + $0x1a8] sm:$0xff] }
 0x795   : > { %v3530_v26 = vpop.f32.mrf.mxu0  ;;  %v11128_v16 = vpop.f32.mrf.mxu1 }
 0x796   : > { %12860 = vst [vmem:[#allocation64_spill] sm:$0xff] %v11126_v61  ;;  %12861 = vst [vmem:[#allocation67_spill] sm:$0xff] %v11128_v16  ;;  %v11130_v0 = vadd.f32 %v3751_v63, %v3530_v26  ;;  %7948 = vmatpush3.bf16.msra.mxu0 %v11029_v3  ;;  %v11148_v3 = vpop.permute.xlu0 %4834  ;;  %v1025_v16 = vld [vmem:[#allocation7 + $0x180] sm:$0xff] }
 0x797   : > { %7949 = vmatprep.subr.bf16.mxu0 %v11034_v8  ;;  %v7820_v53 = vpop.f32.mrf.mxu0  ;;  %v11134_v44 = vpop.f32.mrf.mxu1  ;;  %12868 = vst [vmem:[#allocation74_spill] sm:$0xff] %v11148_v3 }
 0x798   : > { %12862 = vst [vmem:[#allocation38_spill] sm:$0xff] %v11130_v0  ;;  %12863 = vst [vmem:[#allocation52_spill] sm:$0xff] %v11134_v44  ;;  %v11136_v5 = vadd.f32 %v7856_v45, %v7820_v53  ;;  %v1032_v44 = vld [vmem:[#allocation7 + $0x1b8] sm:$0xff] }
 0x799   : > { %7926 = vmatmul.mubr.msk.bf16.gmra.mxu0 %vm1153_vm0, %v11019_v11  ;;  %v11140_v28 = vpop.f32.mrf.mxu1 }
 0x79a   : > { %12864 = vst [vmem:[#allocation69_spill] sm:$0xff] %v11136_v5  ;;  %12865 = vst [vmem:[#allocation80_spill] sm:$0xff] %v11140_v28  ;;  %7950 = vmatpush3.bf16.msra.mxu0 %v11034_v8  ;;  %v1027_v8 = vld [vmem:[#allocation7 + $0x190] sm:$0xff]  ;;  %v993_v5 = vld [vmem:[#allocation7 + $0x80] sm:$0xff] }
 0x79b   : > { %7951 = vmatprep.subr.bf16.mxu0 %v11036_v24  ;;  %v11144_v41 = vpop.f32.mrf.mxu1 }
 0x79c   : > { %12866 = vst [vmem:[#allocation65_spill] sm:$0xff] %v11144_v41  ;;  %v1031_v41 = vld [vmem:[#allocation7 + $0x1b0] sm:$0xff] }
 0x79d   : > { %v11146_v63 = vpop.f32.mrf.mxu1 }
 0x79e   : > { %12867 = vst [vmem:[#allocation68_spill] sm:$0xff] %v11146_v63  ;;  %7952 = vmatpush3.bf16.msra.mxu0 %v11036_v24 }
 0x79f   : > { %7977 = vmatprep.subr.bf16.mxu0 %v11148_v3  ;;  %v11152_v45 = vpop.f32.mrf.mxu1 }
 0x7a0   : > { %12869 = vst [vmem:[#allocation76_spill] sm:$0xff] %v11152_v45  ;;  %v1026_v45 = vld [vmem:[#allocation7 + $0x188] sm:$0xff] }
 0x7a1   : > { %v11154_v30 = vpop.f32.mrf.mxu1 }
 0x7a2   : > { %12870 = vst [vmem:[#allocation63_spill] sm:$0xff] %v11154_v30 }
 0x7a3   : > { %v11156_v11 = vpop.f32.mrf.mxu1 }
 0x7a4   : > { %12871 = vst [vmem:[#allocation62_spill] sm:$0xff] %v11156_v11 }
 0x7a5   : > { %v11158_v26 = vpop.f32.mrf.mxu1 }
 0x7a6   : > { %12872 = vst [vmem:[#allocation78_spill] sm:$0xff] %v11158_v26 }
 0x7a7   : > { %v7907_v53 = vpop.f32.mrf.mxu1 }
 0x7a8   : > { %v11160_v43 = vadd.f32 %v7907_v53, %v1027_v8 }
 0x7a9   : > { %v4041_v63 = vpop.f32.mrf.mxu1 }
 0x7aa   : > { %v11162_v4 = vadd.f32 %v4041_v63, %v1025_v16  ;;  %v4312_v24 = vsel %vm1510_vm1, %v11160_v43, -inf  ;;  %v1029_v63 = vld [vmem:[#allocation7 + $0x1a0] sm:$0xff] }
 0x7ab   : > { %4313 = vmax.xlane.f32.xlu0 %v4312_v24  ;;  %v7908_v34 = vpop.f32.mrf.mxu1 }
 0x7ac   : > { %v11166_v30 = vadd.f32 %v7908_v34, %v1028_v54  ;;  %v4306_v53 = vsel %vm1510_vm1, %v11162_v4, -inf }
 0x7ad   : > { %v4044_v11 = vpop.f32.mrf.mxu1 }
 0x7ae   : > { %v11168_v26 = vadd.f32 %v4044_v11, %v1026_v45  ;;  %v4315_v8 = vsel %vm1510_vm1, %v11166_v30, -inf }
 0x7af   : > { %4316 = vmax.xlane.f32.xlu1 %v4315_v8  ;;  %4307 = vmax.xlane.f32.xlu0 %v4306_v53  ;;  %v7911_v16 = vpop.f32.mrf.mxu1 }
 0x7b0   : > { %v11174_v28 = vadd.f32 %v7911_v16, %v1031_v41  ;;  %v4309_v34 = vsel %vm1510_vm1, %v11168_v26, -inf }
 0x7b1   : > { %v4057_v24 = vpop.f32.mrf.mxu1 }
 0x7b2   : > { %v11176_v54 = vadd.f32 %v4057_v24, %v1029_v63  ;;  %v4324_v45 = vsel %vm1510_vm1, %v11174_v28, -inf  ;;  %v1091_v24 = vld [vmem:[#allocation7 + $0x390] sm:$0xff] }
 0x7b3   : > { %4310 = vmax.xlane.f32.xlu1 %v4309_v34  ;;  %4325 = vmax.xlane.f32.xlu0 %v4324_v45  ;;  %v7912_v11 = vpop.f32.mrf.mxu1  ;;  %v1089_v45 = vld [vmem:[#allocation7 + $0x380] sm:$0xff] }
 0x7b4   : > { %v11182_v8 = vadd.f32 %v7912_v11, %v1032_v44  ;;  %v4318_v16 = vsel %vm1510_vm1, %v11176_v54, -inf }
 0x7b5   : > { %v4060_v53 = vpop.f32.mrf.mxu1 }
 0x7b6   : > { %v11184_v21 = vadd.f32 %v4060_v53, %v1030_v57  ;;  %v4327_v41 = vsel %vm1510_vm1, %v11182_v8, -inf  ;;  %v1092_v57 = vld [vmem:[#allocation7 + $0x398] sm:$0xff] }
 0x7b7   : > { %4328 = vmax.xlane.f32.xlu1 %v4327_v41  ;;  %4319 = vmax.xlane.f32.xlu0 %v4318_v16  ;;  %v1090_v41 = vld [vmem:[#allocation7 + $0x388] sm:$0xff] }
 0x7b8   : > { %v4321_v63 = vsel %vm1510_vm1, %v11184_v21, -inf }
 0x7bb   : > { %4322 = vmax.xlane.f32.xlu1 %v4321_v63 }
 0x7c7   : > { %v7939_v34 = vpop.f32.mrf.mxu1 }
 0x7c8   : > { %v11192_v44 = vadd.f32 %v7939_v34, %v1091_v24 }
 0x7c9   : > { %v4251_v11 = vpop.f32.mrf.mxu1 }
 0x7ca   : > { %v11194_v53 = vadd.f32 %v4251_v11, %v1089_v45  ;;  %v4360_v12 = vsel %vm1510_vm1, %v11192_v44, -inf  ;;  %v1093_v11 = vld [vmem:[#allocation7 + $0x3a0] sm:$0xff] }
 0x7cb   : > { %4361 = vmax.xlane.f32.xlu0 %v4360_v12  ;;  %v7940_v14 = vpop.f32.mrf.mxu1 }
 0x7cc   : > { %v11198_v16 = vadd.f32 %v7940_v14, %v1092_v57  ;;  %v4354_v34 = vsel %vm1510_vm1, %v11194_v53, -inf }
 0x7cd   : > { %v4254_v2 = vpop.f32.mrf.mxu1 }
 0x7ce   : > { %v11200_v63 = vadd.f32 %v4254_v2, %v1090_v41  ;;  %v4363_v24 = vsel %vm1510_vm1, %v11198_v16, -inf }
 0x7cf   : > { %4364 = vmax.xlane.f32.xlu1 %v4363_v24  ;;  %4355 = vmax.xlane.f32.xlu0 %v4354_v34  ;;  %v7943_v45 = vpop.f32.mrf.mxu1 }
 0x7d0   : > { %v11206_v9 = vadd.f32 %v7943_v45, %v1095_v51  ;;  %v4357_v2 = vsel %vm1510_vm1, %v11200_v63, -inf }
 0x7d1   : > { %v4267_v12 = vpop.f32.mrf.mxu1 }
 0x7d2   : > { %v11208_v14 = vadd.f32 %v4267_v12, %v1093_v11  ;;  %v4372_v57 = vsel %vm1510_vm1, %v11206_v9, -inf  ;;  %v11224_v12 = vpop.f32.mrf.mxu0 }
 0x7d3   : > { %4358 = vmax.xlane.f32.xlu1 %v4357_v2  ;;  %4373 = vmax.xlane.f32.xlu0 %v4372_v57  ;;  %v7944_v41 = vpop.f32.mrf.mxu1  ;;  %12873 = vst [vmem:[#allocation81_spill] sm:$0xff] %v11224_v12 }
 0x7d4   : > { %v11214_v24 = vadd.f32 %v7944_v41, %v1096_v50  ;;  %v4366_v45 = vsel %vm1510_vm1, %v11208_v14, -inf  ;;  %v11226_v2 = vpop.f32.mrf.mxu0 }
 0x7d5   : > { %v4270_v34 = vpop.f32.mrf.mxu1  ;;  %12874 = vst [vmem:[#allocation75_spill] sm:$0xff] %v11226_v2 }
 0x7d6   : > { %v11216_v37 = vadd.f32 %v4270_v34, %v1094_v49  ;;  %v4375_v51 = vsel %vm1510_vm1, %v11214_v24, -inf  ;;  %v11228_v50 = vpop.f32.mrf.mxu0 }
 0x7d7   : > { %4376 = vmax.xlane.f32.xlu1 %v4375_v51  ;;  %4367 = vmax.xlane.f32.xlu0 %v4366_v45  ;;  %12875 = vst [vmem:[#allocation70_spill] sm:$0xff] %v11228_v50 }
 0x7d8   : > { %v4369_v11 = vsel %vm1510_vm1, %v11216_v37, -inf  ;;  %v11230_v49 = vpop.f32.mrf.mxu0 }
 0x7d9   : > { %12876 = vst [vmem:[#allocation83_spill] sm:$0xff] %v11230_v49 }
 0x7da   : > { %v11232_v57 = vpop.f32.mrf.mxu0 }
 0x7db   : > { %4370 = vmax.xlane.f32.xlu1 %v4369_v11  ;;  %12877 = vst [vmem:[#allocation85_spill] sm:$0xff] %v11232_v57 }
 0x7e0   : > { %v11234_v41 = vpop.f32.mrf.mxu0 }
 0x7e1   : > { %12878 = vst [vmem:[#allocation79_spill] sm:$0xff] %v11234_v41 }
 0x7e2   : > { %v11236_v34 = vpop.f32.mrf.mxu0 }
 0x7e3   : > { %12879 = vst [vmem:[#allocation77_spill] sm:$0xff] %v11236_v34 }
 0x7e4   : > { %v11238_v51 = vpop.f32.mrf.mxu0 }
 0x7e5   : > { %12880 = vst [vmem:[#allocation87_spill] sm:$0xff] %v11238_v51 }
 0x7e6   : > { %v11240_v45 = vpop.f32.mrf.mxu0 }
 0x7e7   : > { %12881 = vst [vmem:[#allocation89_spill] sm:$0xff] %v11240_v45 }
 0x7e8   : > { %v11242_v13 = vpop.f32.mrf.mxu0 }
 0x7e9   : > { %12882 = vst [vmem:[#allocation84_spill] sm:$0xff] %v11242_v13 }
 0x7ea   : > { %v11244_v11 = vpop.f32.mrf.mxu0 }
 0x7eb   : > { %12883 = vst [vmem:[#allocation82_spill] sm:$0xff] %v11244_v11 }
 0x7ec   : > { %v11246_v20 = vpop.f32.mrf.mxu0 }
 0x7ed   : > { %12884 = vst [vmem:[#allocation88_spill] sm:$0xff] %v11246_v20 }
 0x7ee   : > { %v11248_v2 = vpop.f32.mrf.mxu0 }
 0x7ef   : > { %12885 = vst [vmem:[#allocation86_spill] sm:$0xff] %v11248_v2 }
 0x7f0   : > { %v11250_v50 = vpop.f32.mrf.mxu0 }
 0x7f1   : > { %12886 = vst [vmem:[#allocation90_spill] sm:$0xff] %v11250_v50 }
 0x7f2   : > { %v11252_v49 = vpop.f32.mrf.mxu0 }
 0x7f3   : > { %12887 = vst [vmem:[#allocation91_spill] sm:$0xff] %v11252_v49  ;;  %v995_v49 = vld [vmem:[#allocation7 + $0x90] sm:$0xff] }
 0x7f4   : > { %v11254_v57 = vpop.f32.mrf.mxu0 }
 0x7f5   : > { %12888 = vst [vmem:[#allocation92_spill] sm:$0xff] %v11254_v57 }
 0x7f6   : > { %v11256_v41 = vpop.f32.mrf.mxu0 }
 0x7f7   : > { %12889 = vst [vmem:[#allocation93_spill] sm:$0xff] %v11256_v41 }
 0x821   : > { %v11258_v34 = vpop.f32.mrf.mxu0 }
 0x822   : > { %12890 = vst [vmem:[#allocation94_spill] sm:$0xff] %v11258_v34 }
 0x823   : > { %v11260_v51 = vpop.f32.mrf.mxu0 }
 0x824   : > { %12891 = vst [vmem:[#allocation95_spill] sm:$0xff] %v11260_v51 }
 0x825   : > { %v11262_v45 = vpop.f32.mrf.mxu0 }
 0x826   : > { %12892 = vst [vmem:[#allocation96_spill] sm:$0xff] %v11262_v45 }
 0x827   : > { %v11264_v13 = vpop.f32.mrf.mxu0 }
 0x828   : > { %12893 = vst [vmem:[#allocation97_spill] sm:$0xff] %v11264_v13 }
 0x829   : > { %v11266_v11 = vpop.f32.mrf.mxu0 }
 0x82a   : > { %12894 = vst [vmem:[#allocation98_spill] sm:$0xff] %v11266_v11  ;;  %v996_v11 = vld [vmem:[#allocation7 + $0x98] sm:$0xff] }
 0x82b   : > { %v11268_v20 = vpop.f32.mrf.mxu0 }
 0x82c   : > { %12895 = vst [vmem:[#allocation99_spill] sm:$0xff] %v11268_v20 }
 0x82d   : > { %v11270_v2 = vpop.f32.mrf.mxu0 }
 0x82e   : > { %12896 = vst [vmem:[#allocation100_spill] sm:$0xff] %v11270_v2 }
 0x82f   : > { %v11272_v50 = vpop.f32.mrf.mxu0 }
 0x830   : > { %12897 = vst [vmem:[#allocation101_spill] sm:$0xff] %v11272_v50  ;;  %v994_v50 = vld [vmem:[#allocation7 + $0x88] sm:$0xff] }
 0x831   : > { %v7891_v57 = vpop.f32.mrf.mxu0 }
 0x832   : > { %v11274_v41 = vadd.f32 %v7891_v57, %v995_v49 }
 0x833   : > { %v3936_v34 = vpop.f32.mrf.mxu0 }
 0x834   : > { %v11278_v51 = vadd.f32 %v3936_v34, %v993_v5  ;;  %v4314_v45 = vpop.xlane.xlu0 %4313  ;;  %v4288_v13 = vsel %vm1510_vm1, %v11274_v41, -inf  ;;  %v999_v5 = vld [vmem:[#allocation7 + $0xb0] sm:$0xff] }
 0x835   : > { %v4388_v20 = vsub.f32 %v11160_v43, %v4314_v45  ;;  %v7892_v2 = vpop.f32.mrf.mxu0  ;;  %4289 = vmax.xlane.f32.xlu0 %v4288_v13 }
 0x836   : > { %v11283_v61 = vadd.f32 %v7892_v2, %v996_v11  ;;  %v4282_v34 = vsel %vm1510_vm1, %v11278_v51, -inf }
 0x837   : > { %v4430_v12 = vmul.f32 1.442695, %v4388_v20  ;;  %v3939_v0 = vpop.f32.mrf.mxu0 }
 0x838   : > { %v11285_v49 = vadd.f32 %v3939_v0, %v994_v50  ;;  %v4317_v57 = vpop.xlane.xlu1 %4316  ;;  %v4308_v48 = vpop.xlane.xlu0 %4307  ;;  %v1000_v50 = vld [vmem:[#allocation7 + $0xb8] sm:$0xff] }
 0x839   : > { %8678 = vpow2.f32 %v4430_v12  ;;  %v4389_v32 = vsub.f32 %v11166_v30, %v4317_v57  ;;  %v4386_v43 = vsub.f32 %v11162_v4, %v4308_v48  ;;  %v7895_v45 = vpop.f32.mrf.mxu0  ;;  %4283 = vmax.xlane.f32.xlu0 %v4282_v34  ;;  %v4291_v30 = vsel %vm1510_vm1, %v11283_v61, -inf  ;;  %v998_v57 = vld [vmem:[#allocation7 + $0xa8] sm:$0xff] }
 0x83a   : > { %v4285_v20 = vsel %vm1510_vm1, %v11285_v49, -inf  ;;  %v11293_v2 = vadd.f32 %v7895_v45, %v999_v5 }
 0x83b   : > { %v4426_v13 = vmul.f32 1.442695, %v4386_v43  ;;  %v3952_v0 = vpop.f32.mrf.mxu0  ;;  %4286 = vmax.xlane.f32.xlu1 %v4285_v20  ;;  %v4432_v11 = vmul.f32 1.442695, %v4389_v32 }
 0x83c   : > { %v4311_v6 = vpop.xlane.xlu1 %4310  ;;  %v4326_v3 = vpop.xlane.xlu0 %4325  ;;  %v11301_v34 = vadd.f32 %v3952_v0, %v997_v23  ;;  %v4300_v45 = vsel %vm1510_vm1, %v11293_v2, -inf }
 0x83d   : > { %v4387_v48 = vsub.f32 %v11168_v26, %v4311_v6  ;;  %v4392_v4 = vsub.f32 %v11174_v28, %v4326_v3  ;;  %v7896_v12 = vpop.f32.mrf.mxu0  ;;  %4292 = vmax.xlane.f32.xlu0 %v4291_v30  ;;  %8680 = vpow2.f32 %v4426_v13 }
 0x83e   : > { %v11299_v5 = vadd.f32 %v7896_v12, %v1000_v50  ;;  %8682 = vpow2.f32 %v4432_v11  ;;  %v4294_v11 = vsel %vm1510_vm1, %v11301_v34, -inf }
 0x83f   : > { %v4438_v43 = vmul.f32 1.442695, %v4392_v4  ;;  %v3955_v32 = vpop.f32.mrf.mxu0  ;;  %v4428_v20 = vmul.f32 1.442695, %v4387_v48 }
 0x840   : > { %v11305_v15 = vadd.f32 %v3955_v32, %v998_v57  ;;  %v4329_v6 = vpop.xlane.xlu1 %4328  ;;  %v4320_v26 = vpop.xlane.xlu0 %4319  ;;  %v4303_v28 = vsel %vm1510_vm1, %v11299_v5, -inf }
 0x841   : > { %v4390_v3 = vsub.f32 %v11176_v54, %v4320_v26  ;;  %4304 = vmax.xlane.f32.xlu1 %v4303_v28  ;;  %4301 = vmax.xlane.f32.xlu0 %v4300_v45  ;;  %8684 = vpow2.f32 %v4438_v43  ;;  %v4393_v23 = vsub.f32 %v11182_v8, %v4329_v6  ;;  %v1059_v6 = vld [vmem:[#allocation7 + $0x290] sm:$0xff] }
 0x842   : > { %8686 = vpow2.f32 %v4428_v20  ;;  %v4297_v50 = vsel %vm1510_vm1, %v11305_v15, -inf }
 0x843   : > { %v4434_v13 = vmul.f32 1.442695, %v4390_v3  ;;  %v4440_v54 = vmul.f32 1.442695, %v4393_v23 }
 0x844   : > { %v4323_v0 = vpop.xlane.xlu1 %4322 }
 0x845   : > { %v4391_v30 = vsub.f32 %v11184_v21, %v4323_v0  ;;  %4298 = vmax.xlane.f32.xlu1 %v4297_v50  ;;  %4295 = vmax.xlane.f32.xlu0 %v4294_v11  ;;  %8688 = vpow2.f32 %v4434_v13 }
 0x846   : > { %v11316_v48 = vpop.eup %8678 }
 0x847   : > { %v4436_v4 = vmul.f32 1.442695, %v4391_v30  ;;  %v4504_v8 = vsel %vm1510_vm1, %v11316_v48, 0.0  ;;  %v1060_v30 = vld [vmem:[#allocation7 + $0x298] sm:$0xff] }
 0x849   : > { %8690 = vpow2.f32 %v4436_v4  ;;  %4505 = vadd.xlane.f32.xlu1 %v4504_v8 }
 0x84a   : > { %v11320_v12 = vpop.eup %8680  ;;  %8692 = vpow2.f32 %v4440_v54 }
 0x84b   : > { %v4498_v57 = vsel %vm1510_vm1, %v11320_v12, 0.0  ;;  %v11324_v43 = vpop.eup %8682 }
 0x84c   : > { %v4507_v45 = vsel %vm1510_vm1, %v11324_v43, 0.0 }
 0x84d   : > { %4499 = vadd.xlane.f32.xlu1 %v4498_v57 }
 0x84e   : > { %v11326_v21 = vpop.eup %8684 }
 0x84f   : > { %v4516_v32 = vsel %vm1510_vm1, %v11326_v21, 0.0  ;;  %v11332_v20 = vpop.eup %8686 }
 0x850   : > { %4517 = vadd.xlane.f32.xlu0 %v4516_v32  ;;  %v4501_v50 = vsel %vm1510_vm1, %v11332_v20, 0.0 }
 0x851   : > { %v7923_v26 = vpop.f32.mrf.mxu0  ;;  %4508 = vadd.xlane.f32.xlu1 %v4507_v45  ;;  %v1057_v45 = vld [vmem:[#allocation7 + $0x280] sm:$0xff] }
 0x852   : > { %v11334_v28 = vpop.eup %8688  ;;  %v11336_v23 = vadd.f32 %v7923_v26, %v1059_v6 }
 0x853   : > { %v4146_v3 = vpop.f32.mrf.mxu0  ;;  %v4510_v0 = vsel %vm1510_vm1, %v11334_v28, 0.0 }
 0x854   : > { %v4362_v13 = vpop.xlane.xlu0 %4361  ;;  %4511 = vadd.xlane.f32.xlu0 %v4510_v0  ;;  %v11354_v40 = vadd.f32 %v4146_v3, %v1057_v45 }
 0x855   : > { %v4404_v11 = vsub.f32 %v11192_v44, %v4362_v13  ;;  %v7924_v54 = vpop.f32.mrf.mxu0  ;;  %4502 = vadd.xlane.f32.xlu1 %v4501_v50  ;;  %v4336_v44 = vsel %vm1510_vm1, %v11336_v23, -inf  ;;  %v1058_v13 = vld [vmem:[#allocation7 + $0x288] sm:$0xff] }
 0x856   : > { %v11343_v4 = vpop.eup %8690  ;;  %v11349_v26 = vadd.f32 %v7924_v54, %v1060_v30  ;;  %v1063_v54 = vld [vmem:[#allocation7 + $0x2b0] sm:$0xff] }
 0x857   : > { %v4149_v8 = vpop.f32.mrf.mxu0  ;;  %v4513_v57 = vsel %vm1510_vm1, %v11343_v4, 0.0  ;;  %v11347_v32 = vpop.eup %8692  ;;  %v4462_v6 = vmul.f32 1.442695, %v4404_v11 }
 0x858   : > { %v4356_v1 = vpop.xlane.xlu0 %4355  ;;  %4337 = vmax.xlane.f32.xlu0 %v4336_v44  ;;  %v4519_v62 = vsel %vm1510_vm1, %v11347_v32, 0.0  ;;  %v11358_v11 = vadd.f32 %v4149_v8, %v1058_v13  ;;  %v4339_v59 = vsel %vm1510_vm1, %v11349_v26, -inf  ;;  %v1061_v8 = vld [vmem:[#allocation7 + $0x2a0] sm:$0xff] }
 0x859   : > { %v4402_v0 = vsub.f32 %v11194_v53, %v4356_v1  ;;  %v7927_v50 = vpop.f32.mrf.mxu0  ;;  %4514 = vadd.xlane.f32.xlu1 %v4513_v57  ;;  %8694 = vpow2.f32 %v4462_v6  ;;  %v1064_v53 = vld [vmem:[#allocation7 + $0x2b8] sm:$0xff]  ;;  %v4330_v57 = vsel %vm1510_vm1, %v11354_v40, -inf }
 0x85a   : > { %v11363_v3 = vadd.f32 %v7927_v50, %v1063_v54 }
 0x85b   : > { %v4162_v10 = vpop.f32.mrf.mxu0  ;;  %v4458_v30 = vmul.f32 1.442695, %v4402_v0  ;;  %v4333_v0 = vsel %vm1510_vm1, %v11358_v11, -inf }
 0x85c   : > { %v4374_v29 = vpop.xlane.xlu0 %4373  ;;  %4520 = vadd.xlane.f32.xlu0 %v4519_v62  ;;  %v4348_v62 = vsel %vm1510_vm1, %v11363_v3, -inf }
 0x85d   : > { %v4408_v1 = vsub.f32 %v11206_v9, %v4374_v29  ;;  %v7928_v44 = vpop.f32.mrf.mxu0  ;;  %4340 = vmax.xlane.f32.xlu1 %v4339_v59  ;;  %8696 = vpow2.f32 %v4458_v30  ;;  %v1062_v29 = vld [vmem:[#allocation7 + $0x2a8] sm:$0xff]  ;;  %v11372_v59 = vadd.f32 %v4162_v10, %v1061_v8 }
 0x85e   : > { %v11367_v6 = vadd.f32 %v7928_v44, %v1064_v53 }
 0x85f   : > { %v4470_v45 = vmul.f32 1.442695, %v4408_v1  ;;  %v4165_v22 = vpop.f32.mrf.mxu0 }
 0x860   : > { %v4368_v13 = vpop.xlane.xlu0 %4367  ;;  %4331 = vmax.xlane.f32.xlu0 %v4330_v57  ;;  %v11376_v50 = vadd.f32 %v4165_v22, %v1062_v29  ;;  %v4351_v54 = vsel %vm1510_vm1, %v11367_v6, -inf }
 0x861   : > { %v4406_v9 = vsub.f32 %v11208_v14, %v4368_v13  ;;  %4334 = vmax.xlane.f32.xlu1 %v4333_v0  ;;  %8698 = vpow2.f32 %v4470_v45  ;;  %v4342_v14 = vsel %vm1510_vm1, %v11372_v59, -inf  ;;  %v4365_v13 = vpop.xlane.xlu1 %4364 }
 0x862   : > { %v4345_v10 = vsel %vm1510_vm1, %v11376_v50, -inf }
 0x863   : > { %v4466_v30 = vmul.f32 1.442695, %v4406_v9  ;;  %v12902_v9 = vld [vmem:[#allocation32_spill] sm:$0xff] }
 0x864   : > { %4349 = vmax.xlane.f32.xlu0 %v4348_v62 }
 0x865   : > { %4352 = vmax.xlane.f32.xlu1 %v4351_v54  ;;  %8700 = vpow2.f32 %v4466_v30  ;;  %v4359_v29 = vpop.xlane.xlu1 %4358  ;;  %v4405_v30 = vsub.f32 %v11198_v16, %v4365_v13 }
 0x866   : > { %v11384_v1 = vpop.eup %8694 }
 0x867   : > { %12899 = vst [vmem:[#allocation103_spill] sm:$0xff] %v11384_v1  ;;  %v4552_v22 = vsel %vm1510_vm1, %v11384_v1, 0.0  ;;  %v4464_v54 = vmul.f32 1.442695, %v4405_v30 }
 0x868   : > { %4343 = vmax.xlane.f32.xlu0 %v4342_v14  ;;  %v4403_v14 = vsub.f32 %v11200_v63, %v4359_v29 }
 0x869   : > { %4346 = vmax.xlane.f32.xlu1 %v4345_v10  ;;  %v4377_v62 = vpop.xlane.xlu1 %4376  ;;  %8702 = vpow2.f32 %v4464_v54 }
 0x86a   : > { %v11388_v53 = vpop.eup %8696 }
 0x86b   : > { %v4546_v44 = vsel %vm1510_vm1, %v11388_v53, 0.0 }
 0x86d   : > { %4553 = vadd.xlane.f32.xlu1 %v4552_v22  ;;  %v4371_v10 = vpop.xlane.xlu1 %4370  ;;  %v4460_v22 = vmul.f32 1.442695, %v4403_v14 }
 0x86e   : > { %v11392_v57 = vpop.eup %8698 }
 0x86f   : > { %12900 = vst [vmem:[#allocation104_spill] sm:$0xff] %v11392_v57  ;;  %v4564_v8 = vsel %vm1510_vm1, %v11392_v57, 0.0  ;;  %8704 = vpow2.f32 %v4460_v22 }
 0x871   : > { %4547 = vadd.xlane.f32.xlu1 %v4546_v44  ;;  %v4407_v44 = vsub.f32 %v11216_v37, %v4371_v10 }
 0x872   : > { %v11396_v45 = vpop.eup %8700 }
 0x873   : > { %12901 = vst [vmem:[#allocation105_spill] sm:$0xff] %v11396_v45  ;;  %v4558_v0 = vsel %vm1510_vm1, %v11396_v45, 0.0 }
 0x875   : > { %4565 = vadd.xlane.f32.xlu1 %v4564_v8  ;;  %v4468_v8 = vmul.f32 1.442695, %v4407_v44 }
 0x876   : > { %v11405_v57 = vpop.eup %8702 }
 0x877   : > { %8706 = vpow2.f32 %v4468_v8 }
 0x879   : > { %4559 = vadd.xlane.f32.xlu1 %v4558_v0  ;;  %v4555_v0 = vsel %vm1510_vm1, %v11405_v57, 0.0 }
 0x87e   : > { %4830 = vrot.lane.b32.xlu0 %v12902_v9, %s9126_s11  ;;  %v11409_v9 = vpop.eup %8704 }
 0x87f   : > { %v4549_v16 = vsel %vm1510_vm1, %v11409_v9, 0.0 }
 0x884   : > { %v11413_v63 = vpop.eup %8706 }
 0x885   : > { %v4561_v37 = vsel %vm1510_vm1, %v11413_v63, 0.0 }
 0x89d   : > { %4556 = vadd.xlane.f32.xlu0 %v4555_v0 }
 0x8a1   : > { %4550 = vadd.xlane.f32.xlu0 %v4549_v16 }
 0x8a5   : > { %4562 = vadd.xlane.f32.xlu0 %v4561_v37 }
 0x8be   : > { %v4290_v13 = vpop.xlane.xlu0 %4289 }
 0x8bf   : > { %v4380_v29 = vsub.f32 %v11274_v41, %v4290_v13 }
 0x8c1   : > { %v4414_v30 = vmul.f32 1.442695, %v4380_v29 }
 0x8c2   : > { %v4284_v54 = vpop.xlane.xlu0 %4283 }
 0x8c3   : > { %8708 = vpow2.f32 %v4414_v30  ;;  %v4378_v14 = vsub.f32 %v11278_v51, %v4284_v54  ;;  %v4409_v30 = vsub.f32 %v11214_v24, %v4377_v62 }
 0x8c4   : > { %v4287_v10 = vpop.xlane.xlu1 %4286 }
 0x8c5   : > { %v4410_v22 = vmul.f32 1.442695, %v4378_v14  ;;  %v4379_v44 = vsub.f32 %v11285_v49, %v4287_v10 }
 0x8c6   : > { %v4293_v8 = vpop.xlane.xlu0 %4292 }
 0x8c7   : > { %8710 = vpow2.f32 %v4410_v22  ;;  %v4381_v0 = vsub.f32 %v11283_v61, %v4293_v8  ;;  %v4412_v16 = vmul.f32 1.442695, %v4379_v44 }
 0x8c9   : > { %v4416_v45 = vmul.f32 1.442695, %v4381_v0 }
 0x8ca   : > { %v4305_v1 = vpop.xlane.xlu1 %4304  ;;  %v4302_v37 = vpop.xlane.xlu0 %4301 }
 0x8cb   : > { %8712 = vpow2.f32 %v4416_v45  ;;  %v4385_v41 = vsub.f32 %v11299_v5, %v4305_v1  ;;  %v4384_v13 = vsub.f32 %v11293_v2, %v4302_v37  ;;  %v4472_v5 = vmul.f32 1.442695, %v4409_v30 }
 0x8cc   : > { %8714 = vpow2.f32 %v4412_v16 }
 0x8cd   : > { %v4424_v29 = vmul.f32 1.442695, %v4385_v41  ;;  %v4422_v51 = vmul.f32 1.442695, %v4384_v13 }
 0x8ce   : > { %v4299_v54 = vpop.xlane.xlu1 %4298  ;;  %v4296_v49 = vpop.xlane.xlu0 %4295 }
 0x8cf   : > { %v4383_v14 = vsub.f32 %v11305_v15, %v4299_v54  ;;  %v4382_v61 = vsub.f32 %v11301_v34, %v4296_v49  ;;  %8716 = vpow2.f32 %v4422_v51 }
 0x8d0   : > { %v11426_v10 = vpop.eup %8708  ;;  %8718 = vpow2.f32 %v4424_v29 }
 0x8d1   : > { %v4420_v45 = vmul.f32 1.442695, %v4383_v14  ;;  %v4418_v22 = vmul.f32 1.442695, %v4382_v61  ;;  %v4480_v2 = vsel %vm1510_vm1, %v11426_v10, 0.0 }
 0x8d2   : > { %v4506_v1 = vpop.xlane.xlu1 %4505  ;;  %4481 = vadd.xlane.f32.xlu0 %v4480_v2 }
 0x8d3   : > { %8720 = vpow2.f32 %v4418_v22 }
 0x8d4   : > { %v11430_v44 = vpop.eup %8710  ;;  %8722 = vpow2.f32 %v4420_v45 }
 0x8d5   : > { %v4474_v15 = vsel %vm1510_vm1, %v11430_v44, 0.0  ;;  %8724 = vpow2.f32 %v4472_v5 }
 0x8d6   : > { %v4500_v24 = vpop.xlane.xlu1 %4499  ;;  %4475 = vadd.xlane.f32.xlu0 %v4474_v15 }
 0x8d8   : > { %v11434_v34 = vpop.eup %8712 }
 0x8d9   : > { %v4483_v62 = vsel %vm1510_vm1, %v11434_v34, 0.0  ;;  %v11438_v8 = vpop.eup %8714  ;;  %v4518_v0 = vpop.xlane.xlu0 %4517 }
 0x8da   : > { %v4509_v16 = vpop.xlane.xlu1 %4508  ;;  %4484 = vadd.xlane.f32.xlu1 %v4483_v62  ;;  %v4477_v41 = vsel %vm1510_vm1, %v11438_v8, 0.0 }
 0x8db   : > { %8726 = vrcp.f32 %v4509_v16 }
 0x8dc   : > { %v11440_v37 = vpop.eup %8716  ;;  %8728 = vrcp.f32 %v4500_v24 }
 0x8dd   : > { %v11444_v13 = vpop.eup %8718  ;;  %v4512_v29 = vpop.xlane.xlu0 %4511  ;;  %v4492_v30 = vsel %vm1510_vm1, %v11440_v37, 0.0  ;;  %8730 = vrcp.f32 %v4506_v1 }
 0x8de   : > { %v4503_v51 = vpop.xlane.xlu1 %4502  ;;  %4478 = vadd.xlane.f32.xlu1 %v4477_v41  ;;  %4493 = vadd.xlane.f32.xlu0 %v4492_v30  ;;  %v4495_v49 = vsel %vm1510_vm1, %v11444_v13, 0.0 }
 0x8df   : > { %8732 = vrcp.f32 %v4503_v51 }
 0x8e0   : > { %v11448_v54 = vpop.eup %8720  ;;  %8734 = vrcp.f32 %v4512_v29 }
 0x8e1   : > { %v11452_v14 = vpop.eup %8722  ;;  %v4338_v61 = vpop.xlane.xlu0 %4337  ;;  %v4486_v22 = vsel %vm1510_vm1, %v11448_v54, 0.0 }
 0x8e2   : > { %v4515_v45 = vpop.xlane.xlu1 %4514  ;;  %4496 = vadd.xlane.f32.xlu1 %v4495_v49  ;;  %v11456_v2 = vpop.eup %8724  ;;  %v4396_v5 = vsub.f32 %v11336_v23, %v4338_v61  ;;  %4487 = vadd.xlane.f32.xlu0 %v4486_v22  ;;  %v4489_v15 = vsel %vm1510_vm1, %v11452_v14, 0.0 }
 0x8e3   : > { %8736 = vrcp.f32 %v4515_v45  ;;  %v4567_v16 = vsel %vm1510_vm1, %v11456_v2, 0.0 }
 0x8e4   : > { %v4446_v1 = vmul.f32 1.442695, %v4396_v5  ;;  %8738 = vrcp.f32 %v4518_v0 }
 0x8e5   : > { %v4521_v24 = vpop.xlane.xlu0 %4520 }
 0x8e6   : > { %v4341_v62 = vpop.xlane.xlu1 %4340  ;;  %4490 = vadd.xlane.f32.xlu1 %v4489_v15  ;;  %8740 = vpow2.f32 %v4446_v1  ;;  %4568 = vadd.xlane.f32.xlu0 %v4567_v16 }
 0x8e7   : > { %v4397_v41 = vsub.f32 %v11349_v26, %v4341_v62  ;;  %8742 = vrcp.f32 %v4521_v24 }
 0x8e8   : > { %v8727_v23 = vpop.eup %8726 }
 0x8e9   : > { %v4448_v29 = vmul.f32 1.442695, %v4397_v41  ;;  %v8729_v30 = vpop.eup %8728  ;;  %v4613_v45 = vmul.f32 %v8727_v23, %v11324_v43 }
 0x8ea   : > { %v4335_v51 = vpop.xlane.xlu1 %4334  ;;  %v8731_v61 = vpop.eup %8730  ;;  %v4610_v1 = vmul.f32 %v8729_v30, %v11320_v12 }
 0x8eb   : > { %8744 = vpow2.f32 %v4448_v29  ;;  %v4395_v49 = vsub.f32 %v11358_v11, %v4335_v51  ;;  %v4612_v24 = vmul.f32 %v8731_v61, %v11316_v48  ;;  %v12903_v61 = vld [vmem:[#allocation73_spill] sm:$0xff] }
 0x8ec   : > { %v8733_v0 = vpop.eup %8732 }
 0x8ed   : > { %v4444_v22 = vmul.f32 1.442695, %v4395_v49  ;;  %v8735_v5 = vpop.eup %8734  ;;  %v4611_v26 = vmul.f32 %v8733_v0, %v11332_v20  ;;  %v4639_v29 = vpack.c.bf16 %v4613_v45, %v4612_v24 }
 0x8ee   : > { %v4353_v15 = vpop.xlane.xlu1 %4352  ;;  %v4614_v51 = vmul.f32 %v8735_v5, %v11334_v28  ;;  %v4332_v5 = vpop.xlane.xlu0 %4331 }
 0x8ef   : > { %v4401_v62 = vsub.f32 %v11367_v6, %v4353_v15  ;;  %8746 = vpow2.f32 %v4444_v22  ;;  %v4638_v41 = vpack.c.bf16 %v4611_v26, %v4610_v1  ;;  %v4394_v26 = vsub.f32 %v11354_v40, %v4332_v5 }
 0x8f0   : > { %v8737_v16 = vpop.eup %8736 }
 0x8f1   : > { %v4456_v11 = vmul.f32 1.442695, %v4401_v62  ;;  %v4615_v43 = vmul.f32 %v8737_v16, %v11343_v4  ;;  %7969 = vmatprep.mubr.msk.bf16.mxu1 %vm1510_vm1, %v4638_v41  ;;  %v8739_v49 = vpop.eup %8738  ;;  %v4442_v16 = vmul.f32 1.442695, %v4394_v26 }
 0x8f2   : > { %v4347_v23 = vpop.xlane.xlu1 %4346  ;;  %7970 = vmatmul.mubr.msk.bf16.vlgmr.msra.gmra.mxu1 %vm1510_vm1, %v4639_v29  ;;  %v4616_v0 = vmul.f32 %v8739_v49, %v11326_v21  ;;  %v4350_v21 = vpop.xlane.xlu0 %4349 }
 0x8f3   : > { %v4399_v12 = vsub.f32 %v11376_v50, %v4347_v23  ;;  %v4640_v48 = vpack.c.bf16 %v4615_v43, %v4614_v51  ;;  %v11475_v20 = vpop.eup %8740  ;;  %8748 = vpow2.f32 %v4456_v11  ;;  %v4400_v41 = vsub.f32 %v11363_v3, %v4350_v21  ;;  %v12915_v21 = vld [vmem:[#allocation45_spill] sm:$0xff] }
 0x8f4   : > { %v8743_v6 = vpop.eup %8742  ;;  %v4528_v28 = vsel %vm1510_vm1, %v11475_v20, 0.0 }
 0x8f5   : > { %v4452_v30 = vmul.f32 1.442695, %v4399_v12  ;;  %7973 = vmatprep.mubr.msk.bf16.mxu1 %vm1510_vm1, %v4640_v48  ;;  %4529 = vadd.xlane.f32.xlu0 %v4528_v28  ;;  %v4617_v4 = vmul.f32 %v8743_v6, %v11347_v32  ;;  %v4454_v51 = vmul.f32 1.442695, %v4400_v41  ;;  %v12917_v41 = vld [vmem:[#allocation47_spill] sm:$0xff] }
 0x8f6   : > { %v4344_v11 = vpop.xlane.xlu0 %4343 }
 0x8f7   : > { %4828 = vrot.lane.b32.xlu1 %v12903_v61, %s9126_s11  ;;  %8750 = vpow2.f32 %v4452_v30  ;;  %v4641_v22 = vpack.c.bf16 %v4617_v4, %v4616_v0  ;;  %v4398_v43 = vsub.f32 %v11372_v59, %v4344_v11  ;;  %v11516_v59 = vpop.xlane.xlu1 %4553 }
 0x8f8   : > { %v11484_v50 = vpop.eup %8744  ;;  %8752 = vpow2.f32 %v4442_v16  ;;  %v12916_v16 = vld [vmem:[#allocation44_spill] sm:$0xff] }
 0x8f9   : > { %v4531_v45 = vsel %vm1510_vm1, %v11484_v50, 0.0  ;;  %8754 = vpow2.f32 %v4454_v51  ;;  %v4450_v40 = vmul.f32 1.442695, %v4398_v43  ;;  %v12918_v51 = vld [vmem:[#allocation40_spill] sm:$0xff]  ;;  %v12919_v43 = vld [vmem:[#allocation57_spill] sm:$0xff] }
 0x8fa   : > { %4532 = vadd.xlane.f32.xlu0 %v4531_v45  ;;  %7974 = vmatmul.mubr.msk.bf16.gmra.mxu1 %vm1510_vm1, %v4641_v22  ;;  %v11522_v30 = vpop.permute.xlu0 %4830 }
 0x8fb   : > { %8756 = vpow2.f32 %v4450_v40  ;;  %v4548_v28 = vpop.xlane.xlu1 %4547 }
 0x8fc   : > { %v11489_v15 = vpop.eup %8746  ;;  %8758 = vrcp.f32 %v4548_v28 }
 0x8fd   : > { %v4525_v32 = vsel %vm1510_vm1, %v11489_v15, 0.0 }
 0x8fe   : > { %4526 = vadd.xlane.f32.xlu0 %v4525_v32  ;;  %v12914_v32 = vld [vmem:[#allocation33_spill] sm:$0xff] }
 0x900   : > { %v11493_v1 = vpop.eup %8748 }
 0x901   : > { %v4543_v24 = vsel %vm1510_vm1, %v11493_v1, 0.0 }
 0x902   : > { %4544 = vadd.xlane.f32.xlu0 %v4543_v24 }
 0x904   : > { %v11498_v62 = vpop.eup %8750 }
 0x905   : > { %v4537_v29 = vsel %vm1510_vm1, %v11498_v62, 0.0  ;;  %v11504_v23 = vpop.eup %8752 }
 0x906   : > { %4538 = vadd.xlane.f32.xlu0 %v4537_v29  ;;  %v4522_v49 = vsel %vm1510_vm1, %v11504_v23, 0.0  ;;  %v11508_v12 = vpop.eup %8754 }
 0x907   : > { %v4540_v3 = vsel %vm1510_vm1, %v11508_v12, 0.0 }
 0x908   : > { %v11514_v48 = vpop.eup %8756 }
 0x909   : > { %v4534_v6 = vsel %vm1510_vm1, %v11514_v48, 0.0 }
 0x91b   : > { %4523 = vadd.xlane.f32.xlu1 %v4522_v49  ;;  %v12920_v49 = vld [vmem:[#allocation42_spill] sm:$0xff] }
 0x91c   : > { %4923 = vrot.lane.b32.xlu0 %v12705_v25, %s9126_s11 }
 0x91f   : > { %4541 = vadd.xlane.f32.xlu1 %v4540_v3  ;;  %v12921_v3 = vld [vmem:[#allocation49_spill] sm:$0xff] }
 0x920   : > { %5294 = vrot.lane.b32.xlu0 %v12773_v42, %s9127_s12  ;;  %v8759_v42 = vpop.eup %8758 }
 0x923   : > { %4535 = vadd.xlane.f32.xlu1 %v4534_v6 }
 0x924   : > { %5290 = vrot.lane.b32.xlu0 %v12774_v39, %s9127_s12 }
 0x926   : > { %v11526_v4 = vpop.xlane.xlu0 %4556 }
 0x928   : > { %5280 = vrot.lane.b32.xlu0 %v12776_v7, %s9127_s12  ;;  %v4626_v7 = vmul.f32 %v8759_v42, %v11388_v53  ;;  %v12910_v53 = vld [vmem:[#allocation30_spill] sm:$0xff] }
 0x929   : > { %v12922_v42 = vld [vmem:[#allocation50_spill] sm:$0xff] }
 0x92a   : > { %v4551_v0 = vpop.xlane.xlu0 %4550 }
 0x92b   : > { %8760 = vrcp.f32 %v4551_v0 }
 0x92c   : > { %5282 = vrot.lane.b32.xlu0 %v12771_v46, %s9127_s12 }
 0x930   : > { %5395 = vrot.lane.b32.xlu0 %v12777_v58, %s9127_s12 }
 0x934   : > { %4921 = vrot.lane.b32.xlu1 %v10217_v33, %s9126_s11  ;;  %5284 = vrot.lane.b32.xlu0 %v12779_v27, %s9127_s12  ;;  %v12904_v27 = vld [vmem:[#allocation19_spill] sm:$0xff] }
 0x938   : > { %4919 = vrot.lane.b32.xlu1 %v12711_v19, %s9126_s11  ;;  %v8761_v39 = vpop.eup %8760  ;;  %5393 = vrot.lane.b32.xlu0 %v12781_v47, %s9127_s12  ;;  %v12905_v47 = vld [vmem:[#allocation23_spill] sm:$0xff] }
 0x939   : > { %v4627_v46 = vmul.f32 %v8761_v39, %v11409_v9  ;;  %v12911_v9 = vld [vmem:[#allocation55_spill] sm:$0xff] }
 0x93b   : > { %v4646_v58 = vpack.c.bf16 %v4627_v46, %v4626_v7 }
 0x93c   : > { %4917 = vrot.lane.b32.xlu1 %v10241_v36, %s9126_s11  ;;  %5385 = vrot.lane.b32.xlu0 %v12783_v55, %s9127_s12  ;;  %v12906_v55 = vld [vmem:[#allocation22_spill] sm:$0xff]  ;;  %s9046_s11 = scalar_lea.vmem %s9045_s30, 8192 }
 0x93d   : > { %8001 = vmatprep.mubr.msk.bf16.mxu1 %vm1510_vm1, %v4646_v58  ;;  %p9048_p3 = scmp.lt.s32.totalorder %s9046_s11, %s9040_s27 }
 0x93f   : > { %p9049_p6 = por %p9048_p3, %p9047_p1 }
 0x940   : > { %5292 = vrot.lane.b32.xlu1 %v12904_v27, %s9127_s12  ;;  %5500 = vrot.lane.b32.xlu0 %v12785_v17, %s9127_s12  ;;  %v12907_v17 = vld [vmem:[#allocation29_spill] sm:$0xff] }
 0x941   : > { %p9050_p9 = pnand %p9049_p6, %p9043_p10 }
 0x944   : > { %5288 = vrot.lane.b32.xlu1 %v12775_v52, %s9127_s12  ;;  %5389 = vrot.lane.b32.xlu0 %v12787_v38, %s9127_s12  ;;  %v12908_v52 = vld [vmem:[#allocation26_spill] sm:$0xff]  ;;  %v11575_v38 = vpop.xlane.xlu1 %4565 }
 0x948   : > { %5399 = vrot.lane.b32.xlu1 %v12905_v47, %s9127_s12  ;;  %5498 = vrot.lane.b32.xlu0 %v12788_v18, %s9127_s12  ;;  %v11577_v18 = vpop.xlane.xlu0 %4562  ;;  %v11585_v45 = vpop.xlane.xlu1 %4559  ;;  %v12923_v47 = vld [vmem:[#allocation53_spill] sm:$0xff] }
 0x94c   : > { %5397 = vrot.lane.b32.xlu1 %v12906_v55, %s9127_s12  ;;  %5490 = vrot.lane.b32.xlu0 %v12789_v35, %s9127_s12  ;;  %v12909_v35 = vld [vmem:[#allocation35_spill] sm:$0xff] }
 0x950   : > { %5504 = vrot.lane.b32.xlu1 %v12907_v17, %s9127_s12  ;;  %5605 = vrot.lane.b32.xlu0 %v12790_v56, %s9127_s12 }
 0x954   : > { %5286 = vrot.lane.b32.xlu1 %v12908_v52, %s9127_s12  ;;  %5496 = vrot.lane.b32.xlu0 %v12791_v60, %s9127_s12  ;;  %v12912_v60 = vld [vmem:[#allocation41_spill] sm:$0xff] }
 0x958   : > { %5502 = vrot.lane.b32.xlu1 %v9591_v31, %s9127_s12  ;;  %5595 = vrot.lane.b32.xlu0 %v12909_v35, %s9127_s12  ;;  %v12913_v31 = vld [vmem:[#allocation39_spill] sm:$0xff] }
 0x95b   : > { %v4482_v56 = vpop.xlane.xlu0 %4481 }
 0x95c   : > { %5387 = vrot.lane.b32.xlu1 %v12910_v53, %s9127_s12  ;;  %5599 = vrot.lane.b32.xlu0 %v12911_v9, %s9127_s12 }
 0x95f   : > { %v4476_v22 = vpop.xlane.xlu0 %4475 }
 0x960   : > { %5609 = vrot.lane.b32.xlu1 %v12912_v60, %s9127_s12  ;;  %6074 = vrot.lane.b32.xlu0 %v12913_v31, %s9127_s12 }
 0x963   : > { %v4485_v5 = vpop.xlane.xlu1 %4484 }
 0x964   : > { %5391 = vrot.lane.b32.xlu1 %v12914_v32, %s9127_s12  ;;  %8762 = vrcp.f32 %v4485_v5  ;;  %6070 = vrot.lane.b32.xlu0 %v12915_v21, %s9127_s12  ;;  %v12927_v32 = vld [vmem:[#allocation43_spill] sm:$0xff] }
 0x965   : > { %8764 = vrcp.f32 %v4476_v22 }
 0x966   : > { %8766 = vrcp.f32 %v4482_v56 }
 0x967   : > { %v4479_v26 = vpop.xlane.xlu1 %4478  ;;  %v4494_v24 = vpop.xlane.xlu0 %4493 }
 0x968   : > { %8768 = vrcp.f32 %v4479_v26  ;;  %5607 = vrot.lane.b32.xlu1 %v12916_v16, %s9127_s12  ;;  %6068 = vrot.lane.b32.xlu0 %v12917_v41, %s9127_s12  ;;  %v12929_v16 = vld [vmem:[#allocation54_spill] sm:$0xff] }
 0x96b   : > { %v4497_v29 = vpop.xlane.xlu1 %4496  ;;  %v4488_v11 = vpop.xlane.xlu0 %4487 }
 0x96c   : > { %5492 = vrot.lane.b32.xlu1 %v12918_v51, %s9127_s12  ;;  %8770 = vrcp.f32 %v4497_v29  ;;  %6159 = vrot.lane.b32.xlu0 %v12919_v43, %s9127_s12  ;;  %v12930_v29 = vld [vmem:[#allocation59_spill] sm:$0xff] }
 0x96d   : > { %8772 = vrcp.f32 %v4488_v11 }
 0x96e   : > { %8774 = vrcp.f32 %v4494_v24 }
 0x96f   : > { %v4491_v40 = vpop.xlane.xlu1 %4490  ;;  %v4569_v53 = vpop.xlane.xlu0 %4568 }
 0x970   : > { %8776 = vrcp.f32 %v4491_v40  ;;  %5494 = vrot.lane.b32.xlu1 %v12920_v49, %s9127_s12  ;;  %6252 = vrot.lane.b32.xlu0 %v12921_v3, %s9127_s12 }
 0x971   : > { %v8763_v6 = vpop.eup %8762 }
 0x972   : > { %v8765_v28 = vpop.eup %8764  ;;  %v4605_v7 = vmul.f32 %v8763_v6, %v11434_v34  ;;  %v12924_v34 = vld [vmem:[#allocation74_spill] sm:$0xff] }
 0x973   : > { %v8767_v0 = vpop.eup %8766  ;;  %v4602_v46 = vmul.f32 %v8765_v28, %v11430_v44  ;;  %v12925_v44 = vld [vmem:[#allocation58_spill] sm:$0xff] }
 0x974   : > { %5603 = vrot.lane.b32.xlu1 %v12922_v42, %s9127_s12  ;;  %v4604_v27 = vmul.f32 %v8767_v0, %v11426_v10  ;;  %v12926_v10 = vld [vmem:[#allocation102_spill] sm:$0xff] }
 0x975   : > { %v8769_v39 = vpop.eup %8768 }
 0x976   : > { %v4603_v58 = vmul.f32 %v8769_v39, %v11438_v8  ;;  %v4635_v17 = vpack.c.bf16 %v4605_v7, %v4604_v27 }
 0x978   : > { %5597 = vrot.lane.b32.xlu1 %v12923_v47, %s9127_s12  ;;  %v4634_v55 = vpack.c.bf16 %v4603_v58, %v4602_v46 }
 0x979   : > { %v8771_v52 = vpop.eup %8770 }
 0x97a   : > { %7953 = vmatprep.mubr.msk.bf16.mxu0 %vm1510_vm1, %v4634_v55  ;;  %v8773_v35 = vpop.eup %8772  ;;  %v4609_v9 = vmul.f32 %v8771_v52, %v11444_v13 }
 0x97b   : > { %7954 = vmatmul.mubr.msk.bf16.vlgmr.msra.gmra.mxu0 %vm1510_vm1, %v4635_v17  ;;  %v8775_v56 = vpop.eup %8774  ;;  %v4606_v60 = vmul.f32 %v8773_v35, %v11448_v54  ;;  %v4829_v54 = vpop.permute.xlu1 %4828 }
 0x97c   : > { %7978 = vmatpush3.bf16.msra.mxu0 %v12924_v34  ;;  %5601 = vrot.lane.b32.xlu1 %v12925_v44, %s9127_s12  ;;  %v4608_v5 = vmul.f32 %v8775_v56, %v11440_v37  ;;  %v11634_v37 = vld [vmem:[#allocation8 + $0x28] sm:$0xff]   ;;  %v12931_v44 = vld [vmem:[#allocation103_spill] sm:$0xff] }
 0x97d   : > { %v8777_v8 = vpop.eup %8776  ;;  %7979 = vmatprep.subr.bf16.mxu0 %v12926_v10 }
 0x97e   : > { %v4607_v31 = vmul.f32 %v8777_v8, %v11452_v14  ;;  %v4530_v22 = vpop.xlane.xlu0 %4529  ;;  %v4637_v26 = vpack.c.bf16 %v4609_v9, %v4608_v5  ;;  %v12928_v14 = vld [vmem:[#allocation51_spill] sm:$0xff]  ;;  %v12932_v9 = vld [vmem:[#allocation105_spill] sm:$0xff] }
 0x980   : > { %7980 = vmatpush3.bf16.msra.mxu0 %v12926_v10  ;;  %6072 = vrot.lane.b32.xlu1 %v12927_v32, %s9127_s12  ;;  %v4636_v21 = vpack.c.bf16 %v4607_v31, %v4606_v60 }
 0x981   : > { %7981 = vmatprep.subr.bf16.mxu0 %v11522_v30 }
 0x982   : > { %7957 = vmatprep.mubr.msk.bf16.mxu0 %vm1510_vm1, %v4636_v21 }
 0x983   : > { %7958 = vmatmul.mubr.msk.bf16.gmra.mxu0 %vm1510_vm1, %v4637_v26  ;;  %v4533_v13 = vpop.xlane.xlu0 %4532 }
 0x984   : > { %7982 = vmatpush3.bf16.msra.mxu0 %v11522_v30  ;;  %6163 = vrot.lane.b32.xlu1 %v12928_v14, %s9127_s12  ;;  %8778 = vrcp.f32 %v4533_v13 }
 0x985   : > { %7983 = vmatprep.subr.bf16.mxu0 %v4829_v54 }
 0x987   : > { %v4527_v24 = vpop.xlane.xlu0 %4526 }
 0x988   : > { %7984 = vmatpush3.bf16.msra.mxu0 %v4829_v54  ;;  %6161 = vrot.lane.b32.xlu1 %v12929_v16, %s9127_s12  ;;  %8780 = vrcp.f32 %v4527_v24 }
 0x989   : > { %8009 = vmatprep.subr.bf16.mxu0 %v11634_v37  ;;  %8782 = vrcp.f32 %v4530_v22 }
 0x98b   : > { %v4545_v41 = vpop.xlane.xlu0 %4544 }
 0x98c   : > { %6157 = vrot.lane.b32.xlu1 %v12930_v29, %s9127_s12 }
 0x98f   : > { %v4539_v11 = vpop.xlane.xlu0 %4538 }
 0x991   : > { %v8779_v28 = vpop.eup %8778 }
 0x993   : > { %v4924_v51 = vpop.permute.xlu0 %4923 }
 0x994   : > { %7993 = vmatprep.subr.bf16.mxu1 %v4924_v51 }
 0x995   : > { %7994 = vmatpush3.bf16.msra.mxu1 %v4924_v51  ;;  %v8781_v0 = vpop.eup %8780 }
 0x996   : > { %v8783_v39 = vpop.eup %8782  ;;  %v4619_v46 = vmul.f32 %v8781_v0, %v11489_v15 }
 0x997   : > { %v11641_v30 = vpop.permute.xlu0 %5294  ;;  %v4620_v27 = vmul.f32 %v8783_v39, %v11475_v20 }
 0x99b   : > { %v11643_v43 = vpop.permute.xlu0 %5290 }
 0x99f   : > { %v11649_v3 = vpop.permute.xlu0 %5280 }
 0x9a3   : > { %v11651_v42 = vpop.permute.xlu0 %5282 }
 0x9a4   : > { %v4524_v40 = vpop.xlane.xlu1 %4523 }
 0x9a5   : > { %8784 = vrcp.f32 %v4524_v40  ;;  %v5312_v40 = vsel %vm1153_vm0, %v11643_v43, 0 }
 0x9a6   : > { %8786 = vrcp.f32 %v11516_v59 }
 0x9a7   : > { %8788 = vrcp.f32 %v11526_v4 }
 0x9a8   : > { %8790 = vrcp.f32 %v11577_v18  ;;  %v4542_v49 = vpop.xlane.xlu1 %4541  ;;  %v4621_v18 = vmul.f32 %v8779_v28, %v11484_v50 }
 0x9a9   : > { %8792 = vrcp.f32 %v11585_v45 }
 0x9aa   : > { %8794 = vrcp.f32 %v4542_v49  ;;  %v4643_v35 = vpack.c.bf16 %v4621_v18, %v4620_v27 }
 0x9ab   : > { %8796 = vrcp.f32 %v4539_v11 }
 0x9ac   : > { %8798 = vrcp.f32 %v4545_v41  ;;  %v4536_v6 = vpop.xlane.xlu1 %4535 }
 0x9ad   : > { %8800 = vrcp.f32 %v4536_v6 }
 0x9ae   : > { %8802 = vrcp.f32 %v4569_v53  ;;  %v8419_v53 = vld [vmem:[#allocation8 + $0x20] sm:$0xff]  }
 0x9af   : > { %8804 = vrcp.f32 %v11575_v38  ;;  %v11658_v38 = vpop.permute.xlu0 %5395 }
 0x9b0   : > { %v4922_v59 = vpop.permute.xlu1 %4921 }
 0x9b1   : > { %7995 = vmatprep.subr.bf16.mxu1 %v4922_v59 }
 0x9b2   : > { %v8785_v4 = vpop.eup %8784  ;;  %7996 = vmatpush3.bf16.msra.mxu1 %v4922_v59 }
 0x9b3   : > { %v8787_v45 = vpop.eup %8786  ;;  %v4618_v7 = vmul.f32 %v8785_v4, %v11504_v23  ;;  %v5285_v32 = vpop.permute.xlu0 %5284 }
 0x9b4   : > { %v8789_v58 = vpop.eup %8788  ;;  %v4920_v47 = vpop.permute.xlu1 %4919  ;;  %v4628_v8 = vmul.f32 %v8787_v45, %v12931_v44 }
 0x9b5   : > { %v8791_v55 = vpop.eup %8790  ;;  %7997 = vmatprep.subr.bf16.mxu1 %v4920_v47  ;;  %v4642_v17 = vpack.c.bf16 %v4619_v46, %v4618_v7  ;;  %v4629_v56 = vmul.f32 %v8789_v58, %v11405_v57  ;;  %v5417_v7 = vsel %vm1153_vm0, %v11658_v38, 0 }
 0x9b6   : > { %v8793_v52 = vpop.eup %8792  ;;  %7998 = vmatpush3.bf16.msra.mxu1 %v4920_v47  ;;  %v4631_v20 = vmul.f32 %v8791_v55, %v11413_v63 }
 0x9b7   : > { %v8795_v50 = vpop.eup %8794  ;;  %7985 = vmatprep.mubr.msk.bf16.mxu0 %vm1510_vm1, %v4642_v17  ;;  %v4630_v60 = vmul.f32 %v8793_v52, %v12932_v9  ;;  %v4647_v31 = vpack.c.bf16 %v4629_v56, %v4628_v8  ;;  %v5394_v16 = vpop.permute.xlu0 %5393 }
 0x9b8   : > { %v8797_v23 = vpop.eup %8796  ;;  %v4918_v15 = vpop.permute.xlu1 %4917  ;;  %7986 = vmatmul.mubr.msk.bf16.vlgmr.msra.gmra.mxu0 %vm1510_vm1, %v4643_v35  ;;  %v4624_v57 = vmul.f32 %v8795_v50, %v11508_v12  ;;  %v5318_v12 = vsel %vm1153_vm0, %v11641_v30, 0  ;;  %v5414_v27 = vsel %vm1153_vm0, %v5394_v16, 0 }
 0x9b9   : > { %v8799_v34 = vpop.eup %8798  ;;  %7999 = vmatprep.subr.bf16.mxu1 %v4918_v15  ;;  %8010 = vmatpush3.bf16.msra.mxu0 %v11634_v37  ;;  %v4623_v63 = vmul.f32 %v8797_v23, %v11498_v62  ;;  %v4648_v26 = vpack.c.bf16 %v4631_v20, %v4630_v60  ;;  %v7971_v60 = vpop.f32.mrf.mxu1 }
 0x9ba   : > { %v8801_v10 = vpop.eup %8800  ;;  %8000 = vmatpush3.bf16.msra.mxu1 %v4918_v15  ;;  %8011 = vmatprep.subr.bf16.mxu0 %v8419_v53  ;;  %v4625_v13 = vmul.f32 %v8799_v34, %v11493_v1  ;;  %v12933_v1 = vld [vmem:[#allocation104_spill] sm:$0xff] }
 0x9bb   : > { %8261 = vmatprep.subr.msk.bf16.mxu1 %vm1153_vm0, %v11641_v30  ;;  %v4622_v22 = vmul.f32 %v8801_v10, %v11514_v48  ;;  %v8803_v5 = vpop.eup %8802 }
 0x9bc   : > { %v5293_v21 = vpop.permute.xlu1 %5292  ;;  %v8805_v14 = vpop.eup %8804  ;;  %v4645_v48 = vpack.c.bf16 %v4625_v13, %v4624_v57  ;;  %v4633_v62 = vmul.f32 %v8803_v5, %v11456_v2 }
 0x9bd   : > { %8002 = vmatmul.mubr.msk.bf16.vlgmr.msra.gmra.mxu1 %vm1510_vm1, %v4647_v31  ;;  %v4644_v54 = vpack.c.bf16 %v4623_v63, %v4622_v22  ;;  %8012 = vmatpush3.bf16.msra.mxu0 %v8419_v53  ;;  %v4632_v24 = vmul.f32 %v8805_v14, %v12933_v1  ;;  %v5315_v11 = vsel %vm1153_vm0, %v5293_v21, 0  ;;  %v5386_v2 = vpop.permute.xlu0 %5385  ;;  %v4797_v57 = vpop.f32.mrf.mxu1 }
 0x9be   : > { %8005 = vmatprep.mubr.msk.bf16.mxu1 %vm1510_vm1, %v4648_v26  ;;  %8046 = vmatpush3.bf16.xpose.msra.mxu1 %v5318_v12 }
 0x9bf   : > { %7989 = vmatprep.mubr.msk.bf16.mxu0 %vm1510_vm1, %v4644_v54  ;;  %8262 = vmatprep.subr.msk.bf16.mxu1 %vm1153_vm0, %v5293_v21  ;;  %v4649_v41 = vpack.c.bf16 %v4633_v62, %v4632_v24  ;;  %v7972_v22 = vpop.f32.mrf.mxu1 }
 0x9c0   : > { %v5289_v37 = vpop.permute.xlu1 %5288  ;;  %7990 = vmatmul.mubr.msk.bf16.gmra.mxu0 %vm1510_vm1, %v4645_v48 }
 0x9c1   : > { %v11694_v49 = vpop.permute.xlu0 %5500 }
 0x9c4   : > { %v5400_v29 = vpop.permute.xlu1 %5399 }
 0x9c5   : > { %8006 = vmatmul.mubr.msk.bf16.gmra.mxu1 %vm1510_vm1, %v4649_v41  ;;  %v5390_v6 = vpop.permute.xlu0 %5389  ;;  %v5423_v0 = vsel %vm1153_vm0, %v5400_v29, 0 }
 0x9c6   : > { %8048 = vmatpush3.bf16.xpose.msra.mxu1 %v5315_v11  ;;  %8053 = vmatprep.mubr.msk.bf16.mxu1 %vm1153_vm0, %v11649_v3  ;;  %v5309_v3 = vsel %vm1153_vm0, %v5289_v37, 0 }
 0x9c7   : > { %8263 = vmatprep.subr.msk.bf16.mxu1 %vm1153_vm0, %v11643_v43 }
 0x9c8   : > { %v5398_v51 = vpop.permute.xlu1 %5397 }
 0x9c9   : > { %v11699_v28 = vpop.permute.xlu0 %5498  ;;  %v5420_v4 = vsel %vm1153_vm0, %v5398_v51, 0 }
 0x9cc   : > { %v11688_v30 = vpop.permute.xlu1 %5504 }
 0x9cd   : > { %8269 = vmatprep.subr.msk.bf16.mxu0 %vm1153_vm0, %v11688_v30  ;;  %v11706_v43 = vpop.permute.xlu0 %5490  ;;  %v5528_v48 = vsel %vm1153_vm0, %v11688_v30, 0 }
 0x9ce   : > { %8050 = vmatpush3.bf16.xpose.msra.mxu1 %v5312_v40  ;;  %v5522_v40 = vsel %vm1153_vm0, %v11694_v49, 0 }
 0x9cf   : > { %8264 = vmatprep.subr.msk.bf16.mxu1 %vm1153_vm0, %v5289_v37 }
 0x9d0   : > { %v5287_v59 = vpop.permute.xlu1 %5286 }
 0x9d1   : > { %v5606_v18 = vpop.permute.xlu0 %5605 }
 0x9d2   : > { %v5627_v15 = vsel %vm1153_vm0, %v5606_v18, 0 }
 0x9d4   : > { %v11708_v39 = vpop.permute.xlu1 %5502 }
 0x9d5   : > { %v11715_v45 = vpop.permute.xlu0 %5496  ;;  %v5525_v11 = vsel %vm1153_vm0, %v11708_v39, 0 }
 0x9d6   : > { %8052 = vmatpush3.bf16.xpose.msra.mxu1 %v5309_v3  ;;  %v5519_v3 = vsel %vm1153_vm0, %v11699_v28, 0 }
 0x9d7   : > { %8265 = vmatprep.subr.msk.bf16.mxu1 %vm1153_vm0, %v5400_v29 }
 0x9d9   : > { %v5596_v58 = vpop.permute.xlu0 %5595 }
 0x9dd   : > { %8054 = vmatmul.mubr.msk.bf16.vlgmr.msra.gmra.mxu1 %vm1153_vm0, %v11651_v42  ;;  %v5388_v42 = vpop.permute.xlu1 %5387  ;;  %v5600_v55 = vpop.permute.xlu0 %5599 }
 0x9de   : > { %8057 = vmatprep.mubr.msk.bf16.mxu1 %vm1153_vm0, %v5285_v32  ;;  %8062 = vmatpush3.bf16.xpose.msra.mxu1 %v5423_v0  ;;  %v4800_v32 = vpop.f32.mrf.mxu1 }
 0x9df   : > { %8266 = vmatprep.subr.msk.bf16.mxu1 %vm1153_vm0, %v5398_v51  ;;  %v5010_v41 = vpack.c.bf16 %v4800_v32, %v4797_v57  ;;  %v5011_v51 = vpack.c.bf16 %v7972_v22, %v7971_v60  ;;  %v1003_v57 = vld [vmem:[#allocation7 + $0xd0] sm:$0xff]  ;;  %v1001_v22 = vld [vmem:[#allocation7 + $0xc0] sm:$0xff] }
 0x9e0   : > { %v7975_v54 = vpop.f32.mrf.mxu1 }
 0x9e1   : > { %v5610_v46 = vpop.permute.xlu1 %5609  ;;  %v11724_v35 = vpop.permute.xlu0 %6074 }
 0x9e2   : > { %v5633_v52 = vsel %vm1153_vm0, %v5610_v46, 0  ;;  %v4813_v37 = vpop.f32.mrf.mxu1 }
 0x9e4   : > { %v7976_v29 = vpop.f32.mrf.mxu1 }
 0x9e5   : > { %8058 = vmatmul.mubr.msk.bf16.gmra.mxu1 %vm1153_vm0, %v5287_v59  ;;  %v5392_v47 = vpop.permute.xlu1 %5391  ;;  %v11730_v53 = vpop.permute.xlu0 %6070 }
 0x9e6   : > { %8064 = vmatpush3.bf16.xpose.msra.mxu1 %v5420_v4  ;;  %8069 = vmatprep.mubr.msk.bf16.mxu1 %vm1153_vm0, %v5386_v2  ;;  %v4816_v2 = vpop.f32.mrf.mxu1 }
 0x9e7   : > { %8267 = vmatprep.subr.msk.bf16.mxu1 %vm1153_vm0, %v11658_v38  ;;  %v5012_v30 = vpack.c.bf16 %v4816_v2, %v4813_v37  ;;  %v1007_v37 = vld [vmem:[#allocation7 + $0xf0] sm:$0xff] }
 0x9e9   : > { %v5608_v17 = vpop.permute.xlu1 %5607  ;;  %v11738_v23 = vpop.permute.xlu0 %6068 }
 0x9ea   : > { %v5630_v50 = vsel %vm1153_vm0, %v5608_v17, 0 }
 0x9ed   : > { %v11728_v38 = vpop.permute.xlu1 %5492  ;;  %v11742_v34 = vpop.permute.xlu0 %6159 }
 0x9ee   : > { %8066 = vmatpush3.bf16.xpose.msra.mxu1 %v5417_v7 }
 0x9ef   : > { %8268 = vmatprep.subr.msk.bf16.mxu1 %vm1153_vm0, %v5394_v16 }
 0x9f1   : > { %v11736_v56 = vpop.permute.xlu1 %5494  ;;  %v6253_v8 = vpop.permute.xlu0 %6252 }
 0x9f5   : > { %v5604_v20 = vpop.permute.xlu1 %5603 }
 0x9f6   : > { %8068 = vmatpush3.bf16.xpose.msra.mxu1 %v5414_v27  ;;  %v5624_v44 = vsel %vm1153_vm0, %v5604_v20, 0 }
 0x9f7   : > { %8273 = vmatprep.subr.msk.bf16.mxu1 %vm1153_vm0, %v5610_v46 }
 0x9f9   : > { %v5598_v10 = vpop.permute.xlu1 %5597 }
 0x9fd   : > { %8070 = vmatmul.mubr.msk.bf16.vlgmr.msra.gmra.mxu1 %vm1153_vm0, %v5388_v42  ;;  %v5602_v9 = vpop.permute.xlu1 %5601 }
 0x9fe   : > { %8073 = vmatprep.mubr.msk.bf16.mxu1 %vm1153_vm0, %v5390_v6  ;;  %8094 = vmatpush3.bf16.xpose.msra.mxu1 %v5633_v52  ;;  %v5013_v6 = vpack.c.bf16 %v7976_v29, %v7975_v54 }
 0x9ff   : > { %8274 = vmatprep.subr.msk.bf16.mxu1 %vm1153_vm0, %v5608_v17 }
 0xa01   : > { %v6073_v54 = vpop.permute.xlu1 %6072 }
 0xa05   : > { %8074 = vmatmul.mubr.msk.bf16.gmra.mxu1 %vm1153_vm0, %v5392_v47 }
 0xa06   : > { %8096 = vmatpush3.bf16.xpose.msra.mxu1 %v5630_v50  ;;  %8101 = vmatprep.mubr.msk.bf16.mxu1 %vm1153_vm0, %v5596_v58 }
 0xa07   : > { %8275 = vmatprep.subr.msk.bf16.mxu1 %vm1153_vm0, %v5606_v18 }
 0xa0e   : > { %8098 = vmatpush3.bf16.xpose.msra.mxu1 %v5627_v15 }
 0xa0f   : > { %8276 = vmatprep.subr.msk.bf16.mxu1 %vm1153_vm0, %v5604_v20 }
 0xa16   : > { %8100 = vmatpush3.bf16.xpose.msra.mxu1 %v5624_v44 }
 0xa17   : > { %8141 = vmatprep.subr.bf16.mxu1 %v6253_v8 }
 0xa1d   : > { %8102 = vmatmul.mubr.msk.bf16.vlgmr.msra.gmra.mxu1 %vm1153_vm0, %v5598_v10 }
 0xa1e   : > { %8105 = vmatprep.mubr.msk.bf16.mxu1 %vm1153_vm0, %v5600_v55  ;;  %8142 = vmatpush3.bf16.msra.mxu1 %v6253_v8 }
 0xa25   : > { %8106 = vmatmul.mubr.msk.bf16.gmra.mxu1 %vm1153_vm0, %v5602_v9 }
 0xa3b   : > { %v7955_v31 = vpop.f32.mrf.mxu0 }
 0xa3d   : > { %v4708_v63 = vpop.f32.mrf.mxu0 }
 0xa3f   : > { %v7956_v5 = vpop.f32.mrf.mxu0 }
 0xa40   : > { %v5007_v13 = vpack.c.bf16 %v7956_v5, %v7955_v31 }
 0xa41   : > { %v4711_v21 = vpop.f32.mrf.mxu0 }
 0xa42   : > { %v5006_v26 = vpack.c.bf16 %v4711_v21, %v4708_v63 }
 0xa43   : > { %v7959_v12 = vpop.f32.mrf.mxu0 }
 0xa44   : > { %8013 = vmatprep.mubr.msk.bf16.mxu0 %vm1153_vm0, %v5006_v26  ;;  %v1004_v26 = vld [vmem:[#allocation7 + $0xd8] sm:$0xff] }
 0xa45   : > { %v4724_v14 = vpop.f32.mrf.mxu0  ;;  %8014 = vmatmul.mubr.msk.bf16.vlgmr.msra.gmra.mxu0 %vm1153_vm0, %v5007_v13 }
 0xa46   : > { %8078 = vmatpush3.bf16.xpose.msra.mxu0 %v5528_v48 }
 0xa47   : > { %8270 = vmatprep.subr.msk.bf16.mxu0 %vm1153_vm0, %v11708_v39  ;;  %v7960_v62 = vpop.f32.mrf.mxu0 }
 0xa48   : > { %v5009_v16 = vpack.c.bf16 %v7960_v62, %v7959_v12  ;;  %v1002_v12 = vld [vmem:[#allocation7 + $0xc8] sm:$0xff] }
 0xa49   : > { %v4727_v1 = vpop.f32.mrf.mxu0 }
 0xa4a   : > { %v5008_v24 = vpack.c.bf16 %v4727_v1, %v4724_v14 }
 0xa4c   : > { %8017 = vmatprep.mubr.msk.bf16.mxu0 %vm1153_vm0, %v5008_v24  ;;  %v1008_v24 = vld [vmem:[#allocation7 + $0xf8] sm:$0xff] }
 0xa4d   : > { %8018 = vmatmul.mubr.msk.bf16.gmra.mxu0 %vm1153_vm0, %v5009_v16 }
 0xa4e   : > { %8080 = vmatpush3.bf16.xpose.msra.mxu0 %v5525_v11  ;;  %8021 = vmatprep.mubr.msk.bf16.mxu0 %vm1153_vm0, %v5010_v41  ;;  %v1005_v41 = vld [vmem:[#allocation7 + $0xe0] sm:$0xff]  ;;  %v1006_v11 = vld [vmem:[#allocation7 + $0xe8] sm:$0xff] }
 0xa4f   : > { %8271 = vmatprep.subr.msk.bf16.mxu0 %vm1153_vm0, %v11694_v49 }
 0xa55   : > { %8022 = vmatmul.mubr.msk.bf16.gmra.mxu0 %vm1153_vm0, %v5011_v51 }
 0xa56   : > { %8082 = vmatpush3.bf16.xpose.msra.mxu0 %v5522_v40  ;;  %8025 = vmatprep.mubr.msk.bf16.mxu0 %vm1153_vm0, %v5012_v30 }
 0xa57   : > { %8272 = vmatprep.subr.msk.bf16.mxu0 %vm1153_vm0, %v11699_v28 }
 0xa5d   : > { %8026 = vmatmul.mubr.msk.bf16.gmra.mxu0 %vm1153_vm0, %v5013_v6 }
 0xa5e   : > { %8084 = vmatpush3.bf16.xpose.msra.mxu0 %v5519_v3 }
 0xa5f   : > { %8109 = vmatprep.subr.bf16.mxu0 %v11724_v35 }
 0xa78   : > { %v7987_v0 = vpop.f32.mrf.mxu0 }
 0xa7a   : > { %v4886_v59 = vpop.f32.mrf.mxu0 }
 0xa7c   : > { %v7988_v49 = vpop.f32.mrf.mxu0 }
 0xa7d   : > { %v8003_v39 = vpop.f32.mrf.mxu1  ;;  %v5015_v7 = vpack.c.bf16 %v7988_v49, %v7987_v0  ;;  %v11819_v0 = vpop.permute.xlu1 %6163 }
 0xa7e   : > { %v4889_v4 = vpop.f32.mrf.mxu0 }
 0xa7f   : > { %v5014_v18 = vpack.c.bf16 %v4889_v4, %v4886_v59  ;;  %v4975_v42 = vpop.f32.mrf.mxu1  ;;  %v1035_v59 = vld [vmem:[#allocation7 + $0x1d0] sm:$0xff] }
 0xa80   : > { %v7991_v46 = vpop.f32.mrf.mxu0 }
 0xa81   : > { %v8004_v58 = vpop.f32.mrf.mxu1  ;;  %8029 = vmatprep.mubr.msk.bf16.mxu0 %vm1153_vm0, %v5014_v18 }
 0xa82   : > { %v4902_v27 = vpop.f32.mrf.mxu0  ;;  %8030 = vmatmul.mubr.msk.bf16.gmra.mxu0 %vm1153_vm0, %v5015_v7  ;;  %v5019_v10 = vpack.c.bf16 %v8004_v58, %v8003_v39  ;;  %v1033_v39 = vld [vmem:[#allocation7 + $0x1c0] sm:$0xff]  ;;  %v1034_v58 = vld [vmem:[#allocation7 + $0x1c8] sm:$0xff] }
 0xa83   : > { %v4978_v28 = vpop.f32.mrf.mxu1 }
 0xa84   : > { %v7992_v47 = vpop.f32.mrf.mxu0  ;;  %v5018_v20 = vpack.c.bf16 %v4978_v28, %v4975_v42  ;;  %v1036_v42 = vld [vmem:[#allocation7 + $0x1d8] sm:$0xff] }
 0xa85   : > { %v8007_v55 = vpop.f32.mrf.mxu1  ;;  %v5017_v15 = vpack.c.bf16 %v7992_v47, %v7991_v46  ;;  %v1039_v47 = vld [vmem:[#allocation7 + $0x1f0] sm:$0xff] }
 0xa86   : > { %v4905_v17 = vpop.f32.mrf.mxu0 }
 0xa87   : > { %v5016_v52 = vpack.c.bf16 %v4905_v17, %v4902_v27  ;;  %v4991_v50 = vpop.f32.mrf.mxu1 }
 0xa89   : > { %8033 = vmatprep.mubr.msk.bf16.mxu0 %vm1153_vm0, %v5016_v52  ;;  %v8008_v44 = vpop.f32.mrf.mxu1 }
 0xa8a   : > { %8034 = vmatmul.mubr.msk.bf16.gmra.mxu0 %vm1153_vm0, %v5017_v15  ;;  %v5021_v60 = vpack.c.bf16 %v8008_v44, %v8007_v55  ;;  %v1037_v15 = vld [vmem:[#allocation7 + $0x1e0] sm:$0xff] }
 0xa8b   : > { %8037 = vmatprep.mubr.msk.bf16.mxu0 %vm1153_vm0, %v5018_v20  ;;  %v4994_v8 = vpop.f32.mrf.mxu1 }
 0xa8c   : > { %v5020_v9 = vpack.c.bf16 %v4994_v8, %v4991_v50  ;;  %v1040_v8 = vld [vmem:[#allocation7 + $0x1f8] sm:$0xff] }
 0xa92   : > { %8038 = vmatmul.mubr.msk.bf16.gmra.mxu0 %vm1153_vm0, %v5019_v10 }
 0xa93   : > { %8041 = vmatprep.mubr.msk.bf16.mxu0 %vm1153_vm0, %v5020_v9 }
 0xa9a   : > { %8042 = vmatmul.mubr.msk.bf16.gmra.mxu0 %vm1153_vm0, %v5021_v60 }
 0xa9b   : > { %8085 = vmatprep.mubr.msk.bf16.mxu0 %vm1153_vm0, %v11706_v43 }
 0xa9d   : > { %v8055_v31 = vpop.f32.mrf.mxu1 }
 0xa9e   : > { %v11781_v63 = vadd.f32 %v8055_v31, %v1003_v57  ;;  %v1038_v31 = vld [vmem:[#allocation7 + $0x1e8] sm:$0xff] }
 0xa9f   : > { %v5354_v5 = vpop.f32.mrf.mxu1 }
 0xaa0   : > { %v11783_v32 = vadd.f32 %v5354_v5, %v1001_v22  ;;  %v5706_v21 = vsel %vm1510_vm1, %v11781_v63, -inf }
 0xaa1   : > { %5707 = vmax.xlane.f32.xlu0 %v5706_v21  ;;  %v8056_v13 = vpop.f32.mrf.mxu1 }
 0xaa2   : > { %8086 = vmatmul.mubr.msk.bf16.vlgmr.msra.gmra.mxu0 %vm1153_vm0, %v11728_v38  ;;  %v11792_v14 = vadd.f32 %v8056_v13, %v1004_v26  ;;  %v5700_v62 = vsel %vm1510_vm1, %v11783_v32, -inf }
 0xaa3   : > { %8110 = vmatpush3.bf16.msra.mxu0 %v11724_v35  ;;  %v5357_v43 = vpop.f32.mrf.mxu1  ;;  %8089 = vmatprep.mubr.msk.bf16.mxu0 %vm1153_vm0, %v11736_v56 }
 0xaa4   : > { %v11794_v48 = vadd.f32 %v5357_v43, %v1002_v12  ;;  %8111 = vmatprep.subr.bf16.mxu0 %v6073_v54  ;;  %v5709_v56 = vsel %vm1510_vm1, %v11792_v14, -inf }
 0xaa5   : > { %5701 = vmax.xlane.f32.xlu0 %v5700_v62  ;;  %v8059_v1 = vpop.f32.mrf.mxu1  ;;  %v1097_v62 = vld [vmem:[#allocation7 + $0x3c0] sm:$0xff] }
 0xaa6   : > { %v5703_v38 = vsel %vm1510_vm1, %v11794_v48, -inf  ;;  %v11800_v16 = vadd.f32 %v8059_v1, %v1007_v37 }
 0xaa7   : > { %8112 = vmatpush3.bf16.msra.mxu0 %v6073_v54  ;;  %5704 = vmax.xlane.f32.xlu1 %v5703_v38  ;;  %v5370_v35 = vpop.f32.mrf.mxu1  ;;  %v1099_v54 = vld [vmem:[#allocation7 + $0x3d0] sm:$0xff]  ;;  %v1100_v38 = vld [vmem:[#allocation7 + $0x3d8] sm:$0xff] }
 0xaa8   : > { %8113 = vmatprep.subr.bf16.mxu0 %v11730_v53  ;;  %v11810_v30 = vadd.f32 %v5370_v35, %v1005_v41  ;;  %v5718_v6 = vsel %vm1510_vm1, %v11800_v16, -inf  ;;  %v1098_v41 = vld [vmem:[#allocation7 + $0x3c8] sm:$0xff] }
 0xaa9   : > { %5710 = vmax.xlane.f32.xlu0 %v5709_v56  ;;  %v8060_v29 = vpop.f32.mrf.mxu1 }
 0xaaa   : > { %v11805_v2 = vadd.f32 %v8060_v29, %v1008_v24  ;;  %8090 = vmatmul.mubr.msk.bf16.gmra.mxu0 %vm1153_vm0, %v11715_v45 }
 0xaab   : > { %8114 = vmatpush3.bf16.msra.mxu0 %v11730_v53  ;;  %v5373_v51 = vpop.f32.mrf.mxu1  ;;  %v5712_v53 = vsel %vm1510_vm1, %v11810_v30, -inf }
 0xaac   : > { %v11812_v40 = vadd.f32 %v5373_v51, %v1006_v11  ;;  %8115 = vmatprep.subr.bf16.mxu0 %v11738_v23  ;;  %v5721_v3 = vsel %vm1510_vm1, %v11805_v2, -inf  ;;  %v1103_v51 = vld [vmem:[#allocation7 + $0x3f0] sm:$0xff] }
 0xaad   : > { %5719 = vmax.xlane.f32.xlu0 %v5718_v6  ;;  %5722 = vmax.xlane.f32.xlu1 %v5721_v3 }
 0xaae   : > { %v5715_v45 = vsel %vm1510_vm1, %v11812_v40, -inf }
 0xaaf   : > { %8116 = vmatpush3.bf16.msra.mxu0 %v11738_v23 }
 0xab0   : > { %8125 = vmatprep.subr.bf16.mxu0 %v11819_v0 }
 0xab1   : > { %5716 = vmax.xlane.f32.xlu1 %v5715_v45  ;;  %5713 = vmax.xlane.f32.xlu0 %v5712_v53 }
 0xabd   : > { %v8071_v49 = vpop.f32.mrf.mxu1 }
 0xabe   : > { %v11827_v4 = vadd.f32 %v8071_v49, %v1035_v59  ;;  %v1101_v59 = vld [vmem:[#allocation7 + $0x3e0] sm:$0xff] }
 0xabf   : > { %v5459_v18 = vpop.f32.mrf.mxu1 }
 0xac0   : > { %v11829_v7 = vadd.f32 %v5459_v18, %v1033_v39  ;;  %v5730_v23 = vsel %vm1510_vm1, %v11827_v4, -inf  ;;  %v1104_v18 = vld [vmem:[#allocation7 + $0x3f8] sm:$0xff] }
 0xac1   : > { %5731 = vmax.xlane.f32.xlu0 %v5730_v23  ;;  %v8072_v46 = vpop.f32.mrf.mxu1 }
 0xac2   : > { %v11833_v27 = vadd.f32 %v8072_v46, %v1036_v42  ;;  %v5724_v52 = vsel %vm1510_vm1, %v11829_v7, -inf }
 0xac3   : > { %v5462_v28 = vpop.f32.mrf.mxu1 }
 0xac4   : > { %v11835_v55 = vadd.f32 %v5462_v28, %v1034_v58  ;;  %v5733_v17 = vsel %vm1510_vm1, %v11833_v27, -inf  ;;  %v1102_v28 = vld [vmem:[#allocation7 + $0x3e8] sm:$0xff] }
 0xac5   : > { %5734 = vmax.xlane.f32.xlu1 %v5733_v17  ;;  %5725 = vmax.xlane.f32.xlu0 %v5724_v52  ;;  %v8075_v50 = vpop.f32.mrf.mxu1 }
 0xac6   : > { %v11841_v20 = vadd.f32 %v8075_v50, %v1039_v47  ;;  %v5727_v9 = vsel %vm1510_vm1, %v11835_v55, -inf }
 0xac7   : > { %v5475_v44 = vpop.f32.mrf.mxu1 }
 0xac8   : > { %v11843_v10 = vadd.f32 %v5475_v44, %v1037_v15  ;;  %v5742_v60 = vsel %vm1510_vm1, %v11841_v20, -inf }
 0xac9   : > { %5728 = vmax.xlane.f32.xlu1 %v5727_v9  ;;  %5743 = vmax.xlane.f32.xlu0 %v5742_v60  ;;  %v8076_v57 = vpop.f32.mrf.mxu1  ;;  %v12934_v9 = vld [vmem:[#allocation48_spill] sm:$0xff] }
 0xaca   : > { %v11849_v22 = vadd.f32 %v8076_v57, %v1040_v8  ;;  %v5736_v13 = vsel %vm1510_vm1, %v11843_v10, -inf }
 0xacb   : > { %v5478_v5 = vpop.f32.mrf.mxu1 }
 0xacc   : > { %v11851_v21 = vadd.f32 %v5478_v5, %v1038_v31  ;;  %v5745_v26 = vsel %vm1510_vm1, %v11849_v22, -inf  ;;  %v12935_v31 = vld [vmem:[#allocation61_spill] sm:$0xff] }
 0xacd   : > { %5746 = vmax.xlane.f32.xlu1 %v5745_v26  ;;  %5737 = vmax.xlane.f32.xlu0 %v5736_v13  ;;  %v12936_v13 = vld [vmem:[#allocation71_spill] sm:$0xff] }
 0xace   : > { %v5739_v12 = vsel %vm1510_vm1, %v11851_v21, -inf }
 0xad1   : > { %5740 = vmax.xlane.f32.xlu1 %v5739_v12 }
 0xadd   : > { %v8103_v43 = vpop.f32.mrf.mxu1 }
 0xade   : > { %v11859_v37 = vadd.f32 %v8103_v43, %v1099_v54 }
 0xadf   : > { %v5669_v1 = vpop.f32.mrf.mxu1 }
 0xae0   : > { %v11861_v35 = vadd.f32 %v5669_v1, %v1097_v62  ;;  %v5778_v24 = vsel %vm1510_vm1, %v11859_v37, -inf  ;;  %v12937_v62 = vld [vmem:[#allocation64_spill] sm:$0xff] }
 0xae1   : > { %5779 = vmax.xlane.f32.xlu0 %v5778_v24  ;;  %v8104_v56 = vpop.f32.mrf.mxu1  ;;  %v12938_v24 = vld [vmem:[#allocation38_spill] sm:$0xff] }
 0xae2   : > { %v11865_v29 = vadd.f32 %v8104_v56, %v1100_v38  ;;  %v5772_v45 = vsel %vm1510_vm1, %v11861_v35, -inf }
 0xae3   : > { %v5672_v11 = vpop.f32.mrf.mxu1 }
 0xae4   : > { %v11867_v6 = vadd.f32 %v5672_v11, %v1098_v41  ;;  %v5781_v3 = vsel %vm1510_vm1, %v11865_v29, -inf  ;;  %v12940_v11 = vld [vmem:[#allocation81_spill] sm:$0xff] }
 0xae5   : > { %5782 = vmax.xlane.f32.xlu1 %v5781_v3  ;;  %5773 = vmax.xlane.f32.xlu0 %v5772_v45  ;;  %v8107_v53 = vpop.f32.mrf.mxu1  ;;  %v12942_v45 = vld [vmem:[#allocation69_spill] sm:$0xff] }
 0xae6   : > { %v11873_v49 = vadd.f32 %v8107_v53, %v1103_v51  ;;  %v5775_v23 = vsel %vm1510_vm1, %v11867_v6, -inf  ;;  %v12941_v51 = vld [vmem:[#allocation20_spill] sm:$0xff] }
 0xae7   : > { %v5685_v39 = vpop.f32.mrf.mxu1  ;;  %v3755_v3 = vadd.f32 %v12941_v51, %v12940_v11  ;;  %v12957_v11 = vld [vmem:[#allocation77_spill] sm:$0xff]  ;;  %v12958_v51 = vld [vmem:[#allocation28_spill] sm:$0xff] }
 0xae8   : > { %v11875_v42 = vadd.f32 %v5685_v39, %v1101_v59  ;;  %v5790_v46 = vsel %vm1510_vm1, %v11873_v49, -inf  ;;  %v12944_v39 = vld [vmem:[#allocation75_spill] sm:$0xff] }
 0xae9   : > { %5776 = vmax.xlane.f32.xlu1 %v5775_v23  ;;  %5791 = vmax.xlane.f32.xlu0 %v5790_v46  ;;  %v8108_v58 = vpop.f32.mrf.mxu1 }
 0xaea   : > { %v11881_v47 = vadd.f32 %v8108_v58, %v1104_v18  ;;  %v5784_v15 = vsel %vm1510_vm1, %v11875_v42, -inf  ;;  %v12945_v18 = vld [vmem:[#allocation18_spill] sm:$0xff] }
 0xaeb   : > { %v5688_v17 = vpop.f32.mrf.mxu1  ;;  %v3776_v23 = vadd.f32 %v12945_v18, %v12944_v39  ;;  %v12959_v39 = vld [vmem:[#allocation87_spill] sm:$0xff] }
 0xaec   : > { %v11883_v52 = vadd.f32 %v5688_v17, %v1102_v28  ;;  %v5793_v50 = vsel %vm1510_vm1, %v11881_v47, -inf  ;;  %v12947_v28 = vld [vmem:[#allocation70_spill] sm:$0xff]  ;;  %v12948_v17 = vld [vmem:[#allocation16_spill] sm:$0xff]  ;;  %v12960_v18 = vld [vmem:[#allocation27_spill] sm:$0xff] }
 0xaed   : > { %5794 = vmax.xlane.f32.xlu1 %v5793_v50  ;;  %5785 = vmax.xlane.f32.xlu0 %v5784_v15  ;;  %v3768_v50 = vadd.f32 %v12948_v17, %v12947_v28 }
 0xaee   : > { %v5787_v44 = vsel %vm1510_vm1, %v11883_v52, -inf }
 0xaf1   : > { %5788 = vmax.xlane.f32.xlu1 %v5787_v44 }
 0xb05   : > { %v8015_v8 = vpop.f32.mrf.mxu0 }
 0xb06   : > { %v11892_v60 = vadd.f32 %v8015_v8, %v12934_v9  ;;  %v12950_v8 = vld [vmem:[#allocation83_spill] sm:$0xff] }
 0xb07   : > { %v5121_v57 = vpop.f32.mrf.mxu0  ;;  %v12951_v9 = vld [vmem:[#allocation15_spill] sm:$0xff] }
 0xb08   : > { %v11895_v5 = vadd.f32 %v5121_v57, %v12935_v31  ;;  %v3779_v57 = vadd.f32 %v12951_v9, %v12950_v8 }
 0xb09   : > { %v8016_v26 = vpop.f32.mrf.mxu0 }
 0xb0a   : > { %v11898_v12 = vadd.f32 %v8016_v26, %v12936_v13 }
 0xb0b   : > { %v11900_v54 = vpop.f32.mrf.mxu0 }
 0xb0d   : > { %v8019_v43 = vpop.f32.mrf.mxu0 }
 0xb0e   : > { %v11903_v1 = vadd.f32 %v8019_v43, %v12937_v62  ;;  %v12955_v62 = vld [vmem:[#allocation79_spill] sm:$0xff] }
 0xb0f   : > { %v5137_v38 = vpop.f32.mrf.mxu0 }
 0xb10   : > { %v11906_v56 = vadd.f32 %v5137_v38, %v12938_v24  ;;  %v12956_v38 = vld [vmem:[#allocation24_spill] sm:$0xff] }
 0xb11   : > { %v8020_v41 = vpop.f32.mrf.mxu0  ;;  %v3792_v24 = vadd.f32 %v12956_v38, %v12955_v62 }
 0xb12   : > { %12939 = vst [vmem:[#allocation73_spill] sm:$0xff] %v11906_v56  ;;  %v11911_v53 = vadd.f32 %v8020_v41, %v12942_v45 }
 0xb13   : > { %v5140_v59 = vpop.f32.mrf.mxu0 }
 0xb14   : > { %12943 = vst [vmem:[#allocation19_spill] sm:$0xff] %v11911_v53  ;;  %v11915_v46 = vadd.f32 %v5140_v59, %v3755_v3  ;;  %v3784_v3 = vadd.f32 %v12958_v51, %v12957_v11 }
 0xb15   : > { %v8023_v58 = vpop.f32.mrf.mxu0 }
 0xb16   : > { %12946 = vst [vmem:[#allocation23_spill] sm:$0xff] %v11915_v46  ;;  %v11919_v15 = vadd.f32 %v8023_v58, %v3776_v23  ;;  %v3795_v23 = vadd.f32 %v12960_v18, %v12959_v39 }
 0xb17   : > { %v5153_v44 = vpop.f32.mrf.mxu0 }
 0xb18   : > { %12949 = vst [vmem:[#allocation22_spill] sm:$0xff] %v11919_v15  ;;  %v11923_v31 = vadd.f32 %v5153_v44, %v3768_v50  ;;  %v11941_v50 = vpop.permute.xlu1 %6161 }
 0xb19   : > { %v8024_v26 = vpop.f32.mrf.mxu0 }
 0xb1a   : > { %12952 = vst [vmem:[#allocation29_spill] sm:$0xff] %v11923_v31  ;;  %v11925_v13 = vadd.f32 %v8024_v26, %v3779_v57 }
 0xb1b   : > { %v11927_v43 = vpop.f32.mrf.mxu0 }
 0xb1c   : > { %12953 = vst [vmem:[#allocation26_spill] sm:$0xff] %v11925_v13  ;;  %12954 = vst [vmem:[#allocation35_spill] sm:$0xff] %v11927_v43  ;;  %v11944_v9 = vpop.permute.xlu1 %6157 }
 0xb1d   : > { %v8027_v41 = vpop.f32.mrf.mxu0 }
 0xb1e   : > { %v11933_v45 = vadd.f32 %v8027_v41, %v3792_v24 }
 0xb1f   : > { %v5169_v59 = vpop.f32.mrf.mxu0 }
 0xb20   : > { %v11937_v58 = vadd.f32 %v5169_v59, %v3784_v3 }
 0xb21   : > { %v8028_v28 = vpop.f32.mrf.mxu0 }
 0xb22   : > { %v11939_v17 = vadd.f32 %v8028_v28, %v3795_v23 }
 0xb2a   : > { %v5708_v44 = vpop.xlane.xlu0 %5707 }
 0xb2b   : > { %v5798_v8 = vsub.f32 %v11781_v63, %v5708_v44 }
 0xb2d   : > { %v5832_v57 = vmul.f32 1.442695, %v5798_v8 }
 0xb2e   : > { %v5702_v26 = vpop.xlane.xlu0 %5701 }
 0xb2f   : > { %8806 = vpow2.f32 %v5832_v57  ;;  %v5796_v62 = vsub.f32 %v11783_v32, %v5702_v26 }
 0xb30   : > { %v5705_v38 = vpop.xlane.xlu1 %5704 }
 0xb31   : > { %v5828_v24 = vmul.f32 1.442695, %v5796_v62  ;;  %v5797_v41 = vsub.f32 %v11794_v48, %v5705_v38  ;;  %v11959_v38 = vpop.f32.mrf.mxu0 }
 0xb32   : > { %v5711_v11 = vpop.xlane.xlu0 %5710 }
 0xb33   : > { %8808 = vpow2.f32 %v5828_v24  ;;  %v5799_v51 = vsub.f32 %v11792_v14, %v5711_v11  ;;  %v5830_v3 = vmul.f32 1.442695, %v5797_v41  ;;  %v12961_v24 = vld [vmem:[#allocation84_spill] sm:$0xff]  ;;  %v12962_v41 = vld [vmem:[#allocation31_spill] sm:$0xff] }
 0xb35   : > { %v5834_v59 = vmul.f32 1.442695, %v5799_v51  ;;  %v12963_v51 = vld [vmem:[#allocation82_spill] sm:$0xff] }
 0xb36   : > { %v5723_v39 = vpop.xlane.xlu1 %5722  ;;  %v5720_v18 = vpop.xlane.xlu0 %5719 }
 0xb37   : > { %8810 = vpow2.f32 %v5834_v59  ;;  %v5803_v63 = vsub.f32 %v11805_v2, %v5723_v39  ;;  %v5802_v23 = vsub.f32 %v11800_v16, %v5720_v18 }
 0xb38   : > { %8812 = vpow2.f32 %v5830_v3  ;;  %v12964_v3 = vld [vmem:[#allocation36_spill] sm:$0xff] }
 0xb39   : > { %v5842_v28 = vmul.f32 1.442695, %v5803_v63  ;;  %v5840_v32 = vmul.f32 1.442695, %v5802_v23  ;;  %v3800_v59 = vadd.f32 %v12964_v3, %v12963_v51  ;;  %v12966_v23 = vld [vmem:[#allocation88_spill] sm:$0xff] }
 0xb3a   : > { %v5717_v44 = vpop.xlane.xlu1 %5716  ;;  %v5714_v8 = vpop.xlane.xlu0 %5713 }
 0xb3b   : > { %v5801_v48 = vsub.f32 %v11812_v40, %v5717_v44  ;;  %v5800_v57 = vsub.f32 %v11810_v30, %v5714_v8  ;;  %8814 = vpow2.f32 %v5840_v32  ;;  %v3808_v40 = vadd.f32 %v12962_v41, %v12961_v24  ;;  %v12971_v24 = vld [vmem:[#allocation90_spill] sm:$0xff]  ;;  %v12972_v41 = vld [vmem:[#allocation37_spill] sm:$0xff] }
 0xb3c   : > { %v11953_v26 = vpop.eup %8806  ;;  %8816 = vpow2.f32 %v5842_v28  ;;  %v12967_v28 = vld [vmem:[#allocation25_spill] sm:$0xff] }
 0xb3d   : > { %v5838_v14 = vmul.f32 1.442695, %v5801_v48  ;;  %v5836_v62 = vmul.f32 1.442695, %v5800_v57  ;;  %v5898_v2 = vsel %vm1510_vm1, %v11953_v26, 0.0  ;;  %v3811_v32 = vadd.f32 %v12967_v28, %v12966_v23  ;;  %v12974_v23 = vld [vmem:[#allocation60_spill] sm:$0xff] }
 0xb3e   : > { %5899 = vadd.xlane.f32.xlu0 %v5898_v2 }
 0xb3f   : > { %8818 = vpow2.f32 %v5836_v62 }
 0xb40   : > { %v11957_v16 = vpop.eup %8808  ;;  %8820 = vpow2.f32 %v5838_v14 }
 0xb41   : > { %v5892_v30 = vsel %vm1510_vm1, %v11957_v16, 0.0 }
 0xb42   : > { %v8031_v11 = vpop.f32.mrf.mxu0  ;;  %5893 = vadd.xlane.f32.xlu0 %v5892_v30 }
 0xb43   : > { %v11967_v39 = vadd.f32 %v8031_v11, %v3808_v40  ;;  %v3824_v40 = vadd.f32 %v12972_v41, %v12971_v24  ;;  %v12976_v41 = vld [vmem:[#allocation92_spill] sm:$0xff] }
 0xb44   : > { %v11969_v18 = vpop.eup %8810  ;;  %v5185_v63 = vpop.f32.mrf.mxu0 }
 0xb45   : > { %12965 = vst [vmem:[#allocation30_spill] sm:$0xff] %v11967_v39  ;;  %v11973_v44 = vadd.f32 %v5185_v63, %v3800_v59  ;;  %v5901_v8 = vsel %vm1510_vm1, %v11969_v18, 0.0  ;;  %v11977_v48 = vpop.eup %8812  ;;  %v12973_v63 = vld [vmem:[#allocation91_spill] sm:$0xff] }
 0xb46   : > { %v8032_v57 = vpop.f32.mrf.mxu0  ;;  %5902 = vadd.xlane.f32.xlu1 %v5901_v8  ;;  %v5895_v30 = vsel %vm1510_vm1, %v11977_v48, 0.0  ;;  %v3816_v28 = vadd.f32 %v12974_v23, %v12973_v63 }
 0xb47   : > { %12968 = vst [vmem:[#allocation55_spill] sm:$0xff] %v11973_v44  ;;  %v11979_v14 = vadd.f32 %v8032_v57, %v3811_v32 }
 0xb48   : > { %v11981_v62 = vpop.f32.mrf.mxu0  ;;  %v11983_v2 = vpop.eup %8814 }
 0xb49   : > { %12969 = vst [vmem:[#allocation41_spill] sm:$0xff] %v11979_v14  ;;  %12970 = vst [vmem:[#allocation39_spill] sm:$0xff] %v11981_v62  ;;  %v11989_v11 = vpop.eup %8816  ;;  %v5910_v3 = vsel %vm1510_vm1, %v11983_v2, 0.0  ;;  %v12977_v14 = vld [vmem:[#allocation56_spill] sm:$0xff] }
 0xb4a   : > { %v8035_v51 = vpop.f32.mrf.mxu0  ;;  %5896 = vadd.xlane.f32.xlu1 %v5895_v30  ;;  %v5732_v59 = vpop.xlane.xlu0 %5731  ;;  %5911 = vadd.xlane.f32.xlu0 %v5910_v3  ;;  %v3827_v62 = vadd.f32 %v12977_v14, %v12976_v41  ;;  %v5913_v39 = vsel %vm1510_vm1, %v11989_v11, 0.0 }
 0xb4b   : > { %v11995_v32 = vadd.f32 %v8035_v51, %v3824_v40  ;;  %v5806_v8 = vsub.f32 %v11827_v4, %v5732_v59 }
 0xb4c   : > { %v5201_v57 = vpop.f32.mrf.mxu0  ;;  %v11998_v24 = vpop.eup %8818 }
 0xb4d   : > { %12975 = vst [vmem:[#allocation33_spill] sm:$0xff] %v11995_v32  ;;  %v5848_v44 = vmul.f32 1.442695, %v5806_v8  ;;  %v12002_v30 = vadd.f32 %v5201_v57, %v3816_v28  ;;  %v12006_v13 = vpop.eup %8820  ;;  %v5904_v4 = vsel %vm1510_vm1, %v11998_v24, 0.0  ;;  %v12981_v28 = vld [vmem:[#allocation94_spill] sm:$0xff]  ;;  %v12982_v8 = vld [vmem:[#allocation52_spill] sm:$0xff] }
 0xb4e   : > { %v8036_v63 = vpop.f32.mrf.mxu0  ;;  %v5735_v40 = vpop.xlane.xlu1 %5734  ;;  %5914 = vadd.xlane.f32.xlu1 %v5913_v39  ;;  %5905 = vadd.xlane.f32.xlu0 %v5904_v4  ;;  %v3840_v57 = vadd.f32 %v12982_v8, %v12981_v28  ;;  %v5907_v39 = vsel %vm1510_vm1, %v12006_v13, 0.0  ;;  %v12986_v8 = vld [vmem:[#allocation96_spill] sm:$0xff] }
 0xb4f   : > { %12978 = vst [vmem:[#allocation45_spill] sm:$0xff] %v12002_v30  ;;  %8822 = vpow2.f32 %v5848_v44  ;;  %v12010_v51 = vadd.f32 %v8036_v63, %v3827_v62  ;;  %v5807_v3 = vsub.f32 %v11833_v27, %v5735_v40  ;;  %v5726_v14 = vpop.xlane.xlu0 %5725  ;;  %v12983_v62 = vld [vmem:[#allocation95_spill] sm:$0xff]  ;;  %v12984_v63 = vld [vmem:[#allocation80_spill] sm:$0xff] }
 0xb50   : > { %v5804_v59 = vsub.f32 %v11829_v7, %v5726_v14  ;;  %v12014_v23 = vpop.f32.mrf.mxu0  ;;  %v3832_v27 = vadd.f32 %v12984_v63, %v12983_v62 }
 0xb51   : > { %12979 = vst [vmem:[#allocation44_spill] sm:$0xff] %v12010_v51  ;;  %12980 = vst [vmem:[#allocation47_spill] sm:$0xff] %v12014_v23  ;;  %v5850_v41 = vmul.f32 1.442695, %v5807_v3  ;;  %v12987_v51 = vld [vmem:[#allocation65_spill] sm:$0xff] }
 0xb52   : > { %v5844_v30 = vmul.f32 1.442695, %v5804_v59  ;;  %v8039_v32 = vpop.f32.mrf.mxu0  ;;  %v5729_v44 = vpop.xlane.xlu1 %5728  ;;  %5908 = vadd.xlane.f32.xlu1 %v5907_v39  ;;  %v3843_v23 = vadd.f32 %v12987_v51, %v12986_v8  ;;  %v12997_v8 = vld [vmem:[#allocation62_spill] sm:$0xff] }
 0xb53   : > { %v12022_v40 = vadd.f32 %v8039_v32, %v3840_v57  ;;  %v5805_v7 = vsub.f32 %v11835_v55, %v5729_v44  ;;  %v5744_v4 = vpop.xlane.xlu0 %5743  ;;  %v12991_v57 = vld [vmem:[#allocation98_spill] sm:$0xff]  ;;  %v12992_v44 = vld [vmem:[#allocation76_spill] sm:$0xff] }
 0xb54   : > { %8824 = vpow2.f32 %v5844_v30  ;;  %v5810_v14 = vsub.f32 %v11841_v20, %v5744_v4  ;;  %v5217_v28 = vpop.f32.mrf.mxu0  ;;  %v3856_v51 = vadd.f32 %v12992_v44, %v12991_v57  ;;  %v12993_v4 = vld [vmem:[#allocation99_spill] sm:$0xff]  ;;  %v12999_v57 = vld [vmem:[#allocation101_spill] sm:$0xff]  ;;  %v13000_v44 = vld [vmem:[#allocation78_spill] sm:$0xff] }
 0xb55   : > { %12985 = vst [vmem:[#allocation40_spill] sm:$0xff] %v12022_v40  ;;  %v12028_v3 = vadd.f32 %v5217_v28, %v3832_v27  ;;  %8826 = vpow2.f32 %v5850_v41  ;;  %v5846_v59 = vmul.f32 1.442695, %v5805_v7  ;;  %v12996_v28 = vld [vmem:[#allocation100_spill] sm:$0xff] }
 0xb56   : > { %v5856_v39 = vmul.f32 1.442695, %v5810_v14  ;;  %v8040_v43 = vpop.f32.mrf.mxu0  ;;  %v5747_v31 = vpop.xlane.xlu1 %5746  ;;  %v12994_v14 = vld [vmem:[#allocation63_spill] sm:$0xff] }
 0xb57   : > { %12988 = vst [vmem:[#allocation57_spill] sm:$0xff] %v12028_v3  ;;  %v12030_v62 = vadd.f32 %v8040_v43, %v3843_v23  ;;  %v5811_v32 = vsub.f32 %v11849_v22, %v5747_v31  ;;  %v5738_v55 = vpop.xlane.xlu0 %5737  ;;  %v3848_v43 = vadd.f32 %v12994_v14, %v12993_v4  ;;  %v1065_v3 = vld [vmem:[#allocation7 + $0x2c0] sm:$0xff] }
 0xb58   : > { %8828 = vpow2.f32 %v5856_v39  ;;  %v5808_v30 = vsub.f32 %v11843_v10, %v5738_v55  ;;  %v12034_v20 = vpop.f32.mrf.mxu0  ;;  %v3859_v39 = vadd.f32 %v12997_v8, %v12996_v28 }
 0xb59   : > { %12989 = vst [vmem:[#allocation42_spill] sm:$0xff] %v12030_v62  ;;  %12990 = vst [vmem:[#allocation49_spill] sm:$0xff] %v12034_v20  ;;  %8830 = vpow2.f32 %v5846_v59  ;;  %v5858_v63 = vmul.f32 1.442695, %v5811_v32 }
 0xb5a   : > { %v5852_v41 = vmul.f32 1.442695, %v5808_v30  ;;  %v8043_v27 = vpop.f32.mrf.mxu0  ;;  %v5741_v7 = vpop.xlane.xlu1 %5740 }
 0xb5b   : > { %v12040_v23 = vadd.f32 %v8043_v27, %v3856_v51  ;;  %v5809_v22 = vsub.f32 %v11851_v21, %v5741_v7  ;;  %v3851_v51 = vadd.f32 %v13000_v44, %v12999_v57 }
 0xb5c   : > { %v12043_v31 = vpop.eup %8822  ;;  %8832 = vpow2.f32 %v5852_v41  ;;  %v5233_v10 = vpop.f32.mrf.mxu0 }
 0xb5d   : > { %12995 = vst [vmem:[#allocation50_spill] sm:$0xff] %v12040_v23  ;;  %v5854_v55 = vmul.f32 1.442695, %v5809_v22  ;;  %v12047_v59 = vadd.f32 %v5233_v10, %v3848_v43  ;;  %v5922_v32 = vsel %vm1510_vm1, %v12043_v31, 0.0  ;;  %8834 = vpow2.f32 %v5858_v63 }
 0xb5e   : > { %v8044_v30 = vpop.f32.mrf.mxu0  ;;  %5923 = vadd.xlane.f32.xlu1 %v5922_v32 }
 0xb5f   : > { %12998 = vst [vmem:[#allocation53_spill] sm:$0xff] %v12047_v59  ;;  %8836 = vpow2.f32 %v5854_v55  ;;  %v12053_v21 = vadd.f32 %v8044_v30, %v3859_v39 }
 0xb60   : > { %v5236_v41 = vpop.f32.mrf.mxu0 }
 0xb61   : > { %13001 = vst [vmem:[#allocation74_spill] sm:$0xff] %v12053_v21  ;;  %v12055_v27 = vpop.eup %8824  ;;  %v12057_v7 = vadd.f32 %v5236_v41, %v3851_v51 }
 0xb62   : > { %v5916_v4 = vsel %vm1510_vm1, %v12055_v27, 0.0  ;;  %v12061_v14 = vpop.eup %8826 }
 0xb63   : > { %13002 = vst [vmem:[#allocation58_spill] sm:$0xff] %v12057_v7  ;;  %5917 = vadd.xlane.f32.xlu1 %v5916_v4  ;;  %v5925_v43 = vsel %vm1510_vm1, %v12061_v14, 0.0 }
 0xb65   : > { %v12063_v63 = vpop.eup %8828 }
 0xb66   : > { %v5934_v22 = vsel %vm1510_vm1, %v12063_v63, 0.0  ;;  %v12069_v10 = vpop.eup %8830 }
 0xb67   : > { %5926 = vadd.xlane.f32.xlu1 %v5925_v43  ;;  %5935 = vadd.xlane.f32.xlu0 %v5934_v22  ;;  %v5919_v8 = vsel %vm1510_vm1, %v12069_v10, 0.0  ;;  %v8087_v43 = vpop.f32.mrf.mxu0 }
 0xb69   : > { %v12071_v28 = vpop.eup %8832 }
 0xb6a   : > { %v5928_v39 = vsel %vm1510_vm1, %v12071_v28, 0.0  ;;  %v5780_v55 = vpop.xlane.xlu0 %5779  ;;  %v12077_v32 = vpop.eup %8834 }
 0xb6b   : > { %5920 = vadd.xlane.f32.xlu1 %v5919_v8  ;;  %5929 = vadd.xlane.f32.xlu0 %v5928_v39  ;;  %v5822_v30 = vsub.f32 %v11859_v37, %v5780_v55  ;;  %v5937_v4 = vsel %vm1510_vm1, %v12077_v32, 0.0  ;;  %v5564_v37 = vpop.f32.mrf.mxu0 }
 0xb6c   : > { %v12080_v57 = vpop.eup %8836 }
 0xb6d   : > { %v5880_v44 = vmul.f32 1.442695, %v5822_v30  ;;  %v5931_v51 = vsel %vm1510_vm1, %v12080_v57, 0.0  ;;  %v8088_v21 = vpop.f32.mrf.mxu0 }
 0xb6e   : > { %v5783_v41 = vpop.xlane.xlu1 %5782  ;;  %v5774_v22 = vpop.xlane.xlu0 %5773 }
 0xb6f   : > { %8838 = vpow2.f32 %v5880_v44  ;;  %5932 = vadd.xlane.f32.xlu1 %v5931_v51  ;;  %5938 = vadd.xlane.f32.xlu0 %v5937_v4  ;;  %v5820_v8 = vsub.f32 %v11861_v35, %v5774_v22  ;;  %v5567_v59 = vpop.f32.mrf.mxu0  ;;  %v1068_v51 = vld [vmem:[#allocation7 + $0x2d8] sm:$0xff]  ;;  %v5823_v35 = vsub.f32 %v11865_v29, %v5783_v41  ;;  %v1067_v22 = vld [vmem:[#allocation7 + $0x2d0] sm:$0xff] }
 0xb71   : > { %v5876_v39 = vmul.f32 1.442695, %v5820_v8  ;;  %v8091_v4 = vpop.f32.mrf.mxu0  ;;  %v12095_v8 = vadd.f32 %v8088_v21, %v1068_v51  ;;  %v1072_v21 = vld [vmem:[#allocation7 + $0x2f8] sm:$0xff]  ;;  %v12109_v51 = vadd.f32 %v5564_v37, %v1065_v3  ;;  %v1069_v37 = vld [vmem:[#allocation7 + $0x2e0] sm:$0xff] }
 0xb72   : > { %v5777_v7 = vpop.xlane.xlu1 %5776 }
 0xb73   : > { %v5821_v55 = vsub.f32 %v11867_v6, %v5777_v7  ;;  %8840 = vpow2.f32 %v5876_v39  ;;  %v1066_v7 = vld [vmem:[#allocation7 + $0x2c8] sm:$0xff]  ;;  %v5580_v39 = vpop.f32.mrf.mxu0  ;;  %v5757_v29 = vsel %vm1510_vm1, %v12095_v8, -inf  ;;  %v5748_v3 = vsel %vm1510_vm1, %v12109_v51, -inf }
 0xb74   : > { %v12105_v40 = vadd.f32 %v5567_v59, %v1066_v7 }
 0xb75   : > { %v5878_v30 = vmul.f32 1.442695, %v5821_v55  ;;  %v8092_v41 = vpop.f32.mrf.mxu0 }
 0xb76   : > { %v5751_v59 = vsel %vm1510_vm1, %v12105_v40, -inf }
 0xb77   : > { %8842 = vpow2.f32 %v5878_v30  ;;  %v12101_v30 = vadd.f32 %v8087_v43, %v1067_v22  ;;  %v12113_v22 = vadd.f32 %v8092_v41, %v1072_v21  ;;  %v12125_v21 = vadd.f32 %v5580_v39, %v1069_v37  ;;  %v13003_v39 = vld [vmem:[#allocation72_spill] sm:$0xff] }
 0xb79   : > { %v5754_v43 = vsel %vm1510_vm1, %v12101_v30, -inf }
 0xb7c   : > { %v12088_v23 = vpop.eup %8838 }
 0xb7d   : > { %v5970_v44 = vsel %vm1510_vm1, %v12088_v23, 0.0 }
 0xb7e   : > { %5971 = vadd.xlane.f32.xlu1 %v5970_v44  ;;  %v5882_v44 = vmul.f32 1.442695, %v5823_v35  ;;  %v1071_v35 = vld [vmem:[#allocation7 + $0x2f0] sm:$0xff] }
 0xb7f   : > { %v12117_v7 = vadd.f32 %v8091_v4, %v1071_v35 }
 0xb80   : > { %v12092_v62 = vpop.eup %8840  ;;  %8844 = vpow2.f32 %v5882_v44 }
 0xb81   : > { %v5964_v6 = vsel %vm1510_vm1, %v12092_v62, 0.0  ;;  %v5766_v41 = vsel %vm1510_vm1, %v12117_v7, -inf }
 0xb82   : > { %5965 = vadd.xlane.f32.xlu1 %v5964_v6  ;;  %v1070_v6 = vld [vmem:[#allocation7 + $0x2e8] sm:$0xff] }
 0xb84   : > { %v12099_v55 = vpop.eup %8842 }
 0xb85   : > { %v5967_v20 = vsel %vm1510_vm1, %v12099_v55, 0.0 }
 0xb86   : > { %5968 = vadd.xlane.f32.xlu0 %v5967_v20  ;;  %5758 = vmax.xlane.f32.xlu1 %v5757_v29  ;;  %v5583_v20 = vpop.f32.mrf.mxu0  ;;  %v5769_v29 = vsel %vm1510_vm1, %v12113_v22, -inf }
 0xb87   : > { %v12121_v44 = vadd.f32 %v5583_v20, %v1070_v6  ;;  %v5792_v20 = vpop.xlane.xlu0 %5791 }
 0xb89   : > { %v5763_v4 = vsel %vm1510_vm1, %v12121_v44, -inf }
 0xb8a   : > { %5755 = vmax.xlane.f32.xlu0 %v5754_v43  ;;  %5752 = vmax.xlane.f32.xlu1 %v5751_v59  ;;  %v5760_v43 = vsel %vm1510_vm1, %v12125_v21, -inf }
 0xb8b   : > { %v5786_v6 = vpop.xlane.xlu0 %5785 }
 0xb8c   : > { %v5824_v37 = vsub.f32 %v11875_v42, %v5786_v6 }
 0xb8d   : > { %v12133_v35 = vpop.eup %8844 }
 0xb8e   : > { %5749 = vmax.xlane.f32.xlu0 %v5748_v3  ;;  %5770 = vmax.xlane.f32.xlu1 %v5769_v29  ;;  %v5973_v59 = vsel %vm1510_vm1, %v12133_v35, 0.0  ;;  %v5795_v3 = vpop.xlane.xlu1 %5794  ;;  %v13004_v29 = vld [vmem:[#allocation32_spill] sm:$0xff] }
 0xb92   : > { %5767 = vmax.xlane.f32.xlu0 %v5766_v41  ;;  %5764 = vmax.xlane.f32.xlu1 %v5763_v4  ;;  %v5826_v41 = vsub.f32 %v11873_v49, %v5792_v20  ;;  %v5884_v4 = vmul.f32 1.442695, %v5824_v37  ;;  %v5789_v15 = vpop.xlane.xlu1 %5788 }
 0xb94   : > { %v5888_v46 = vmul.f32 1.442695, %v5826_v41  ;;  %8846 = vpow2.f32 %v5884_v4 }
 0xb96   : > { %5761 = vmax.xlane.f32.xlu0 %v5760_v43  ;;  %v5825_v43 = vsub.f32 %v11883_v52, %v5789_v15  ;;  %8848 = vpow2.f32 %v5888_v46 }
 0xb98   : > { %v5886_v53 = vmul.f32 1.442695, %v5825_v43 }
 0xb9a   : > { %5974 = vadd.xlane.f32.xlu0 %v5973_v59  ;;  %v5827_v59 = vsub.f32 %v11881_v47, %v5795_v3  ;;  %8850 = vpow2.f32 %v5886_v53 }
 0xba1   : > { %v12145_v56 = vpop.eup %8846 }
 0xba2   : > { %v5976_v42 = vsel %vm1510_vm1, %v12145_v56, 0.0 }
 0xba3   : > { %6250 = vrot.lane.b32.xlu1 %v13003_v39, %s9127_s12  ;;  %v5890_v39 = vmul.f32 1.442695, %v5827_v59  ;;  %v12149_v6 = vpop.eup %8848 }
 0xba4   : > { %v5982_v52 = vsel %vm1510_vm1, %v12149_v6, 0.0 }
 0xba5   : > { %8852 = vpow2.f32 %v5890_v39 }
 0xba7   : > { %v12151_v20 = vpop.eup %8850 }
 0xba8   : > { %v5979_v47 = vsel %vm1510_vm1, %v12151_v20, 0.0 }
 0xbb0   : > { %6248 = vrot.lane.b32.xlu0 %v13004_v29, %s9127_s12 }
 0xbb2   : > { %v12157_v53 = vpop.eup %8852 }
 0xbb3   : > { %v5985_v3 = vsel %vm1510_vm1, %v12157_v53, 0.0 }
 0xbc7   : > { %5977 = vadd.xlane.f32.xlu1 %v5976_v42  ;;  %v5900_v49 = vpop.xlane.xlu0 %5899 }
 0xbcb   : > { %5983 = vadd.xlane.f32.xlu1 %v5982_v52  ;;  %v5894_v46 = vpop.xlane.xlu0 %5893 }
 0xbcf   : > { %v5903_v15 = vpop.xlane.xlu1 %5902  ;;  %5980 = vadd.xlane.f32.xlu0 %v5979_v47 }
 0xbd0   : > { %8854 = vrcp.f32 %v5903_v15 }
 0xbd1   : > { %8856 = vrcp.f32 %v5894_v46 }
 0xbd2   : > { %8858 = vrcp.f32 %v5900_v49 }
 0xbd3   : > { %v5897_v37 = vpop.xlane.xlu1 %5896  ;;  %5986 = vadd.xlane.f32.xlu0 %v5985_v3  ;;  %v5912_v29 = vpop.xlane.xlu0 %5911 }
 0xbd4   : > { %8860 = vrcp.f32 %v5897_v37 }
 0xbd7   : > { %v5915_v41 = vpop.xlane.xlu1 %5914  ;;  %v5906_v4 = vpop.xlane.xlu0 %5905 }
 0xbd8   : > { %8862 = vrcp.f32 %v5915_v41 }
 0xbd9   : > { %8864 = vrcp.f32 %v5906_v4 }
 0xbda   : > { %8866 = vrcp.f32 %v5912_v29 }
 0xbdb   : > { %v5909_v43 = vpop.xlane.xlu1 %5908 }
 0xbdc   : > { %8868 = vrcp.f32 %v5909_v43  ;;  %6246 = vrot.lane.b32.xlu1 %v12903_v61, %s9127_s12 }
 0xbdd   : > { %v8855_v59 = vpop.eup %8854 }
 0xbde   : > { %v8857_v39 = vpop.eup %8856  ;;  %v6023_v49 = vmul.f32 %v8855_v59, %v11969_v18 }
 0xbdf   : > { %v8859_v42 = vpop.eup %8858  ;;  %v6020_v47 = vmul.f32 %v8857_v39, %v11957_v16 }
 0xbe0   : > { %v6022_v15 = vmul.f32 %v8859_v42, %v11953_v26 }
 0xbe1   : > { %v8861_v52 = vpop.eup %8860 }
 0xbe2   : > { %v6021_v46 = vmul.f32 %v8861_v52, %v11977_v48  ;;  %v6053_v37 = vpack.c.bf16 %v6023_v49, %v6022_v15 }
 0xbe4   : > { %v6052_v3 = vpack.c.bf16 %v6021_v46, %v6020_v47 }
 0xbe5   : > { %v8863_v29 = vpop.eup %8862 }
 0xbe6   : > { %8117 = vmatprep.mubr.msk.bf16.mxu0 %vm1510_vm1, %v6052_v3  ;;  %v8865_v41 = vpop.eup %8864  ;;  %v6027_v16 = vmul.f32 %v8863_v29, %v11989_v11 }
 0xbe7   : > { %v5924_v4 = vpop.xlane.xlu1 %5923  ;;  %8118 = vmatmul.mubr.msk.bf16.vlgmr.msra.gmra.mxu0 %vm1510_vm1, %v6053_v37  ;;  %v8867_v61 = vpop.eup %8866  ;;  %v6024_v18 = vmul.f32 %v8865_v41, %v11998_v24 }
 0xbe8   : > { %8126 = vmatpush3.bf16.msra.mxu0 %v11819_v0  ;;  %v6026_v48 = vmul.f32 %v8867_v61, %v11983_v2 }
 0xbe9   : > { %v8869_v43 = vpop.eup %8868  ;;  %8127 = vmatprep.subr.bf16.mxu0 %v11941_v50 }
 0xbea   : > { %v6025_v26 = vmul.f32 %v8869_v43, %v12006_v13  ;;  %v6055_v42 = vpack.c.bf16 %v6027_v16, %v6026_v48 }
 0xbec   : > { %v5918_v59 = vpop.xlane.xlu1 %5917  ;;  %8128 = vmatpush3.bf16.msra.mxu0 %v11941_v50  ;;  %v6054_v39 = vpack.c.bf16 %v6025_v26, %v6024_v18 }
 0xbed   : > { %8129 = vmatprep.subr.bf16.mxu0 %v11742_v34 }
 0xbee   : > { %8121 = vmatprep.mubr.msk.bf16.mxu0 %vm1510_vm1, %v6054_v39 }
 0xbef   : > { %8122 = vmatmul.mubr.msk.bf16.gmra.mxu0 %vm1510_vm1, %v6055_v42 }
 0xbf0   : > { %v5927_v0 = vpop.xlane.xlu1 %5926  ;;  %8130 = vmatpush3.bf16.msra.mxu0 %v11742_v34  ;;  %v5936_v11 = vpop.xlane.xlu0 %5935 }
 0xbf1   : > { %8131 = vmatprep.subr.bf16.mxu0 %v11944_v9  ;;  %8870 = vrcp.f32 %v5927_v0 }
 0xbf2   : > { %8872 = vrcp.f32 %v5918_v59 }
 0xbf3   : > { %8874 = vrcp.f32 %v5924_v4 }
 0xbf4   : > { %v5921_v13 = vpop.xlane.xlu1 %5920  ;;  %8132 = vmatpush3.bf16.msra.mxu0 %v11944_v9  ;;  %v5930_v50 = vpop.xlane.xlu0 %5929 }
 0xbf5   : > { %8876 = vrcp.f32 %v5921_v13 }
 0xbf6   : > { %8878 = vrcp.f32 %v5930_v50 }
 0xbf8   : > { %v5933_v2 = vpop.xlane.xlu1 %5932  ;;  %v5939_v24 = vpop.xlane.xlu0 %5938 }
 0xbf9   : > { %8880 = vrcp.f32 %v5933_v2 }
 0xbfa   : > { %8882 = vrcp.f32 %v5939_v24 }
 0xbfb   : > { %8884 = vrcp.f32 %v5936_v11 }
 0xbfe   : > { %v8871_v52 = vpop.eup %8870 }
 0xbff   : > { %v8873_v49 = vpop.eup %8872  ;;  %v6031_v46 = vmul.f32 %v8871_v52, %v12061_v14 }
 0xc00   : > { %v8875_v34 = vpop.eup %8874  ;;  %v6028_v15 = vmul.f32 %v8873_v49, %v12055_v27 }
 0xc01   : > { %v6030_v9 = vmul.f32 %v8875_v34, %v12043_v31 }
 0xc02   : > { %v8877_v47 = vpop.eup %8876 }
 0xc03   : > { %v6029_v3 = vmul.f32 %v8877_v47, %v12069_v10  ;;  %v8879_v37 = vpop.eup %8878  ;;  %v6057_v4 = vpack.c.bf16 %v6031_v46, %v6030_v9 }
 0xc04   : > { %v6032_v16 = vmul.f32 %v8879_v37, %v12071_v28 }
 0xc05   : > { %v6056_v29 = vpack.c.bf16 %v6029_v3, %v6028_v15 }
 0xc06   : > { %v8881_v41 = vpop.eup %8880 }
 0xc07   : > { %v8883_v61 = vpop.eup %8882  ;;  %8133 = vmatprep.mubr.msk.bf16.mxu0 %vm1510_vm1, %v6056_v29  ;;  %v5972_v43 = vpop.xlane.xlu1 %5971  ;;  %v6033_v18 = vmul.f32 %v8881_v41, %v12080_v57 }
 0xc08   : > { %8134 = vmatmul.mubr.msk.bf16.vlgmr.msra.gmra.mxu0 %vm1510_vm1, %v6057_v4  ;;  %v8885_v14 = vpop.eup %8884  ;;  %v6035_v10 = vmul.f32 %v8883_v61, %v12077_v32 }
 0xc09   : > { %v6058_v27 = vpack.c.bf16 %v6033_v18, %v6032_v16  ;;  %v6034_v26 = vmul.f32 %v8885_v14, %v12063_v63 }
 0xc0b   : > { %8137 = vmatprep.mubr.msk.bf16.mxu0 %vm1510_vm1, %v6058_v27  ;;  %v5966_v31 = vpop.xlane.xlu1 %5965  ;;  %v6059_v48 = vpack.c.bf16 %v6035_v10, %v6034_v26 }
 0xc0c   : > { %8886 = vrcp.f32 %v5966_v31 }
 0xc0f   : > { %v5969_v59 = vpop.xlane.xlu0 %5968  ;;  %v5759_v39 = vpop.xlane.xlu1 %5758 }
 0xc10   : > { %8138 = vmatmul.mubr.msk.bf16.gmra.mxu0 %vm1510_vm1, %v6059_v48  ;;  %8888 = vrcp.f32 %v5969_v59  ;;  %v5815_v28 = vsub.f32 %v12095_v8, %v5759_v39 }
 0xc12   : > { %v5866_v11 = vmul.f32 1.442695, %v5815_v28 }
 0xc13   : > { %v5756_v57 = vpop.xlane.xlu0 %5755  ;;  %v5753_v42 = vpop.xlane.xlu1 %5752 }
 0xc14   : > { %v5814_v0 = vsub.f32 %v12101_v30, %v5756_v57  ;;  %v5813_v32 = vsub.f32 %v12105_v40, %v5753_v42 }
 0xc16   : > { %v5864_v13 = vmul.f32 1.442695, %v5814_v0  ;;  %v5862_v24 = vmul.f32 1.442695, %v5813_v32 }
 0xc17   : > { %v5750_v50 = vpop.xlane.xlu0 %5749  ;;  %v5771_v63 = vpop.xlane.xlu1 %5770 }
 0xc18   : > { %8890 = vpow2.f32 %v5864_v13  ;;  %v5812_v2 = vsub.f32 %v12109_v51, %v5750_v50  ;;  %v5819_v52 = vsub.f32 %v12113_v22, %v5771_v63  ;;  %v12253_v50 = vld [vmem:[#allocation8 + $0x38] sm:$0xff]  }
 0xc19   : > { %8892 = vpow2.f32 %v5866_v11  ;;  %v8887_v34 = vpop.eup %8886 }
 0xc1a   : > { %v5860_v49 = vmul.f32 1.442695, %v5812_v2  ;;  %v5874_v40 = vmul.f32 1.442695, %v5819_v52  ;;  %v6044_v37 = vmul.f32 %v8887_v34, %v12092_v62 }
 0xc1b   : > { %v5768_v8 = vpop.xlane.xlu0 %5767  ;;  %v5765_v47 = vpop.xlane.xlu1 %5764 }
 0xc1c   : > { %8894 = vpow2.f32 %v5860_v49  ;;  %v5818_v30 = vsub.f32 %v12117_v7, %v5768_v8  ;;  %v5817_v15 = vsub.f32 %v12121_v44, %v5765_v47 }
 0xc1d   : > { %v8889_v46 = vpop.eup %8888  ;;  %8896 = vpow2.f32 %v5862_v24 }
 0xc1e   : > { %v5872_v3 = vmul.f32 1.442695, %v5818_v30  ;;  %v6045_v51 = vmul.f32 %v8889_v46, %v12099_v55  ;;  %v5870_v4 = vmul.f32 1.442695, %v5817_v15 }
 0xc1f   : > { %v5762_v9 = vpop.xlane.xlu0 %5761  ;;  %v6251_v22 = vpop.permute.xlu1 %6250 }
 0xc20   : > { %8898 = vpow2.f32 %v5872_v3  ;;  %v5816_v29 = vsub.f32 %v12125_v21, %v5762_v9  ;;  %v6064_v41 = vpack.c.bf16 %v6045_v51, %v6044_v37  ;;  %8143 = vmatprep.subr.bf16.mxu1 %v6251_v22 }
 0xc21   : > { %8900 = vpow2.f32 %v5874_v40  ;;  %8144 = vmatpush3.bf16.msra.mxu1 %v6251_v22 }
 0xc22   : > { %v5868_v7 = vmul.f32 1.442695, %v5816_v29  ;;  %8165 = vmatprep.mubr.msk.bf16.mxu0 %vm1510_vm1, %v6064_v41  ;;  %8902 = vrcp.f32 %v5972_v43 }
 0xc23   : > { %v5975_v44 = vpop.xlane.xlu0 %5974 }
 0xc24   : > { %8904 = vpow2.f32 %v5868_v7 }
 0xc25   : > { %v12205_v61 = vpop.eup %8890  ;;  %8906 = vrcp.f32 %v5975_v44 }
 0xc26   : > { %8908 = vpow2.f32 %v5870_v4  ;;  %v5946_v62 = vsel %vm1510_vm1, %v12205_v61, 0.0  ;;  %v12209_v55 = vpop.eup %8892 }
 0xc27   : > { %5947 = vadd.xlane.f32.xlu0 %v5946_v62  ;;  %v6249_v21 = vpop.permute.xlu0 %6248  ;;  %v5949_v43 = vsel %vm1510_vm1, %v12209_v55, 0.0 }
 0xc28   : > { %8145 = vmatprep.subr.bf16.mxu1 %v6249_v21 }
 0xc29   : > { %v12211_v16 = vpop.eup %8894  ;;  %8146 = vmatpush3.bf16.msra.mxu1 %v6249_v21 }
 0xc2a   : > { %v12213_v18 = vpop.eup %8896  ;;  %v5940_v14 = vsel %vm1510_vm1, %v12211_v16, 0.0 }
 0xc2b   : > { %5950 = vadd.xlane.f32.xlu0 %v5949_v43  ;;  %5941 = vadd.xlane.f32.xlu1 %v5940_v14  ;;  %v5943_v10 = vsel %vm1510_vm1, %v12213_v18, 0.0 }
 0xc2d   : > { %v12219_v27 = vpop.eup %8898 }
 0xc2e   : > { %v5958_v31 = vsel %vm1510_vm1, %v12219_v27, 0.0  ;;  %v12225_v26 = vpop.eup %8900 }
 0xc2f   : > { %5944 = vadd.xlane.f32.xlu0 %v5943_v10  ;;  %5959 = vadd.xlane.f32.xlu1 %v5958_v31  ;;  %v8903_v48 = vpop.eup %8902  ;;  %v5961_v28 = vsel %vm1510_vm1, %v12225_v26, 0.0 }
 0xc30   : > { %v12236_v0 = vmul.f32 %v8903_v48, %v12088_v23 }
 0xc31   : > { %v12227_v59 = vpop.eup %8904 }
 0xc32   : > { %v8907_v39 = vpop.eup %8906  ;;  %v5952_v57 = vsel %vm1510_vm1, %v12227_v59, 0.0 }
 0xc33   : > { %v12233_v42 = vpop.eup %8908  ;;  %v12239_v32 = vmul.f32 %v8907_v39, %v12133_v35  ;;  %5962 = vadd.xlane.f32.xlu0 %v5961_v28  ;;  %5953 = vadd.xlane.f32.xlu1 %v5952_v57 }
 0xc34   : > { %v5955_v13 = vsel %vm1510_vm1, %v12233_v42, 0.0 }
 0xc35   : > { %v6065_v11 = vpack.c.bf16 %v12239_v32, %v12236_v0 }
 0xc37   : > { %5956 = vadd.xlane.f32.xlu0 %v5955_v13 }
 0xc44   : > { %6339 = vrot.lane.b32.xlu1 %v10217_v33, %s9127_s12 }
 0xc48   : > { %6337 = vrot.lane.b32.xlu1 %v12711_v19, %s9127_s12 }
 0xc4c   : > { %6335 = vrot.lane.b32.xlu1 %v10241_v36, %s9127_s12 }
 0xc4d   : > { %6341 = vrot.lane.b32.xlu0 %v12705_v25, %s9127_s12 }
 0xc50   : > { %v5978_v23 = vpop.xlane.xlu1 %5977 }
 0xc54   : > { %v5984_v35 = vpop.xlane.xlu1 %5983 }
 0xc58   : > { %v6247_v63 = vpop.permute.xlu1 %6246  ;;  %v5981_v2 = vpop.xlane.xlu0 %5980 }
 0xc59   : > { %8147 = vmatprep.subr.bf16.mxu1 %v6247_v63 }
 0xc5a   : > { %8148 = vmatpush3.bf16.msra.mxu1 %v6247_v63 }
 0xc5b   : > { %8209 = vmatprep.subr.bf16.mxu1 %v12253_v50 }
 0xc5c   : > { %v5987_v24 = vpop.xlane.xlu0 %5986 }
 0xca7   : > { %v12256_v33 = vpop.f32.mrf.mxu0 }
 0xca9   : > { %v12258_v19 = vpop.f32.mrf.mxu0 }
 0xcab   : > { %v12260_v36 = vpop.f32.mrf.mxu0 }
 0xcad   : > { %v12262_v34 = vpop.f32.mrf.mxu0 }
 0xcae   : > { %v6424_v0 = vpack.c.bf16 %v12262_v34, %v12258_v19 }
 0xcaf   : > { %v12264_v30 = vpop.f32.mrf.mxu0 }
 0xcb0   : > { %v5948_v52 = vpop.xlane.xlu0 %5947 }
 0xcb1   : > { %v12266_v15 = vpop.f32.mrf.mxu0 }
 0xcb3   : > { %v12268_v37 = vpop.f32.mrf.mxu0 }
 0xcb4   : > { %v5942_v49 = vpop.xlane.xlu1 %5941  ;;  %v5951_v25 = vpop.xlane.xlu0 %5950 }
 0xcb5   : > { %8910 = vrcp.f32 %v5951_v25  ;;  %v12270_v4 = vpop.f32.mrf.mxu0 }
 0xcb6   : > { %8912 = vrcp.f32 %v5942_v49  ;;  %v6426_v32 = vpack.c.bf16 %v12270_v4, %v12266_v15 }
 0xcb7   : > { %8914 = vrcp.f32 %v5948_v52 }
 0xcb8   : > { %v5960_v8 = vpop.xlane.xlu1 %5959  ;;  %v5945_v47 = vpop.xlane.xlu0 %5944 }
 0xcb9   : > { %8916 = vrcp.f32 %v5945_v47 }
 0xcba   : > { %8918 = vrcp.f32 %v5981_v2 }
 0xcbc   : > { %v5954_v46 = vpop.xlane.xlu1 %5953  ;;  %v5963_v40 = vpop.xlane.xlu0 %5962 }
 0xcbd   : > { %8920 = vrcp.f32 %v5954_v46 }
 0xcbe   : > { %8922 = vrcp.f32 %v5963_v40 }
 0xcbf   : > { %8924 = vrcp.f32 %v5960_v8 }
 0xcc0   : > { %v5957_v3 = vpop.xlane.xlu0 %5956  ;;  %v6340_v51 = vpop.permute.xlu1 %6339 }
 0xcc1   : > { %8926 = vrcp.f32 %v5957_v3 }
 0xcc2   : > { %8928 = vrcp.f32 %v5978_v23  ;;  %v8911_v9 = vpop.eup %8910 }
 0xcc3   : > { %v8913_v29 = vpop.eup %8912  ;;  %8930 = vrcp.f32 %v5987_v24  ;;  %v6039_v44 = vmul.f32 %v8911_v9, %v12209_v55  ;;  %v8421_v55 = vld [vmem:[#allocation8 + $0x30] sm:$0xff]  }
 0xcc4   : > { %v6342_v22 = vpop.permute.xlu0 %6341  ;;  %v8915_v41 = vpop.eup %8914  ;;  %v6036_v43 = vmul.f32 %v8913_v29, %v12211_v16  ;;  %8932 = vrcp.f32 %v5984_v35 }
 0xcc5   : > { %8157 = vmatprep.subr.bf16.mxu0 %v6342_v22  ;;  %v6338_v62 = vpop.permute.xlu1 %6337  ;;  %v6038_v10 = vmul.f32 %v8915_v41, %v12205_v61 }
 0xcc6   : > { %8158 = vmatpush3.bf16.msra.mxu0 %v6342_v22  ;;  %v8917_v7 = vpop.eup %8916 }
 0xcc7   : > { %8159 = vmatprep.subr.bf16.mxu0 %v6340_v51  ;;  %v6037_v14 = vmul.f32 %v8917_v7, %v12213_v18  ;;  %v8919_v31 = vpop.eup %8918  ;;  %v6061_v57 = vpack.c.bf16 %v6039_v44, %v6038_v10 }
 0xcc8   : > { %v12273_v21 = vpop.f32.mrf.mxu0  ;;  %v6049_v25 = vmul.f32 %v8919_v31, %v12151_v20 }
 0xcc9   : > { %v6060_v39 = vpack.c.bf16 %v6037_v14, %v6036_v43  ;;  %v6336_v18 = vpop.permute.xlu1 %6335 }
 0xcca   : > { %v12278_v48 = vpop.f32.mrf.mxu0  ;;  %8160 = vmatpush3.bf16.msra.mxu0 %v6340_v51  ;;  %v8921_v28 = vpop.eup %8920 }
 0xccb   : > { %8161 = vmatprep.subr.bf16.mxu0 %v6338_v62  ;;  %v8923_v13 = vpop.eup %8922  ;;  %8149 = vmatprep.mubr.msk.bf16.mxu1 %vm1510_vm1, %v6060_v39  ;;  %v6040_v2 = vmul.f32 %v8921_v28, %v12227_v59  ;;  %v12325_v39 = vld [vmem:[%s12498_s5] ss:$0 sm:$0xff] }
 0xccc   : > { %v8136_v23 = vpop.f32.mrf.mxu0  ;;  %v8925_v63 = vpop.eup %8924  ;;  %8150 = vmatmul.mubr.msk.bf16.vlgmr.msra.gmra.mxu1 %vm1510_vm1, %v6061_v57  ;;  %v6043_v52 = vmul.f32 %v8923_v13, %v12225_v26 }
 0xccd   : > { %8211 = vmatpush3.bf16.msra.mxu1 %v12253_v50  ;;  %v6042_v47 = vmul.f32 %v8925_v63, %v12219_v27  ;;  %v13006_v63 = vld [vmem:[#allocation34_spill] sm:$0xff] }
 0xcce   : > { %v8927_v16 = vpop.eup %8926  ;;  %v6218_v35 = vpop.f32.mrf.mxu0  ;;  %8162 = vmatpush3.bf16.msra.mxu0 %v6338_v62  ;;  %8210 = vmatprep.subr.bf16.mxu1 %v8421_v55 }
 0xccf   : > { %v8929_v61 = vpop.eup %8928  ;;  %8163 = vmatprep.subr.bf16.mxu0 %v6336_v18  ;;  %v6041_v24 = vmul.f32 %v8927_v16, %v12233_v42  ;;  %v6063_v3 = vpack.c.bf16 %v6043_v52, %v6042_v47 }
 0xcd0   : > { %v8139_v49 = vpop.f32.mrf.mxu0  ;;  %v6048_v40 = vmul.f32 %v8929_v61, %v12145_v56  ;;  %v8931_v59 = vpop.eup %8930 }
 0xcd1   : > { %v6062_v8 = vpack.c.bf16 %v6041_v24, %v6040_v2  ;;  %8212 = vmatpush3.bf16.msra.mxu1 %v8421_v55  ;;  %v8933_v20 = vpop.eup %8932  ;;  %v6051_v51 = vmul.f32 %v8931_v59, %v12157_v53  ;;  %v6425_v53 = vpack.c.bf16 %v12260_v36, %v12256_v33 }
 0xcd2   : > { %v6231_v46 = vpop.f32.mrf.mxu0  ;;  %8164 = vmatpush3.bf16.msra.mxu0 %v6336_v18  ;;  %v6066_v26 = vpack.c.bf16 %v6049_v25, %v6048_v40  ;;  %v6050_v9 = vmul.f32 %v8933_v20, %v12149_v6  ;;  %v6427_v6 = vpack.c.bf16 %v12268_v37, %v12264_v30 }
 0xcd3   : > { %8153 = vmatprep.mubr.msk.bf16.mxu1 %vm1510_vm1, %v6062_v8  ;;  %8173 = vmatprep.subr.bf16.mxu0 %v12253_v50 }
 0xcd4   : > { %v8140_v42 = vpop.f32.mrf.mxu0  ;;  %8154 = vmatmul.mubr.msk.bf16.gmra.mxu1 %vm1510_vm1, %v6063_v3  ;;  %v6067_v29 = vpack.c.bf16 %v6051_v51, %v6050_v9 }
 0xcd5   : > { %8166 = vmatmul.mubr.msk.bf16.vlgmr.msra.gmra.mxu0 %vm1510_vm1, %v6065_v11  ;;  %v6431_v22 = vpack.c.bf16 %v8140_v42, %v8139_v49  ;;  %v6428_v11 = vpack.c.bf16 %v6218_v35, %v12278_v48  ;;  %v13008_v42 = vld [vmem:[#allocation17_spill] sm:$0xff] }
 0xcd6   : > { %v6234_v27 = vpop.f32.mrf.mxu0  ;;  %8169 = vmatprep.mubr.msk.bf16.mxu0 %vm1510_vm1, %v6066_v26  ;;  %8174 = vmatpush3.bf16.msra.mxu0 %v12253_v50  ;;  %v6429_v50 = vpack.c.bf16 %v8136_v23, %v12273_v21  ;;  %v13005_v23 = vld [vmem:[#allocation89_spill] sm:$0xff] }
 0xcd7   : > { %v6430_v56 = vpack.c.bf16 %v6234_v27, %v6231_v46  ;;  %8175 = vmatprep.subr.bf16.mxu0 %v8421_v55  ;;  %v3787_v16 = vadd.f32 %v13006_v63, %v13005_v23  ;;  %v13017_v23 = vld [vmem:[#allocation26_spill] sm:$0xff] }
 0xcd9   : > { %8189 = vmatprep.mubr.msk.bf16.mxu1 %vm1153_vm0, %v6430_v56  ;;  %v5261_v24 = vadd.f32 %v11959_v38, %v3787_v16 }
 0xcda   : > { %8176 = vmatpush3.bf16.msra.mxu0 %v8421_v55 }
 0xcdc   : > { %8190 = vmatmul.mubr.msk.bf16.vlgmr.msra.gmra.mxu1 %vm1153_vm0, %v6431_v22 }
 0xcdd   : > { %8170 = vmatmul.mubr.msk.bf16.gmra.mxu0 %vm1510_vm1, %v6067_v29 }
 0xcde   : > { %8177 = vmatprep.mubr.msk.bf16.mxu0 %vm1153_vm0, %v6424_v0 }
 0xce5   : > { %8178 = vmatmul.mubr.msk.bf16.vlgmr.msra.gmra.mxu0 %vm1153_vm0, %v6425_v53 }
 0xce6   : > { %8181 = vmatprep.mubr.msk.bf16.mxu0 %vm1153_vm0, %v6426_v32 }
 0xced   : > { %8182 = vmatmul.mubr.msk.bf16.gmra.mxu0 %vm1153_vm0, %v6427_v6 }
 0xcee   : > { %8185 = vmatprep.mubr.msk.bf16.mxu0 %vm1153_vm0, %v6428_v11  ;;  %v13009_v11 = vld [vmem:[#allocation73_spill] sm:$0xff] }
 0xcf5   : > { %8186 = vmatmul.mubr.msk.bf16.gmra.mxu0 %vm1153_vm0, %v6429_v50 }
 0xd8c   : > { %v8151_v33 = vpop.f32.mrf.mxu1 }
 0xd8e   : > { %v6304_v19 = vpop.f32.mrf.mxu1 }
 0xd90   : > { %v8152_v36 = vpop.f32.mrf.mxu1 }
 0xd91   : > { %v6433_v41 = vpack.c.bf16 %v8152_v36, %v8151_v33  ;;  %v13010_v36 = vld [vmem:[#allocation19_spill] sm:$0xff] }
 0xd92   : > { %v6307_v34 = vpop.f32.mrf.mxu1 }
 0xd93   : > { %v6432_v15 = vpack.c.bf16 %v6307_v34, %v6304_v19 }
 0xd94   : > { %v8155_v4 = vpop.f32.mrf.mxu1 }
 0xd95   : > { %v8167_v7 = vpop.f32.mrf.mxu0  ;;  %8193 = vmatprep.mubr.msk.bf16.mxu1 %vm1153_vm0, %v6432_v15 }
 0xd96   : > { %v6320_v30 = vpop.f32.mrf.mxu1  ;;  %8194 = vmatmul.mubr.msk.bf16.gmra.mxu1 %vm1153_vm0, %v6433_v41  ;;  %v13011_v41 = vld [vmem:[#allocation23_spill] sm:$0xff] }
 0xd97   : > { %v6393_v37 = vpop.f32.mrf.mxu0 }
 0xd98   : > { %v8156_v44 = vpop.f32.mrf.mxu1 }
 0xd99   : > { %v8168_v62 = vpop.f32.mrf.mxu0  ;;  %v6435_v31 = vpack.c.bf16 %v8156_v44, %v8155_v4 }
 0xd9a   : > { %v6323_v21 = vpop.f32.mrf.mxu1  ;;  %v6437_v38 = vpack.c.bf16 %v8168_v62, %v8167_v7 }
 0xd9b   : > { %v6396_v43 = vpop.f32.mrf.mxu0  ;;  %v6434_v14 = vpack.c.bf16 %v6323_v21, %v6320_v30  ;;  %v13013_v21 = vld [vmem:[#allocation85_spill] sm:$0xff] }
 0xd9c   : > { %v6436_v10 = vpack.c.bf16 %v6396_v43, %v6393_v37  ;;  %v8191_v48 = vpop.f32.mrf.mxu1  ;;  %v13012_v37 = vld [vmem:[#allocation22_spill] sm:$0xff]  ;;  %v13014_v43 = vld [vmem:[#allocation21_spill] sm:$0xff] }
 0xd9d   : > { %v8171_v28 = vpop.f32.mrf.mxu0  ;;  %v6680_v57 = vadd.f32 %v8191_v48, %v11933_v45  ;;  %8197 = vmatprep.mubr.msk.bf16.mxu1 %vm1153_vm0, %v6434_v14  ;;  %v3771_v14 = vadd.f32 %v13014_v43, %v13013_v21  ;;  %v13033_v43 = vld [vmem:[#allocation57_spill] sm:$0xff] }
 0xd9e   : > { %v6587_v55 = vpop.f32.mrf.mxu1  ;;  %8198 = vmatmul.mubr.msk.bf16.gmra.mxu1 %vm1153_vm0, %v6435_v31  ;;  %v13015_v31 = vld [vmem:[#allocation29_spill] sm:$0xff] }
 0xd9f   : > { %v6409_v13 = vpop.f32.mrf.mxu0  ;;  %v6719_v18 = vadd.f32 %v12325_v39, %v6680_v57  ;;  %v6678_v35 = vadd.f32 %v6587_v55, %v11937_v58  ;;  %8201 = vmatprep.mubr.msk.bf16.mxu1 %vm1153_vm0, %v6436_v10  ;;  %v13016_v57 = vld [vmem:[#allocation35_spill] sm:$0xff] }
 0xda0   : > { %v8192_v61 = vpop.f32.mrf.mxu1  ;;  %v5257_v55 = vadd.f32 %v13016_v57, %v3771_v14  ;;  %v13035_v57 = vld [vmem:[#allocation42_spill] sm:$0xff] }
 0xda1   : > { %v8172_v2 = vpop.f32.mrf.mxu0  ;;  %6751 = vst [vmem:[%s12336_s18 + $0x70] sm:$0xff] %v6719_v18  ;;  %v6717_v45 = vadd.f32 %v12325_v39, %v6678_v35  ;;  %v6681_v52 = vadd.f32 %v8192_v61, %v11939_v17  ;;  %v13007_v17 = vld [vmem:[#allocation66_spill] sm:$0xff] }
 0xda2   : > { %v6590_v49 = vpop.f32.mrf.mxu1  ;;  %v3739_v26 = vadd.f32 %v13008_v42, %v13007_v17  ;;  %v6439_v53 = vpack.c.bf16 %v8172_v2, %v8171_v28  ;;  %v13023_v17 = vld [vmem:[#allocation41_spill] sm:$0xff] }
 0xda3   : > { %v6412_v25 = vpop.f32.mrf.mxu0  ;;  %6749 = vst [vmem:[%s12336_s18 + $0x60] sm:$0xff] %v6717_v45  ;;  %v6720_v58 = vadd.f32 %v12325_v39, %v6681_v52  ;;  %v6679_v8 = vadd.f32 %v6590_v49, %v5261_v24  ;;  %v13018_v24 = vld [vmem:[#allocation30_spill] sm:$0xff] }
 0xda4   : > { %v6438_v47 = vpack.c.bf16 %v6412_v25, %v6409_v13  ;;  %v5249_v51 = vadd.f32 %v11900_v54, %v3739_v26  ;;  %v13019_v49 = vld [vmem:[#allocation86_spill] sm:$0xff] }
 0xda5   : > { %v8179_v46 = vpop.f32.mrf.mxu0  ;;  %6752 = vst [vmem:[%s12336_s18 + $0x78] sm:$0xff] %v6720_v58  ;;  %v6718_v40 = vadd.f32 %v12325_v39, %v6679_v8  ;;  %v13020_v25 = vld [vmem:[#allocation46_spill] sm:$0xff] }
 0xda6   : > { %v6668_v3 = vadd.f32 %v8179_v46, %v11892_v60  ;;  %8202 = vmatmul.mubr.msk.bf16.gmra.mxu1 %vm1153_vm0, %v6437_v38  ;;  %v3803_v58 = vadd.f32 %v13020_v25, %v13019_v49 }
 0xda7   : > { %v6539_v59 = vpop.f32.mrf.mxu0  ;;  %6750 = vst [vmem:[%s12336_s18 + $0x68] sm:$0xff] %v6718_v40  ;;  %8205 = vmatprep.mubr.msk.bf16.mxu1 %vm1153_vm0, %v6438_v47  ;;  %v13021_v47 = vld [vmem:[#allocation55_spill] sm:$0xff] }
 0xda8   : > { %v6707_v20 = vadd.f32 %v12325_v39, %v6668_v3  ;;  %v6666_v27 = vadd.f32 %v6539_v59, %v11895_v5  ;;  %v13022_v40 = vld [vmem:[#allocation39_spill] sm:$0xff] }
 0xda9   : > { %v8180_v56 = vpop.f32.mrf.mxu0  ;;  %v5265_v3 = vadd.f32 %v13022_v40, %v3803_v58  ;;  %v13038_v58 = vld [vmem:[#allocation74_spill] sm:$0xff] }
 0xdaa   : > { %6739 = vst [vmem:[%s12336_s18 + $0x10] sm:$0xff] %v6707_v20  ;;  %v6705_v60 = vadd.f32 %v12325_v39, %v6666_v27  ;;  %v6669_v9 = vadd.f32 %v8180_v56, %v11898_v12 }
 0xdab   : > { %v6542_v22 = vpop.f32.mrf.mxu0 }
 0xdac   : > { %6737 = vst [vmem:[%s12336_s18] sm:$0xff] %v6705_v60  ;;  %v6708_v29 = vadd.f32 %v12325_v39, %v6669_v9  ;;  %v6667_v0 = vadd.f32 %v6542_v22, %v5249_v51  ;;  %v13024_v60 = vld [vmem:[#allocation33_spill] sm:$0xff] }
 0xdad   : > { %v8183_v5 = vpop.f32.mrf.mxu0 }
 0xdae   : > { %6740 = vst [vmem:[%s12336_s18 + $0x18] sm:$0xff] %v6708_v29  ;;  %v6706_v32 = vadd.f32 %v12325_v39, %v6667_v0  ;;  %v6672_v54 = vadd.f32 %v8183_v5, %v11903_v1  ;;  %8206 = vmatmul.mubr.msk.bf16.gmra.mxu1 %vm1153_vm0, %v6439_v53  ;;  %v13025_v29 = vld [vmem:[#allocation93_spill] sm:$0xff]  ;;  %v13026_v0 = vld [vmem:[#allocation67_spill] sm:$0xff] }
 0xdaf   : > { %v6555_v6 = vpop.f32.mrf.mxu0  ;;  %v3819_v53 = vadd.f32 %v13026_v0, %v13025_v29 }
 0xdb0   : > { %6738 = vst [vmem:[%s12336_s18 + $0x8] sm:$0xff] %v6706_v32  ;;  %v6711_v12 = vadd.f32 %v12325_v39, %v6672_v54  ;;  %v6670_v50 = vadd.f32 %v6555_v6, %v13009_v11  ;;  %v13027_v32 = vld [vmem:[#allocation45_spill] sm:$0xff] }
 0xdb1   : > { %v8184_v33 = vpop.f32.mrf.mxu0 }
 0xdb2   : > { %6743 = vst [vmem:[%s12336_s18 + $0x30] sm:$0xff] %v6711_v12  ;;  %v6709_v19 = vadd.f32 %v12325_v39, %v6670_v50  ;;  %v6673_v34 = vadd.f32 %v8184_v33, %v13010_v36  ;;  %v13028_v12 = vld [vmem:[#allocation47_spill] sm:$0xff]  ;;  %v13029_v33 = vld [vmem:[#allocation44_spill] sm:$0xff] }
 0xdb3   : > { %v6558_v15 = vpop.f32.mrf.mxu0  ;;  %v5269_v11 = vadd.f32 %v13028_v12, %v3819_v53 }
 0xdb4   : > { %6741 = vst [vmem:[%s12336_s18 + $0x20] sm:$0xff] %v6709_v19  ;;  %v6712_v1 = vadd.f32 %v12325_v39, %v6673_v34  ;;  %v6671_v4 = vadd.f32 %v6558_v15, %v13011_v41 }
 0xdb5   : > { %v8187_v7 = vpop.f32.mrf.mxu0 }
 0xdb6   : > { %6744 = vst [vmem:[%s12336_s18 + $0x38] sm:$0xff] %v6712_v1  ;;  %v6710_v30 = vadd.f32 %v12325_v39, %v6671_v4  ;;  %v6676_v44 = vadd.f32 %v8187_v7, %v13012_v37  ;;  %v13030_v4 = vld [vmem:[#allocation40_spill] sm:$0xff]  ;;  %v13031_v37 = vld [vmem:[#allocation97_spill] sm:$0xff] }
 0xdb7   : > { %v6571_v62 = vpop.f32.mrf.mxu0 }
 0xdb8   : > { %6742 = vst [vmem:[%s12336_s18 + $0x28] sm:$0xff] %v6710_v30  ;;  %v6715_v10 = vadd.f32 %v12325_v39, %v6676_v44  ;;  %v6674_v48 = vadd.f32 %v6571_v62, %v13015_v31  ;;  %v13032_v44 = vld [vmem:[#allocation68_spill] sm:$0xff]  ;;  %v13034_v31 = vld [vmem:[#allocation49_spill] sm:$0xff] }
 0xdb9   : > { %v8188_v28 = vpop.f32.mrf.mxu0  ;;  %v3835_v62 = vadd.f32 %v13032_v44, %v13031_v37 }
 0xdba   : > { %6747 = vst [vmem:[%s12336_s18 + $0x50] sm:$0xff] %v6715_v10  ;;  %v6713_v13 = vadd.f32 %v12325_v39, %v6674_v48  ;;  %v6677_v63 = vadd.f32 %v8188_v28, %v13017_v23 }
 0xdbb   : > { %v6574_v16 = vpop.f32.mrf.mxu0  ;;  %v5273_v48 = vadd.f32 %v13034_v31, %v3835_v62 }
 0xdbc   : > { %6745 = vst [vmem:[%s12336_s18 + $0x40] sm:$0xff] %v6713_v13  ;;  %v6716_v18 = vadd.f32 %v12325_v39, %v6677_v63  ;;  %v6675_v35 = vadd.f32 %v6574_v16, %v5257_v55 }
 0xdbe   : > { %6748 = vst [vmem:[%s12336_s18 + $0x58] sm:$0xff] %v6716_v18  ;;  %v6714_v61 = vadd.f32 %v12325_v39, %v6675_v35  ;;  %v13036_v35 = vld [vmem:[#allocation50_spill] sm:$0xff] }
 0xdc0   : > { %6746 = vst [vmem:[%s12336_s18 + $0x48] sm:$0xff] %v6714_v61 }
 0xe56   : > { %v8195_v2 = vpop.f32.mrf.mxu1 }
 0xe57   : > { %v6684_v45 = vadd.f32 %v8195_v2, %v13018_v24 }
 0xe58   : > { %v6603_v52 = vpop.f32.mrf.mxu1 }
 0xe59   : > { %v6723_v8 = vadd.f32 %v12325_v39, %v6684_v45  ;;  %v6682_v38 = vadd.f32 %v6603_v52, %v13021_v47  ;;  %v13037_v45 = vld [vmem:[#allocation53_spill] sm:$0xff] }
 0xe5a   : > { %v8196_v46 = vpop.f32.mrf.mxu1 }
 0xe5b   : > { %6755 = vst [vmem:[%s12336_s18 + $0x90] sm:$0xff] %v6723_v8  ;;  %v6721_v59 = vadd.f32 %v12325_v39, %v6682_v38  ;;  %v6685_v42 = vadd.f32 %v8196_v46, %v13023_v17  ;;  %v13039_v46 = vld [vmem:[#allocation58_spill] sm:$0xff] }
 0xe5c   : > { %v6606_v26 = vpop.f32.mrf.mxu1 }
 0xe5d   : > { %6753 = vst [vmem:[%s12336_s18 + $0x80] sm:$0xff] %v6721_v59  ;;  %v6724_v20 = vadd.f32 %v12325_v39, %v6685_v42  ;;  %v6683_v27 = vadd.f32 %v6606_v26, %v5265_v3 }
 0xe5e   : > { %v8199_v56 = vpop.f32.mrf.mxu1 }
 0xe5f   : > { %6756 = vst [vmem:[%s12336_s18 + $0x98] sm:$0xff] %v6724_v20  ;;  %v6722_v51 = vadd.f32 %v12325_v39, %v6683_v27  ;;  %v6688_v9 = vadd.f32 %v8199_v56, %v13024_v60 }
 0xe60   : > { %v6619_v22 = vpop.f32.mrf.mxu1 }
 0xe61   : > { %6754 = vst [vmem:[%s12336_s18 + $0x88] sm:$0xff] %v6722_v51  ;;  %v6727_v5 = vadd.f32 %v12325_v39, %v6688_v9  ;;  %v6686_v54 = vadd.f32 %v6619_v22, %v13027_v32 }
 0xe62   : > { %v8200_v6 = vpop.f32.mrf.mxu1 }
 0xe63   : > { %6759 = vst [vmem:[%s12336_s18 + $0xb0] sm:$0xff] %v6727_v5  ;;  %v6725_v50 = vadd.f32 %v12325_v39, %v6686_v54  ;;  %v6689_v19 = vadd.f32 %v8200_v6, %v13029_v33 }
 0xe64   : > { %v6622_v36 = vpop.f32.mrf.mxu1 }
 0xe65   : > { %6757 = vst [vmem:[%s12336_s18 + $0xa0] sm:$0xff] %v6725_v50  ;;  %v6728_v34 = vadd.f32 %v12325_v39, %v6689_v19  ;;  %v6687_v15 = vadd.f32 %v6622_v36, %v5269_v11 }
 0xe66   : > { %v8203_v1 = vpop.f32.mrf.mxu1 }
 0xe67   : > { %6760 = vst [vmem:[%s12336_s18 + $0xb8] sm:$0xff] %v6728_v34  ;;  %v6726_v41 = vadd.f32 %v12325_v39, %v6687_v15  ;;  %v6692_v7 = vadd.f32 %v8203_v1, %v13030_v4 }
 0xe68   : > { %v6635_v30 = vpop.f32.mrf.mxu1 }
 0xe69   : > { %6758 = vst [vmem:[%s12336_s18 + $0xa8] sm:$0xff] %v6726_v41  ;;  %v6731_v21 = vadd.f32 %v12325_v39, %v6692_v7  ;;  %v6690_v14 = vadd.f32 %v6635_v30, %v13033_v43 }
 0xe6a   : > { %v8204_v10 = vpop.f32.mrf.mxu1 }
 0xe6b   : > { %6763 = vst [vmem:[%s12336_s18 + $0xd0] sm:$0xff] %v6731_v21  ;;  %v6729_v28 = vadd.f32 %v12325_v39, %v6690_v14  ;;  %v6693_v55 = vadd.f32 %v8204_v10, %v13035_v57 }
 0xe6c   : > { %v6638_v13 = vpop.f32.mrf.mxu1 }
 0xe6d   : > { %6761 = vst [vmem:[%s12336_s18 + $0xc0] sm:$0xff] %v6729_v28  ;;  %v6732_v23 = vadd.f32 %v12325_v39, %v6693_v55  ;;  %v6691_v63 = vadd.f32 %v6638_v13, %v5273_v48 }
 0xe6e   : > { %v8207_v16 = vpop.f32.mrf.mxu1 }
 0xe6f   : > { %6764 = vst [vmem:[%s12336_s18 + $0xd8] sm:$0xff] %v6732_v23  ;;  %v6730_v18 = vadd.f32 %v12325_v39, %v6691_v63  ;;  %v6696_v61 = vadd.f32 %v8207_v16, %v13036_v35 }
 0xe70   : > { %v6651_v2 = vpop.f32.mrf.mxu1 }
 0xe71   : > { %6762 = vst [vmem:[%s12336_s18 + $0xc8] sm:$0xff] %v6730_v18  ;;  %v6735_v24 = vadd.f32 %v12325_v39, %v6696_v61  ;;  %v6694_v52 = vadd.f32 %v6651_v2, %v13037_v45 }
 0xe72   : > { %v8208_v49 = vpop.f32.mrf.mxu1 }
 0xe73   : > { %6767 = vst [vmem:[%s12336_s18 + $0xf0] sm:$0xff] %v6735_v24  ;;  %v6733_v25 = vadd.f32 %v12325_v39, %v6694_v52  ;;  %v6697_v8 = vadd.f32 %v8208_v49, %v13038_v58 }
 0xe74   : > { %v6654_v47 = vpop.f32.mrf.mxu1 }
 0xe75   : > { %6765 = vst [vmem:[%s12336_s18 + $0xe0] sm:$0xff] %v6733_v25  ;;  %v6736_v38 = vadd.f32 %v12325_v39, %v6697_v8  ;;  %v6695_v40 = vadd.f32 %v6654_v47, %v13039_v46 }
 0xe77   : > { %6768 = vst [vmem:[%s12336_s18 + $0xf8] sm:$0xff] %v6736_v38  ;;  %v6734_v3 = vadd.f32 %v12325_v39, %v6695_v40 }
 0xe79   : > { %6766 = vst [vmem:[%s12336_s18 + $0xe8] sm:$0xff] %v6734_v3 }
 0xe7a   : > { %9053 = shalt.err (!%p9050_p9)
}
 0xe7b   : > { %s9054_s12 = scalar_lea.hbm %s12445_s26, 4096  ;;  %s9058_s17 = scalar_lea.hbm %s12499_s6, 8192 }
 0xe7c   : > { %p9055_p7 = scmp.ne.s32.totalorder %s12445_s26, %s9054_s12  ;;  %p9059_p2 = scmp.lt.s32.totalorder %s12445_s26, %s12499_s6 }
 0xe7d   : > { %p9060_p11 = scmp.lt.s32.totalorder %s9058_s17, %s9054_s12 }
 0xe7e   : > { %p9056_p4 = pnand %p9055_p7, %p13040_p0 }
 0xe7f   : > { %p9061_p13 = por %p9060_p11, %p9059_p2 }
 0xe80   : > { %p9057_p8 = pneg %p9056_p4 }
 0xe82   : > { %p9062_p12 = pnand %p9061_p13, %p9057_p8 }
 0xe84   : > { %9065 = shalt.err (!%p9062_p12)
}
 0xe85   : > { %s9129_s10 = smov 128   ;;  %s9130_s19 = smov 8  }
 0xe86   : > { %8291 = dma.vmem_to_hbm [thread:$0]  (%p13040_p0), %s12447_s20, 4096, %s12445_s26, %s6770_s25, %s9129_s10, %s9129_s10, %s9130_s19  }
 0xe87 PF: > { %s6799_s27 = sand.u32 1, %s9100_s21   ;;  %p13041_p5 = scmp.ne.s32.totalorder %s12627_s28, 0 }
 0xe88   : > { %p13042_p10 = scmp.ge.s32.totalorder %s9112_s24, 2  ;;  %s6800_s29 = scalar_lea.sflag [#allocation4], %s6799_s27 }
 0xe8a   : > { %p8308_p1 = pnand %p13042_p10, %p13041_p5 }
 0xe8c   : > { %p8309_p3 = pneg %p8308_p1 }
 0xe8e   : > { %9095 = dma.done.wait (%p8309_p3), %s6800_s29, 4096  }
 0xe8f   : > { %9097 = vsyncadd (%p8309_p3), %s6800_s29, 4294963200  ;;  %p21_p6 = scmp.ge.s32.totalorder %s9249_s13, 4   ;;  %s13043_s21 = smov %s9104_s22 }
 0xe90   : > { %s13044_s22 = smov %s9108_s23  ;;  %s13045_s23 = smov %s9259_s16 }
 0xe91   : > { %s13046_s24 = smov %s9249_s13  ;;  %23 = sbr.rel (!%p21_p6) target bundleno = 7 (0x7), region = 104 }
 0xe96   :  { %6805 = vsyncpa [#allocation3], 1 }
 0xe97   :  { %6807 = vsyncpa [#allocation3 + $0x1], 1 }
 0xe98   :  { %6808 = vsyncpa [#allocation6], 1 }
 0xe99   :  { %6809 = vsyncpa [#allocation9], 1 }
 0xe9a   :  { %6810 = vsyncpa [#allocation4], 1 }
 0xe9b   :  { %6812 = vsyncpa [#allocation4 + $0x1], 1 }

</bundles_post_ra>
